<compile_context>
chip_gen: v7x
topology: tpu7x:2x2x1
jax: 0.10.0
libtpu: 0.0.40
codegen_flags: <defaults>
</compile_context>

<pallas_src>
import math
import numpy as np
import jax
import jax.numpy as jnp
from jax.experimental import pallas as pl
from jax.experimental.pallas import tpu as pltpu

W_DIM = 32
IMG_RESOLUTION = 16
IMG_CHANNELS = 3
CHANNEL_BASE = 256
CHANNEL_MAX = 64
BLOCK_RESOLUTIONS = [4, 8, 16]
CHANNELS = {r: min(CHANNEL_BASE // r, CHANNEL_MAX) for r in BLOCK_RESOLUTIONS}  # {4:64, 8:32, 16:16}
GEOM_FEATURE_RESOLUTIONS = [4]
GEOM_FEATURE_CHANNELS = [8]
NUM_WS = 6  # b4: 1 conv, b8: 2 convs, b16: 2 convs + 1 torgb

_SQRT2 = math.sqrt(2.0)

# zero-padding rows for the in-kernel 3x3 tap gather: >= W+1 and a multiple of 8
PAD4, PAD8, PAD16 = 8, 16, 24


# ---------------------------------------------------------------------------
# One-time (host, init-time) parameter preparation
# ---------------------------------------------------------------------------
def _phase_weights(weight_np):
    """Exact sub-pixel decomposition of conv_transpose2d(w.T, stride=2, pad=0) followed by
    upfirdn2d(f=[1,3,3,1]/8, pad=1, gain=4).  Returns (4, Cout, Cin, 3, 3) phase kernels;
    phase p = ph*2 + pw places outputs at y[:, 2i+ph, 2j+pw]."""
    f1 = np.array([1.0, 3.0, 3.0, 1.0], np.float64) / 8.0
    f2d = np.outer(f1, f1) * 4.0          # gain = up**2; filter symmetric -> flip is a no-op
    cout, cin = weight_np.shape[:2]
    g = np.zeros((cout, cin, 6, 6), np.float64)
    for dh in range(-2, 4):
        for dw in range(-2, 4):
            acc = np.zeros((cout, cin), np.float64)
            for th in range(4):
                for tw in range(4):
                    kh, kw = dh + th - 1, dw + tw - 1
                    if 0 <= kh < 3 and 0 <= kw < 3:
                        acc += f2d[th, tw] * weight_np[:, :, kh, kw].astype(np.float64)
            g[:, :, dh + 2, dw + 2] = acc
    k = np.zeros((4, cout, cin, 3, 3), np.float64)
    for ph in range(2):
        for pw in range(2):
            for a in range(3):
                for b in range(3):
                    k[ph * 2 + pw, :, :, a, b] = g[:, :, ph - 2 * (a - 1) + 2, pw - 2 * (b - 1) + 2]
    return k.astype(np.float32)


def _phase_scatter_t(h_in):
    """0/1 matrices (4, (2h)^2, h^2): scat[p] @ y_phase_p places sub-pixel phase
    p = ph*2 + pw onto the interleaved (2h, 2w) grid at rows 2i+ph, cols 2j+pw."""
    w_in = h_in
    w_out = 2 * w_in
    s_in = h_in * w_in
    p_mat = np.zeros((4, 4 * s_in, s_in), np.float32)
    for ph in range(2):
        for pw in range(2):
            p = ph * 2 + pw
            for i in range(h_in):
                for j in range(w_in):
                    p_mat[p, (2 * i + ph) * w_out + (2 * j + pw), i * w_in + j] = 1.0
    return p_mat


def prepare_params(params):
    """Repack raw parameters (once, at init) into the layouts the fused kernel consumes:
    pre-scaled affines, tap-major transposed conv weights, squared-weight sums for
    in-kernel demodulation, pre-scaled const noise columns, composite sub-pixel phase
    kernels + phase-scatter matrices for the up=2 convs, and 0/1 channel-concat
    embeddings for the geometry injection."""
    def affine(lp, cin):
        a = np.asarray(lp["affine_w"], np.float64) / np.sqrt(W_DIM)        # (Cin, w_dim)
        b = np.asarray(lp["affine_b"], np.float64).reshape(cin, 1)
        return jnp.asarray(a, jnp.float32), jnp.asarray(b, jnp.float32)

    def synth(lp, up, res_out):
        w = np.asarray(lp["weight"], np.float64)                            # (Cout, Cin, 3, 3)
        cout, cin = w.shape[:2]
        a, ab = affine(lp, cin)
        out = dict(
            a=a, ab=ab,
            wsq=jnp.asarray(np.sum(w * w, axis=(2, 3)).T, jnp.float32),     # (Cin, Cout)
            bias=jnp.asarray(np.asarray(lp["bias"]).reshape(1, cout), jnp.float32),
            noise=jnp.asarray(np.asarray(lp["noise_const"]).reshape(-1, 1)
                              * np.asarray(lp["noise_strength"]), jnp.float32),  # (res^2, 1)
        )
        if up == 1:
            wt = np.transpose(w, (2, 3, 1, 0)).reshape(9, cin, cout)        # [a*3+b, ci, co]
        else:
            kph = _phase_weights(w)                                          # (4, Cout, Cin, 3, 3)
            wt = np.transpose(kph, (3, 4, 2, 0, 1)).reshape(9, cin, 4 * cout)
            out["scat"] = jnp.asarray(_phase_scatter_t(res_out // 2), jnp.float32)
        out["w"] = jnp.asarray(wt, jnp.float32)
        return out

    def torgb(lp):
        w = np.asarray(lp["weight"])                                         # (3, Cin, 1, 1)
        cin = w.shape[1]
        a, ab = affine(lp, cin)
        return dict(a=a, ab=ab,
                    w=jnp.asarray(w[:, :, 0, 0].T, jnp.float32),             # (Cin, 3)
                    bias=jnp.asarray(np.asarray(lp["bias"]).reshape(1, -1), jnp.float32))

    c4, g4 = CHANNELS[4], GEOM_FEATURE_CHANNELS[0]
    e_x = np.zeros((c4, c4 + g4), np.float32)
    e_x[np.arange(c4), np.arange(c4)] = 1.0
    e_g = np.zeros((g4, c4 + g4), np.float32)
    e_g[np.arange(g4), c4 + np.arange(g4)] = 1.0
    const = np.transpose(np.asarray(params["b4"]["const"]), (1, 2, 0)).reshape(16, c4)

    return {
        "const4": jnp.asarray(const, jnp.float32),        # (16, 64)  (spatial, channel)
        "e_x": jnp.asarray(e_x),                          # (64, 72)  concat embedding
        "e_g": jnp.asarray(e_g),                          # (8, 72)
        "c1_b4": synth(params["b4"]["conv1"], 1, 4),
        "c0_b8": synth(params["b8"]["conv0"], 2, 8),
        "c1_b8": synth(params["b8"]["conv1"], 1, 8),
        "c0_b16": synth(params["b16"]["conv0"], 2, 16),
        "c1_b16": synth(params["b16"]["conv1"], 1, 16),
        "rgb": torgb(params["b16"]["torgb"]),
    }


# ---------------------------------------------------------------------------
# In-kernel building blocks (traced inside the fused kernel body)
# ---------------------------------------------------------------------------
def _affine_style(a_ref, ab_ref, w_row):
    """styles column (Cin,1) = (affine_w / sqrt(w_dim)) @ w + bias (lane reduce)."""
    return jnp.sum(a_ref[...] * w_row, axis=1, keepdims=True) + ab_ref[...]


def _demod_row(wsq_t_ref, s_col):
    """demod row (1,Cout) = rsqrt(sum_ci Wsq[co,ci] * s[ci]^2 + 1e-8) (sublane reduce)."""
    return jax.lax.rsqrt(
        jnp.sum(wsq_t_ref[...] * (s_col * s_col), axis=0, keepdims=True) + 1e-8)


def _padded(x, pad_ref, pad, s):
    """Zero-pad x (S, C) by `pad` rows on both ends inside a VMEM scratch (aligned stores)."""
    pad_ref[...] = jnp.zeros(pad_ref.shape, jnp.float32)
    pad_ref[pad:pad + s, :] = x
    return pad_ref[...]


def _col_masks(s, w):
    """Column-validity masks (S,1) for dw=-1 / dw=+1 taps (W is a power of two)."""
    pos = jax.lax.broadcasted_iota(jnp.int32, (s, 1), 0)
    col = jnp.bitwise_and(pos, w - 1)                     # spatial column index  i % W
    return (jnp.where(col >= 1, 1.0, 0.0),                # left neighbour exists
            jnp.where(col <= w - 2, 1.0, 0.0))            # right neighbour exists


def _tap(xp, pad, s, w, a, b, m_left, m_right):
    """Tap (a,b) of the zero-padded 3x3 window in flat (S, C) layout.  Row-wrap reads are
    killed by the column mask; out-of-image rows land in the zero pad."""
    d = (a - 1) * w + (b - 1)
    t = xp[pad + d:pad + d + s, :]
    if b == 0:
        t = t * m_left
    elif b == 2:
        t = t * m_right
    return t


def _lrelu(y):
    return jnp.where(y >= 0.0, y, 0.2 * y) * _SQRT2        # bias_act('lrelu') * sqrt(2)


def _mod_conv3x3(x, pad_ref, pad, h, w, wt_ref, s_col, d_row, noise_ref, bias_ref):
    """Modulated + demodulated 3x3 conv (up=1) + const noise + bias + lrelu*sqrt(2).
    x: (H*W, Cin); wt_ref: (9, Cin, Cout) tap-major transposed weights."""
    s = h * w
    xp = _padded(x, pad_ref, pad, s)
    m_l, m_r = _col_masks(s, w)
    acc = None
    for a in range(3):
        for b in range(3):
            t = _tap(xp, pad, s, w, a, b, m_l, m_r)
            wf = wt_ref[a * 3 + b] * s_col * d_row          # fold modulation + demod
            y = jnp.dot(t, wf, preferred_element_type=jnp.float32)
            acc = y if acc is None else acc + y
    return _lrelu(acc + noise_ref[...] + bias_ref[...])


def _mod_conv3x3_up2(x, pad_ref, pad, h, w, wt_ref, s_col, d_row, scat_ref, cout,
                     noise_ref, bias_ref):
    """Modulated conv with up=2 (exactly conv_transpose2d(stride=2) + [1,3,3,1] FIR),
    written as 4 sub-pixel-phase 3x3 convs at the input resolution followed by 0/1
    phase-scatter matmuls that interleave phases to (2H, 2W).  Then demod, const
    noise, bias, lrelu*sqrt(2).
    x: (H*W, Cin); wt_ref: (9, Cin, 4*Cout); scat_ref: (4, 4*H*W, H*W)."""
    s = h * w
    xp = _padded(x, pad_ref, pad, s)
    m_l, m_r = _col_masks(s, w)
    acc = None
    for a in range(3):
        for b in range(3):
            t = _tap(xp, pad, s, w, a, b, m_l, m_r)
            wm = wt_ref[a * 3 + b] * s_col                  # modulation only
            y = jnp.dot(t, wm, preferred_element_type=jnp.float32)   # (S, 4*Cout)
            acc = y if acc is None else acc + y
    out = None
    for p in range(4):
        yp = jnp.dot(scat_ref[p], acc[:, p * cout:(p + 1) * cout],
                     preferred_element_type=jnp.float32)    # (4*S, Cout)
        out = yp if out is None else out + yp
    return _lrelu(out * d_row + noise_ref[...] + bias_ref[...])


def _const_index_map(ndim):
    return lambda i: (0,) * ndim


# ---------------------------------------------------------------------------
# SynthesisNetwork.forward — one fused pallas_call
# ---------------------------------------------------------------------------
def synthesis_forward(prepped, ws, geom_feature):
    """ws: (N, num_ws, w_dim); geom_feature: [ (N, 8, 4, 4) ].  Returns (N, 3, 16, 16)."""
    ws = ws.astype(jnp.float32)
    n = ws.shape[0]
    c4, g4 = CHANNELS[4], GEOM_FEATURE_CHANNELS[0]
    geom = jnp.transpose(geom_feature[0].astype(jnp.float32), (0, 2, 3, 1)).reshape(n, 16, g4)

    flat, treedef = jax.tree_util.tree_flatten(prepped)
    n_flat = len(flat)

    def kernel(*refs):
        ws_ref, geom_ref = refs[0], refs[1]
        param_refs = refs[2:2 + n_flat]
        o_ref = refs[2 + n_flat]
        pad4a, pad4b, pad8, pad16 = refs[3 + n_flat:7 + n_flat]
        prm = jax.tree_util.tree_unflatten(treedef, param_refs)

        wsv = ws_ref[0]                                     # (num_ws, w_dim)
        gv = geom_ref[0]                                    # (16, 8)

        # ---- b4: learned const input, conv1 (64 -> 64, res 4) ----
        lp = prm["c1_b4"]
        s = _affine_style(lp["a"], lp["ab"], wsv[0:1, :])
        d = _demod_row(lp["wsq"], s)
        x = _mod_conv3x3(prm["const4"][...], pad4a, PAD4, 4, 4, lp["w"], s, d,
                         lp["noise"], lp["bias"])           # (16, 64)

        # ---- geometry injection at res 4: channel concat via 0/1 embedding matmuls ----
        x = (jnp.dot(x, prm["e_x"][...], preferred_element_type=jnp.float32) +
             jnp.dot(gv, prm["e_g"][...], preferred_element_type=jnp.float32))   # (16, 72)

        # ---- b8.conv0 (72 -> 32, up=2, out res 8) ----
        lp = prm["c0_b8"]
        s = _affine_style(lp["a"], lp["ab"], wsv[1:2, :])
        d = _demod_row(lp["wsq"], s)
        x = _mod_conv3x3_up2(x, pad4b, PAD4, 4, 4, lp["w"], s, d, lp["scat"],
                             CHANNELS[8], lp["noise"], lp["bias"])                # (64, 32)

        # ---- b8.conv1 (32 -> 32, res 8) ----
        lp = prm["c1_b8"]
        s = _affine_style(lp["a"], lp["ab"], wsv[2:3, :])
        d = _demod_row(lp["wsq"], s)
        x = _mod_conv3x3(x, pad8, PAD8, 8, 8, lp["w"], s, d, lp["noise"], lp["bias"])  # (64, 32)

        # ---- b16.conv0 (32 -> 16, up=2, out res 16) ----
        lp = prm["c0_b16"]
        s = _affine_style(lp["a"], lp["ab"], wsv[3:4, :])
        d = _demod_row(lp["wsq"], s)
        x = _mod_conv3x3_up2(x, pad8, PAD8, 8, 8, lp["w"], s, d, lp["scat"],
                             CHANNELS[16], lp["noise"], lp["bias"])               # (256, 16)

        # ---- b16.conv1 (16 -> 16, res 16) ----
        lp = prm["c1_b16"]
        s = _affine_style(lp["a"], lp["ab"], wsv[4:5, :])
        d = _demod_row(lp["wsq"], s)
        x = _mod_conv3x3(x, pad16, PAD16, 16, 16, lp["w"], s, d,
                         lp["noise"], lp["bias"])                                 # (256, 16)

        # ---- ToRGB: modulated 1x1 conv (no demod), bias, linear ----
        lp = prm["rgb"]
        s = _affine_style(lp["a"], lp["ab"], wsv[5:6, :]) * (1.0 / math.sqrt(CHANNELS[16]))
        img = jnp.dot(x, lp["w"][...] * s,
                      preferred_element_type=jnp.float32) + lp["bias"][...]       # (256, 3)
        o_ref[0] = img

    in_specs = [
        pl.BlockSpec((1, NUM_WS, W_DIM), lambda i: (i, 0, 0)),
        pl.BlockSpec((1, 16, g4), lambda i: (i, 0, 0)),
    ]
    for arr in flat:
        in_specs.append(pl.BlockSpec(arr.shape, _const_index_map(arr.ndim)))

    s_out = IMG_RESOLUTION * IMG_RESOLUTION
    out = pl.pallas_call(
        kernel,
        out_shape=jax.ShapeDtypeStruct((n, s_out, IMG_CHANNELS), jnp.float32),
        grid=(n,),
        in_specs=in_specs,
        out_specs=pl.BlockSpec((1, s_out, IMG_CHANNELS), lambda i: (i, 0, 0)),
        scratch_shapes=[
            pltpu.VMEM((2 * PAD4 + 16, c4), jnp.float32),            # b4.conv1 padded input
            pltpu.VMEM((2 * PAD4 + 16, c4 + g4), jnp.float32),       # b8.conv0 padded input
            pltpu.VMEM((2 * PAD8 + 64, CHANNELS[8]), jnp.float32),   # res-8 padded inputs
            pltpu.VMEM((2 * PAD16 + 256, CHANNELS[16]), jnp.float32),
        ],
        compiler_params=pltpu.CompilerParams(dimension_semantics=("parallel",)),
    )(ws, geom, *flat)

    return jnp.transpose(out, (0, 2, 1)).reshape(n, IMG_CHANNELS, IMG_RESOLUTION, IMG_RESOLUTION)


# ---------------------------------------------------------------------------
# Deterministic parameters (matching the module __init__ distributions)
# ---------------------------------------------------------------------------
def init_params(key):
    keys = iter(jax.random.split(key, 32))

    def randn(shape):
        return jax.random.normal(next(keys), shape, jnp.float32)

    def synth_layer(in_ch, out_ch, res):
        return dict(
            affine_w=randn((in_ch, W_DIM)),                 # FullyConnectedLayer weight ~ randn
            affine_b=jnp.ones((in_ch,), jnp.float32),       # bias_init = 1
            weight=randn((out_ch, in_ch, 3, 3)),
            bias=jnp.zeros((out_ch,), jnp.float32),
            noise_strength=jnp.zeros((), jnp.float32),
            noise_const=randn((res, res)),
        )

    def torgb(in_ch):
        return dict(
            affine_w=randn((in_ch, W_DIM)),
            affine_b=jnp.ones((in_ch,), jnp.float32),
            weight=randn((IMG_CHANNELS, in_ch, 1, 1)),
            bias=jnp.zeros((IMG_CHANNELS,), jnp.float32),
        )

    return {
        "b4": dict(const=randn((CHANNELS[4], 4, 4)),
                   conv1=synth_layer(CHANNELS[4], CHANNELS[4], 4)),
        "b8": dict(conv0=synth_layer(CHANNELS[4] + GEOM_FEATURE_CHANNELS[0], CHANNELS[8], 8),
                   conv1=synth_layer(CHANNELS[8], CHANNELS[8], 8)),
        "b16": dict(conv0=synth_layer(CHANNELS[8], CHANNELS[16], 16),
                    conv1=synth_layer(CHANNELS[16], CHANNELS[16], 16),
                    torgb=torgb(CHANNELS[16])),
    }


# TODO(synk): return_debug_data / return_features / blended_features / noise_buffers
# overrides, positional-encoding injection, the 'skip'/'resnet' block architectures and
# the MappingNetwork (Generator pre-synthesis stage) are not exercised in this config.

if __name__ == "__main__":
    key = jax.random.PRNGKey(0)
    k_param, k_ws, k_geo = jax.random.split(key, 3)
    params = init_params(k_param)
    prepped = prepare_params(params)   # one-time repack (incl. phase kernels) -> jittable forward

    batch = 2
    ws = jax.random.normal(k_ws, (batch, NUM_WS, W_DIM), jnp.float32)
    geom_feature = [jax.random.normal(k_geo, (batch, GEOM_FEATURE_CHANNELS[0], 4, 4), jnp.float32)]

    forward = jax.jit(synthesis_forward)
    img = jax.block_until_ready(forward(prepped, ws, geom_feature))

    assert img.shape == (batch, IMG_CHANNELS, IMG_RESOLUTION, IMG_RESOLUTION)
    assert img.dtype == jnp.float32
    assert bool(jnp.all(jnp.isfinite(img)))
    print("KERNEL_OK")
</pallas_src>

<mosaic_0001>
module attributes {stable_mosaic.version = 11 : i64} {
  func.func @kernel(%arg0: i32, %arg1: memref<1x6x32xf32, #tpu.memory_space<vmem>>, %arg2: memref<1x16x8xf32, #tpu.memory_space<vmem>>, %arg3: memref<32x32xf32, #tpu.memory_space<vmem>>, %arg4: memref<32x1xf32, #tpu.memory_space<vmem>>, %arg5: memref<1x16xf32, #tpu.memory_space<vmem>>, %arg6: memref<256x1xf32, #tpu.memory_space<vmem>>, %arg7: memref<4x256x64xf32, #tpu.memory_space<vmem>>, %arg8: memref<9x32x64xf32, #tpu.memory_space<vmem>>, %arg9: memref<32x16xf32, #tpu.memory_space<vmem>>, %arg10: memref<72x32xf32, #tpu.memory_space<vmem>>, %arg11: memref<72x1xf32, #tpu.memory_space<vmem>>, %arg12: memref<1x32xf32, #tpu.memory_space<vmem>>, %arg13: memref<64x1xf32, #tpu.memory_space<vmem>>, %arg14: memref<4x64x16xf32, #tpu.memory_space<vmem>>, %arg15: memref<9x72x128xf32, #tpu.memory_space<vmem>>, %arg16: memref<72x32xf32, #tpu.memory_space<vmem>>, %arg17: memref<16x32xf32, #tpu.memory_space<vmem>>, %arg18: memref<16x1xf32, #tpu.memory_space<vmem>>, %arg19: memref<1x16xf32, #tpu.memory_space<vmem>>, %arg20: memref<256x1xf32, #tpu.memory_space<vmem>>, %arg21: memref<9x16x16xf32, #tpu.memory_space<vmem>>, %arg22: memref<16x16xf32, #tpu.memory_space<vmem>>, %arg23: memref<64x32xf32, #tpu.memory_space<vmem>>, %arg24: memref<64x1xf32, #tpu.memory_space<vmem>>, %arg25: memref<1x64xf32, #tpu.memory_space<vmem>>, %arg26: memref<16x1xf32, #tpu.memory_space<vmem>>, %arg27: memref<9x64x64xf32, #tpu.memory_space<vmem>>, %arg28: memref<64x64xf32, #tpu.memory_space<vmem>>, %arg29: memref<32x32xf32, #tpu.memory_space<vmem>>, %arg30: memref<32x1xf32, #tpu.memory_space<vmem>>, %arg31: memref<1x32xf32, #tpu.memory_space<vmem>>, %arg32: memref<64x1xf32, #tpu.memory_space<vmem>>, %arg33: memref<9x32x32xf32, #tpu.memory_space<vmem>>, %arg34: memref<32x32xf32, #tpu.memory_space<vmem>>, %arg35: memref<16x64xf32, #tpu.memory_space<vmem>>, %arg36: memref<8x72xf32, #tpu.memory_space<vmem>>, %arg37: memref<64x72xf32, #tpu.memory_space<vmem>>, %arg38: memref<16x32xf32, #tpu.memory_space<vmem>>, %arg39: memref<16x1xf32, #tpu.memory_space<vmem>>, %arg40: memref<1x3xf32, #tpu.memory_space<vmem>>, %arg41: memref<16x3xf32, #tpu.memory_space<vmem>>, %arg42: memref<1x256x3xf32, #tpu.memory_space<vmem>>, %arg43: memref<32x64xf32, #tpu.memory_space<vmem>>, %arg44: memref<32x72xf32, #tpu.memory_space<vmem>>, %arg45: memref<96x32xf32, #tpu.memory_space<vmem>>, %arg46: memref<304x16xf32, #tpu.memory_space<vmem>>) attributes {dimension_semantics = [#tpu.dimension_semantics<parallel>], iteration_bounds = array<i64: 2>, scalar_prefetch = 0 : i64, scratch_operands = 4 : i64, tpu.core_type = #tpu.core_type<tc>, window_params = [{transform_indices = @transform_0, window_bounds = array<i64: 1, 6, 32>}, {transform_indices = @transform_1, window_bounds = array<i64: 1, 16, 8>}, {pipeline_mode = #tpu.pipeline_mode<synchronous>, transform_indices = @transform_2, window_bounds = array<i64: 32, 32>}, {pipeline_mode = #tpu.pipeline_mode<synchronous>, transform_indices = @transform_3, window_bounds = array<i64: 32, 1>}, {pipeline_mode = #tpu.pipeline_mode<synchronous>, transform_indices = @transform_4, window_bounds = array<i64: 1, 16>}, {pipeline_mode = #tpu.pipeline_mode<synchronous>, transform_indices = @transform_5, window_bounds = array<i64: 256, 1>}, {pipeline_mode = #tpu.pipeline_mode<synchronous>, transform_indices = @transform_6, window_bounds = array<i64: 4, 256, 64>}, {pipeline_mode = #tpu.pipeline_mode<synchronous>, transform_indices = @transform_7, window_bounds = array<i64: 9, 32, 64>}, {pipeline_mode = #tpu.pipeline_mode<synchronous>, transform_indices = @transform_8, window_bounds = array<i64: 32, 16>}, {pipeline_mode = #tpu.pipeline_mode<synchronous>, transform_indices = @transform_9, window_bounds = array<i64: 72, 32>}, {pipeline_mode = #tpu.pipeline_mode<synchronous>, transform_indices = @transform_10, window_bounds = array<i64: 72, 1>}, {pipeline_mode = #tpu.pipeline_mode<synchronous>, transform_indices = @transform_11, window_bounds = array<i64: 1, 32>}, {pipeline_mode = #tpu.pipeline_mode<synchronous>, transform_indices = @transform_12, window_bounds = array<i64: 64, 1>}, {pipeline_mode = #tpu.pipeline_mode<synchronous>, transform_indices = @transform_13, window_bounds = array<i64: 4, 64, 16>}, {pipeline_mode = #tpu.pipeline_mode<synchronous>, transform_indices = @transform_14, window_bounds = array<i64: 9, 72, 128>}, {pipeline_mode = #tpu.pipeline_mode<synchronous>, transform_indices = @transform_15, window_bounds = array<i64: 72, 32>}, {pipeline_mode = #tpu.pipeline_mode<synchronous>, transform_indices = @transform_16, window_bounds = array<i64: 16, 32>}, {pipeline_mode = #tpu.pipeline_mode<synchronous>, transform_indices = @transform_17, window_bounds = array<i64: 16, 1>}, {pipeline_mode = #tpu.pipeline_mode<synchronous>, transform_indices = @transform_18, window_bounds = array<i64: 1, 16>}, {pipeline_mode = #tpu.pipeline_mode<synchronous>, transform_indices = @transform_19, window_bounds = array<i64: 256, 1>}, {pipeline_mode = #tpu.pipeline_mode<synchronous>, transform_indices = @transform_20, window_bounds = array<i64: 9, 16, 16>}, {pipeline_mode = #tpu.pipeline_mode<synchronous>, transform_indices = @transform_21, window_bounds = array<i64: 16, 16>}, {pipeline_mode = #tpu.pipeline_mode<synchronous>, transform_indices = @transform_22, window_bounds = array<i64: 64, 32>}, {pipeline_mode = #tpu.pipeline_mode<synchronous>, transform_indices = @transform_23, window_bounds = array<i64: 64, 1>}, {pipeline_mode = #tpu.pipeline_mode<synchronous>, transform_indices = @transform_24, window_bounds = array<i64: 1, 64>}, {pipeline_mode = #tpu.pipeline_mode<synchronous>, transform_indices = @transform_25, window_bounds = array<i64: 16, 1>}, {pipeline_mode = #tpu.pipeline_mode<synchronous>, transform_indices = @transform_26, window_bounds = array<i64: 9, 64, 64>}, {pipeline_mode = #tpu.pipeline_mode<synchronous>, transform_indices = @transform_27, window_bounds = array<i64: 64, 64>}, {pipeline_mode = #tpu.pipeline_mode<synchronous>, transform_indices = @transform_28, window_bounds = array<i64: 32, 32>}, {pipeline_mode = #tpu.pipeline_mode<synchronous>, transform_indices = @transform_29, window_bounds = array<i64: 32, 1>}, {pipeline_mode = #tpu.pipeline_mode<synchronous>, transform_indices = @transform_30, window_bounds = array<i64: 1, 32>}, {pipeline_mode = #tpu.pipeline_mode<synchronous>, transform_indices = @transform_31, window_bounds = array<i64: 64, 1>}, {pipeline_mode = #tpu.pipeline_mode<synchronous>, transform_indices = @transform_32, window_bounds = array<i64: 9, 32, 32>}, {pipeline_mode = #tpu.pipeline_mode<synchronous>, transform_indices = @transform_33, window_bounds = array<i64: 32, 32>}, {pipeline_mode = #tpu.pipeline_mode<synchronous>, transform_indices = @transform_34, window_bounds = array<i64: 16, 64>}, {pipeline_mode = #tpu.pipeline_mode<synchronous>, transform_indices = @transform_35, window_bounds = array<i64: 8, 72>}, {pipeline_mode = #tpu.pipeline_mode<synchronous>, transform_indices = @transform_36, window_bounds = array<i64: 64, 72>}, {pipeline_mode = #tpu.pipeline_mode<synchronous>, transform_indices = @transform_37, window_bounds = array<i64: 16, 32>}, {pipeline_mode = #tpu.pipeline_mode<synchronous>, transform_indices = @transform_38, window_bounds = array<i64: 16, 1>}, {pipeline_mode = #tpu.pipeline_mode<synchronous>, transform_indices = @transform_39, window_bounds = array<i64: 1, 3>}, {pipeline_mode = #tpu.pipeline_mode<synchronous>, transform_indices = @transform_40, window_bounds = array<i64: 16, 3>}, {transform_indices = @transform_41, window_bounds = array<i64: 1, 256, 3>}]} {
    %c0 = arith.constant 0 : index
    %c0_0 = arith.constant 0 : index
    %c0_1 = arith.constant 0 : index
    %0 = vector.load %arg1[%c0, %c0_0, %c0_1] : memref<1x6x32xf32, #tpu.memory_space<vmem>>, vector<1x6x32xf32>
    %1 = vector.shape_cast %0 : vector<1x6x32xf32> to vector<6x32xf32>
    %c0_2 = arith.constant 0 : index
    %c0_3 = arith.constant 0 : index
    %c0_4 = arith.constant 0 : index
    %2 = vector.load %arg2[%c0_2, %c0_3, %c0_4] : memref<1x16x8xf32, #tpu.memory_space<vmem>>, vector<1x16x8xf32>
    %3 = vector.shape_cast %2 : vector<1x16x8xf32> to vector<16x8xf32>
    %4 = vector.extract_strided_slice %1 {offsets = [0, 0], sizes = [1, 32], strides = [1, 1]} : vector<6x32xf32> to vector<1x32xf32>
    %c0_5 = arith.constant 0 : index
    %c0_6 = arith.constant 0 : index
    %5 = vector.load %arg23[%c0_5, %c0_6] : memref<64x32xf32, #tpu.memory_space<vmem>>, vector<64x32xf32>
    %6 = vector.broadcast %4 : vector<1x32xf32> to vector<64x32xf32>
    %7 = arith.mulf %5, %6 : vector<64x32xf32>
    %cst = arith.constant dense<0.000000e+00> : vector<64xf32>
    %8 = vector.multi_reduction <add>, %7, %cst [1] : vector<64x32xf32> to vector<64xf32>
    %9 = vector.shape_cast %8 : vector<64xf32> to vector<64x1xf32>
    %c0_7 = arith.constant 0 : index
    %c0_8 = arith.constant 0 : index
    %10 = vector.load %arg24[%c0_7, %c0_8] : memref<64x1xf32, #tpu.memory_space<vmem>>, vector<64x1xf32>
    %11 = arith.addf %9, %10 : vector<64x1xf32>
    %c0_9 = arith.constant 0 : index
    %c0_10 = arith.constant 0 : index
    %12 = vector.load %arg28[%c0_9, %c0_10] : memref<64x64xf32, #tpu.memory_space<vmem>>, vector<64x64xf32>
    %13 = arith.mulf %11, %11 : vector<64x1xf32>
    %14 = vector.broadcast %13 : vector<64x1xf32> to vector<64x64xf32>
    %15 = arith.mulf %12, %14 : vector<64x64xf32>
    %cst_11 = arith.constant dense<0.000000e+00> : vector<64xf32>
    %16 = vector.multi_reduction <add>, %15, %cst_11 [0] : vector<64x64xf32> to vector<64xf32>
    %17 = vector.shape_cast %16 : vector<64xf32> to vector<1x64xf32>
    %cst_12 = arith.constant 9.99999993E-9 : f32
    %18 = vector.broadcast %cst_12 : f32 to vector<1x64xf32>
    %19 = arith.addf %17, %18 : vector<1x64xf32>
    %20 = math.rsqrt %19 : vector<1x64xf32>
    %c0_13 = arith.constant 0 : index
    %c0_14 = arith.constant 0 : index
    %21 = vector.load %arg35[%c0_13, %c0_14] : memref<16x64xf32, #tpu.memory_space<vmem>>, vector<16x64xf32>
    %cst_15 = arith.constant 0.000000e+00 : f32
    %22 = vector.broadcast %cst_15 : f32 to vector<32x64xf32>
    %c0_16 = arith.constant 0 : index
    %c0_17 = arith.constant 0 : index
    %23 = vector.load %arg43[%c0_16, %c0_17] : memref<32x64xf32, #tpu.memory_space<vmem>>, vector<32x64xf32>
    tpu.vector_store %arg43[%c0_16, %c0_17], %22 {strides = array<i32>} : memref<32x64xf32, #tpu.memory_space<vmem>>, vector<32x64xf32>,
    %c8 = arith.constant 8 : index
    %c0_18 = arith.constant 0 : index
    %24 = vector.load %arg43[%c8, %c0_18] : memref<32x64xf32, #tpu.memory_space<vmem>>, vector<16x64xf32>
    tpu.vector_store %arg43[%c8, %c0_18], %21 {strides = array<i32>} : memref<32x64xf32, #tpu.memory_space<vmem>>, vector<16x64xf32>,
    %c0_19 = arith.constant 0 : index
    %c0_20 = arith.constant 0 : index
    %25 = vector.load %arg43[%c0_19, %c0_20] : memref<32x64xf32, #tpu.memory_space<vmem>>, vector<32x64xf32>
    %26 = tpu.iota {dimensions = array<i32: 0>} : vector<16x1xi32>
    %c3_i32 = arith.constant 3 : i32
    %27 = vector.broadcast %c3_i32 : i32 to vector<16x1xi32>
    %28 = arith.andi %26, %27 : vector<16x1xi32>
    %c1_i32 = arith.constant 1 : i32
    %29 = vector.broadcast %c1_i32 : i32 to vector<16x1xi32>
    %30 = arith.cmpi sge, %28, %29 : vector<16x1xi32>
    %cst_21 = arith.constant 1.000000e+00 : f32
    %cst_22 = arith.constant 0.000000e+00 : f32
    %31 = vector.broadcast %cst_21 : f32 to vector<16x1xf32>
    %32 = vector.broadcast %cst_22 : f32 to vector<16x1xf32>
    %33 = arith.select %30, %31, %32 : vector<16x1xi1>, vector<16x1xf32>
    %c2_i32 = arith.constant 2 : i32
    %34 = vector.broadcast %c2_i32 : i32 to vector<16x1xi32>
    %35 = arith.cmpi sle, %28, %34 : vector<16x1xi32>
    %cst_23 = arith.constant 1.000000e+00 : f32
    %cst_24 = arith.constant 0.000000e+00 : f32
    %36 = vector.broadcast %cst_23 : f32 to vector<16x1xf32>
    %37 = vector.broadcast %cst_24 : f32 to vector<16x1xf32>
    %38 = arith.select %35, %36, %37 : vector<16x1xi1>, vector<16x1xf32>
    %39 = vector.extract_strided_slice %25 {offsets = [3, 0], sizes = [16, 64], strides = [1, 1]} : vector<32x64xf32> to vector<16x64xf32>
    %40 = vector.broadcast %33 : vector<16x1xf32> to vector<16x64xf32>
    %41 = arith.mulf %39, %40 : vector<16x64xf32>
    %c0_25 = arith.constant 0 : index
    %c0_26 = arith.constant 0 : index
    %c0_27 = arith.constant 0 : index
    %42 = vector.load %arg27[%c0_25, %c0_26, %c0_27] : memref<9x64x64xf32, #tpu.memory_space<vmem>>, vector<1x64x64xf32>
    %43 = vector.shape_cast %42 : vector<1x64x64xf32> to vector<64x64xf32>
    %44 = vector.broadcast %11 : vector<64x1xf32> to vector<64x64xf32>
    %45 = arith.mulf %43, %44 : vector<64x64xf32>
    %46 = vector.broadcast %20 : vector<1x64xf32> to vector<64x64xf32>
    %47 = arith.mulf %45, %46 : vector<64x64xf32>
    %cst_28 = arith.constant dense<0.000000e+00> : vector<16x64xf32>
    %48 = tpu.matmul %41, %47, %cst_28 {dimension_numbers = #tpu.dot_dimension_numbers<[1], [0], [0], [1], [0, 0, 1, 1], [], []>} : vector<16x64xf32>, vector<64x64xf32>, vector<16x64xf32> -> vector<16x64xf32>
    %49 = vector.extract_strided_slice %25 {offsets = [4, 0], sizes = [16, 64], strides = [1, 1]} : vector<32x64xf32> to vector<16x64xf32>
    %c1 = arith.constant 1 : index
    %c0_29 = arith.constant 0 : index
    %c0_30 = arith.constant 0 : index
    %50 = vector.load %arg27[%c1, %c0_29, %c0_30] : memref<9x64x64xf32, #tpu.memory_space<vmem>>, vector<1x64x64xf32>
    %51 = vector.shape_cast %50 : vector<1x64x64xf32> to vector<64x64xf32>
    %52 = vector.broadcast %11 : vector<64x1xf32> to vector<64x64xf32>
    %53 = arith.mulf %51, %52 : vector<64x64xf32>
    %54 = vector.broadcast %20 : vector<1x64xf32> to vector<64x64xf32>
    %55 = arith.mulf %53, %54 : vector<64x64xf32>
    %cst_31 = arith.constant dense<0.000000e+00> : vector<16x64xf32>
    %56 = tpu.matmul %49, %55, %cst_31 {dimension_numbers = #tpu.dot_dimension_numbers<[1], [0], [0], [1], [0, 0, 1, 1], [], []>} : vector<16x64xf32>, vector<64x64xf32>, vector<16x64xf32> -> vector<16x64xf32>
    %57 = arith.addf %48, %56 : vector<16x64xf32>
    %58 = vector.extract_strided_slice %25 {offsets = [5, 0], sizes = [16, 64], strides = [1, 1]} : vector<32x64xf32> to vector<16x64xf32>
    %59 = vector.broadcast %38 : vector<16x1xf32> to vector<16x64xf32>
    %60 = arith.mulf %58, %59 : vector<16x64xf32>
    %c2 = arith.constant 2 : index
    %c0_32 = arith.constant 0 : index
    %c0_33 = arith.constant 0 : index
    %61 = vector.load %arg27[%c2, %c0_32, %c0_33] : memref<9x64x64xf32, #tpu.memory_space<vmem>>, vector<1x64x64xf32>
    %62 = vector.shape_cast %61 : vector<1x64x64xf32> to vector<64x64xf32>
    %63 = vector.broadcast %11 : vector<64x1xf32> to vector<64x64xf32>
    %64 = arith.mulf %62, %63 : vector<64x64xf32>
    %65 = vector.broadcast %20 : vector<1x64xf32> to vector<64x64xf32>
    %66 = arith.mulf %64, %65 : vector<64x64xf32>
    %cst_34 = arith.constant dense<0.000000e+00> : vector<16x64xf32>
    %67 = tpu.matmul %60, %66, %cst_34 {dimension_numbers = #tpu.dot_dimension_numbers<[1], [0], [0], [1], [0, 0, 1, 1], [], []>} : vector<16x64xf32>, vector<64x64xf32>, vector<16x64xf32> -> vector<16x64xf32>
    %68 = arith.addf %57, %67 : vector<16x64xf32>
    %69 = vector.extract_strided_slice %25 {offsets = [7, 0], sizes = [16, 64], strides = [1, 1]} : vector<32x64xf32> to vector<16x64xf32>
    %70 = vector.broadcast %33 : vector<16x1xf32> to vector<16x64xf32>
    %71 = arith.mulf %69, %70 : vector<16x64xf32>
    %c3 = arith.constant 3 : index
    %c0_35 = arith.constant 0 : index
    %c0_36 = arith.constant 0 : index
    %72 = vector.load %arg27[%c3, %c0_35, %c0_36] : memref<9x64x64xf32, #tpu.memory_space<vmem>>, vector<1x64x64xf32>
    %73 = vector.shape_cast %72 : vector<1x64x64xf32> to vector<64x64xf32>
    %74 = vector.broadcast %11 : vector<64x1xf32> to vector<64x64xf32>
    %75 = arith.mulf %73, %74 : vector<64x64xf32>
    %76 = vector.broadcast %20 : vector<1x64xf32> to vector<64x64xf32>
    %77 = arith.mulf %75, %76 : vector<64x64xf32>
    %cst_37 = arith.constant dense<0.000000e+00> : vector<16x64xf32>
    %78 = tpu.matmul %71, %77, %cst_37 {dimension_numbers = #tpu.dot_dimension_numbers<[1], [0], [0], [1], [0, 0, 1, 1], [], []>} : vector<16x64xf32>, vector<64x64xf32>, vector<16x64xf32> -> vector<16x64xf32>
    %79 = arith.addf %68, %78 : vector<16x64xf32>
    %80 = vector.extract_strided_slice %25 {offsets = [8, 0], sizes = [16, 64], strides = [1, 1]} : vector<32x64xf32> to vector<16x64xf32>
    %c4 = arith.constant 4 : index
    %c0_38 = arith.constant 0 : index
    %c0_39 = arith.constant 0 : index
    %81 = vector.load %arg27[%c4, %c0_38, %c0_39] : memref<9x64x64xf32, #tpu.memory_space<vmem>>, vector<1x64x64xf32>
    %82 = vector.shape_cast %81 : vector<1x64x64xf32> to vector<64x64xf32>
    %83 = vector.broadcast %11 : vector<64x1xf32> to vector<64x64xf32>
    %84 = arith.mulf %82, %83 : vector<64x64xf32>
    %85 = vector.broadcast %20 : vector<1x64xf32> to vector<64x64xf32>
    %86 = arith.mulf %84, %85 : vector<64x64xf32>
    %cst_40 = arith.constant dense<0.000000e+00> : vector<16x64xf32>
    %87 = tpu.matmul %80, %86, %cst_40 {dimension_numbers = #tpu.dot_dimension_numbers<[1], [0], [0], [1], [0, 0, 1, 1], [], []>} : vector<16x64xf32>, vector<64x64xf32>, vector<16x64xf32> -> vector<16x64xf32>
    %88 = arith.addf %79, %87 : vector<16x64xf32>
    %89 = vector.extract_strided_slice %25 {offsets = [9, 0], sizes = [16, 64], strides = [1, 1]} : vector<32x64xf32> to vector<16x64xf32>
    %90 = vector.broadcast %38 : vector<16x1xf32> to vector<16x64xf32>
    %91 = arith.mulf %89, %90 : vector<16x64xf32>
    %c5 = arith.constant 5 : index
    %c0_41 = arith.constant 0 : index
    %c0_42 = arith.constant 0 : index
    %92 = vector.load %arg27[%c5, %c0_41, %c0_42] : memref<9x64x64xf32, #tpu.memory_space<vmem>>, vector<1x64x64xf32>
    %93 = vector.shape_cast %92 : vector<1x64x64xf32> to vector<64x64xf32>
    %94 = vector.broadcast %11 : vector<64x1xf32> to vector<64x64xf32>
    %95 = arith.mulf %93, %94 : vector<64x64xf32>
    %96 = vector.broadcast %20 : vector<1x64xf32> to vector<64x64xf32>
    %97 = arith.mulf %95, %96 : vector<64x64xf32>
    %cst_43 = arith.constant dense<0.000000e+00> : vector<16x64xf32>
    %98 = tpu.matmul %91, %97, %cst_43 {dimension_numbers = #tpu.dot_dimension_numbers<[1], [0], [0], [1], [0, 0, 1, 1], [], []>} : vector<16x64xf32>, vector<64x64xf32>, vector<16x64xf32> -> vector<16x64xf32>
    %99 = arith.addf %88, %98 : vector<16x64xf32>
    %100 = vector.extract_strided_slice %25 {offsets = [11, 0], sizes = [16, 64], strides = [1, 1]} : vector<32x64xf32> to vector<16x64xf32>
    %101 = vector.broadcast %33 : vector<16x1xf32> to vector<16x64xf32>
    %102 = arith.mulf %100, %101 : vector<16x64xf32>
    %c6 = arith.constant 6 : index
    %c0_44 = arith.constant 0 : index
    %c0_45 = arith.constant 0 : index
    %103 = vector.load %arg27[%c6, %c0_44, %c0_45] : memref<9x64x64xf32, #tpu.memory_space<vmem>>, vector<1x64x64xf32>
    %104 = vector.shape_cast %103 : vector<1x64x64xf32> to vector<64x64xf32>
    %105 = vector.broadcast %11 : vector<64x1xf32> to vector<64x64xf32>
    %106 = arith.mulf %104, %105 : vector<64x64xf32>
    %107 = vector.broadcast %20 : vector<1x64xf32> to vector<64x64xf32>
    %108 = arith.mulf %106, %107 : vector<64x64xf32>
    %cst_46 = arith.constant dense<0.000000e+00> : vector<16x64xf32>
    %109 = tpu.matmul %102, %108, %cst_46 {dimension_numbers = #tpu.dot_dimension_numbers<[1], [0], [0], [1], [0, 0, 1, 1], [], []>} : vector<16x64xf32>, vector<64x64xf32>, vector<16x64xf32> -> vector<16x64xf32>
    %110 = arith.addf %99, %109 : vector<16x64xf32>
    %111 = vector.extract_strided_slice %25 {offsets = [12, 0], sizes = [16, 64], strides = [1, 1]} : vector<32x64xf32> to vector<16x64xf32>
    %c7 = arith.constant 7 : index
    %c0_47 = arith.constant 0 : index
    %c0_48 = arith.constant 0 : index
    %112 = vector.load %arg27[%c7, %c0_47, %c0_48] : memref<9x64x64xf32, #tpu.memory_space<vmem>>, vector<1x64x64xf32>
    %113 = vector.shape_cast %112 : vector<1x64x64xf32> to vector<64x64xf32>
    %114 = vector.broadcast %11 : vector<64x1xf32> to vector<64x64xf32>
    %115 = arith.mulf %113, %114 : vector<64x64xf32>
    %116 = vector.broadcast %20 : vector<1x64xf32> to vector<64x64xf32>
    %117 = arith.mulf %115, %116 : vector<64x64xf32>
    %cst_49 = arith.constant dense<0.000000e+00> : vector<16x64xf32>
    %118 = tpu.matmul %111, %117, %cst_49 {dimension_numbers = #tpu.dot_dimension_numbers<[1], [0], [0], [1], [0, 0, 1, 1], [], []>} : vector<16x64xf32>, vector<64x64xf32>, vector<16x64xf32> -> vector<16x64xf32>
    %119 = arith.addf %110, %118 : vector<16x64xf32>
    %120 = vector.extract_strided_slice %25 {offsets = [13, 0], sizes = [16, 64], strides = [1, 1]} : vector<32x64xf32> to vector<16x64xf32>
    %121 = vector.broadcast %38 : vector<16x1xf32> to vector<16x64xf32>
    %122 = arith.mulf %120, %121 : vector<16x64xf32>
    %c8_50 = arith.constant 8 : index
    %c0_51 = arith.constant 0 : index
    %c0_52 = arith.constant 0 : index
    %123 = vector.load %arg27[%c8_50, %c0_51, %c0_52] : memref<9x64x64xf32, #tpu.memory_space<vmem>>, vector<1x64x64xf32>
    %124 = vector.shape_cast %123 : vector<1x64x64xf32> to vector<64x64xf32>
    %125 = vector.broadcast %11 : vector<64x1xf32> to vector<64x64xf32>
    %126 = arith.mulf %124, %125 : vector<64x64xf32>
    %127 = vector.broadcast %20 : vector<1x64xf32> to vector<64x64xf32>
    %128 = arith.mulf %126, %127 : vector<64x64xf32>
    %cst_53 = arith.constant dense<0.000000e+00> : vector<16x64xf32>
    %129 = tpu.matmul %122, %128, %cst_53 {dimension_numbers = #tpu.dot_dimension_numbers<[1], [0], [0], [1], [0, 0, 1, 1], [], []>} : vector<16x64xf32>, vector<64x64xf32>, vector<16x64xf32> -> vector<16x64xf32>
    %130 = arith.addf %119, %129 : vector<16x64xf32>
    %c0_54 = arith.constant 0 : index
    %c0_55 = arith.constant 0 : index
    %131 = vector.load %arg26[%c0_54, %c0_55] : memref<16x1xf32, #tpu.memory_space<vmem>>, vector<16x1xf32>
    %132 = vector.broadcast %131 : vector<16x1xf32> to vector<16x64xf32>
    %133 = arith.addf %130, %132 : vector<16x64xf32>
    %c0_56 = arith.constant 0 : index
    %c0_57 = arith.constant 0 : index
    %134 = vector.load %arg25[%c0_56, %c0_57] : memref<1x64xf32, #tpu.memory_space<vmem>>, vector<1x64xf32>
    %135 = vector.broadcast %134 : vector<1x64xf32> to vector<16x64xf32>
    %136 = arith.addf %133, %135 : vector<16x64xf32>
    %cst_58 = arith.constant 0.000000e+00 : f32
    %137 = vector.broadcast %cst_58 : f32 to vector<16x64xf32>
    %138 = arith.cmpf oge, %136, %137 : vector<16x64xf32>
    %cst_59 = arith.constant 2.000000e-01 : f32
    %139 = vector.broadcast %cst_59 : f32 to vector<16x64xf32>
    %140 = arith.mulf %139, %136 : vector<16x64xf32>
    %141 = arith.select %138, %136, %140 : vector<16x64xi1>, vector<16x64xf32>
    %cst_60 = arith.constant 1.41421354 : f32
    %142 = vector.broadcast %cst_60 : f32 to vector<16x64xf32>
    %143 = arith.mulf %141, %142 : vector<16x64xf32>
    %c0_61 = arith.constant 0 : index
    %c0_62 = arith.constant 0 : index
    %144 = vector.load %arg37[%c0_61, %c0_62] : memref<64x72xf32, #tpu.memory_space<vmem>>, vector<64x72xf32>
    %cst_63 = arith.constant dense<0.000000e+00> : vector<16x72xf32>
    %145 = tpu.matmul %143, %144, %cst_63 {dimension_numbers = #tpu.dot_dimension_numbers<[1], [0], [0], [1], [0, 0, 1, 1], [], []>} : vector<16x64xf32>, vector<64x72xf32>, vector<16x72xf32> -> vector<16x72xf32>
    %c0_64 = arith.constant 0 : index
    %c0_65 = arith.constant 0 : index
    %146 = vector.load %arg36[%c0_64, %c0_65] : memref<8x72xf32, #tpu.memory_space<vmem>>, vector<8x72xf32>
    %cst_66 = arith.constant dense<0.000000e+00> : vector<16x72xf32>
    %147 = tpu.matmul %3, %146, %cst_66 {dimension_numbers = #tpu.dot_dimension_numbers<[1], [0], [0], [1], [0, 0, 1, 1], [], []>} : vector<16x8xf32>, vector<8x72xf32>, vector<16x72xf32> -> vector<16x72xf32>
    %148 = arith.addf %145, %147 : vector<16x72xf32>
    %149 = vector.extract_strided_slice %1 {offsets = [1, 0], sizes = [1, 32], strides = [1, 1]} : vector<6x32xf32> to vector<1x32xf32>
    %c0_67 = arith.constant 0 : index
    %c0_68 = arith.constant 0 : index
    %150 = vector.load %arg10[%c0_67, %c0_68] : memref<72x32xf32, #tpu.memory_space<vmem>>, vector<72x32xf32>
    %151 = vector.broadcast %149 : vector<1x32xf32> to vector<72x32xf32>
    %152 = arith.mulf %150, %151 : vector<72x32xf32>
    %cst_69 = arith.constant dense<0.000000e+00> : vector<72xf32>
    %153 = vector.multi_reduction <add>, %152, %cst_69 [1] : vector<72x32xf32> to vector<72xf32>
    %154 = vector.shape_cast %153 : vector<72xf32> to vector<72x1xf32>
    %c0_70 = arith.constant 0 : index
    %c0_71 = arith.constant 0 : index
    %155 = vector.load %arg11[%c0_70, %c0_71] : memref<72x1xf32, #tpu.memory_space<vmem>>, vector<72x1xf32>
    %156 = arith.addf %154, %155 : vector<72x1xf32>
    %c0_72 = arith.constant 0 : index
    %c0_73 = arith.constant 0 : index
    %157 = vector.load %arg16[%c0_72, %c0_73] : memref<72x32xf32, #tpu.memory_space<vmem>>, vector<72x32xf32>
    %158 = arith.mulf %156, %156 : vector<72x1xf32>
    %159 = vector.broadcast %158 : vector<72x1xf32> to vector<72x32xf32>
    %160 = arith.mulf %157, %159 : vector<72x32xf32>
    %cst_74 = arith.constant dense<0.000000e+00> : vector<32xf32>
    %161 = vector.multi_reduction <add>, %160, %cst_74 [0] : vector<72x32xf32> to vector<32xf32>
    %162 = vector.shape_cast %161 : vector<32xf32> to vector<1x32xf32>
    %cst_75 = arith.constant 9.99999993E-9 : f32
    %163 = vector.broadcast %cst_75 : f32 to vector<1x32xf32>
    %164 = arith.addf %162, %163 : vector<1x32xf32>
    %165 = math.rsqrt %164 : vector<1x32xf32>
    %cst_76 = arith.constant 0.000000e+00 : f32
    %166 = vector.broadcast %cst_76 : f32 to vector<32x72xf32>
    %c0_77 = arith.constant 0 : index
    %c0_78 = arith.constant 0 : index
    %167 = vector.load %arg44[%c0_77, %c0_78] : memref<32x72xf32, #tpu.memory_space<vmem>>, vector<32x72xf32>
    tpu.vector_store %arg44[%c0_77, %c0_78], %166 {strides = array<i32>} : memref<32x72xf32, #tpu.memory_space<vmem>>, vector<32x72xf32>,
    %c8_79 = arith.constant 8 : index
    %c0_80 = arith.constant 0 : index
    %168 = vector.load %arg44[%c8_79, %c0_80] : memref<32x72xf32, #tpu.memory_space<vmem>>, vector<16x72xf32>
    tpu.vector_store %arg44[%c8_79, %c0_80], %148 {strides = array<i32>} : memref<32x72xf32, #tpu.memory_space<vmem>>, vector<16x72xf32>,
    %c0_81 = arith.constant 0 : index
    %c0_82 = arith.constant 0 : index
    %169 = vector.load %arg44[%c0_81, %c0_82] : memref<32x72xf32, #tpu.memory_space<vmem>>, vector<32x72xf32>
    %170 = tpu.iota {dimensions = array<i32: 0>} : vector<16x1xi32>
    %c3_i32_83 = arith.constant 3 : i32
    %171 = vector.broadcast %c3_i32_83 : i32 to vector<16x1xi32>
    %172 = arith.andi %170, %171 : vector<16x1xi32>
    %c1_i32_84 = arith.constant 1 : i32
    %173 = vector.broadcast %c1_i32_84 : i32 to vector<16x1xi32>
    %174 = arith.cmpi sge, %172, %173 : vector<16x1xi32>
    %cst_85 = arith.constant 1.000000e+00 : f32
    %cst_86 = arith.constant 0.000000e+00 : f32
    %175 = vector.broadcast %cst_85 : f32 to vector<16x1xf32>
    %176 = vector.broadcast %cst_86 : f32 to vector<16x1xf32>
    %177 = arith.select %174, %175, %176 : vector<16x1xi1>, vector<16x1xf32>
    %c2_i32_87 = arith.constant 2 : i32
    %178 = vector.broadcast %c2_i32_87 : i32 to vector<16x1xi32>
    %179 = arith.cmpi sle, %172, %178 : vector<16x1xi32>
    %cst_88 = arith.constant 1.000000e+00 : f32
    %cst_89 = arith.constant 0.000000e+00 : f32
    %180 = vector.broadcast %cst_88 : f32 to vector<16x1xf32>
    %181 = vector.broadcast %cst_89 : f32 to vector<16x1xf32>
    %182 = arith.select %179, %180, %181 : vector<16x1xi1>, vector<16x1xf32>
    %183 = vector.extract_strided_slice %169 {offsets = [3, 0], sizes = [16, 72], strides = [1, 1]} : vector<32x72xf32> to vector<16x72xf32>
    %184 = vector.broadcast %177 : vector<16x1xf32> to vector<16x72xf32>
    %185 = arith.mulf %183, %184 : vector<16x72xf32>
    %c0_90 = arith.constant 0 : index
    %c0_91 = arith.constant 0 : index
    %c0_92 = arith.constant 0 : index
    %186 = vector.load %arg15[%c0_90, %c0_91, %c0_92] : memref<9x72x128xf32, #tpu.memory_space<vmem>>, vector<1x72x128xf32>
    %187 = vector.shape_cast %186 : vector<1x72x128xf32> to vector<72x128xf32>
    %188 = vector.broadcast %156 : vector<72x1xf32> to vector<72x128xf32>
    %189 = arith.mulf %187, %188 : vector<72x128xf32>
    %cst_93 = arith.constant dense<0.000000e+00> : vector<16x128xf32>
    %190 = tpu.matmul %185, %189, %cst_93 {dimension_numbers = #tpu.dot_dimension_numbers<[1], [0], [0], [1], [0, 0, 1, 1], [], []>} : vector<16x72xf32>, vector<72x128xf32>, vector<16x128xf32> -> vector<16x128xf32>
    %191 = vector.extract_strided_slice %169 {offsets = [4, 0], sizes = [16, 72], strides = [1, 1]} : vector<32x72xf32> to vector<16x72xf32>
    %c1_94 = arith.constant 1 : index
    %c0_95 = arith.constant 0 : index
    %c0_96 = arith.constant 0 : index
    %192 = vector.load %arg15[%c1_94, %c0_95, %c0_96] : memref<9x72x128xf32, #tpu.memory_space<vmem>>, vector<1x72x128xf32>
    %193 = vector.shape_cast %192 : vector<1x72x128xf32> to vector<72x128xf32>
    %194 = vector.broadcast %156 : vector<72x1xf32> to vector<72x128xf32>
    %195 = arith.mulf %193, %194 : vector<72x128xf32>
    %cst_97 = arith.constant dense<0.000000e+00> : vector<16x128xf32>
    %196 = tpu.matmul %191, %195, %cst_97 {dimension_numbers = #tpu.dot_dimension_numbers<[1], [0], [0], [1], [0, 0, 1, 1], [], []>} : vector<16x72xf32>, vector<72x128xf32>, vector<16x128xf32> -> vector<16x128xf32>
    %197 = arith.addf %190, %196 : vector<16x128xf32>
    %198 = vector.extract_strided_slice %169 {offsets = [5, 0], sizes = [16, 72], strides = [1, 1]} : vector<32x72xf32> to vector<16x72xf32>
    %199 = vector.broadcast %182 : vector<16x1xf32> to vector<16x72xf32>
    %200 = arith.mulf %198, %199 : vector<16x72xf32>
    %c2_98 = arith.constant 2 : index
    %c0_99 = arith.constant 0 : index
    %c0_100 = arith.constant 0 : index
    %201 = vector.load %arg15[%c2_98, %c0_99, %c0_100] : memref<9x72x128xf32, #tpu.memory_space<vmem>>, vector<1x72x128xf32>
    %202 = vector.shape_cast %201 : vector<1x72x128xf32> to vector<72x128xf32>
    %203 = vector.broadcast %156 : vector<72x1xf32> to vector<72x128xf32>
    %204 = arith.mulf %202, %203 : vector<72x128xf32>
    %cst_101 = arith.constant dense<0.000000e+00> : vector<16x128xf32>
    %205 = tpu.matmul %200, %204, %cst_101 {dimension_numbers = #tpu.dot_dimension_numbers<[1], [0], [0], [1], [0, 0, 1, 1], [], []>} : vector<16x72xf32>, vector<72x128xf32>, vector<16x128xf32> -> vector<16x128xf32>
    %206 = arith.addf %197, %205 : vector<16x128xf32>
    %207 = vector.extract_strided_slice %169 {offsets = [7, 0], sizes = [16, 72], strides = [1, 1]} : vector<32x72xf32> to vector<16x72xf32>
    %208 = vector.broadcast %177 : vector<16x1xf32> to vector<16x72xf32>
    %209 = arith.mulf %207, %208 : vector<16x72xf32>
    %c3_102 = arith.constant 3 : index
    %c0_103 = arith.constant 0 : index
    %c0_104 = arith.constant 0 : index
    %210 = vector.load %arg15[%c3_102, %c0_103, %c0_104] : memref<9x72x128xf32, #tpu.memory_space<vmem>>, vector<1x72x128xf32>
    %211 = vector.shape_cast %210 : vector<1x72x128xf32> to vector<72x128xf32>
    %212 = vector.broadcast %156 : vector<72x1xf32> to vector<72x128xf32>
    %213 = arith.mulf %211, %212 : vector<72x128xf32>
    %cst_105 = arith.constant dense<0.000000e+00> : vector<16x128xf32>
    %214 = tpu.matmul %209, %213, %cst_105 {dimension_numbers = #tpu.dot_dimension_numbers<[1], [0], [0], [1], [0, 0, 1, 1], [], []>} : vector<16x72xf32>, vector<72x128xf32>, vector<16x128xf32> -> vector<16x128xf32>
    %215 = arith.addf %206, %214 : vector<16x128xf32>
    %216 = vector.extract_strided_slice %169 {offsets = [8, 0], sizes = [16, 72], strides = [1, 1]} : vector<32x72xf32> to vector<16x72xf32>
    %c4_106 = arith.constant 4 : index
    %c0_107 = arith.constant 0 : index
    %c0_108 = arith.constant 0 : index
    %217 = vector.load %arg15[%c4_106, %c0_107, %c0_108] : memref<9x72x128xf32, #tpu.memory_space<vmem>>, vector<1x72x128xf32>
    %218 = vector.shape_cast %217 : vector<1x72x128xf32> to vector<72x128xf32>
    %219 = vector.broadcast %156 : vector<72x1xf32> to vector<72x128xf32>
    %220 = arith.mulf %218, %219 : vector<72x128xf32>
    %cst_109 = arith.constant dense<0.000000e+00> : vector<16x128xf32>
    %221 = tpu.matmul %216, %220, %cst_109 {dimension_numbers = #tpu.dot_dimension_numbers<[1], [0], [0], [1], [0, 0, 1, 1], [], []>} : vector<16x72xf32>, vector<72x128xf32>, vector<16x128xf32> -> vector<16x128xf32>
    %222 = arith.addf %215, %221 : vector<16x128xf32>
    %223 = vector.extract_strided_slice %169 {offsets = [9, 0], sizes = [16, 72], strides = [1, 1]} : vector<32x72xf32> to vector<16x72xf32>
    %224 = vector.broadcast %182 : vector<16x1xf32> to vector<16x72xf32>
    %225 = arith.mulf %223, %224 : vector<16x72xf32>
    %c5_110 = arith.constant 5 : index
    %c0_111 = arith.constant 0 : index
    %c0_112 = arith.constant 0 : index
    %226 = vector.load %arg15[%c5_110, %c0_111, %c0_112] : memref<9x72x128xf32, #tpu.memory_space<vmem>>, vector<1x72x128xf32>
    %227 = vector.shape_cast %226 : vector<1x72x128xf32> to vector<72x128xf32>
    %228 = vector.broadcast %156 : vector<72x1xf32> to vector<72x128xf32>
    %229 = arith.mulf %227, %228 : vector<72x128xf32>
    %cst_113 = arith.constant dense<0.000000e+00> : vector<16x128xf32>
    %230 = tpu.matmul %225, %229, %cst_113 {dimension_numbers = #tpu.dot_dimension_numbers<[1], [0], [0], [1], [0, 0, 1, 1], [], []>} : vector<16x72xf32>, vector<72x128xf32>, vector<16x128xf32> -> vector<16x128xf32>
    %231 = arith.addf %222, %230 : vector<16x128xf32>
    %232 = vector.extract_strided_slice %169 {offsets = [11, 0], sizes = [16, 72], strides = [1, 1]} : vector<32x72xf32> to vector<16x72xf32>
    %233 = vector.broadcast %177 : vector<16x1xf32> to vector<16x72xf32>
    %234 = arith.mulf %232, %233 : vector<16x72xf32>
    %c6_114 = arith.constant 6 : index
    %c0_115 = arith.constant 0 : index
    %c0_116 = arith.constant 0 : index
    %235 = vector.load %arg15[%c6_114, %c0_115, %c0_116] : memref<9x72x128xf32, #tpu.memory_space<vmem>>, vector<1x72x128xf32>
    %236 = vector.shape_cast %235 : vector<1x72x128xf32> to vector<72x128xf32>
    %237 = vector.broadcast %156 : vector<72x1xf32> to vector<72x128xf32>
    %238 = arith.mulf %236, %237 : vector<72x128xf32>
    %cst_117 = arith.constant dense<0.000000e+00> : vector<16x128xf32>
    %239 = tpu.matmul %234, %238, %cst_117 {dimension_numbers = #tpu.dot_dimension_numbers<[1], [0], [0], [1], [0, 0, 1, 1], [], []>} : vector<16x72xf32>, vector<72x128xf32>, vector<16x128xf32> -> vector<16x128xf32>
    %240 = arith.addf %231, %239 : vector<16x128xf32>
    %241 = vector.extract_strided_slice %169 {offsets = [12, 0], sizes = [16, 72], strides = [1, 1]} : vector<32x72xf32> to vector<16x72xf32>
    %c7_118 = arith.constant 7 : index
    %c0_119 = arith.constant 0 : index
    %c0_120 = arith.constant 0 : index
    %242 = vector.load %arg15[%c7_118, %c0_119, %c0_120] : memref<9x72x128xf32, #tpu.memory_space<vmem>>, vector<1x72x128xf32>
    %243 = vector.shape_cast %242 : vector<1x72x128xf32> to vector<72x128xf32>
    %244 = vector.broadcast %156 : vector<72x1xf32> to vector<72x128xf32>
    %245 = arith.mulf %243, %244 : vector<72x128xf32>
    %cst_121 = arith.constant dense<0.000000e+00> : vector<16x128xf32>
    %246 = tpu.matmul %241, %245, %cst_121 {dimension_numbers = #tpu.dot_dimension_numbers<[1], [0], [0], [1], [0, 0, 1, 1], [], []>} : vector<16x72xf32>, vector<72x128xf32>, vector<16x128xf32> -> vector<16x128xf32>
    %247 = arith.addf %240, %246 : vector<16x128xf32>
    %248 = vector.extract_strided_slice %169 {offsets = [13, 0], sizes = [16, 72], strides = [1, 1]} : vector<32x72xf32> to vector<16x72xf32>
    %249 = vector.broadcast %182 : vector<16x1xf32> to vector<16x72xf32>
    %250 = arith.mulf %248, %249 : vector<16x72xf32>
    %c8_122 = arith.constant 8 : index
    %c0_123 = arith.constant 0 : index
    %c0_124 = arith.constant 0 : index
    %251 = vector.load %arg15[%c8_122, %c0_123, %c0_124] : memref<9x72x128xf32, #tpu.memory_space<vmem>>, vector<1x72x128xf32>
    %252 = vector.shape_cast %251 : vector<1x72x128xf32> to vector<72x128xf32>
    %253 = vector.broadcast %156 : vector<72x1xf32> to vector<72x128xf32>
    %254 = arith.mulf %252, %253 : vector<72x128xf32>
    %cst_125 = arith.constant dense<0.000000e+00> : vector<16x128xf32>
    %255 = tpu.matmul %250, %254, %cst_125 {dimension_numbers = #tpu.dot_dimension_numbers<[1], [0], [0], [1], [0, 0, 1, 1], [], []>} : vector<16x72xf32>, vector<72x128xf32>, vector<16x128xf32> -> vector<16x128xf32>
    %256 = arith.addf %247, %255 : vector<16x128xf32>
    %c0_126 = arith.constant 0 : index
    %c0_127 = arith.constant 0 : index
    %c0_128 = arith.constant 0 : index
    %257 = vector.load %arg14[%c0_126, %c0_127, %c0_128] : memref<4x64x16xf32, #tpu.memory_space<vmem>>, vector<1x64x16xf32>
    %258 = vector.shape_cast %257 : vector<1x64x16xf32> to vector<64x16xf32>
    %259 = vector.extract_strided_slice %256 {offsets = [0, 0], sizes = [16, 32], strides = [1, 1]} : vector<16x128xf32> to vector<16x32xf32>
    %cst_129 = arith.constant dense<0.000000e+00> : vector<64x32xf32>
    %260 = tpu.matmul %258, %259, %cst_129 {dimension_numbers = #tpu.dot_dimension_numbers<[1], [0], [0], [1], [0, 0, 1, 1], [], []>} : vector<64x16xf32>, vector<16x32xf32>, vector<64x32xf32> -> vector<64x32xf32>
    %c1_130 = arith.constant 1 : index
    %c0_131 = arith.constant 0 : index
    %c0_132 = arith.constant 0 : index
    %261 = vector.load %arg14[%c1_130, %c0_131, %c0_132] : memref<4x64x16xf32, #tpu.memory_space<vmem>>, vector<1x64x16xf32>
    %262 = vector.shape_cast %261 : vector<1x64x16xf32> to vector<64x16xf32>
    %263 = vector.extract_strided_slice %256 {offsets = [0, 32], sizes = [16, 32], strides = [1, 1]} : vector<16x128xf32> to vector<16x32xf32>
    %cst_133 = arith.constant dense<0.000000e+00> : vector<64x32xf32>
    %264 = tpu.matmul %262, %263, %cst_133 {dimension_numbers = #tpu.dot_dimension_numbers<[1], [0], [0], [1], [0, 0, 1, 1], [], []>} : vector<64x16xf32>, vector<16x32xf32>, vector<64x32xf32> -> vector<64x32xf32>
    %265 = arith.addf %260, %264 : vector<64x32xf32>
    %c2_134 = arith.constant 2 : index
    %c0_135 = arith.constant 0 : index
    %c0_136 = arith.constant 0 : index
    %266 = vector.load %arg14[%c2_134, %c0_135, %c0_136] : memref<4x64x16xf32, #tpu.memory_space<vmem>>, vector<1x64x16xf32>
    %267 = vector.shape_cast %266 : vector<1x64x16xf32> to vector<64x16xf32>
    %268 = vector.extract_strided_slice %256 {offsets = [0, 64], sizes = [16, 32], strides = [1, 1]} : vector<16x128xf32> to vector<16x32xf32>
    %cst_137 = arith.constant dense<0.000000e+00> : vector<64x32xf32>
    %269 = tpu.matmul %267, %268, %cst_137 {dimension_numbers = #tpu.dot_dimension_numbers<[1], [0], [0], [1], [0, 0, 1, 1], [], []>} : vector<64x16xf32>, vector<16x32xf32>, vector<64x32xf32> -> vector<64x32xf32>
    %270 = arith.addf %265, %269 : vector<64x32xf32>
    %c3_138 = arith.constant 3 : index
    %c0_139 = arith.constant 0 : index
    %c0_140 = arith.constant 0 : index
    %271 = vector.load %arg14[%c3_138, %c0_139, %c0_140] : memref<4x64x16xf32, #tpu.memory_space<vmem>>, vector<1x64x16xf32>
    %272 = vector.shape_cast %271 : vector<1x64x16xf32> to vector<64x16xf32>
    %273 = vector.extract_strided_slice %256 {offsets = [0, 96], sizes = [16, 32], strides = [1, 1]} : vector<16x128xf32> to vector<16x32xf32>
    %cst_141 = arith.constant dense<0.000000e+00> : vector<64x32xf32>
    %274 = tpu.matmul %272, %273, %cst_141 {dimension_numbers = #tpu.dot_dimension_numbers<[1], [0], [0], [1], [0, 0, 1, 1], [], []>} : vector<64x16xf32>, vector<16x32xf32>, vector<64x32xf32> -> vector<64x32xf32>
    %275 = arith.addf %270, %274 : vector<64x32xf32>
    %276 = vector.broadcast %165 : vector<1x32xf32> to vector<64x32xf32>
    %277 = arith.mulf %275, %276 : vector<64x32xf32>
    %c0_142 = arith.constant 0 : index
    %c0_143 = arith.constant 0 : index
    %278 = vector.load %arg13[%c0_142, %c0_143] : memref<64x1xf32, #tpu.memory_space<vmem>>, vector<64x1xf32>
    %279 = vector.broadcast %278 : vector<64x1xf32> to vector<64x32xf32>
    %280 = arith.addf %277, %279 : vector<64x32xf32>
    %c0_144 = arith.constant 0 : index
    %c0_145 = arith.constant 0 : index
    %281 = vector.load %arg12[%c0_144, %c0_145] : memref<1x32xf32, #tpu.memory_space<vmem>>, vector<1x32xf32>
    %282 = vector.broadcast %281 : vector<1x32xf32> to vector<64x32xf32>
    %283 = arith.addf %280, %282 : vector<64x32xf32>
    %cst_146 = arith.constant 0.000000e+00 : f32
    %284 = vector.broadcast %cst_146 : f32 to vector<64x32xf32>
    %285 = arith.cmpf oge, %283, %284 : vector<64x32xf32>
    %cst_147 = arith.constant 2.000000e-01 : f32
    %286 = vector.broadcast %cst_147 : f32 to vector<64x32xf32>
    %287 = arith.mulf %286, %283 : vector<64x32xf32>
    %288 = arith.select %285, %283, %287 : vector<64x32xi1>, vector<64x32xf32>
    %cst_148 = arith.constant 1.41421354 : f32
    %289 = vector.broadcast %cst_148 : f32 to vector<64x32xf32>
    %290 = arith.mulf %288, %289 : vector<64x32xf32>
    %291 = vector.extract_strided_slice %1 {offsets = [2, 0], sizes = [1, 32], strides = [1, 1]} : vector<6x32xf32> to vector<1x32xf32>
    %c0_149 = arith.constant 0 : index
    %c0_150 = arith.constant 0 : index
    %292 = vector.load %arg29[%c0_149, %c0_150] : memref<32x32xf32, #tpu.memory_space<vmem>>, vector<32x32xf32>
    %293 = vector.broadcast %291 : vector<1x32xf32> to vector<32x32xf32>
    %294 = arith.mulf %292, %293 : vector<32x32xf32>
    %cst_151 = arith.constant dense<0.000000e+00> : vector<32xf32>
    %295 = vector.multi_reduction <add>, %294, %cst_151 [1] : vector<32x32xf32> to vector<32xf32>
    %296 = vector.shape_cast %295 : vector<32xf32> to vector<32x1xf32>
    %c0_152 = arith.constant 0 : index
    %c0_153 = arith.constant 0 : index
    %297 = vector.load %arg30[%c0_152, %c0_153] : memref<32x1xf32, #tpu.memory_space<vmem>>, vector<32x1xf32>
    %298 = arith.addf %296, %297 : vector<32x1xf32>
    %c0_154 = arith.constant 0 : index
    %c0_155 = arith.constant 0 : index
    %299 = vector.load %arg34[%c0_154, %c0_155] : memref<32x32xf32, #tpu.memory_space<vmem>>, vector<32x32xf32>
    %300 = arith.mulf %298, %298 : vector<32x1xf32>
    %301 = vector.broadcast %300 : vector<32x1xf32> to vector<32x32xf32>
    %302 = arith.mulf %299, %301 : vector<32x32xf32>
    %cst_156 = arith.constant dense<0.000000e+00> : vector<32xf32>
    %303 = vector.multi_reduction <add>, %302, %cst_156 [0] : vector<32x32xf32> to vector<32xf32>
    %304 = vector.shape_cast %303 : vector<32xf32> to vector<1x32xf32>
    %cst_157 = arith.constant 9.99999993E-9 : f32
    %305 = vector.broadcast %cst_157 : f32 to vector<1x32xf32>
    %306 = arith.addf %304, %305 : vector<1x32xf32>
    %307 = math.rsqrt %306 : vector<1x32xf32>
    %cst_158 = arith.constant 0.000000e+00 : f32
    %308 = vector.broadcast %cst_158 : f32 to vector<96x32xf32>
    %c0_159 = arith.constant 0 : index
    %c0_160 = arith.constant 0 : index
    %309 = vector.load %arg45[%c0_159, %c0_160] : memref<96x32xf32, #tpu.memory_space<vmem>>, vector<96x32xf32>
    tpu.vector_store %arg45[%c0_159, %c0_160], %308 {strides = array<i32>} : memref<96x32xf32, #tpu.memory_space<vmem>>, vector<96x32xf32>,
    %c16 = arith.constant 16 : index
    %c0_161 = arith.constant 0 : index
    %310 = vector.load %arg45[%c16, %c0_161] : memref<96x32xf32, #tpu.memory_space<vmem>>, vector<64x32xf32>
    tpu.vector_store %arg45[%c16, %c0_161], %290 {strides = array<i32>} : memref<96x32xf32, #tpu.memory_space<vmem>>, vector<64x32xf32>,
    %c0_162 = arith.constant 0 : index
    %c0_163 = arith.constant 0 : index
    %311 = vector.load %arg45[%c0_162, %c0_163] : memref<96x32xf32, #tpu.memory_space<vmem>>, vector<96x32xf32>
    %312 = tpu.iota {dimensions = array<i32: 0>} : vector<64x1xi32>
    %c7_i32 = arith.constant 7 : i32
    %313 = vector.broadcast %c7_i32 : i32 to vector<64x1xi32>
    %314 = arith.andi %312, %313 : vector<64x1xi32>
    %c1_i32_164 = arith.constant 1 : i32
    %315 = vector.broadcast %c1_i32_164 : i32 to vector<64x1xi32>
    %316 = arith.cmpi sge, %314, %315 : vector<64x1xi32>
    %cst_165 = arith.constant 1.000000e+00 : f32
    %cst_166 = arith.constant 0.000000e+00 : f32
    %317 = vector.broadcast %cst_165 : f32 to vector<64x1xf32>
    %318 = vector.broadcast %cst_166 : f32 to vector<64x1xf32>
    %319 = arith.select %316, %317, %318 : vector<64x1xi1>, vector<64x1xf32>
    %c6_i32 = arith.constant 6 : i32
    %320 = vector.broadcast %c6_i32 : i32 to vector<64x1xi32>
    %321 = arith.cmpi sle, %314, %320 : vector<64x1xi32>
    %cst_167 = arith.constant 1.000000e+00 : f32
    %cst_168 = arith.constant 0.000000e+00 : f32
    %322 = vector.broadcast %cst_167 : f32 to vector<64x1xf32>
    %323 = vector.broadcast %cst_168 : f32 to vector<64x1xf32>
    %324 = arith.select %321, %322, %323 : vector<64x1xi1>, vector<64x1xf32>
    %325 = vector.extract_strided_slice %311 {offsets = [7, 0], sizes = [64, 32], strides = [1, 1]} : vector<96x32xf32> to vector<64x32xf32>
    %326 = vector.broadcast %319 : vector<64x1xf32> to vector<64x32xf32>
    %327 = arith.mulf %325, %326 : vector<64x32xf32>
    %c0_169 = arith.constant 0 : index
    %c0_170 = arith.constant 0 : index
    %c0_171 = arith.constant 0 : index
    %328 = vector.load %arg33[%c0_169, %c0_170, %c0_171] : memref<9x32x32xf32, #tpu.memory_space<vmem>>, vector<1x32x32xf32>
    %329 = vector.shape_cast %328 : vector<1x32x32xf32> to vector<32x32xf32>
    %330 = vector.broadcast %298 : vector<32x1xf32> to vector<32x32xf32>
    %331 = arith.mulf %329, %330 : vector<32x32xf32>
    %332 = vector.broadcast %307 : vector<1x32xf32> to vector<32x32xf32>
    %333 = arith.mulf %331, %332 : vector<32x32xf32>
    %cst_172 = arith.constant dense<0.000000e+00> : vector<64x32xf32>
    %334 = tpu.matmul %327, %333, %cst_172 {dimension_numbers = #tpu.dot_dimension_numbers<[1], [0], [0], [1], [0, 0, 1, 1], [], []>} : vector<64x32xf32>, vector<32x32xf32>, vector<64x32xf32> -> vector<64x32xf32>
    %335 = vector.extract_strided_slice %311 {offsets = [8, 0], sizes = [64, 32], strides = [1, 1]} : vector<96x32xf32> to vector<64x32xf32>
    %c1_173 = arith.constant 1 : index
    %c0_174 = arith.constant 0 : index
    %c0_175 = arith.constant 0 : index
    %336 = vector.load %arg33[%c1_173, %c0_174, %c0_175] : memref<9x32x32xf32, #tpu.memory_space<vmem>>, vector<1x32x32xf32>
    %337 = vector.shape_cast %336 : vector<1x32x32xf32> to vector<32x32xf32>
    %338 = vector.broadcast %298 : vector<32x1xf32> to vector<32x32xf32>
    %339 = arith.mulf %337, %338 : vector<32x32xf32>
    %340 = vector.broadcast %307 : vector<1x32xf32> to vector<32x32xf32>
    %341 = arith.mulf %339, %340 : vector<32x32xf32>
    %cst_176 = arith.constant dense<0.000000e+00> : vector<64x32xf32>
    %342 = tpu.matmul %335, %341, %cst_176 {dimension_numbers = #tpu.dot_dimension_numbers<[1], [0], [0], [1], [0, 0, 1, 1], [], []>} : vector<64x32xf32>, vector<32x32xf32>, vector<64x32xf32> -> vector<64x32xf32>
    %343 = arith.addf %334, %342 : vector<64x32xf32>
    %344 = vector.extract_strided_slice %311 {offsets = [9, 0], sizes = [64, 32], strides = [1, 1]} : vector<96x32xf32> to vector<64x32xf32>
    %345 = vector.broadcast %324 : vector<64x1xf32> to vector<64x32xf32>
    %346 = arith.mulf %344, %345 : vector<64x32xf32>
    %c2_177 = arith.constant 2 : index
    %c0_178 = arith.constant 0 : index
    %c0_179 = arith.constant 0 : index
    %347 = vector.load %arg33[%c2_177, %c0_178, %c0_179] : memref<9x32x32xf32, #tpu.memory_space<vmem>>, vector<1x32x32xf32>
    %348 = vector.shape_cast %347 : vector<1x32x32xf32> to vector<32x32xf32>
    %349 = vector.broadcast %298 : vector<32x1xf32> to vector<32x32xf32>
    %350 = arith.mulf %348, %349 : vector<32x32xf32>
    %351 = vector.broadcast %307 : vector<1x32xf32> to vector<32x32xf32>
    %352 = arith.mulf %350, %351 : vector<32x32xf32>
    %cst_180 = arith.constant dense<0.000000e+00> : vector<64x32xf32>
    %353 = tpu.matmul %346, %352, %cst_180 {dimension_numbers = #tpu.dot_dimension_numbers<[1], [0], [0], [1], [0, 0, 1, 1], [], []>} : vector<64x32xf32>, vector<32x32xf32>, vector<64x32xf32> -> vector<64x32xf32>
    %354 = arith.addf %343, %353 : vector<64x32xf32>
    %355 = vector.extract_strided_slice %311 {offsets = [15, 0], sizes = [64, 32], strides = [1, 1]} : vector<96x32xf32> to vector<64x32xf32>
    %356 = vector.broadcast %319 : vector<64x1xf32> to vector<64x32xf32>
    %357 = arith.mulf %355, %356 : vector<64x32xf32>
    %c3_181 = arith.constant 3 : index
    %c0_182 = arith.constant 0 : index
    %c0_183 = arith.constant 0 : index
    %358 = vector.load %arg33[%c3_181, %c0_182, %c0_183] : memref<9x32x32xf32, #tpu.memory_space<vmem>>, vector<1x32x32xf32>
    %359 = vector.shape_cast %358 : vector<1x32x32xf32> to vector<32x32xf32>
    %360 = vector.broadcast %298 : vector<32x1xf32> to vector<32x32xf32>
    %361 = arith.mulf %359, %360 : vector<32x32xf32>
    %362 = vector.broadcast %307 : vector<1x32xf32> to vector<32x32xf32>
    %363 = arith.mulf %361, %362 : vector<32x32xf32>
    %cst_184 = arith.constant dense<0.000000e+00> : vector<64x32xf32>
    %364 = tpu.matmul %357, %363, %cst_184 {dimension_numbers = #tpu.dot_dimension_numbers<[1], [0], [0], [1], [0, 0, 1, 1], [], []>} : vector<64x32xf32>, vector<32x32xf32>, vector<64x32xf32> -> vector<64x32xf32>
    %365 = arith.addf %354, %364 : vector<64x32xf32>
    %366 = vector.extract_strided_slice %311 {offsets = [16, 0], sizes = [64, 32], strides = [1, 1]} : vector<96x32xf32> to vector<64x32xf32>
    %c4_185 = arith.constant 4 : index
    %c0_186 = arith.constant 0 : index
    %c0_187 = arith.constant 0 : index
    %367 = vector.load %arg33[%c4_185, %c0_186, %c0_187] : memref<9x32x32xf32, #tpu.memory_space<vmem>>, vector<1x32x32xf32>
    %368 = vector.shape_cast %367 : vector<1x32x32xf32> to vector<32x32xf32>
    %369 = vector.broadcast %298 : vector<32x1xf32> to vector<32x32xf32>
    %370 = arith.mulf %368, %369 : vector<32x32xf32>
    %371 = vector.broadcast %307 : vector<1x32xf32> to vector<32x32xf32>
    %372 = arith.mulf %370, %371 : vector<32x32xf32>
    %cst_188 = arith.constant dense<0.000000e+00> : vector<64x32xf32>
    %373 = tpu.matmul %366, %372, %cst_188 {dimension_numbers = #tpu.dot_dimension_numbers<[1], [0], [0], [1], [0, 0, 1, 1], [], []>} : vector<64x32xf32>, vector<32x32xf32>, vector<64x32xf32> -> vector<64x32xf32>
    %374 = arith.addf %365, %373 : vector<64x32xf32>
    %375 = vector.extract_strided_slice %311 {offsets = [17, 0], sizes = [64, 32], strides = [1, 1]} : vector<96x32xf32> to vector<64x32xf32>
    %376 = vector.broadcast %324 : vector<64x1xf32> to vector<64x32xf32>
    %377 = arith.mulf %375, %376 : vector<64x32xf32>
    %c5_189 = arith.constant 5 : index
    %c0_190 = arith.constant 0 : index
    %c0_191 = arith.constant 0 : index
    %378 = vector.load %arg33[%c5_189, %c0_190, %c0_191] : memref<9x32x32xf32, #tpu.memory_space<vmem>>, vector<1x32x32xf32>
    %379 = vector.shape_cast %378 : vector<1x32x32xf32> to vector<32x32xf32>
    %380 = vector.broadcast %298 : vector<32x1xf32> to vector<32x32xf32>
    %381 = arith.mulf %379, %380 : vector<32x32xf32>
    %382 = vector.broadcast %307 : vector<1x32xf32> to vector<32x32xf32>
    %383 = arith.mulf %381, %382 : vector<32x32xf32>
    %cst_192 = arith.constant dense<0.000000e+00> : vector<64x32xf32>
    %384 = tpu.matmul %377, %383, %cst_192 {dimension_numbers = #tpu.dot_dimension_numbers<[1], [0], [0], [1], [0, 0, 1, 1], [], []>} : vector<64x32xf32>, vector<32x32xf32>, vector<64x32xf32> -> vector<64x32xf32>
    %385 = arith.addf %374, %384 : vector<64x32xf32>
    %386 = vector.extract_strided_slice %311 {offsets = [23, 0], sizes = [64, 32], strides = [1, 1]} : vector<96x32xf32> to vector<64x32xf32>
    %387 = vector.broadcast %319 : vector<64x1xf32> to vector<64x32xf32>
    %388 = arith.mulf %386, %387 : vector<64x32xf32>
    %c6_193 = arith.constant 6 : index
    %c0_194 = arith.constant 0 : index
    %c0_195 = arith.constant 0 : index
    %389 = vector.load %arg33[%c6_193, %c0_194, %c0_195] : memref<9x32x32xf32, #tpu.memory_space<vmem>>, vector<1x32x32xf32>
    %390 = vector.shape_cast %389 : vector<1x32x32xf32> to vector<32x32xf32>
    %391 = vector.broadcast %298 : vector<32x1xf32> to vector<32x32xf32>
    %392 = arith.mulf %390, %391 : vector<32x32xf32>
    %393 = vector.broadcast %307 : vector<1x32xf32> to vector<32x32xf32>
    %394 = arith.mulf %392, %393 : vector<32x32xf32>
    %cst_196 = arith.constant dense<0.000000e+00> : vector<64x32xf32>
    %395 = tpu.matmul %388, %394, %cst_196 {dimension_numbers = #tpu.dot_dimension_numbers<[1], [0], [0], [1], [0, 0, 1, 1], [], []>} : vector<64x32xf32>, vector<32x32xf32>, vector<64x32xf32> -> vector<64x32xf32>
    %396 = arith.addf %385, %395 : vector<64x32xf32>
    %397 = vector.extract_strided_slice %311 {offsets = [24, 0], sizes = [64, 32], strides = [1, 1]} : vector<96x32xf32> to vector<64x32xf32>
    %c7_197 = arith.constant 7 : index
    %c0_198 = arith.constant 0 : index
    %c0_199 = arith.constant 0 : index
    %398 = vector.load %arg33[%c7_197, %c0_198, %c0_199] : memref<9x32x32xf32, #tpu.memory_space<vmem>>, vector<1x32x32xf32>
    %399 = vector.shape_cast %398 : vector<1x32x32xf32> to vector<32x32xf32>
    %400 = vector.broadcast %298 : vector<32x1xf32> to vector<32x32xf32>
    %401 = arith.mulf %399, %400 : vector<32x32xf32>
    %402 = vector.broadcast %307 : vector<1x32xf32> to vector<32x32xf32>
    %403 = arith.mulf %401, %402 : vector<32x32xf32>
    %cst_200 = arith.constant dense<0.000000e+00> : vector<64x32xf32>
    %404 = tpu.matmul %397, %403, %cst_200 {dimension_numbers = #tpu.dot_dimension_numbers<[1], [0], [0], [1], [0, 0, 1, 1], [], []>} : vector<64x32xf32>, vector<32x32xf32>, vector<64x32xf32> -> vector<64x32xf32>
    %405 = arith.addf %396, %404 : vector<64x32xf32>
    %406 = vector.extract_strided_slice %311 {offsets = [25, 0], sizes = [64, 32], strides = [1, 1]} : vector<96x32xf32> to vector<64x32xf32>
    %407 = vector.broadcast %324 : vector<64x1xf32> to vector<64x32xf32>
    %408 = arith.mulf %406, %407 : vector<64x32xf32>
    %c8_201 = arith.constant 8 : index
    %c0_202 = arith.constant 0 : index
    %c0_203 = arith.constant 0 : index
    %409 = vector.load %arg33[%c8_201, %c0_202, %c0_203] : memref<9x32x32xf32, #tpu.memory_space<vmem>>, vector<1x32x32xf32>
    %410 = vector.shape_cast %409 : vector<1x32x32xf32> to vector<32x32xf32>
    %411 = vector.broadcast %298 : vector<32x1xf32> to vector<32x32xf32>
    %412 = arith.mulf %410, %411 : vector<32x32xf32>
    %413 = vector.broadcast %307 : vector<1x32xf32> to vector<32x32xf32>
    %414 = arith.mulf %412, %413 : vector<32x32xf32>
    %cst_204 = arith.constant dense<0.000000e+00> : vector<64x32xf32>
    %415 = tpu.matmul %408, %414, %cst_204 {dimension_numbers = #tpu.dot_dimension_numbers<[1], [0], [0], [1], [0, 0, 1, 1], [], []>} : vector<64x32xf32>, vector<32x32xf32>, vector<64x32xf32> -> vector<64x32xf32>
    %416 = arith.addf %405, %415 : vector<64x32xf32>
    %c0_205 = arith.constant 0 : index
    %c0_206 = arith.constant 0 : index
    %417 = vector.load %arg32[%c0_205, %c0_206] : memref<64x1xf32, #tpu.memory_space<vmem>>, vector<64x1xf32>
    %418 = vector.broadcast %417 : vector<64x1xf32> to vector<64x32xf32>
    %419 = arith.addf %416, %418 : vector<64x32xf32>
    %c0_207 = arith.constant 0 : index
    %c0_208 = arith.constant 0 : index
    %420 = vector.load %arg31[%c0_207, %c0_208] : memref<1x32xf32, #tpu.memory_space<vmem>>, vector<1x32xf32>
    %421 = vector.broadcast %420 : vector<1x32xf32> to vector<64x32xf32>
    %422 = arith.addf %419, %421 : vector<64x32xf32>
    %cst_209 = arith.constant 0.000000e+00 : f32
    %423 = vector.broadcast %cst_209 : f32 to vector<64x32xf32>
    %424 = arith.cmpf oge, %422, %423 : vector<64x32xf32>
    %cst_210 = arith.constant 2.000000e-01 : f32
    %425 = vector.broadcast %cst_210 : f32 to vector<64x32xf32>
    %426 = arith.mulf %425, %422 : vector<64x32xf32>
    %427 = arith.select %424, %422, %426 : vector<64x32xi1>, vector<64x32xf32>
    %cst_211 = arith.constant 1.41421354 : f32
    %428 = vector.broadcast %cst_211 : f32 to vector<64x32xf32>
    %429 = arith.mulf %427, %428 : vector<64x32xf32>
    %430 = vector.extract_strided_slice %1 {offsets = [3, 0], sizes = [1, 32], strides = [1, 1]} : vector<6x32xf32> to vector<1x32xf32>
    %c0_212 = arith.constant 0 : index
    %c0_213 = arith.constant 0 : index
    %431 = vector.load %arg3[%c0_212, %c0_213] : memref<32x32xf32, #tpu.memory_space<vmem>>, vector<32x32xf32>
    %432 = vector.broadcast %430 : vector<1x32xf32> to vector<32x32xf32>
    %433 = arith.mulf %431, %432 : vector<32x32xf32>
    %cst_214 = arith.constant dense<0.000000e+00> : vector<32xf32>
    %434 = vector.multi_reduction <add>, %433, %cst_214 [1] : vector<32x32xf32> to vector<32xf32>
    %435 = vector.shape_cast %434 : vector<32xf32> to vector<32x1xf32>
    %c0_215 = arith.constant 0 : index
    %c0_216 = arith.constant 0 : index
    %436 = vector.load %arg4[%c0_215, %c0_216] : memref<32x1xf32, #tpu.memory_space<vmem>>, vector<32x1xf32>
    %437 = arith.addf %435, %436 : vector<32x1xf32>
    %c0_217 = arith.constant 0 : index
    %c0_218 = arith.constant 0 : index
    %438 = vector.load %arg9[%c0_217, %c0_218] : memref<32x16xf32, #tpu.memory_space<vmem>>, vector<32x16xf32>
    %439 = arith.mulf %437, %437 : vector<32x1xf32>
    %440 = vector.broadcast %439 : vector<32x1xf32> to vector<32x16xf32>
    %441 = arith.mulf %438, %440 : vector<32x16xf32>
    %cst_219 = arith.constant dense<0.000000e+00> : vector<16xf32>
    %442 = vector.multi_reduction <add>, %441, %cst_219 [0] : vector<32x16xf32> to vector<16xf32>
    %443 = vector.shape_cast %442 : vector<16xf32> to vector<1x16xf32>
    %cst_220 = arith.constant 9.99999993E-9 : f32
    %444 = vector.broadcast %cst_220 : f32 to vector<1x16xf32>
    %445 = arith.addf %443, %444 : vector<1x16xf32>
    %446 = math.rsqrt %445 : vector<1x16xf32>
    %cst_221 = arith.constant 0.000000e+00 : f32
    %447 = vector.broadcast %cst_221 : f32 to vector<96x32xf32>
    %c0_222 = arith.constant 0 : index
    %c0_223 = arith.constant 0 : index
    %448 = vector.load %arg45[%c0_222, %c0_223] : memref<96x32xf32, #tpu.memory_space<vmem>>, vector<96x32xf32>
    tpu.vector_store %arg45[%c0_222, %c0_223], %447 {strides = array<i32>} : memref<96x32xf32, #tpu.memory_space<vmem>>, vector<96x32xf32>,
    %c16_224 = arith.constant 16 : index
    %c0_225 = arith.constant 0 : index
    %449 = vector.load %arg45[%c16_224, %c0_225] : memref<96x32xf32, #tpu.memory_space<vmem>>, vector<64x32xf32>
    tpu.vector_store %arg45[%c16_224, %c0_225], %429 {strides = array<i32>} : memref<96x32xf32, #tpu.memory_space<vmem>>, vector<64x32xf32>,
    %c0_226 = arith.constant 0 : index
    %c0_227 = arith.constant 0 : index
    %450 = vector.load %arg45[%c0_226, %c0_227] : memref<96x32xf32, #tpu.memory_space<vmem>>, vector<96x32xf32>
    %451 = tpu.iota {dimensions = array<i32: 0>} : vector<64x1xi32>
    %c7_i32_228 = arith.constant 7 : i32
    %452 = vector.broadcast %c7_i32_228 : i32 to vector<64x1xi32>
    %453 = arith.andi %451, %452 : vector<64x1xi32>
    %c1_i32_229 = arith.constant 1 : i32
    %454 = vector.broadcast %c1_i32_229 : i32 to vector<64x1xi32>
    %455 = arith.cmpi sge, %453, %454 : vector<64x1xi32>
    %cst_230 = arith.constant 1.000000e+00 : f32
    %cst_231 = arith.constant 0.000000e+00 : f32
    %456 = vector.broadcast %cst_230 : f32 to vector<64x1xf32>
    %457 = vector.broadcast %cst_231 : f32 to vector<64x1xf32>
    %458 = arith.select %455, %456, %457 : vector<64x1xi1>, vector<64x1xf32>
    %c6_i32_232 = arith.constant 6 : i32
    %459 = vector.broadcast %c6_i32_232 : i32 to vector<64x1xi32>
    %460 = arith.cmpi sle, %453, %459 : vector<64x1xi32>
    %cst_233 = arith.constant 1.000000e+00 : f32
    %cst_234 = arith.constant 0.000000e+00 : f32
    %461 = vector.broadcast %cst_233 : f32 to vector<64x1xf32>
    %462 = vector.broadcast %cst_234 : f32 to vector<64x1xf32>
    %463 = arith.select %460, %461, %462 : vector<64x1xi1>, vector<64x1xf32>
    %464 = vector.extract_strided_slice %450 {offsets = [7, 0], sizes = [64, 32], strides = [1, 1]} : vector<96x32xf32> to vector<64x32xf32>
    %465 = vector.broadcast %458 : vector<64x1xf32> to vector<64x32xf32>
    %466 = arith.mulf %464, %465 : vector<64x32xf32>
    %c0_235 = arith.constant 0 : index
    %c0_236 = arith.constant 0 : index
    %c0_237 = arith.constant 0 : index
    %467 = vector.load %arg8[%c0_235, %c0_236, %c0_237] : memref<9x32x64xf32, #tpu.memory_space<vmem>>, vector<1x32x64xf32>
    %468 = vector.shape_cast %467 : vector<1x32x64xf32> to vector<32x64xf32>
    %469 = vector.broadcast %437 : vector<32x1xf32> to vector<32x64xf32>
    %470 = arith.mulf %468, %469 : vector<32x64xf32>
    %cst_238 = arith.constant dense<0.000000e+00> : vector<64x64xf32>
    %471 = tpu.matmul %466, %470, %cst_238 {dimension_numbers = #tpu.dot_dimension_numbers<[1], [0], [0], [1], [0, 0, 1, 1], [], []>} : vector<64x32xf32>, vector<32x64xf32>, vector<64x64xf32> -> vector<64x64xf32>
    %472 = vector.extract_strided_slice %450 {offsets = [8, 0], sizes = [64, 32], strides = [1, 1]} : vector<96x32xf32> to vector<64x32xf32>
    %c1_239 = arith.constant 1 : index
    %c0_240 = arith.constant 0 : index
    %c0_241 = arith.constant 0 : index
    %473 = vector.load %arg8[%c1_239, %c0_240, %c0_241] : memref<9x32x64xf32, #tpu.memory_space<vmem>>, vector<1x32x64xf32>
    %474 = vector.shape_cast %473 : vector<1x32x64xf32> to vector<32x64xf32>
    %475 = vector.broadcast %437 : vector<32x1xf32> to vector<32x64xf32>
    %476 = arith.mulf %474, %475 : vector<32x64xf32>
    %cst_242 = arith.constant dense<0.000000e+00> : vector<64x64xf32>
    %477 = tpu.matmul %472, %476, %cst_242 {dimension_numbers = #tpu.dot_dimension_numbers<[1], [0], [0], [1], [0, 0, 1, 1], [], []>} : vector<64x32xf32>, vector<32x64xf32>, vector<64x64xf32> -> vector<64x64xf32>
    %478 = arith.addf %471, %477 : vector<64x64xf32>
    %479 = vector.extract_strided_slice %450 {offsets = [9, 0], sizes = [64, 32], strides = [1, 1]} : vector<96x32xf32> to vector<64x32xf32>
    %480 = vector.broadcast %463 : vector<64x1xf32> to vector<64x32xf32>
    %481 = arith.mulf %479, %480 : vector<64x32xf32>
    %c2_243 = arith.constant 2 : index
    %c0_244 = arith.constant 0 : index
    %c0_245 = arith.constant 0 : index
    %482 = vector.load %arg8[%c2_243, %c0_244, %c0_245] : memref<9x32x64xf32, #tpu.memory_space<vmem>>, vector<1x32x64xf32>
    %483 = vector.shape_cast %482 : vector<1x32x64xf32> to vector<32x64xf32>
    %484 = vector.broadcast %437 : vector<32x1xf32> to vector<32x64xf32>
    %485 = arith.mulf %483, %484 : vector<32x64xf32>
    %cst_246 = arith.constant dense<0.000000e+00> : vector<64x64xf32>
    %486 = tpu.matmul %481, %485, %cst_246 {dimension_numbers = #tpu.dot_dimension_numbers<[1], [0], [0], [1], [0, 0, 1, 1], [], []>} : vector<64x32xf32>, vector<32x64xf32>, vector<64x64xf32> -> vector<64x64xf32>
    %487 = arith.addf %478, %486 : vector<64x64xf32>
    %488 = vector.extract_strided_slice %450 {offsets = [15, 0], sizes = [64, 32], strides = [1, 1]} : vector<96x32xf32> to vector<64x32xf32>
    %489 = vector.broadcast %458 : vector<64x1xf32> to vector<64x32xf32>
    %490 = arith.mulf %488, %489 : vector<64x32xf32>
    %c3_247 = arith.constant 3 : index
    %c0_248 = arith.constant 0 : index
    %c0_249 = arith.constant 0 : index
    %491 = vector.load %arg8[%c3_247, %c0_248, %c0_249] : memref<9x32x64xf32, #tpu.memory_space<vmem>>, vector<1x32x64xf32>
    %492 = vector.shape_cast %491 : vector<1x32x64xf32> to vector<32x64xf32>
    %493 = vector.broadcast %437 : vector<32x1xf32> to vector<32x64xf32>
    %494 = arith.mulf %492, %493 : vector<32x64xf32>
    %cst_250 = arith.constant dense<0.000000e+00> : vector<64x64xf32>
    %495 = tpu.matmul %490, %494, %cst_250 {dimension_numbers = #tpu.dot_dimension_numbers<[1], [0], [0], [1], [0, 0, 1, 1], [], []>} : vector<64x32xf32>, vector<32x64xf32>, vector<64x64xf32> -> vector<64x64xf32>
    %496 = arith.addf %487, %495 : vector<64x64xf32>
    %497 = vector.extract_strided_slice %450 {offsets = [16, 0], sizes = [64, 32], strides = [1, 1]} : vector<96x32xf32> to vector<64x32xf32>
    %c4_251 = arith.constant 4 : index
    %c0_252 = arith.constant 0 : index
    %c0_253 = arith.constant 0 : index
    %498 = vector.load %arg8[%c4_251, %c0_252, %c0_253] : memref<9x32x64xf32, #tpu.memory_space<vmem>>, vector<1x32x64xf32>
    %499 = vector.shape_cast %498 : vector<1x32x64xf32> to vector<32x64xf32>
    %500 = vector.broadcast %437 : vector<32x1xf32> to vector<32x64xf32>
    %501 = arith.mulf %499, %500 : vector<32x64xf32>
    %cst_254 = arith.constant dense<0.000000e+00> : vector<64x64xf32>
    %502 = tpu.matmul %497, %501, %cst_254 {dimension_numbers = #tpu.dot_dimension_numbers<[1], [0], [0], [1], [0, 0, 1, 1], [], []>} : vector<64x32xf32>, vector<32x64xf32>, vector<64x64xf32> -> vector<64x64xf32>
    %503 = arith.addf %496, %502 : vector<64x64xf32>
    %504 = vector.extract_strided_slice %450 {offsets = [17, 0], sizes = [64, 32], strides = [1, 1]} : vector<96x32xf32> to vector<64x32xf32>
    %505 = vector.broadcast %463 : vector<64x1xf32> to vector<64x32xf32>
    %506 = arith.mulf %504, %505 : vector<64x32xf32>
    %c5_255 = arith.constant 5 : index
    %c0_256 = arith.constant 0 : index
    %c0_257 = arith.constant 0 : index
    %507 = vector.load %arg8[%c5_255, %c0_256, %c0_257] : memref<9x32x64xf32, #tpu.memory_space<vmem>>, vector<1x32x64xf32>
    %508 = vector.shape_cast %507 : vector<1x32x64xf32> to vector<32x64xf32>
    %509 = vector.broadcast %437 : vector<32x1xf32> to vector<32x64xf32>
    %510 = arith.mulf %508, %509 : vector<32x64xf32>
    %cst_258 = arith.constant dense<0.000000e+00> : vector<64x64xf32>
    %511 = tpu.matmul %506, %510, %cst_258 {dimension_numbers = #tpu.dot_dimension_numbers<[1], [0], [0], [1], [0, 0, 1, 1], [], []>} : vector<64x32xf32>, vector<32x64xf32>, vector<64x64xf32> -> vector<64x64xf32>
    %512 = arith.addf %503, %511 : vector<64x64xf32>
    %513 = vector.extract_strided_slice %450 {offsets = [23, 0], sizes = [64, 32], strides = [1, 1]} : vector<96x32xf32> to vector<64x32xf32>
    %514 = vector.broadcast %458 : vector<64x1xf32> to vector<64x32xf32>
    %515 = arith.mulf %513, %514 : vector<64x32xf32>
    %c6_259 = arith.constant 6 : index
    %c0_260 = arith.constant 0 : index
    %c0_261 = arith.constant 0 : index
    %516 = vector.load %arg8[%c6_259, %c0_260, %c0_261] : memref<9x32x64xf32, #tpu.memory_space<vmem>>, vector<1x32x64xf32>
    %517 = vector.shape_cast %516 : vector<1x32x64xf32> to vector<32x64xf32>
    %518 = vector.broadcast %437 : vector<32x1xf32> to vector<32x64xf32>
    %519 = arith.mulf %517, %518 : vector<32x64xf32>
    %cst_262 = arith.constant dense<0.000000e+00> : vector<64x64xf32>
    %520 = tpu.matmul %515, %519, %cst_262 {dimension_numbers = #tpu.dot_dimension_numbers<[1], [0], [0], [1], [0, 0, 1, 1], [], []>} : vector<64x32xf32>, vector<32x64xf32>, vector<64x64xf32> -> vector<64x64xf32>
    %521 = arith.addf %512, %520 : vector<64x64xf32>
    %522 = vector.extract_strided_slice %450 {offsets = [24, 0], sizes = [64, 32], strides = [1, 1]} : vector<96x32xf32> to vector<64x32xf32>
    %c7_263 = arith.constant 7 : index
    %c0_264 = arith.constant 0 : index
    %c0_265 = arith.constant 0 : index
    %523 = vector.load %arg8[%c7_263, %c0_264, %c0_265] : memref<9x32x64xf32, #tpu.memory_space<vmem>>, vector<1x32x64xf32>
    %524 = vector.shape_cast %523 : vector<1x32x64xf32> to vector<32x64xf32>
    %525 = vector.broadcast %437 : vector<32x1xf32> to vector<32x64xf32>
    %526 = arith.mulf %524, %525 : vector<32x64xf32>
    %cst_266 = arith.constant dense<0.000000e+00> : vector<64x64xf32>
    %527 = tpu.matmul %522, %526, %cst_266 {dimension_numbers = #tpu.dot_dimension_numbers<[1], [0], [0], [1], [0, 0, 1, 1], [], []>} : vector<64x32xf32>, vector<32x64xf32>, vector<64x64xf32> -> vector<64x64xf32>
    %528 = arith.addf %521, %527 : vector<64x64xf32>
    %529 = vector.extract_strided_slice %450 {offsets = [25, 0], sizes = [64, 32], strides = [1, 1]} : vector<96x32xf32> to vector<64x32xf32>
    %530 = vector.broadcast %463 : vector<64x1xf32> to vector<64x32xf32>
    %531 = arith.mulf %529, %530 : vector<64x32xf32>
    %c8_267 = arith.constant 8 : index
    %c0_268 = arith.constant 0 : index
    %c0_269 = arith.constant 0 : index
    %532 = vector.load %arg8[%c8_267, %c0_268, %c0_269] : memref<9x32x64xf32, #tpu.memory_space<vmem>>, vector<1x32x64xf32>
    %533 = vector.shape_cast %532 : vector<1x32x64xf32> to vector<32x64xf32>
    %534 = vector.broadcast %437 : vector<32x1xf32> to vector<32x64xf32>
    %535 = arith.mulf %533, %534 : vector<32x64xf32>
    %cst_270 = arith.constant dense<0.000000e+00> : vector<64x64xf32>
    %536 = tpu.matmul %531, %535, %cst_270 {dimension_numbers = #tpu.dot_dimension_numbers<[1], [0], [0], [1], [0, 0, 1, 1], [], []>} : vector<64x32xf32>, vector<32x64xf32>, vector<64x64xf32> -> vector<64x64xf32>
    %537 = arith.addf %528, %536 : vector<64x64xf32>
    %c0_271 = arith.constant 0 : index
    %c0_272 = arith.constant 0 : index
    %c0_273 = arith.constant 0 : index
    %538 = vector.load %arg7[%c0_271, %c0_272, %c0_273] : memref<4x256x64xf32, #tpu.memory_space<vmem>>, vector<1x256x64xf32>
    %539 = vector.shape_cast %538 : vector<1x256x64xf32> to vector<256x64xf32>
    %540 = vector.extract_strided_slice %537 {offsets = [0, 0], sizes = [64, 16], strides = [1, 1]} : vector<64x64xf32> to vector<64x16xf32>
    %cst_274 = arith.constant dense<0.000000e+00> : vector<256x16xf32>
    %541 = tpu.matmul %539, %540, %cst_274 {dimension_numbers = #tpu.dot_dimension_numbers<[1], [0], [0], [1], [0, 0, 1, 1], [], []>} : vector<256x64xf32>, vector<64x16xf32>, vector<256x16xf32> -> vector<256x16xf32>
    %c1_275 = arith.constant 1 : index
    %c0_276 = arith.constant 0 : index
    %c0_277 = arith.constant 0 : index
    %542 = vector.load %arg7[%c1_275, %c0_276, %c0_277] : memref<4x256x64xf32, #tpu.memory_space<vmem>>, vector<1x256x64xf32>
    %543 = vector.shape_cast %542 : vector<1x256x64xf32> to vector<256x64xf32>
    %544 = vector.extract_strided_slice %537 {offsets = [0, 16], sizes = [64, 16], strides = [1, 1]} : vector<64x64xf32> to vector<64x16xf32>
    %cst_278 = arith.constant dense<0.000000e+00> : vector<256x16xf32>
    %545 = tpu.matmul %543, %544, %cst_278 {dimension_numbers = #tpu.dot_dimension_numbers<[1], [0], [0], [1], [0, 0, 1, 1], [], []>} : vector<256x64xf32>, vector<64x16xf32>, vector<256x16xf32> -> vector<256x16xf32>
    %546 = arith.addf %541, %545 : vector<256x16xf32>
    %c2_279 = arith.constant 2 : index
    %c0_280 = arith.constant 0 : index
    %c0_281 = arith.constant 0 : index
    %547 = vector.load %arg7[%c2_279, %c0_280, %c0_281] : memref<4x256x64xf32, #tpu.memory_space<vmem>>, vector<1x256x64xf32>
    %548 = vector.shape_cast %547 : vector<1x256x64xf32> to vector<256x64xf32>
    %549 = vector.extract_strided_slice %537 {offsets = [0, 32], sizes = [64, 16], strides = [1, 1]} : vector<64x64xf32> to vector<64x16xf32>
    %cst_282 = arith.constant dense<0.000000e+00> : vector<256x16xf32>
    %550 = tpu.matmul %548, %549, %cst_282 {dimension_numbers = #tpu.dot_dimension_numbers<[1], [0], [0], [1], [0, 0, 1, 1], [], []>} : vector<256x64xf32>, vector<64x16xf32>, vector<256x16xf32> -> vector<256x16xf32>
    %551 = arith.addf %546, %550 : vector<256x16xf32>
    %c3_283 = arith.constant 3 : index
    %c0_284 = arith.constant 0 : index
    %c0_285 = arith.constant 0 : index
    %552 = vector.load %arg7[%c3_283, %c0_284, %c0_285] : memref<4x256x64xf32, #tpu.memory_space<vmem>>, vector<1x256x64xf32>
    %553 = vector.shape_cast %552 : vector<1x256x64xf32> to vector<256x64xf32>
    %554 = vector.extract_strided_slice %537 {offsets = [0, 48], sizes = [64, 16], strides = [1, 1]} : vector<64x64xf32> to vector<64x16xf32>
    %cst_286 = arith.constant dense<0.000000e+00> : vector<256x16xf32>
    %555 = tpu.matmul %553, %554, %cst_286 {dimension_numbers = #tpu.dot_dimension_numbers<[1], [0], [0], [1], [0, 0, 1, 1], [], []>} : vector<256x64xf32>, vector<64x16xf32>, vector<256x16xf32> -> vector<256x16xf32>
    %556 = arith.addf %551, %555 : vector<256x16xf32>
    %557 = vector.broadcast %446 : vector<1x16xf32> to vector<256x16xf32>
    %558 = arith.mulf %556, %557 : vector<256x16xf32>
    %c0_287 = arith.constant 0 : index
    %c0_288 = arith.constant 0 : index
    %559 = vector.load %arg6[%c0_287, %c0_288] : memref<256x1xf32, #tpu.memory_space<vmem>>, vector<256x1xf32>
    %560 = vector.broadcast %559 : vector<256x1xf32> to vector<256x16xf32>
    %561 = arith.addf %558, %560 : vector<256x16xf32>
    %c0_289 = arith.constant 0 : index
    %c0_290 = arith.constant 0 : index
    %562 = vector.load %arg5[%c0_289, %c0_290] : memref<1x16xf32, #tpu.memory_space<vmem>>, vector<1x16xf32>
    %563 = vector.broadcast %562 : vector<1x16xf32> to vector<256x16xf32>
    %564 = arith.addf %561, %563 : vector<256x16xf32>
    %cst_291 = arith.constant 0.000000e+00 : f32
    %565 = vector.broadcast %cst_291 : f32 to vector<256x16xf32>
    %566 = arith.cmpf oge, %564, %565 : vector<256x16xf32>
    %cst_292 = arith.constant 2.000000e-01 : f32
    %567 = vector.broadcast %cst_292 : f32 to vector<256x16xf32>
    %568 = arith.mulf %567, %564 : vector<256x16xf32>
    %569 = arith.select %566, %564, %568 : vector<256x16xi1>, vector<256x16xf32>
    %cst_293 = arith.constant 1.41421354 : f32
    %570 = vector.broadcast %cst_293 : f32 to vector<256x16xf32>
    %571 = arith.mulf %569, %570 : vector<256x16xf32>
    %572 = vector.extract_strided_slice %1 {offsets = [4, 0], sizes = [1, 32], strides = [1, 1]} : vector<6x32xf32> to vector<1x32xf32>
    %c0_294 = arith.constant 0 : index
    %c0_295 = arith.constant 0 : index
    %573 = vector.load %arg17[%c0_294, %c0_295] : memref<16x32xf32, #tpu.memory_space<vmem>>, vector<16x32xf32>
    %574 = vector.broadcast %572 : vector<1x32xf32> to vector<16x32xf32>
    %575 = arith.mulf %573, %574 : vector<16x32xf32>
    %cst_296 = arith.constant dense<0.000000e+00> : vector<16xf32>
    %576 = vector.multi_reduction <add>, %575, %cst_296 [1] : vector<16x32xf32> to vector<16xf32>
    %577 = vector.shape_cast %576 : vector<16xf32> to vector<16x1xf32>
    %c0_297 = arith.constant 0 : index
    %c0_298 = arith.constant 0 : index
    %578 = vector.load %arg18[%c0_297, %c0_298] : memref<16x1xf32, #tpu.memory_space<vmem>>, vector<16x1xf32>
    %579 = arith.addf %577, %578 : vector<16x1xf32>
    %c0_299 = arith.constant 0 : index
    %c0_300 = arith.constant 0 : index
    %580 = vector.load %arg22[%c0_299, %c0_300] : memref<16x16xf32, #tpu.memory_space<vmem>>, vector<16x16xf32>
    %581 = arith.mulf %579, %579 : vector<16x1xf32>
    %582 = vector.broadcast %581 : vector<16x1xf32> to vector<16x16xf32>
    %583 = arith.mulf %580, %582 : vector<16x16xf32>
    %cst_301 = arith.constant dense<0.000000e+00> : vector<16xf32>
    %584 = vector.multi_reduction <add>, %583, %cst_301 [0] : vector<16x16xf32> to vector<16xf32>
    %585 = vector.shape_cast %584 : vector<16xf32> to vector<1x16xf32>
    %cst_302 = arith.constant 9.99999993E-9 : f32
    %586 = vector.broadcast %cst_302 : f32 to vector<1x16xf32>
    %587 = arith.addf %585, %586 : vector<1x16xf32>
    %588 = math.rsqrt %587 : vector<1x16xf32>
    %cst_303 = arith.constant 0.000000e+00 : f32
    %589 = vector.broadcast %cst_303 : f32 to vector<304x16xf32>
    %c0_304 = arith.constant 0 : index
    %c0_305 = arith.constant 0 : index
    %590 = vector.load %arg46[%c0_304, %c0_305] : memref<304x16xf32, #tpu.memory_space<vmem>>, vector<304x16xf32>
    tpu.vector_store %arg46[%c0_304, %c0_305], %589 {strides = array<i32>} : memref<304x16xf32, #tpu.memory_space<vmem>>, vector<304x16xf32>,
    %c24 = arith.constant 24 : index
    %c0_306 = arith.constant 0 : index
    %591 = vector.load %arg46[%c24, %c0_306] : memref<304x16xf32, #tpu.memory_space<vmem>>, vector<256x16xf32>
    tpu.vector_store %arg46[%c24, %c0_306], %571 {strides = array<i32>} : memref<304x16xf32, #tpu.memory_space<vmem>>, vector<256x16xf32>,
    %c0_307 = arith.constant 0 : index
    %c0_308 = arith.constant 0 : index
    %592 = vector.load %arg46[%c0_307, %c0_308] : memref<304x16xf32, #tpu.memory_space<vmem>>, vector<304x16xf32>
    %593 = tpu.iota {dimensions = array<i32: 0>} : vector<256x1xi32>
    %c15_i32 = arith.constant 15 : i32
    %594 = vector.broadcast %c15_i32 : i32 to vector<256x1xi32>
    %595 = arith.andi %593, %594 : vector<256x1xi32>
    %c1_i32_309 = arith.constant 1 : i32
    %596 = vector.broadcast %c1_i32_309 : i32 to vector<256x1xi32>
    %597 = arith.cmpi sge, %595, %596 : vector<256x1xi32>
    %cst_310 = arith.constant 1.000000e+00 : f32
    %cst_311 = arith.constant 0.000000e+00 : f32
    %598 = vector.broadcast %cst_310 : f32 to vector<256x1xf32>
    %599 = vector.broadcast %cst_311 : f32 to vector<256x1xf32>
    %600 = arith.select %597, %598, %599 : vector<256x1xi1>, vector<256x1xf32>
    %c14_i32 = arith.constant 14 : i32
    %601 = vector.broadcast %c14_i32 : i32 to vector<256x1xi32>
    %602 = arith.cmpi sle, %595, %601 : vector<256x1xi32>
    %cst_312 = arith.constant 1.000000e+00 : f32
    %cst_313 = arith.constant 0.000000e+00 : f32
    %603 = vector.broadcast %cst_312 : f32 to vector<256x1xf32>
    %604 = vector.broadcast %cst_313 : f32 to vector<256x1xf32>
    %605 = arith.select %602, %603, %604 : vector<256x1xi1>, vector<256x1xf32>
    %606 = vector.extract_strided_slice %592 {offsets = [7, 0], sizes = [256, 16], strides = [1, 1]} : vector<304x16xf32> to vector<256x16xf32>
    %607 = vector.broadcast %600 : vector<256x1xf32> to vector<256x16xf32>
    %608 = arith.mulf %606, %607 : vector<256x16xf32>
    %c0_314 = arith.constant 0 : index
    %c0_315 = arith.constant 0 : index
    %c0_316 = arith.constant 0 : index
    %609 = vector.load %arg21[%c0_314, %c0_315, %c0_316] : memref<9x16x16xf32, #tpu.memory_space<vmem>>, vector<1x16x16xf32>
    %610 = vector.shape_cast %609 : vector<1x16x16xf32> to vector<16x16xf32>
    %611 = vector.broadcast %579 : vector<16x1xf32> to vector<16x16xf32>
    %612 = arith.mulf %610, %611 : vector<16x16xf32>
    %613 = vector.broadcast %588 : vector<1x16xf32> to vector<16x16xf32>
    %614 = arith.mulf %612, %613 : vector<16x16xf32>
    %cst_317 = arith.constant dense<0.000000e+00> : vector<256x16xf32>
    %615 = tpu.matmul %608, %614, %cst_317 {dimension_numbers = #tpu.dot_dimension_numbers<[1], [0], [0], [1], [0, 0, 1, 1], [], []>} : vector<256x16xf32>, vector<16x16xf32>, vector<256x16xf32> -> vector<256x16xf32>
    %616 = vector.extract_strided_slice %592 {offsets = [8, 0], sizes = [256, 16], strides = [1, 1]} : vector<304x16xf32> to vector<256x16xf32>
    %c1_318 = arith.constant 1 : index
    %c0_319 = arith.constant 0 : index
    %c0_320 = arith.constant 0 : index
    %617 = vector.load %arg21[%c1_318, %c0_319, %c0_320] : memref<9x16x16xf32, #tpu.memory_space<vmem>>, vector<1x16x16xf32>
    %618 = vector.shape_cast %617 : vector<1x16x16xf32> to vector<16x16xf32>
    %619 = vector.broadcast %579 : vector<16x1xf32> to vector<16x16xf32>
    %620 = arith.mulf %618, %619 : vector<16x16xf32>
    %621 = vector.broadcast %588 : vector<1x16xf32> to vector<16x16xf32>
    %622 = arith.mulf %620, %621 : vector<16x16xf32>
    %cst_321 = arith.constant dense<0.000000e+00> : vector<256x16xf32>
    %623 = tpu.matmul %616, %622, %cst_321 {dimension_numbers = #tpu.dot_dimension_numbers<[1], [0], [0], [1], [0, 0, 1, 1], [], []>} : vector<256x16xf32>, vector<16x16xf32>, vector<256x16xf32> -> vector<256x16xf32>
    %624 = arith.addf %615, %623 : vector<256x16xf32>
    %625 = vector.extract_strided_slice %592 {offsets = [9, 0], sizes = [256, 16], strides = [1, 1]} : vector<304x16xf32> to vector<256x16xf32>
    %626 = vector.broadcast %605 : vector<256x1xf32> to vector<256x16xf32>
    %627 = arith.mulf %625, %626 : vector<256x16xf32>
    %c2_322 = arith.constant 2 : index
    %c0_323 = arith.constant 0 : index
    %c0_324 = arith.constant 0 : index
    %628 = vector.load %arg21[%c2_322, %c0_323, %c0_324] : memref<9x16x16xf32, #tpu.memory_space<vmem>>, vector<1x16x16xf32>
    %629 = vector.shape_cast %628 : vector<1x16x16xf32> to vector<16x16xf32>
    %630 = vector.broadcast %579 : vector<16x1xf32> to vector<16x16xf32>
    %631 = arith.mulf %629, %630 : vector<16x16xf32>
    %632 = vector.broadcast %588 : vector<1x16xf32> to vector<16x16xf32>
    %633 = arith.mulf %631, %632 : vector<16x16xf32>
    %cst_325 = arith.constant dense<0.000000e+00> : vector<256x16xf32>
    %634 = tpu.matmul %627, %633, %cst_325 {dimension_numbers = #tpu.dot_dimension_numbers<[1], [0], [0], [1], [0, 0, 1, 1], [], []>} : vector<256x16xf32>, vector<16x16xf32>, vector<256x16xf32> -> vector<256x16xf32>
    %635 = arith.addf %624, %634 : vector<256x16xf32>
    %636 = vector.extract_strided_slice %592 {offsets = [23, 0], sizes = [256, 16], strides = [1, 1]} : vector<304x16xf32> to vector<256x16xf32>
    %637 = vector.broadcast %600 : vector<256x1xf32> to vector<256x16xf32>
    %638 = arith.mulf %636, %637 : vector<256x16xf32>
    %c3_326 = arith.constant 3 : index
    %c0_327 = arith.constant 0 : index
    %c0_328 = arith.constant 0 : index
    %639 = vector.load %arg21[%c3_326, %c0_327, %c0_328] : memref<9x16x16xf32, #tpu.memory_space<vmem>>, vector<1x16x16xf32>
    %640 = vector.shape_cast %639 : vector<1x16x16xf32> to vector<16x16xf32>
    %641 = vector.broadcast %579 : vector<16x1xf32> to vector<16x16xf32>
    %642 = arith.mulf %640, %641 : vector<16x16xf32>
    %643 = vector.broadcast %588 : vector<1x16xf32> to vector<16x16xf32>
    %644 = arith.mulf %642, %643 : vector<16x16xf32>
    %cst_329 = arith.constant dense<0.000000e+00> : vector<256x16xf32>
    %645 = tpu.matmul %638, %644, %cst_329 {dimension_numbers = #tpu.dot_dimension_numbers<[1], [0], [0], [1], [0, 0, 1, 1], [], []>} : vector<256x16xf32>, vector<16x16xf32>, vector<256x16xf32> -> vector<256x16xf32>
    %646 = arith.addf %635, %645 : vector<256x16xf32>
    %647 = vector.extract_strided_slice %592 {offsets = [24, 0], sizes = [256, 16], strides = [1, 1]} : vector<304x16xf32> to vector<256x16xf32>
    %c4_330 = arith.constant 4 : index
    %c0_331 = arith.constant 0 : index
    %c0_332 = arith.constant 0 : index
    %648 = vector.load %arg21[%c4_330, %c0_331, %c0_332] : memref<9x16x16xf32, #tpu.memory_space<vmem>>, vector<1x16x16xf32>
    %649 = vector.shape_cast %648 : vector<1x16x16xf32> to vector<16x16xf32>
    %650 = vector.broadcast %579 : vector<16x1xf32> to vector<16x16xf32>
    %651 = arith.mulf %649, %650 : vector<16x16xf32>
    %652 = vector.broadcast %588 : vector<1x16xf32> to vector<16x16xf32>
    %653 = arith.mulf %651, %652 : vector<16x16xf32>
    %cst_333 = arith.constant dense<0.000000e+00> : vector<256x16xf32>
    %654 = tpu.matmul %647, %653, %cst_333 {dimension_numbers = #tpu.dot_dimension_numbers<[1], [0], [0], [1], [0, 0, 1, 1], [], []>} : vector<256x16xf32>, vector<16x16xf32>, vector<256x16xf32> -> vector<256x16xf32>
    %655 = arith.addf %646, %654 : vector<256x16xf32>
    %656 = vector.extract_strided_slice %592 {offsets = [25, 0], sizes = [256, 16], strides = [1, 1]} : vector<304x16xf32> to vector<256x16xf32>
    %657 = vector.broadcast %605 : vector<256x1xf32> to vector<256x16xf32>
    %658 = arith.mulf %656, %657 : vector<256x16xf32>
    %c5_334 = arith.constant 5 : index
    %c0_335 = arith.constant 0 : index
    %c0_336 = arith.constant 0 : index
    %659 = vector.load %arg21[%c5_334, %c0_335, %c0_336] : memref<9x16x16xf32, #tpu.memory_space<vmem>>, vector<1x16x16xf32>
    %660 = vector.shape_cast %659 : vector<1x16x16xf32> to vector<16x16xf32>
    %661 = vector.broadcast %579 : vector<16x1xf32> to vector<16x16xf32>
    %662 = arith.mulf %660, %661 : vector<16x16xf32>
    %663 = vector.broadcast %588 : vector<1x16xf32> to vector<16x16xf32>
    %664 = arith.mulf %662, %663 : vector<16x16xf32>
    %cst_337 = arith.constant dense<0.000000e+00> : vector<256x16xf32>
    %665 = tpu.matmul %658, %664, %cst_337 {dimension_numbers = #tpu.dot_dimension_numbers<[1], [0], [0], [1], [0, 0, 1, 1], [], []>} : vector<256x16xf32>, vector<16x16xf32>, vector<256x16xf32> -> vector<256x16xf32>
    %666 = arith.addf %655, %665 : vector<256x16xf32>
    %667 = vector.extract_strided_slice %592 {offsets = [39, 0], sizes = [256, 16], strides = [1, 1]} : vector<304x16xf32> to vector<256x16xf32>
    %668 = vector.broadcast %600 : vector<256x1xf32> to vector<256x16xf32>
    %669 = arith.mulf %667, %668 : vector<256x16xf32>
    %c6_338 = arith.constant 6 : index
    %c0_339 = arith.constant 0 : index
    %c0_340 = arith.constant 0 : index
    %670 = vector.load %arg21[%c6_338, %c0_339, %c0_340] : memref<9x16x16xf32, #tpu.memory_space<vmem>>, vector<1x16x16xf32>
    %671 = vector.shape_cast %670 : vector<1x16x16xf32> to vector<16x16xf32>
    %672 = vector.broadcast %579 : vector<16x1xf32> to vector<16x16xf32>
    %673 = arith.mulf %671, %672 : vector<16x16xf32>
    %674 = vector.broadcast %588 : vector<1x16xf32> to vector<16x16xf32>
    %675 = arith.mulf %673, %674 : vector<16x16xf32>
    %cst_341 = arith.constant dense<0.000000e+00> : vector<256x16xf32>
    %676 = tpu.matmul %669, %675, %cst_341 {dimension_numbers = #tpu.dot_dimension_numbers<[1], [0], [0], [1], [0, 0, 1, 1], [], []>} : vector<256x16xf32>, vector<16x16xf32>, vector<256x16xf32> -> vector<256x16xf32>
    %677 = arith.addf %666, %676 : vector<256x16xf32>
    %678 = vector.extract_strided_slice %592 {offsets = [40, 0], sizes = [256, 16], strides = [1, 1]} : vector<304x16xf32> to vector<256x16xf32>
    %c7_342 = arith.constant 7 : index
    %c0_343 = arith.constant 0 : index
    %c0_344 = arith.constant 0 : index
    %679 = vector.load %arg21[%c7_342, %c0_343, %c0_344] : memref<9x16x16xf32, #tpu.memory_space<vmem>>, vector<1x16x16xf32>
    %680 = vector.shape_cast %679 : vector<1x16x16xf32> to vector<16x16xf32>
    %681 = vector.broadcast %579 : vector<16x1xf32> to vector<16x16xf32>
    %682 = arith.mulf %680, %681 : vector<16x16xf32>
    %683 = vector.broadcast %588 : vector<1x16xf32> to vector<16x16xf32>
    %684 = arith.mulf %682, %683 : vector<16x16xf32>
    %cst_345 = arith.constant dense<0.000000e+00> : vector<256x16xf32>
    %685 = tpu.matmul %678, %684, %cst_345 {dimension_numbers = #tpu.dot_dimension_numbers<[1], [0], [0], [1], [0, 0, 1, 1], [], []>} : vector<256x16xf32>, vector<16x16xf32>, vector<256x16xf32> -> vector<256x16xf32>
    %686 = arith.addf %677, %685 : vector<256x16xf32>
    %687 = vector.extract_strided_slice %592 {offsets = [41, 0], sizes = [256, 16], strides = [1, 1]} : vector<304x16xf32> to vector<256x16xf32>
    %688 = vector.broadcast %605 : vector<256x1xf32> to vector<256x16xf32>
    %689 = arith.mulf %687, %688 : vector<256x16xf32>
    %c8_346 = arith.constant 8 : index
    %c0_347 = arith.constant 0 : index
    %c0_348 = arith.constant 0 : index
    %690 = vector.load %arg21[%c8_346, %c0_347, %c0_348] : memref<9x16x16xf32, #tpu.memory_space<vmem>>, vector<1x16x16xf32>
    %691 = vector.shape_cast %690 : vector<1x16x16xf32> to vector<16x16xf32>
    %692 = vector.broadcast %579 : vector<16x1xf32> to vector<16x16xf32>
    %693 = arith.mulf %691, %692 : vector<16x16xf32>
    %694 = vector.broadcast %588 : vector<1x16xf32> to vector<16x16xf32>
    %695 = arith.mulf %693, %694 : vector<16x16xf32>
    %cst_349 = arith.constant dense<0.000000e+00> : vector<256x16xf32>
    %696 = tpu.matmul %689, %695, %cst_349 {dimension_numbers = #tpu.dot_dimension_numbers<[1], [0], [0], [1], [0, 0, 1, 1], [], []>} : vector<256x16xf32>, vector<16x16xf32>, vector<256x16xf32> -> vector<256x16xf32>
    %697 = arith.addf %686, %696 : vector<256x16xf32>
    %c0_350 = arith.constant 0 : index
    %c0_351 = arith.constant 0 : index
    %698 = vector.load %arg20[%c0_350, %c0_351] : memref<256x1xf32, #tpu.memory_space<vmem>>, vector<256x1xf32>
    %699 = vector.broadcast %698 : vector<256x1xf32> to vector<256x16xf32>
    %700 = arith.addf %697, %699 : vector<256x16xf32>
    %c0_352 = arith.constant 0 : index
    %c0_353 = arith.constant 0 : index
    %701 = vector.load %arg19[%c0_352, %c0_353] : memref<1x16xf32, #tpu.memory_space<vmem>>, vector<1x16xf32>
    %702 = vector.broadcast %701 : vector<1x16xf32> to vector<256x16xf32>
    %703 = arith.addf %700, %702 : vector<256x16xf32>
    %cst_354 = arith.constant 0.000000e+00 : f32
    %704 = vector.broadcast %cst_354 : f32 to vector<256x16xf32>
    %705 = arith.cmpf oge, %703, %704 : vector<256x16xf32>
    %cst_355 = arith.constant 2.000000e-01 : f32
    %706 = vector.broadcast %cst_355 : f32 to vector<256x16xf32>
    %707 = arith.mulf %706, %703 : vector<256x16xf32>
    %708 = arith.select %705, %703, %707 : vector<256x16xi1>, vector<256x16xf32>
    %cst_356 = arith.constant 1.41421354 : f32
    %709 = vector.broadcast %cst_356 : f32 to vector<256x16xf32>
    %710 = arith.mulf %708, %709 : vector<256x16xf32>
    %711 = vector.extract_strided_slice %1 {offsets = [5, 0], sizes = [1, 32], strides = [1, 1]} : vector<6x32xf32> to vector<1x32xf32>
    %c0_357 = arith.constant 0 : index
    %c0_358 = arith.constant 0 : index
    %712 = vector.load %arg38[%c0_357, %c0_358] : memref<16x32xf32, #tpu.memory_space<vmem>>, vector<16x32xf32>
    %713 = vector.broadcast %711 : vector<1x32xf32> to vector<16x32xf32>
    %714 = arith.mulf %712, %713 : vector<16x32xf32>
    %cst_359 = arith.constant dense<0.000000e+00> : vector<16xf32>
    %715 = vector.multi_reduction <add>, %714, %cst_359 [1] : vector<16x32xf32> to vector<16xf32>
    %716 = vector.shape_cast %715 : vector<16xf32> to vector<16x1xf32>
    %c0_360 = arith.constant 0 : index
    %c0_361 = arith.constant 0 : index
    %717 = vector.load %arg39[%c0_360, %c0_361] : memref<16x1xf32, #tpu.memory_space<vmem>>, vector<16x1xf32>
    %718 = arith.addf %716, %717 : vector<16x1xf32>
    %cst_362 = arith.constant 2.500000e-01 : f32
    %719 = vector.broadcast %cst_362 : f32 to vector<16x1xf32>
    %720 = arith.mulf %718, %719 : vector<16x1xf32>
    %c0_363 = arith.constant 0 : index
    %c0_364 = arith.constant 0 : index
    %721 = vector.load %arg41[%c0_363, %c0_364] : memref<16x3xf32, #tpu.memory_space<vmem>>, vector<16x3xf32>
    %722 = vector.broadcast %720 : vector<16x1xf32> to vector<16x3xf32>
    %723 = arith.mulf %721, %722 : vector<16x3xf32>
    %cst_365 = arith.constant dense<0.000000e+00> : vector<256x3xf32>
    %724 = tpu.matmul %710, %723, %cst_365 {dimension_numbers = #tpu.dot_dimension_numbers<[1], [0], [0], [1], [0, 0, 1, 1], [], []>} : vector<256x16xf32>, vector<16x3xf32>, vector<256x3xf32> -> vector<256x3xf32>
    %c0_366 = arith.constant 0 : index
    %c0_367 = arith.constant 0 : index
    %725 = vector.load %arg40[%c0_366, %c0_367] : memref<1x3xf32, #tpu.memory_space<vmem>>, vector<1x3xf32>
    %726 = vector.broadcast %725 : vector<1x3xf32> to vector<256x3xf32>
    %727 = arith.addf %724, %726 : vector<256x3xf32>
    %c0_368 = arith.constant 0 : index
    %c0_369 = arith.constant 0 : index
    %c0_370 = arith.constant 0 : index
    %728 = vector.load %arg42[%c0_368, %c0_369, %c0_370] : memref<1x256x3xf32, #tpu.memory_space<vmem>>, vector<1x256x3xf32>
    %729 = vector.shape_cast %728 : vector<1x256x3xf32> to vector<256x3xf32>
    %730 = vector.shape_cast %727 : vector<256x3xf32> to vector<1x256x3xf32>
    tpu.vector_store %arg42[%c0_368, %c0_369, %c0_370], %730 {strides = array<i32>} : memref<1x256x3xf32, #tpu.memory_space<vmem>>, vector<1x256x3xf32>,
    return
  }
  func.func @transform_0(%arg0: i32) -> (i32, i32, i32) {
    %c0_i32 = arith.constant 0 : i32
    %c0_i32_0 = arith.constant 0 : i32
    %c0_i32_1 = arith.constant 0 : i32
    return %arg0, %c0_i32, %c0_i32_0 : i32, i32, i32
  }
  func.func @transform_1(%arg0: i32) -> (i32, i32, i32) {
    %c0_i32 = arith.constant 0 : i32
    %c0_i32_0 = arith.constant 0 : i32
    %c0_i32_1 = arith.constant 0 : i32
    return %arg0, %c0_i32, %c0_i32_0 : i32, i32, i32
  }
  func.func @transform_2(%arg0: i32) -> (i32, i32) {
    %c0_i32 = arith.constant 0 : i32
    %c0_i32_0 = arith.constant 0 : i32
    %c0_i32_1 = arith.constant 0 : i32
    return %c0_i32, %c0_i32_0 : i32, i32
  }
  func.func @transform_3(%arg0: i32) -> (i32, i32) {
    %c0_i32 = arith.constant 0 : i32
    %c0_i32_0 = arith.constant 0 : i32
    %c0_i32_1 = arith.constant 0 : i32
    return %c0_i32, %c0_i32_0 : i32, i32
  }
  func.func @transform_4(%arg0: i32) -> (i32, i32) {
    %c0_i32 = arith.constant 0 : i32
    %c0_i32_0 = arith.constant 0 : i32
    %c0_i32_1 = arith.constant 0 : i32
    return %c0_i32, %c0_i32_0 : i32, i32
  }
  func.func @transform_5(%arg0: i32) -> (i32, i32) {
    %c0_i32 = arith.constant 0 : i32
    %c0_i32_0 = arith.constant 0 : i32
    %c0_i32_1 = arith.constant 0 : i32
    return %c0_i32, %c0_i32_0 : i32, i32
  }
  func.func @transform_6(%arg0: i32) -> (i32, i32, i32) {
    %c0_i32 = arith.constant 0 : i32
    %c0_i32_0 = arith.constant 0 : i32
    %c0_i32_1 = arith.constant 0 : i32
    %c0_i32_2 = arith.constant 0 : i32
    return %c0_i32, %c0_i32_0, %c0_i32_1 : i32, i32, i32
  }
  func.func @transform_7(%arg0: i32) -> (i32, i32, i32) {
    %c0_i32 = arith.constant 0 : i32
    %c0_i32_0 = arith.constant 0 : i32
    %c0_i32_1 = arith.constant 0 : i32
    %c0_i32_2 = arith.constant 0 : i32
    return %c0_i32, %c0_i32_0, %c0_i32_1 : i32, i32, i32
  }
  func.func @transform_8(%arg0: i32) -> (i32, i32) {
    %c0_i32 = arith.constant 0 : i32
    %c0_i32_0 = arith.constant 0 : i32
    %c0_i32_1 = arith.constant 0 : i32
    return %c0_i32, %c0_i32_0 : i32, i32
  }
  func.func @transform_9(%arg0: i32) -> (i32, i32) {
    %c0_i32 = arith.constant 0 : i32
    %c0_i32_0 = arith.constant 0 : i32
    %c0_i32_1 = arith.constant 0 : i32
    return %c0_i32, %c0_i32_0 : i32, i32
  }
  func.func @transform_10(%arg0: i32) -> (i32, i32) {
    %c0_i32 = arith.constant 0 : i32
    %c0_i32_0 = arith.constant 0 : i32
    %c0_i32_1 = arith.constant 0 : i32
    return %c0_i32, %c0_i32_0 : i32, i32
  }
  func.func @transform_11(%arg0: i32) -> (i32, i32) {
    %c0_i32 = arith.constant 0 : i32
    %c0_i32_0 = arith.constant 0 : i32
    %c0_i32_1 = arith.constant 0 : i32
    return %c0_i32, %c0_i32_0 : i32, i32
  }
  func.func @transform_12(%arg0: i32) -> (i32, i32) {
    %c0_i32 = arith.constant 0 : i32
    %c0_i32_0 = arith.constant 0 : i32
    %c0_i32_1 = arith.constant 0 : i32
    return %c0_i32, %c0_i32_0 : i32, i32
  }
  func.func @transform_13(%arg0: i32) -> (i32, i32, i32) {
    %c0_i32 = arith.constant 0 : i32
    %c0_i32_0 = arith.constant 0 : i32
    %c0_i32_1 = arith.constant 0 : i32
    %c0_i32_2 = arith.constant 0 : i32
    return %c0_i32, %c0_i32_0, %c0_i32_1 : i32, i32, i32
  }
  func.func @transform_14(%arg0: i32) -> (i32, i32, i32) {
    %c0_i32 = arith.constant 0 : i32
    %c0_i32_0 = arith.constant 0 : i32
    %c0_i32_1 = arith.constant 0 : i32
    %c0_i32_2 = arith.constant 0 : i32
    return %c0_i32, %c0_i32_0, %c0_i32_1 : i32, i32, i32
  }
  func.func @transform_15(%arg0: i32) -> (i32, i32) {
    %c0_i32 = arith.constant 0 : i32
    %c0_i32_0 = arith.constant 0 : i32
    %c0_i32_1 = arith.constant 0 : i32
    return %c0_i32, %c0_i32_0 : i32, i32
  }
  func.func @transform_16(%arg0: i32) -> (i32, i32) {
    %c0_i32 = arith.constant 0 : i32
    %c0_i32_0 = arith.constant 0 : i32
    %c0_i32_1 = arith.constant 0 : i32
    return %c0_i32, %c0_i32_0 : i32, i32
  }
  func.func @transform_17(%arg0: i32) -> (i32, i32) {
    %c0_i32 = arith.constant 0 : i32
    %c0_i32_0 = arith.constant 0 : i32
    %c0_i32_1 = arith.constant 0 : i32
    return %c0_i32, %c0_i32_0 : i32, i32
  }
  func.func @transform_18(%arg0: i32) -> (i32, i32) {
    %c0_i32 = arith.constant 0 : i32
    %c0_i32_0 = arith.constant 0 : i32
    %c0_i32_1 = arith.constant 0 : i32
    return %c0_i32, %c0_i32_0 : i32, i32
  }
  func.func @transform_19(%arg0: i32) -> (i32, i32) {
    %c0_i32 = arith.constant 0 : i32
    %c0_i32_0 = arith.constant 0 : i32
    %c0_i32_1 = arith.constant 0 : i32
    return %c0_i32, %c0_i32_0 : i32, i32
  }
  func.func @transform_20(%arg0: i32) -> (i32, i32, i32) {
    %c0_i32 = arith.constant 0 : i32
    %c0_i32_0 = arith.constant 0 : i32
    %c0_i32_1 = arith.constant 0 : i32
    %c0_i32_2 = arith.constant 0 : i32
    return %c0_i32, %c0_i32_0, %c0_i32_1 : i32, i32, i32
  }
  func.func @transform_21(%arg0: i32) -> (i32, i32) {
    %c0_i32 = arith.constant 0 : i32
    %c0_i32_0 = arith.constant 0 : i32
    %c0_i32_1 = arith.constant 0 : i32
    return %c0_i32, %c0_i32_0 : i32, i32
  }
  func.func @transform_22(%arg0: i32) -> (i32, i32) {
    %c0_i32 = arith.constant 0 : i32
    %c0_i32_0 = arith.constant 0 : i32
    %c0_i32_1 = arith.constant 0 : i32
    return %c0_i32, %c0_i32_0 : i32, i32
  }
  func.func @transform_23(%arg0: i32) -> (i32, i32) {
    %c0_i32 = arith.constant 0 : i32
    %c0_i32_0 = arith.constant 0 : i32
    %c0_i32_1 = arith.constant 0 : i32
    return %c0_i32, %c0_i32_0 : i32, i32
  }
  func.func @transform_24(%arg0: i32) -> (i32, i32) {
    %c0_i32 = arith.constant 0 : i32
    %c0_i32_0 = arith.constant 0 : i32
    %c0_i32_1 = arith.constant 0 : i32
    return %c0_i32, %c0_i32_0 : i32, i32
  }
  func.func @transform_25(%arg0: i32) -> (i32, i32) {
    %c0_i32 = arith.constant 0 : i32
    %c0_i32_0 = arith.constant 0 : i32
    %c0_i32_1 = arith.constant 0 : i32
    return %c0_i32, %c0_i32_0 : i32, i32
  }
  func.func @transform_26(%arg0: i32) -> (i32, i32, i32) {
    %c0_i32 = arith.constant 0 : i32
    %c0_i32_0 = arith.constant 0 : i32
    %c0_i32_1 = arith.constant 0 : i32
    %c0_i32_2 = arith.constant 0 : i32
    return %c0_i32, %c0_i32_0, %c0_i32_1 : i32, i32, i32
  }
  func.func @transform_27(%arg0: i32) -> (i32, i32) {
    %c0_i32 = arith.constant 0 : i32
    %c0_i32_0 = arith.constant 0 : i32
    %c0_i32_1 = arith.constant 0 : i32
    return %c0_i32, %c0_i32_0 : i32, i32
  }
  func.func @transform_28(%arg0: i32) -> (i32, i32) {
    %c0_i32 = arith.constant 0 : i32
    %c0_i32_0 = arith.constant 0 : i32
    %c0_i32_1 = arith.constant 0 : i32
    return %c0_i32, %c0_i32_0 : i32, i32
  }
  func.func @transform_29(%arg0: i32) -> (i32, i32) {
    %c0_i32 = arith.constant 0 : i32
    %c0_i32_0 = arith.constant 0 : i32
    %c0_i32_1 = arith.constant 0 : i32
    return %c0_i32, %c0_i32_0 : i32, i32
  }
  func.func @transform_30(%arg0: i32) -> (i32, i32) {
    %c0_i32 = arith.constant 0 : i32
    %c0_i32_0 = arith.constant 0 : i32
    %c0_i32_1 = arith.constant 0 : i32
    return %c0_i32, %c0_i32_0 : i32, i32
  }
  func.func @transform_31(%arg0: i32) -> (i32, i32) {
    %c0_i32 = arith.constant 0 : i32
    %c0_i32_0 = arith.constant 0 : i32
    %c0_i32_1 = arith.constant 0 : i32
    return %c0_i32, %c0_i32_0 : i32, i32
  }
  func.func @transform_32(%arg0: i32) -> (i32, i32, i32) {
    %c0_i32 = arith.constant 0 : i32
    %c0_i32_0 = arith.constant 0 : i32
    %c0_i32_1 = arith.constant 0 : i32
    %c0_i32_2 = arith.constant 0 : i32
    return %c0_i32, %c0_i32_0, %c0_i32_1 : i32, i32, i32
  }
  func.func @transform_33(%arg0: i32) -> (i32, i32) {
    %c0_i32 = arith.constant 0 : i32
    %c0_i32_0 = arith.constant 0 : i32
    %c0_i32_1 = arith.constant 0 : i32
    return %c0_i32, %c0_i32_0 : i32, i32
  }
  func.func @transform_34(%arg0: i32) -> (i32, i32) {
    %c0_i32 = arith.constant 0 : i32
    %c0_i32_0 = arith.constant 0 : i32
    %c0_i32_1 = arith.constant 0 : i32
    return %c0_i32, %c0_i32_0 : i32, i32
  }
  func.func @transform_35(%arg0: i32) -> (i32, i32) {
    %c0_i32 = arith.constant 0 : i32
    %c0_i32_0 = arith.constant 0 : i32
    %c0_i32_1 = arith.constant 0 : i32
    return %c0_i32, %c0_i32_0 : i32, i32
  }
  func.func @transform_36(%arg0: i32) -> (i32, i32) {
    %c0_i32 = arith.constant 0 : i32
    %c0_i32_0 = arith.constant 0 : i32
    %c0_i32_1 = arith.constant 0 : i32
    return %c0_i32, %c0_i32_0 : i32, i32
  }
  func.func @transform_37(%arg0: i32) -> (i32, i32) {
    %c0_i32 = arith.constant 0 : i32
    %c0_i32_0 = arith.constant 0 : i32
    %c0_i32_1 = arith.constant 0 : i32
    return %c0_i32, %c0_i32_0 : i32, i32
  }
  func.func @transform_38(%arg0: i32) -> (i32, i32) {
    %c0_i32 = arith.constant 0 : i32
    %c0_i32_0 = arith.constant 0 : i32
    %c0_i32_1 = arith.constant 0 : i32
    return %c0_i32, %c0_i32_0 : i32, i32
  }
  func.func @transform_39(%arg0: i32) -> (i32, i32) {
    %c0_i32 = arith.constant 0 : i32
    %c0_i32_0 = arith.constant 0 : i32
    %c0_i32_1 = arith.constant 0 : i32
    return %c0_i32, %c0_i32_0 : i32, i32
  }
  func.func @transform_40(%arg0: i32) -> (i32, i32) {
    %c0_i32 = arith.constant 0 : i32
    %c0_i32_0 = arith.constant 0 : i32
    %c0_i32_1 = arith.constant 0 : i32
    return %c0_i32, %c0_i32_0 : i32, i32
  }
  func.func @transform_41(%arg0: i32) -> (i32, i32, i32) {
    %c0_i32 = arith.constant 0 : i32
    %c0_i32_0 = arith.constant 0 : i32
    %c0_i32_1 = arith.constant 0 : i32
    return %arg0, %c0_i32, %c0_i32_0 : i32, i32, i32
  }
}

</mosaic_0001>

<bundles_post_ra>
// kernel: synthesis_forward.1
= control target key start
LH: loop header
LB: loop body
LE: loop exit
PB: predicated region body
PF: predicated region fallthrough
CT: control target
= control target key end

     0   :  { %s19889_s6 = smov 1   ;;  %s19890_s10 = smov 2   ;;  %s25029_s0 = inlined_call_operand.smem [shape: u32[42], index: -1, kind: input, shape index: {}] }
   0x1   :  { %s19946_s5 = sld [smem:[%s25029_s0]]   ;;  %s19891_s14 = smov 3  }
   0x2   :  { %s19951_s9 = sld [smem:[%s25029_s0 + %s19889_s6]]   ;;  %s19892_s18 = smov 4  }
   0x3   :  { %s19956_s13 = sld [smem:[%s25029_s0 + %s19890_s10]]   ;;  %s19893_s22 = smov 5  }
   0x4   :  { %s19961_s17 = sld [smem:[%s25029_s0 + %s19891_s14]]   ;;  %s19894_s26 = smov 6  }
   0x5   :  { %s19966_s21 = sld [smem:[%s25029_s0 + %s19892_s18]]   ;;  %s19895_s30 = smov 7  }
   0x6   :  { %s19971_s25 = sld [smem:[%s25029_s0 + %s19893_s22]]   ;;  %s19896_s4 = smov 8  }
   0x7   :  { %25187 = sst [smem:[#allocation6_spill]] %s19946_s5  ;;  %s19897_s10 = smov 9  }
   0x8   :  { %s19976_s29 = sld [smem:[%s25029_s0 + %s19894_s26]]   ;;  %s19898_s15 = smov 10  }
   0x9   :  { %25188 = sst [smem:[#allocation7_spill]] %s19956_s13  ;;  %s19899_s20 = smov 11  }
   0xa   :  { %25189 = sst [smem:[#allocation8_spill]] %s19961_s17  ;;  %s19900_s26 = smov 12  }
   0xb   :  { %25190 = sst [smem:[#allocation9_spill]] %s19966_s21  ;;  %s19901_s1 = smov 13  }
   0xc   :  { %25191 = sst [smem:[#allocation10_spill]] %s19971_s25  ;;  %s19902_s7 = smov 14  }
   0xd   :  { %s19981_s3 = sld [smem:[%s25029_s0 + %s19895_s30]]   ;;  %s19904_s22 = smov 16  }
   0xe   :  { %25192 = sst [smem:[#allocation11_spill]] %s19976_s29  ;;  %s19905_s28 = smov 17  }
   0xf   :  { %s19986_s8 = sld [smem:[%s25029_s0 + %s19896_s4]]  }
  0x10   :  { %s19991_s14 = sld [smem:[%s25029_s0 + %s19897_s10]]  }
  0x11   :  { %s19996_s19 = sld [smem:[%s25029_s0 + %s19898_s15]]   ;;  %s19903_s15 = smov 15  }
  0x12   :  { %s20001_s24 = sld [smem:[%s25029_s0 + %s19899_s20]]  }
  0x13   :  { %25193 = sst [smem:[#allocation12_spill]] %s19981_s3 }
  0x14   :  { %s20006_s30 = sld [smem:[%s25029_s0 + %s19900_s26]]  }
  0x15   :  { %25194 = sst [smem:[#allocation13_spill]] %s19986_s8 }
  0x16   :  { %s20011_s6 = sld [smem:[%s25029_s0 + %s19901_s1]]  }
  0x17   :  { %s20016_s12 = sld [smem:[%s25029_s0 + %s19902_s7]]   ;;  %s19906_s7 = smov 18  }
  0x18   :  { %25195 = sst [smem:[#allocation14_spill]] %s20001_s24 }
  0x19   :  { %s20021_s20 = sld [smem:[%s25029_s0 + %s19903_s15]]   ;;  %s19907_s15 = smov 19  }
  0x1a   :  { %25196 = sst [smem:[#allocation15_spill]] %s20006_s30 }
  0x1b   :  { %s20026_s27 = sld [smem:[%s25029_s0 + %s19904_s22]]   ;;  %s19908_s22 = smov 20  }
  0x1c   :  { %25197 = sst [smem:[#allocation16_spill]] %s20011_s6 }
  0x1d   :  { %s20031_s4 = sld [smem:[%s25029_s0 + %s19905_s28]]   ;;  %s19909_s28 = smov 21  }
  0x1e   :  { %s20036_s21 = sld [smem:[%s25029_s0 + %s19906_s7]]   ;;  %s19910_s7 = smov 22  }
  0x1f   :  { %25198 = sst [smem:[#allocation17_spill]] %s20021_s20 }
  0x20   :  { %s20041_s25 = sld [smem:[%s25029_s0 + %s19907_s15]]   ;;  %s19911_s15 = smov 23  }
  0x21   :  { %25199 = sst [smem:[#allocation18_spill]] %s20026_s27 }
  0x22   :  { %s20046_s8 = sld [smem:[%s25029_s0 + %s19908_s22]]   ;;  %s19912_s22 = smov 24  }
  0x23   :  { %25200 = sst [smem:[#allocation19_spill]] %s20031_s4 }
  0x24   :  { %25201 = sst [smem:[#allocation20_spill]] %s20036_s21 }
  0x25   :  { %s20051_s4 = sld [smem:[%s25029_s0 + %s19909_s28]]   ;;  %s19913_s28 = smov 25  }
  0x26   :  { %25202 = sst [smem:[#allocation21_spill]] %s20041_s25 }
  0x27   :  { %s20056_s21 = sld [smem:[%s25029_s0 + %s19910_s7]]   ;;  %s19914_s7 = smov 26  }
  0x28   :  { %25203 = sst [smem:[#allocation22_spill]] %s20046_s8 }
  0x29   :  { %s20061_s25 = sld [smem:[%s25029_s0 + %s19911_s15]]   ;;  %s19915_s15 = smov 27  }
  0x2a   :  { %s20066_s8 = sld [smem:[%s25029_s0 + %s19912_s22]]   ;;  %s19916_s22 = smov 28  }
  0x2b   :  { %25204 = sst [smem:[#allocation23_spill]] %s20051_s4 }
  0x2c   :  { %s20071_s4 = sld [smem:[%s25029_s0 + %s19913_s28]]   ;;  %s19917_s28 = smov 29  }
  0x2d   :  { %s20076_s27 = sld [smem:[%s25029_s0 + %s19914_s7]]   ;;  %s19918_s7 = smov 30  }
  0x2e   :  { %s20081_s29 = sld [smem:[%s25029_s0 + %s19915_s15]]   ;;  %s19919_s15 = smov 31  }
  0x2f   :  { %s20086_s3 = sld [smem:[%s25029_s0 + %s19916_s22]]   ;;  %s19920_s22 = smov 32  }
  0x30   :  { %s20091_s17 = sld [smem:[%s25029_s0 + %s19917_s28]]   ;;  %s19921_s28 = smov 33  }
  0x31   :  { %s20096_s24 = sld [smem:[%s25029_s0 + %s19918_s7]]   ;;  %s19922_s7 = smov 34  }
  0x32   :  { %25205 = sst [smem:[#allocation24_spill]] %s20071_s4 }
  0x33   :  { %s20101_s20 = sld [smem:[%s25029_s0 + %s19919_s15]]   ;;  %s19923_s15 = smov 35  }
  0x34   :  { %s20106_s13 = sld [smem:[%s25029_s0 + %s19920_s22]]   ;;  %s19924_s22 = smov 36  }
  0x35   :  { %25206 = sst [smem:[#allocation25_spill]] %s20086_s3 }
  0x36   :  { %25207 = sst [smem:[#allocation26_spill]] %s20091_s17 }
  0x37   :  { %25208 = sst [smem:[#allocation27_spill]] %s20096_s24 }
  0x38   :  { %s20111_s30 = sld [smem:[%s25029_s0 + %s19921_s28]]   ;;  %s19925_s28 = smov 37  }
  0x39   :  { %25209 = sst [smem:[#allocation28_spill]] %s20101_s20 }
  0x3a   :  { %25210 = sst [smem:[#allocation29_spill]] %s20106_s13 }
  0x3b   :  { %s20116_s24 = sld [smem:[%s25029_s0 + %s19922_s7]]   ;;  %s19926_s7 = smov 38  }
  0x3c   :  { %s20121_s20 = sld [smem:[%s25029_s0 + %s19923_s15]]   ;;  %s19927_s15 = smov 39  }
  0x3d   :  { %s20126_s13 = sld [smem:[%s25029_s0 + %s19924_s22]]   ;;  %s19928_s22 = smov 40  }
  0x3e   :  { %25211 = sst [smem:[#allocation30_spill]] %s20111_s30 }
  0x3f   :  { %s20131_s30 = sld [smem:[%s25029_s0 + %s19925_s28]]   ;;  %s19929_s28 = smov 41  }
  0x40   :  { %s20136_s17 = sld [smem:[%s25029_s0 + %s19926_s7]]   ;;  %s20153_s7 = smov 0  }
  0x41   :  { %s20141_s3 = sld [smem:[%s25029_s0 + %s19927_s15]]  }
  0x42   :  { %s20146_s6 = sld [smem:[%s25029_s0 + %s19928_s22]]  }
  0x45   :  { %25212 = sst [smem:[#allocation31_spill]] %s20131_s30 }
  0x46   :  { %s20151_s30 = sld [smem:[%s25029_s0 + %s19929_s28]]  }
  0x47 LB: > { %s25213_s4 = sld [smem:[#allocation24_spill]]  ;;  %s15035_s10 = sadd.s32 4294967295, %s19887_s7   ;;  %s19887_s7 = sphi %s20153_s7, %s93_s7  }
  0x48   : > { %p15039_p0 = scmp.ge.s32.totalorder %s19887_s7, 1  ;;  %p1138_p1 = scmp.lt.s32.totalorder %s19887_s7, 3 }
  0x4a   : > { %p1139_p2 = pnand %p15039_p0, %p1138_p1 }
  0x4c   : > { %1142 = sbr.rel (%p1139_p2) target bundleno = 3925 (0xf55), region = 184 }
  0x53   : > { %p1242_p3 = scmp.lt.s32.totalorder %s15035_s10, 1  ;;  %s25214_s5 = sld [smem:[#allocation6_spill]]  ;;  %v1267_v0 = vlaneseq  ;;  %v1259_v3 = vld [vmem:[%s20056_s21] sm:$0xff]  ;;  %v1260_v4 = vld [vmem:[%s20056_s21 + $0x8] sm:$0xff]  ;;  %v1261_v6 = vld [vmem:[%s20056_s21 + $0x10] sm:$0xff]  ;;  %vm1279_vm0 = vcmask 261120  }
  0x54   : > { %v1262_v7 = vld [vmem:[%s20056_s21 + $0x18] sm:$0xff]  ;;  %v1264_v13 = vld [vmem:[%s20056_s21 + $0x28] sm:$0xff]  ;;  %v1263_v14 = vld [vmem:[%s20056_s21 + $0x20] sm:$0xff]  ;;  %v19930_v29 = vmov 0   ;;  %vm1384_vm1 = vcmask 523264   ;;  %vm1537_vm2 = vcmask 1043456  }
  0x55   : > { %s25572_s10 = smov (!%p1242_p3, %s15035_s10), 1  ;;  %v20163_v1 = vshrl.u32 %v1267_v0, 7  ;;  %v1266_v21 = vld [vmem:[%s20056_s21 + $0x38] sm:$0xff]  ;;  %v1265_v22 = vld [vmem:[%s20056_s21 + $0x30] sm:$0xff]  ;;  %19760 = vset.pattern.permute.xlu0 %v19930_v29  ;;  %19761 = vset.pattern.permute.xlu1 %v19930_v29  ;;  %v1304_v30 = vld [vmem:[%s20061_s25] sm:$0xff]  ;;  %vm1435_vm5 = vcmask 1042432  }
  0x56   : > { %s15040_s0 = sshll.u32 %s25572_s10, 3  ;;  %v1305_v34 = vld [vmem:[%s20061_s25 + $0x8] sm:$0xff]  ;;  %v1306_v35 = vld [vmem:[%s20061_s25 + $0x10] sm:$0xff]  ;;  %v1307_v41 = vld [vmem:[%s20061_s25 + $0x18] sm:$0xff]  ;;  %vm1625_vm8 = vcmask 1044480   ;;  %s16053_s15 = sshll.u32 %s25572_s10, 4 }
  0x57   : > { %v1269_v2 = vsub.s32 0, %v20163_v1  ;;  %v1309_v46 = vld [vmem:[%s20061_s25 + $0x28] sm:$0xff]  ;;  %v1308_v47 = vld [vmem:[%s20061_s25 + $0x20] sm:$0xff]  ;;  %v1311_v52 = vld [vmem:[%s20061_s25 + $0x38] sm:$0xff]  ;;  %v2744_v63 = vsub.s32 1, %v20163_v1  ;;  %s1250_s16 = scalar_lea.vmem %s19951_s9, %s16053_s15  ;;  %vm2570_vm9 = vcmask 64512  }
  0x58   : > { %v1310_v56 = vld [vmem:[%s20061_s25 + $0x30] sm:$0xff]  ;;  %v2531_v60 = vld [vmem:[%s25213_s4 + $0x8] sm:$0xff]  ;;  %vm1835_vm10 = vcmask 1046528   ;;  %vm1873_vm11 = vcmask 1040384   ;;  %vm2897_vm14 = vcmask 588800   ;;  %s25218_s18 = sld [smem:[#allocation16_spill]] }
  0x59   : > { %s20168_s11 = scalar_lea.vmem %s25214_s5, %s15040_s0  ;;  %vm3948_vm15 = vcmask 130048   ;;  %s25050_s22 = smov 96  }
  0x5a   : > { %v20173_v5 = vld [vmem:[%s20168_s11] sm:$0x3f]  ;;  %s19933_s23 = smov 64   ;;  %s19934_s26 = smov 32  }
  0x5b   : > { %v1270_v8 = vrot.slane %v20173_v5, %v1269_v2  ;;  %v20201_v0 = vrot.slane %v20173_v5, %v2744_v63  ;;  %v2734_v2 = vld [vmem:[%s19991_s14 + $0x8] sm:$0xff]  ;;  %s25219_s28 = sld [smem:[#allocation25_spill]]  ;;  %s25220_s1 = sld [smem:[#allocation26_spill]] }
  0x5c   : > { %s25221_s2 = sld [smem:[#allocation15_spill]]  ;;  %s25223_s15 = sld [smem:[#allocation28_spill]] }
  0x5d   : > { %v1271_v9 = vmul.f32 %v1270_v8, %v1259_v3  ;;  %v1272_v10 = vmul.f32 %v1270_v8, %v1260_v4  ;;  %v1273_v11 = vmul.f32 %v1270_v8, %v1261_v6  ;;  %v1274_v12 = vmul.f32 %v1270_v8, %v1262_v7  ;;  %v2530_v4 = vld [vmem:[%s25213_s4] sm:$0xff]  ;;  %v2735_v6 = vld [vmem:[%s19991_s14 + $0x10] sm:$0xff]  ;;  %s25222_s0 = sld [smem:[#allocation7_spill]]  ;;  %s25270_s4 = smov 96  }
  0x5e   : > { %v1276_v19 = vmul.f32 %v1270_v8, %v1264_v13  ;;  %v1275_v20 = vmul.f32 %v1270_v8, %v1263_v14  ;;  %v1278_v25 = vmul.f32 %v1270_v8, %v1266_v21  ;;  %v1277_v26 = vmul.f32 %v1270_v8, %v1265_v22  ;;  %v2741_v14 = vld [vmem:[%s19991_s14 + $0x40] sm:$0xff]  ;;  %s19936_s5 = smov 80  }
  0x5f   : > { %v1280_v15 = vsel %vm1279_vm0, %v1271_v9, 0.0  ;;  %v1286_v16 = vsel %vm1279_vm0, %v1273_v11, 0.0  ;;  %v1283_v17 = vsel %vm1279_vm0, %v1272_v10, 0.0  ;;  %v1289_v18 = vsel %vm1279_vm0, %v1274_v12, 0.0  ;;  %v2737_v9 = vld [vmem:[%s19991_s14 + $0x20] sm:$0xff]  ;;  %v2739_v11 = vld [vmem:[%s19991_s14 + $0x30] sm:$0xff] }
  0x60   : > { %1281 = vadd.xlane.f32.xlu0 %v1280_v15  ;;  %1287 = vadd.xlane.f32.xlu1 %v1286_v16  ;;  %v1295_v23 = vsel %vm1279_vm0, %v1276_v19, 0.0  ;;  %v1292_v24 = vsel %vm1279_vm0, %v1275_v20, 0.0  ;;  %v1301_v27 = vsel %vm1279_vm0, %v1278_v25, 0.0  ;;  %v1298_v28 = vsel %vm1279_vm0, %v1277_v26, 0.0  ;;  %v1409_v20 = vld [vmem:[%s20116_s24 + $0x8] sm:$0xff]  ;;  %v2733_v21 = vld [vmem:[%s19991_s14] sm:$0xff] }
  0x61   : > { %v2747_v3 = vmul.f32 %v20201_v0, %v2734_v2  ;;  %v2748_v8 = vmul.f32 %v20201_v0, %v2735_v6  ;;  %v2750_v5 = vmul.f32 %v20201_v0, %v2737_v9  ;;  %v2752_v13 = vmul.f32 %v20201_v0, %v2739_v11 }
  0x62   : > { %v2754_v16 = vmul.f32 %v20201_v0, %v2741_v14  ;;  %v25053_v19 = vmov 0.0  }
  0x63   : > { %v2758_v7 = vsel %vm1279_vm0, %v2747_v3, 0.0  ;;  %v2761_v10 = vsel %vm1279_vm0, %v2748_v8, 0.0  ;;  %v2767_v12 = vsel %vm1279_vm0, %v2750_v5, 0.0  ;;  %v2773_v15 = vsel %vm1279_vm0, %v2752_v13, 0.0  ;;  %1410 = vst.msk [vmem:[#allocation2] sm:$0xff] %vm1384_vm1, %v25053_v19  ;;  %1411 = vst.msk [vmem:[#allocation2 + $0x8] sm:$0xff] %vm1384_vm1, %v25053_v19 }
  0x64   : > { %1284 = vadd.xlane.f32.xlu0 %v1283_v17  ;;  %1290 = vadd.xlane.f32.xlu1 %v1289_v18  ;;  %v2779_v17 = vsel %vm1279_vm0, %v2754_v16, 0.0  ;;  %v1408_v18 = vld [vmem:[%s20116_s24] sm:$0xff]  ;;  %1412 = vst.msk [vmem:[#allocation2 + $0x10] sm:$0xff] %vm1384_vm1, %v25053_v19  ;;  %1413 = vst.msk [vmem:[#allocation2 + $0x18] sm:$0xff] %vm1384_vm1, %v25053_v19 }
  0x65   : > { %4701 = vst.msk [vmem:[#allocation4] sm:$0xff] %vm1279_vm0, %v25053_v19  ;;  %4702 = vst.msk [vmem:[#allocation4 + $0x8] sm:$0xff] %vm1279_vm0, %v25053_v19 }
  0x66   : > { %4703 = vst.msk [vmem:[#allocation4 + $0x10] sm:$0xff] %vm1279_vm0, %v25053_v19  ;;  %4704 = vst.msk [vmem:[#allocation4 + $0x18] sm:$0xff] %vm1279_vm0, %v25053_v19 }
  0x67   : > { %4705 = vst.msk [vmem:[#allocation4 + $0x20] sm:$0xff] %vm1279_vm0, %v25053_v19  ;;  %4706 = vst.msk [vmem:[#allocation4 + $0x28] sm:$0xff] %vm1279_vm0, %v25053_v19 }
  0x68   : > { %1296 = vadd.xlane.f32.xlu1 %v1295_v23  ;;  %1293 = vadd.xlane.f32.xlu0 %v1292_v24  ;;  %4707 = vst.msk [vmem:[#allocation4 + $0x30] sm:$0xff] %vm1279_vm0, %v25053_v19  ;;  %4708 = vst.msk [vmem:[#allocation4 + $0x38] sm:$0xff] %vm1279_vm0, %v25053_v19  ;;  %v2746_v24 = vmul.f32 %v20201_v0, %v2733_v21 }
  0x69   : > { %4709 = vst.msk [vmem:[#allocation4 + $0x40] sm:$0xff] %vm1279_vm0, %v25053_v19  ;;  %4710 = vst.msk [vmem:[#allocation4 + $0x48] sm:$0xff] %vm1279_vm0, %v25053_v19 }
  0x6a   : > { %4711 = vst.msk [vmem:[#allocation4 + $0x50] sm:$0xff] %vm1279_vm0, %v25053_v19  ;;  %4712 = vst.msk [vmem:[#allocation4 + $0x58] sm:$0xff] %vm1279_vm0, %v25053_v19  ;;  %v20256_v22 = vld [vmem:[#allocation2] sm:$0xff]  ;;  %v2755_v29 = vsel %vm1279_vm0, %v2746_v24, 0.0 }
  0x6b   : > { %1414 = vst.msk [vmem:[#allocation2 + $0x8] sm:$0xff] %vm1384_vm1, %v1408_v18  ;;  %1415 = vst.msk [vmem:[#allocation2 + $0x10] sm:$0xff] %vm1384_vm1, %v1409_v20  ;;  %v1538_v25 = vrot.slane %v20256_v22, 4 }
  0x6c   : > { %1302 = vadd.xlane.f32.xlu1 %v1301_v27  ;;  %1299 = vadd.xlane.f32.xlu0 %v1298_v28  ;;  %v2736_v27 = vld [vmem:[%s19991_s14 + $0x18] sm:$0xff]  ;;  %2900 = vst.msk [vmem:[#allocation3 + $0x10] sm:$0xff] %vm2897_vm14, %v25053_v19  ;;  %2898 = vst.msk [vmem:[#allocation3] sm:$0xff] %vm2897_vm14, %v25053_v19 }
  0x6d   : > { %2899 = vst.msk [vmem:[#allocation3 + $0x8] sm:$0xff] %vm2897_vm14, %v25053_v19  ;;  %2901 = vst.msk [vmem:[#allocation3 + $0x18] sm:$0xff] %vm2897_vm14, %v25053_v19 }
  0x6e   : > { %9994 = vst.msk [vmem:[#allocation5] sm:$0xff] %vm3948_vm15, %v25053_v19  ;;  %9995 = vst.msk [vmem:[#allocation5 + $0x8] sm:$0xff] %vm3948_vm15, %v25053_v19 }
  0x6f   : > { %9996 = vst.msk [vmem:[#allocation5 + $0x10] sm:$0xff] %vm3948_vm15, %v25053_v19  ;;  %9997 = vst.msk [vmem:[#allocation5 + $0x18] sm:$0xff] %vm3948_vm15, %v25053_v19 }
  0x70   : > { %9998 = vst.msk [vmem:[#allocation5 + $0x20] sm:$0xff] %vm3948_vm15, %v25053_v19  ;;  %9999 = vst.msk [vmem:[#allocation5 + $0x28] sm:$0xff] %vm3948_vm15, %v25053_v19 }
  0x71   : > { %10000 = vst.msk [vmem:[#allocation5 + $0x30] sm:$0xff] %vm3948_vm15, %v25053_v19  ;;  %10001 = vst.msk [vmem:[#allocation5 + $0x38] sm:$0xff] %vm3948_vm15, %v25053_v19 }
  0x72   : > { %v20258_v23 = vld [vmem:[#allocation2 + $0x8] sm:$0xff]  ;;  %10002 = vst.msk [vmem:[#allocation5 + $0x40] sm:$0xff] %vm3948_vm15, %v25053_v19  ;;  %10003 = vst.msk [vmem:[#allocation5 + $0x48] sm:$0xff] %vm3948_vm15, %v25053_v19 }
  0x73   : > { %v1539_v26 = vrot.slane %v20258_v23, 4  ;;  %10004 = vst.msk [vmem:[#allocation5 + $0x50] sm:$0xff] %vm3948_vm15, %v25053_v19  ;;  %10005 = vst.msk [vmem:[#allocation5 + $0x58] sm:$0xff] %vm3948_vm15, %v25053_v19 }
  0x74   : > { %10006 = vst.msk [vmem:[#allocation5 + $0x60] sm:$0xff] %vm3948_vm15, %v25053_v19  ;;  %10007 = vst.msk [vmem:[#allocation5 + $0x68] sm:$0xff] %vm3948_vm15, %v25053_v19 }
  0x75   : > { %v1540_v28 = vsel %vm1537_vm2, %v1538_v25, %v1539_v26  ;;  %10008 = vst.msk [vmem:[#allocation5 + $0x70] sm:$0xff] %vm3948_vm15, %v25053_v19  ;;  %10009 = vst.msk [vmem:[#allocation5 + $0x78] sm:$0xff] %vm3948_vm15, %v25053_v19 }
  0x76   : > { %17029 = vmatprep.mubr.msk.f32.mxu0 %vm1384_vm1, %v1540_v28  ;;  %v20300_v28 = vadd.s32 8, %v20163_v1  ;;  %10010 = vst.msk [vmem:[#allocation5 + $0x80] sm:$0xff] %vm3948_vm15, %v25053_v19  ;;  %10011 = vst.msk [vmem:[#allocation5 + $0x88] sm:$0xff] %vm3948_vm15, %v25053_v19 }
  0x77   : > { %10012 = vst.msk [vmem:[#allocation5 + $0x90] sm:$0xff] %vm3948_vm15, %v25053_v19  ;;  %10013 = vst.msk [vmem:[#allocation5 + $0x98] sm:$0xff] %vm3948_vm15, %v25053_v19 }
  0x78   : > { %25215 = vst [vmem:[#allocation32_spill] sm:$0xff] %v20300_v28  ;;  %10014 = vst.msk [vmem:[#allocation5 + $0xa0] sm:$0xff] %vm3948_vm15, %v25053_v19 }
  0x79   : > { %10015 = vst.msk [vmem:[#allocation5 + $0xa8] sm:$0xff] %vm3948_vm15, %v25053_v19  ;;  %10016 = vst.msk [vmem:[#allocation5 + $0xb0] sm:$0xff] %vm3948_vm15, %v25053_v19 }
  0x7a   : > { %10017 = vst.msk [vmem:[#allocation5 + $0xb8] sm:$0xff] %vm3948_vm15, %v25053_v19  ;;  %10018 = vst.msk [vmem:[#allocation5 + $0xc0] sm:$0xff] %vm3948_vm15, %v25053_v19 }
  0x7b   : > { %10019 = vst.msk [vmem:[#allocation5 + $0xc8] sm:$0xff] %vm3948_vm15, %v25053_v19  ;;  %10020 = vst.msk [vmem:[#allocation5 + $0xd0] sm:$0xff] %vm3948_vm15, %v25053_v19 }
  0x7c   : > { %10021 = vst.msk [vmem:[#allocation5 + $0xd8] sm:$0xff] %vm3948_vm15, %v25053_v19  ;;  %10022 = vst.msk [vmem:[#allocation5 + $0xe0] sm:$0xff] %vm3948_vm15, %v25053_v19 }
  0x7d   : > { %10023 = vst.msk [vmem:[#allocation5 + $0xe8] sm:$0xff] %vm3948_vm15, %v25053_v19  ;;  %10024 = vst.msk [vmem:[#allocation5 + $0xf0] sm:$0xff] %vm3948_vm15, %v25053_v19 }
  0x7e   : > { %10025 = vst.msk [vmem:[#allocation5 + $0xf8] sm:$0xff] %vm3948_vm15, %v25053_v19  ;;  %10026 = vst.msk [vmem:[#allocation5 + $0x100] sm:$0xff] %vm3948_vm15, %v25053_v19 }
  0x7f   : > { %10027 = vst.msk [vmem:[#allocation5 + $0x108] sm:$0xff] %vm3948_vm15, %v25053_v19  ;;  %10028 = vst.msk [vmem:[#allocation5 + $0x110] sm:$0xff] %vm3948_vm15, %v25053_v19 }
  0x80   : > { %10029 = vst.msk [vmem:[#allocation5 + $0x118] sm:$0xff] %vm3948_vm15, %v25053_v19  ;;  %10030 = vst.msk [vmem:[#allocation5 + $0x120] sm:$0xff] %vm3948_vm15, %v25053_v19 }
  0x81   : > { %10031 = vst.msk [vmem:[#allocation5 + $0x128] sm:$0xff] %vm3948_vm15, %v25053_v19 }
  0xed   : > { %v1282_v31 = vpop.xlane.xlu0 %1281  ;;  %v1288_v32 = vpop.xlane.xlu1 %1287 }
  0xee   : > { %v1312_v33 = vadd.f32 %v1304_v30, %v1282_v31  ;;  %v1314_v40 = vadd.f32 %v1306_v35, %v1288_v32  ;;  %v2749_v30 = vmul.f32 %v20201_v0, %v2736_v27  ;;  %v2738_v31 = vld [vmem:[%s19991_s14 + $0x28] sm:$0xff] }
  0xf0   : > { %v1328_v36 = vmul.f32 %v1312_v33, %v1312_v33  ;;  %v1330_v44 = vmul.f32 %v1314_v40, %v1314_v40  ;;  %v2764_v32 = vsel %vm1279_vm0, %v2749_v30, 0.0 }
  0xf1   : > { %v1285_v37 = vpop.xlane.xlu0 %1284  ;;  %v1291_v38 = vpop.xlane.xlu1 %1290 }
  0xf2   : > { %v1313_v39 = vadd.f32 %v1305_v34, %v1285_v37  ;;  %1338 = vperm.xlu0 %19760, %v1328_v36   ;;  %v1315_v45 = vadd.f32 %v1307_v41, %v1291_v38  ;;  %v2740_v34 = vld [vmem:[%s19991_s14 + $0x38] sm:$0xff]  ;;  %v1320_v41 = vld [vmem:[%s20081_s29] sm:$0xff] }
  0xf3   : > { %v2753_v36 = vmul.f32 %v20201_v0, %v2740_v34  ;;  %v15045_v34 = vld [vmem:[%s20076_s27 + $0x40] sm:$0xff] }
  0xf4   : > { %v1329_v42 = vmul.f32 %v1313_v39, %v1313_v39  ;;  %v1331_v49 = vmul.f32 %v1315_v45, %v1315_v45 }
  0xf5   : > { %v1297_v43 = vpop.xlane.xlu1 %1296  ;;  %v1294_v48 = vpop.xlane.xlu0 %1293  ;;  %v2776_v37 = vsel %vm1279_vm0, %v2753_v36, 0.0  ;;  %v15048_v36 = vld [vmem:[%s20076_s27 + $0x58] sm:$0xff] }
  0xf6   : > { %1460 = vperm.xlu0 %19760, %v1313_v39   ;;  %1343 = vperm.xlu1 %19761, %v1329_v42   ;;  %v1317_v50 = vadd.f32 %v1309_v46, %v1297_v43  ;;  %v1316_v51 = vadd.f32 %v1308_v47, %v1294_v48  ;;  %v1322_v43 = vld [vmem:[%s20081_s29 + $0x10] sm:$0xff]  ;;  %v1323_v46 = vld [vmem:[%s20081_s29 + $0x18] sm:$0xff] }
  0xf8   : > { %v1332_v54 = vmul.f32 %v1316_v51, %v1316_v51  ;;  %v1333_v58 = vmul.f32 %v1317_v50, %v1317_v50 }
  0xf9   : > { %v1303_v53 = vpop.xlane.xlu1 %1302  ;;  %v1300_v57 = vpop.xlane.xlu0 %1299 }
  0xfa   : > { %1470 = vperm.xlu0 %19760, %v1315_v45   ;;  %1348 = vperm.xlu1 %19761, %v1330_v44   ;;  %v1319_v55 = vadd.f32 %v1311_v52, %v1303_v53  ;;  %v1318_v59 = vadd.f32 %v1310_v56, %v1300_v57  ;;  %v1325_v53 = vld [vmem:[%s20081_s29 + $0x28] sm:$0xff] }
  0xfc   : > { %v1334_v61 = vmul.f32 %v1318_v59, %v1318_v59  ;;  %v1335_v62 = vmul.f32 %v1319_v55, %v1319_v55 }
  0xfe   : > { %1480 = vperm.xlu0 %19760, %v1317_v50   ;;  %1353 = vperm.xlu1 %19761, %v1331_v49   ;;  %v1324_v49 = vld [vmem:[%s20081_s29 + $0x20] sm:$0xff] }
 0x102   : > { %1490 = vperm.xlu0 %19760, %v1319_v55   ;;  %1358 = vperm.xlu1 %19761, %v1332_v54  }
 0x106   : > { %2539 = vperm.xlu0 %19760, %v2531_v60   ;;  %1363 = vperm.xlu1 %19761, %v1333_v58  }
 0x10a   : > { %1368 = vperm.xlu1 %19761, %v1334_v61  }
 0x10e   : > { %1373 = vperm.xlu1 %19761, %v1335_v62   ;;  %v1326_v62 = vld [vmem:[%s20081_s29 + $0x30] sm:$0xff] }
 0x112   : > { %1455 = vperm.xlu1 %19761, %v1312_v33   ;;  %v2751_v33 = vmul.f32 %v20201_v0, %v2738_v31  ;;  %v1423_v31 = vand.u32 3, %v20163_v1 }
 0x114   : > { %v2770_v35 = vsel %vm1279_vm0, %v2751_v33, 0.0  ;;  %v15046_v33 = vld [vmem:[%s20076_s27 + $0x48] sm:$0xff]  ;;  %vm1425_vm3 = vcmp.ge.s32.totalorder %v1423_v31, 1  ;;  %vm20381_vm6 = vcmp.le.s32.totalorder %v1423_v31, 2 }
 0x116   : > { %1465 = vperm.xlu1 %19761, %v1314_v40   ;;  %v1321_v40 = vld [vmem:[%s20081_s29 + $0x8] sm:$0xff] }
 0x11a   : > { %1475 = vperm.xlu1 %19761, %v1316_v51  }
 0x11e   : > { %1485 = vperm.xlu1 %19761, %v1318_v59  }
 0x122   : > { %2534 = vperm.xlu1 %19761, %v2530_v4  }
 0x125   : > { %2759 = vadd.xlane.f32.xlu0 %v2758_v7  ;;  %v1327_v7 = vld [vmem:[%s20081_s29 + $0x38] sm:$0xff] }
 0x129   : > { %2762 = vadd.xlane.f32.xlu0 %v2761_v10 }
 0x12d   : > { %2768 = vadd.xlane.f32.xlu0 %v2767_v12 }
 0x131   : > { %2774 = vadd.xlane.f32.xlu0 %v2773_v15 }
 0x135   : > { %2780 = vadd.xlane.f32.xlu0 %v2779_v17 }
 0x146   : > { %2756 = vadd.xlane.f32.xlu1 %v2755_v29 }
 0x14a   : > { %2765 = vadd.xlane.f32.xlu1 %v2764_v32  ;;  %v1424_v32 = vand.u32 3, %v20300_v28 }
 0x14c   : > { %vm1426_vm4 = vcmp.ge.s32.totalorder %v1424_v32, 1  ;;  %vm1430_vm7 = vcmp.le.s32.totalorder %v1424_v32, 2  ;;  %v20401_v32 = vsel %vm20381_vm6, 1.0, %v25053_v19 }
 0x14e   : > { %2771 = vadd.xlane.f32.xlu1 %v2770_v35  ;;  %v15047_v35 = vld [vmem:[%s20076_s27 + $0x50] sm:$0xff] }
 0x152   : > { %2777 = vadd.xlane.f32.xlu1 %v2776_v37 }
 0x171   : > { %v1339_v42 = vpop.permute.xlu0 %1338 }
 0x172   : > { %v1376_v47 = vmul.f32 %v1339_v42, %v1320_v41 }
 0x174   : > { %v1385_v54 = vsel %vm1384_vm1, %v1376_v47, 0.0 }
 0x175   : > { %v1344_v38 = vpop.permute.xlu1 %1343  ;;  %v20293_v16 = vpop.permute.xlu0 %1460 }
 0x176   : > { %v1377_v45 = vmul.f32 %v1344_v38, %v1321_v40  ;;  %v1519_v40 = vmul.f32 %v15046_v33, %v20293_v16 }
 0x178   : > { %v1386_v51 = vsel %vm1384_vm1, %v1377_v45, 0.0  ;;  %v15050_v45 = vld [vmem:[%s20076_s27 + $0x68] sm:$0xff] }
 0x179   : > { %v1349_v39 = vpop.permute.xlu1 %1348  ;;  %v1387_v57 = vadd.f32 %v1386_v51, %v1385_v54  ;;  %v20295_v21 = vpop.permute.xlu0 %1470  ;;  %v20334_v51 = vsel %vm1426_vm4, 1.0, %v25053_v19 }
 0x17a   : > { %v1378_v48 = vmul.f32 %v1349_v39, %v1322_v43  ;;  %v1521_v42 = vmul.f32 %v15048_v36, %v20295_v21 }
 0x17c   : > { %v1388_v55 = vsel %vm1384_vm1, %v1378_v48, 0.0 }
 0x17d   : > { %v1354_v44 = vpop.permute.xlu1 %1353  ;;  %v1389_v61 = vadd.f32 %v1388_v55, %v1387_v57  ;;  %v20302_v29 = vpop.permute.xlu0 %1480  ;;  %v15051_v57 = vld [vmem:[%s20076_s27 + $0x70] sm:$0xff] }
 0x17e   : > { %v1379_v52 = vmul.f32 %v1354_v44, %v1323_v46  ;;  %v15049_v44 = vld [vmem:[%s20076_s27 + $0x60] sm:$0xff]  ;;  %v20327_v46 = vsel %vm1425_vm3, 1.0, %v25053_v19  ;;  %v1523_v55 = vmul.f32 %v15050_v45, %v20302_v29 }
 0x17f   : > { %v1449_v45 = vld [vmem:[%s20076_s27 + $0x20] sm:$0xff] }
 0x180   : > { %v1390_v59 = vsel %vm1384_vm1, %v1379_v52, 0.0 }
 0x181   : > { %v1359_v50 = vpop.permute.xlu1 %1358  ;;  %v1391_v0 = vadd.f32 %v1390_v59, %v1389_v61  ;;  %v20312_v37 = vpop.permute.xlu0 %1490  ;;  %v20345_v59 = vrot.slane %v20327_v46, 5  ;;  %v2783_v61 = vld [vmem:[%s19996_s19 + $0x8] sm:$0xff] }
 0x182   : > { %v1380_v56 = vmul.f32 %v1359_v50, %v1324_v49 }
 0x184   : > { %v1392_v63 = vsel %vm1384_vm1, %v1380_v56, 0.0 }
 0x185   : > { %v1364_v58 = vpop.permute.xlu1 %1363  ;;  %v1393_v6 = vadd.f32 %v1392_v63, %v1391_v0  ;;  %v20336_v52 = vpop.permute.xlu0 %2539  ;;  %v20351_v0 = vrot.slane %v20334_v51, 5 }
 0x186   : > { %v1381_v60 = vmul.f32 %v1364_v58, %v1325_v53  ;;  %v15052_v58 = vld [vmem:[%s20076_s27 + $0x78] sm:$0xff] }
 0x188   : > { %v1394_v3 = vsel %vm1384_vm1, %v1381_v60, 0.0 }
 0x189   : > { %v1369_v2 = vpop.permute.xlu1 %1368  ;;  %v1395_v9 = vadd.f32 %v1394_v3, %v1393_v6 }
 0x18a   : > { %v1382_v4 = vmul.f32 %v1369_v2, %v1326_v62 }
 0x18c   : > { %v1396_v8 = vsel %vm1384_vm1, %v1382_v4, 0.0  ;;  %v1525_v4 = vmul.f32 %v15052_v58, %v20312_v37 }
 0x18d   : > { %v1374_v10 = vpop.permute.xlu1 %1373  ;;  %v1397_v11 = vadd.f32 %v1396_v8, %v1395_v9  ;;  %v1446_v8 = vld [vmem:[%s20076_s27 + $0x8] sm:$0xff] }
 0x18e   : > { %v1383_v5 = vmul.f32 %v1374_v10, %v1327_v7  ;;  %v1445_v7 = vld [vmem:[%s20076_s27] sm:$0xff] }
 0x190   : > { %v1398_v12 = vsel %vm1384_vm1, %v1383_v5, 0.0 }
 0x191   : > { %v1399_v13 = vadd.f32 %v1398_v12, %v1397_v11  ;;  %v20297_v25 = vpop.permute.xlu1 %1455  ;;  %v20364_v11 = vsel %vm1435_vm5, %v20345_v59, %v20351_v0 }
 0x192   : > { %v1518_v39 = vmul.f32 %v15045_v34, %v20297_v25  ;;  %v2786_v34 = vld [vmem:[%s19996_s19 + $0x20] sm:$0xff] }
 0x193   : > { %v1400_v14 = vrot.slane %v1399_v13, 4 }
 0x195   : > { %v1401_v15 = vadd.f32 %v1400_v14, %v1399_v13  ;;  %v20304_v30 = vpop.permute.xlu1 %1465  ;;  %v1493_v13 = vmul.f32 %v20297_v25, %v1445_v7  ;;  %v1494_v14 = vmul.f32 %v20293_v16, %v1446_v8  ;;  %v2790_v8 = vld [vmem:[%s19996_s19 + $0x40] sm:$0xff] }
 0x196   : > { %v1520_v41 = vmul.f32 %v15047_v35, %v20304_v30 }
 0x197   : > { %v1402_v17 = vrot.slane %v1401_v15, 2 }
 0x199   : > { %v1403_v18 = vadd.f32 %v1402_v17, %v1401_v15  ;;  %v20314_v38 = vpop.permute.xlu1 %1475  ;;  %v20371_v15 = vld [vmem:[#allocation2 + $0x10] sm:$0xff]  ;;  %v1442_v17 = vmul.f32 %v20345_v59, %v20256_v22 }
 0x19a   : > { %v1522_v54 = vmul.f32 %v15049_v44, %v20314_v38 }
 0x19b   : > { %v1404_v20 = vrot.slane %v1403_v18, 1 }
 0x19d   : > { %v1405_v24 = vadd.f32 %v1404_v20, %v1403_v18  ;;  %v20340_v56 = vpop.permute.xlu1 %1485  ;;  %v1447_v18 = vld [vmem:[%s20076_s27 + $0x10] sm:$0xff]  ;;  %v1448_v20 = vld [vmem:[%s20076_s27 + $0x18] sm:$0xff] }
 0x19e   : > { %v1524_v3 = vmul.f32 %v15051_v57, %v20340_v56  ;;  %v1495_v31 = vmul.f32 %v20304_v30, %v1447_v18 }
 0x19f   : > { %v1406_v27 = vadd.f32 1e-08, %v1405_v24  ;;  %v20379_v24 = vmul.f32 %v20364_v11, %v20258_v23 }
 0x1a1   : > { %19837 = vrsqrt.f32 %v1406_v27  ;;  %v15058_v27 = vld [vmem:[%s20076_s27 + $0x88] sm:$0xff] }
 0x1ab   : > { %v20322_v43 = vpop.eup %19837 }
 0x1ac   : > { %v1526_v47 = vmul.f32 %v20322_v43, %v1518_v39  ;;  %v1527_v48 = vmul.f32 %v20322_v43, %v1519_v40  ;;  %v1528_v49 = vmul.f32 %v20322_v43, %v1520_v41  ;;  %v1529_v50 = vmul.f32 %v20322_v43, %v1521_v42 }
 0x1ad   : > { %v1530_v62 = vmul.f32 %v20322_v43, %v1522_v54  ;;  %v1531_v63 = vmul.f32 %v20322_v43, %v1523_v55  ;;  %v1532_v10 = vmul.f32 %v20322_v43, %v1524_v3  ;;  %v1533_v5 = vmul.f32 %v20322_v43, %v1525_v4  ;;  %v1451_v3 = vld [vmem:[%s20076_s27 + $0x30] sm:$0xff]  ;;  %v1452_v4 = vld [vmem:[%s20076_s27 + $0x38] sm:$0xff] }
 0x1ae   : > { %v18597_v53 = vpack.c.bf16 %v1527_v48, %v1526_v47  ;;  %v18601_v60 = vpack.c.bf16 %v1529_v50, %v1528_v49  ;;  %v1501_v35 = vmul.f32 %v20322_v43, %v1493_v13  ;;  %v1502_v36 = vmul.f32 %v20322_v43, %v1494_v14  ;;  %v1450_v47 = vld [vmem:[%s20076_s27 + $0x28] sm:$0xff] }
 0x1af   : > { %v18605_v9 = vpack.c.bf16 %v1531_v63, %v1530_v62  ;;  %v18609_v33 = vpack.c.bf16 %v1533_v5, %v1532_v10  ;;  %v1541_v39 = vrot.slane %v20371_v15, 4  ;;  %v1496_v41 = vmul.f32 %v20295_v21, %v1448_v20  ;;  %v15057_v20 = vld [vmem:[%s20076_s27 + $0x80] sm:$0xff] }
 0x1b0   : > { %18598 = vmatprep.subr.bf16.mxu0 %v18597_v53  ;;  %v1626_v42 = vrot.slane %v1442_v17, 3  ;;  %v1627_v48 = vrot.slane %v20379_v24, 3  ;;  %v20404_v49 = vsel %vm1430_vm7, 1.0, %v25053_v19  ;;  %v18613_v50 = vpack.c.bf16 %v1502_v36, %v1501_v35  ;;  %v2569_v36 = vld [vmem:[%s20121_s20] sm:$0xff]  ;;  %v20499_v24 = vpop.permute.xlu1 %2534 }
 0x1b1   : > { %18600 = vmatpush3.bf16.msra.mxu0 %v18597_v53  ;;  %v2788_v53 = vld [vmem:[%s19996_s19 + $0x30] sm:$0xff]  ;;  %v1503_v54 = vmul.f32 %v20322_v43, %v1495_v31  ;;  %v1504_v55 = vmul.f32 %v20322_v43, %v1496_v41  ;;  %v20415_v57 = vsel %vm1537_vm2, %v1539_v26, %v1541_v39  ;;  %v20420_v62 = vrot.slane %v20401_v32, 3  ;;  %17184 = vmatprep.subr.mxu1 %v2569_v36 }
 0x1b2   : > { %18602 = vmatprep.subr.bf16.mxu0 %v18601_v60  ;;  %v2760_v2 = vpop.xlane.xlu0 %2759  ;;  %v20423_v63 = vrot.slane %v20404_v49, 3  ;;  %v1628_v26 = vsel %vm1625_vm8, %v1626_v42, %v1627_v48  ;;  %v1499_v13 = vmul.f32 %v20340_v56, %v1451_v3  ;;  %v1500_v14 = vmul.f32 %v20312_v37, %v1452_v4  ;;  %17185 = vmatpush3.msra.mxu1 %v2569_v36  ;;  %v2563_v3 = vld [vmem:[%s20126_s13 + $0x10] sm:$0xff]  ;;  %v2564_v4 = vld [vmem:[%s20126_s13 + $0x18] sm:$0xff]  ;;  %v2565_v36 = vld [vmem:[%s20126_s13 + $0x20] sm:$0xff] }
 0x1b3   : > { %v20355_v6 = vadd.f32 %v2783_v61, %v2760_v2  ;;  %v1498_v61 = vmul.f32 %v20302_v29, %v1450_v47  ;;  %v18617_v7 = vpack.c.bf16 %v1504_v55, %v1503_v54  ;;  %v1718_v31 = vmul.f32 %v20420_v62, %v20256_v22  ;;  %v15060_v47 = vld [vmem:[%s20076_s27 + $0x98] sm:$0xff]  ;;  %v2562_v54 = vld [vmem:[%s20126_s13 + $0x8] sm:$0xff] }
 0x1b4   : > { %v20444_v17 = vsel %vm1625_vm8, %v20420_v62, %v20423_v63  ;;  %v1508_v35 = vmul.f32 %v20322_v43, %v1500_v14  ;;  %v1730_v42 = vmul.f32 %v15057_v20, %v20297_v25  ;;  %v15062_v14 = vld [vmem:[%s20076_s27 + $0xa8] sm:$0xff] }
 0x1b5   : > { %18604 = vmatpush3.bf16.msra.mxu0 %v18601_v60  ;;  %2927 = vperm.xlu0 %19760, %v20355_v6   ;;  %v1497_v60 = vmul.f32 %v20314_v38, %v1449_v45  ;;  %v1506_v10 = vmul.f32 %v20322_v43, %v1498_v61  ;;  %v20461_v41 = vmul.f32 %v20444_v17, %v20258_v23  ;;  %v1257_v61 = vld [vmem:[%s1250_s16] sm:$0xff] }
 0x1b6   : > { %18606 = vmatprep.subr.bf16.mxu0 %v18605_v9  ;;  %v20367_v12 = vpop.xlane.xlu0 %2762  ;;  %v1731_v45 = vmul.f32 %v15058_v27, %v20293_v16  ;;  %17186 = vmatprep.mubr.msk.f32.mxu1 %vm2570_vm9, %v1257_v61  ;;  %v18745_v27 = vpack.c.bf16 %v2564_v4, %v2563_v3  ;;  %v15068_v4 = vld [vmem:[%s20076_s27 + $0xc8] sm:$0xff] }
 0x1b9   : > { %18608 = vmatpush3.bf16.msra.mxu0 %v18605_v9  ;;  %v1505_v9 = vmul.f32 %v20322_v43, %v1497_v60  ;;  %v1739_v60 = vmul.f32 %v20322_v43, %v1731_v45 }
 0x1ba   : > { %18610 = vmatprep.subr.bf16.mxu0 %v18609_v33  ;;  %v2769_v40 = vpop.xlane.xlu0 %2768 }
 0x1bb   : > { %v20393_v44 = vadd.f32 %v2786_v34, %v2769_v40  ;;  %v1507_v34 = vmul.f32 %v20322_v43, %v1499_v13  ;;  %v1444_v40 = vmul.f32 %v20351_v0, %v20371_v15  ;;  %v15061_v13 = vld [vmem:[%s20076_s27 + $0xa0] sm:$0xff] }
 0x1bc   : > { %v1734_v45 = vmul.f32 %v15061_v13, %v20314_v38 }
 0x1bd   : > { %18612 = vmatpush3.bf16.msra.mxu0 %v18609_v33  ;;  %2942 = vperm.xlu0 %19760, %v20393_v44   ;;  %v18621_v33 = vpack.c.bf16 %v1506_v10, %v1505_v9  ;;  %v18625_v55 = vpack.c.bf16 %v1508_v35, %v1507_v34  ;;  %v1258_v9 = vld [vmem:[%s1250_s16 + $0x8] sm:$0xff]  ;;  %s25224_s16 = sld [smem:[#allocation17_spill]] }
 0x1be   : > { %18614 = vmatprep.subr.bf16.mxu0 %v18613_v50  ;;  %v2775_v58 = vpop.xlane.xlu0 %2774  ;;  %17187 = vmatmul.mubr.msk.f32.vlgmr.msra.gmra.mrb[0].mxu1 %vm2570_vm9, %v1258_v9 }
 0x1bf   : > { %v20425_v2 = vadd.f32 %v2788_v53, %v2775_v58  ;;  %v2561_v53 = vld [vmem:[%s20126_s13] sm:$0xff]  ;;  %v1738_v58 = vmul.f32 %v20322_v43, %v1730_v42 }
 0x1c0   : > { %17030 = vmatmul.mubr.msk.f32.vlgmr.msra.gmra.mrb[0].mxu0 %vm1384_vm1, %v20415_v57  ;;  %v18741_v20 = vpack.c.bf16 %v2562_v54, %v2561_v53  ;;  %v20497_v53 = vrot.slane %v20334_v51, 1  ;;  %v15064_v54 = vld [vmem:[%s20076_s27 + $0xb8] sm:$0xff]  ;;  %v2782_v51 = vld [vmem:[%s19996_s19] sm:$0xff] }
 0x1c1   : > { %18616 = vmatpush3.bf16.msra.mxu0 %v18613_v50  ;;  %2952 = vperm.xlu0 %19760, %v20425_v2   ;;  %v15059_v50 = vld [vmem:[%s20076_s27 + $0x90] sm:$0xff]  ;;  %v18629_v34 = vpack.c.bf16 %v1739_v60, %v1738_v58  ;;  %v1737_v3 = vmul.f32 %v15064_v54, %v20312_v37 }
 0x1c2   : > { %18618 = vmatprep.subr.bf16.mxu0 %v18617_v7  ;;  %v2781_v5 = vpop.xlane.xlu0 %2780  ;;  %17048 = vmatprep.mubr.msk.f32.mxu0 %vm1384_vm1, %v1628_v26  ;;  %v1629_v26 = vrot.slane %v1444_v40, 3  ;;  %v1732_v10 = vmul.f32 %v15059_v50, %v20304_v30  ;;  %v2566_v40 = vld [vmem:[%s20126_s13 + $0x28] sm:$0xff]  ;;  %v20494_v50 = vrot.slane %v20327_v46, 1  ;;  %v1742_v46 = vmul.f32 %v20322_v43, %v1734_v45  ;;  %v15069_v54 = vld [vmem:[%s20076_s27 + $0xd0] sm:$0xff] }
 0x1c3   : > { %v20446_v18 = vadd.f32 %v2790_v8, %v2781_v5  ;;  %v1750_v8 = vrot.slane %v20461_v41, 5  ;;  %v1733_v5 = vmul.f32 %v15060_v47, %v20295_v21  ;;  %18742 = vmatprep.subr.bf16.mxu1 %v18741_v20  ;;  %v1735_v47 = vmul.f32 %v15062_v14, %v20302_v29  ;;  %v15073_v41 = vld [vmem:[%s20076_s27 + $0xf0] sm:$0xff] }
 0x1c4   : > { %18744 = vmatpush3.bf16.msra.mxu1 %v18741_v20  ;;  %v1745_v20 = vmul.f32 %v20322_v43, %v1737_v3 }
 0x1c5   : > { %18620 = vmatpush3.bf16.msra.mxu0 %v18617_v7  ;;  %2962 = vperm.xlu0 %19760, %v20446_v18   ;;  %v1749_v7 = vrot.slane %v1718_v31, 5  ;;  %v1741_v35 = vmul.f32 %v20322_v43, %v1733_v5  ;;  %v1630_v31 = vsel %vm1625_vm8, %v1627_v48, %v1629_v26  ;;  %v15063_v48 = vld [vmem:[%s20076_s27 + $0xb0] sm:$0xff]  ;;  %v1743_v60 = vmul.f32 %v20322_v43, %v1735_v47  ;;  %v2785_v47 = vld [vmem:[%s19996_s19 + $0x18] sm:$0xff] }
 0x1c6   : > { %18622 = vmatprep.subr.bf16.mxu0 %v18621_v33  ;;  %18746 = vmatprep.subr.bf16.mxu1 %v18745_v27  ;;  %v1736_v61 = vmul.f32 %v15063_v48, %v20340_v56  ;;  %v20514_v26 = vsel %vm1835_vm10, %v20494_v50, %v20497_v53 }
 0x1c7   : > { %v1751_v42 = vsel %vm1435_vm5, %v1749_v7, %v1750_v8  ;;  %v2784_v7 = vld [vmem:[%s19996_s19 + $0x10] sm:$0xff]  ;;  %v18637_v13 = vpack.c.bf16 %v1743_v60, %v1742_v46 }
 0x1c8   : > { %18748 = vmatpush3.bf16.msra.mxu1 %v18745_v27  ;;  %v1744_v14 = vmul.f32 %v20322_v43, %v1736_v61  ;;  %v1720_v27 = vmul.f32 %v20423_v63, %v20371_v15 }
 0x1c9   : > { %18624 = vmatpush3.bf16.msra.mxu0 %v18621_v33  ;;  %v1740_v33 = vmul.f32 %v20322_v43, %v1732_v10  ;;  %v15067_v10 = vld [vmem:[%s20076_s27 + $0xc0] sm:$0xff] }
 0x1ca   : > { %18626 = vmatprep.subr.bf16.mxu0 %v18625_v55  ;;  %v1752_v60 = vrot.slane %v1720_v27, 5 }
 0x1cb   : > { %v18633_v58 = vpack.c.bf16 %v1741_v35, %v1740_v33  ;;  %v1842_v33 = vmul.f32 %v20494_v50, %v20256_v22  ;;  %v20529_v35 = vmul.f32 %v20514_v26, %v20258_v23  ;;  %v18641_v22 = vpack.c.bf16 %v1745_v20, %v1744_v14 }
 0x1cc   : > { %v1753_v27 = vsel %vm1435_vm5, %v1750_v8, %v1752_v60  ;;  %v15077_v60 = vld [vmem:[%s20076_s27 + $0x100] sm:$0xff] }
 0x1cd   : > { %18628 = vmatpush3.bf16.msra.mxu0 %v18625_v55  ;;  %v18749_v55 = vpack.c.bf16 %v2566_v40, %v2565_v36  ;;  %v2567_v36 = vld [vmem:[%s20126_s13 + $0x30] sm:$0xff]  ;;  %v2568_v40 = vld [vmem:[%s20126_s13 + $0x38] sm:$0xff]  ;;  %v1875_v61 = vrot.slane %v20529_v35, 7 }
 0x1ce   : > { %18630 = vmatprep.subr.bf16.mxu0 %v18629_v34  ;;  %v18753_v45 = vpack.c.bf16 %v2568_v40, %v2567_v36 }
 0x1cf   : > { %18750 = vmatprep.subr.bf16.mxu1 %v18749_v55 }
 0x1d0   : > { %17049 = vmatmul.mubr.msk.f32.vlgmr.msra.gmra.mrb[0].mxu0 %vm1384_vm1, %v1630_v31  ;;  %v20534_v31 = vadd.f32 %v2784_v7, %v20367_v12  ;;  %18752 = vmatpush3.bf16.msra.mxu1 %v18749_v55  ;;  %v1856_v55 = vmul.f32 %v15069_v54, %v20304_v30  ;;  %v2787_v7 = vld [vmem:[%s19996_s19 + $0x28] sm:$0xff] }
 0x1d1   : > { %18632 = vmatpush3.bf16.msra.mxu0 %v18629_v34  ;;  %17067 = vmatprep.mubr.msk.f32.mxu0 %vm1384_vm1, %v1751_v42  ;;  %v1855_v34 = vmul.f32 %v15068_v4, %v20293_v16  ;;  %v1854_v42 = vmul.f32 %v15067_v10, %v20297_v25  ;;  %v15071_v10 = vld [vmem:[%s20076_s27 + $0xe0] sm:$0xff] }
 0x1d2   : > { %18634 = vmatprep.subr.bf16.mxu0 %v18633_v58  ;;  %18754 = vmatprep.subr.bf16.mxu1 %v18753_v45  ;;  %v1864_v20 = vmul.f32 %v20322_v43, %v1856_v55  ;;  %v1858_v40 = vmul.f32 %v15071_v10, %v20314_v38  ;;  %v1969_v10 = vmul.f32 %v15077_v60, %v20297_v25  ;;  %v15083_v60 = vld [vmem:[%s20076_s27 + $0x130] sm:$0xff] }
 0x1d3   : > { %v2757_v9 = vpop.xlane.xlu1 %2756  ;;  %v1862_v46 = vmul.f32 %v20322_v43, %v1854_v42  ;;  %v1863_v12 = vmul.f32 %v20322_v43, %v1855_v34 }
 0x1d4   : > { %v20518_v5 = vadd.f32 %v2782_v51, %v2757_v9  ;;  %v1874_v51 = vrot.slane %v1842_v33, 7  ;;  %18756 = vmatpush3.bf16.msra.mxu1 %v18753_v45  ;;  %v2789_v45 = vld [vmem:[%s19996_s19 + $0x38] sm:$0xff]  ;;  %v1866_v54 = vmul.f32 %v20322_v43, %v1858_v40 }
 0x1d5   : > { %18636 = vmatpush3.bf16.msra.mxu0 %v18633_v58  ;;  %v15070_v58 = vld [vmem:[%s20076_s27 + $0xd8] sm:$0xff]  ;;  %v18645_v14 = vpack.c.bf16 %v1863_v12, %v1862_v46  ;;  %v1860_v46 = vmul.f32 %v15073_v41, %v20340_v56  ;;  %v15082_v41 = vld [vmem:[%s20076_s27 + $0x128] sm:$0xff] }
 0x1d6   : > { %2922 = vperm.xlu1 %19761, %v20518_v5   ;;  %18638 = vmatprep.subr.bf16.mxu0 %v18637_v13  ;;  %v1857_v4 = vmul.f32 %v15070_v58, %v20295_v21  ;;  %v1876_v33 = vsel %vm1873_vm11, %v1874_v51, %v1875_v61  ;;  %v15078_v51 = vld [vmem:[%s20076_s27 + $0x108] sm:$0xff] }
 0x1d7   : > { %v2766_v48 = vpop.xlane.xlu1 %2765 }
 0x1d8   : > { %v20545_v3 = vadd.f32 %v2785_v47, %v2766_v48  ;;  %v1865_v34 = vmul.f32 %v20322_v43, %v1857_v4  ;;  %v15074_v48 = vld [vmem:[%s20076_s27 + $0xf8] sm:$0xff]  ;;  %v1868_v4 = vmul.f32 %v20322_v43, %v1860_v46 }
 0x1d9   : > { %18640 = vmatpush3.bf16.msra.mxu0 %v18637_v13  ;;  %v15072_v13 = vld [vmem:[%s20076_s27 + $0xe8] sm:$0xff]  ;;  %v1861_v12 = vmul.f32 %v15074_v48, %v20312_v37 }
 0x1da   : > { %18642 = vmatprep.subr.bf16.mxu0 %v18641_v22  ;;  %2932 = vperm.xlu1 %19761, %v20534_v31   ;;  %v1859_v42 = vmul.f32 %v15072_v13, %v20302_v29  ;;  %v18649_v8 = vpack.c.bf16 %v1865_v34, %v1864_v20  ;;  %v1970_v13 = vmul.f32 %v15078_v51, %v20293_v16  ;;  %v15080_v20 = vld [vmem:[%s20076_s27 + $0x118] sm:$0xff] }
 0x1db   : > { %v2772_v9 = vpop.xlane.xlu1 %2771  ;;  %v15084_v51 = vld [vmem:[%s20076_s27 + $0x138] sm:$0xff] }
 0x1dc   : > { %v20561_v36 = vadd.f32 %v2787_v7, %v2772_v9  ;;  %v1867_v58 = vmul.f32 %v20322_v43, %v1859_v42  ;;  %v1869_v7 = vmul.f32 %v20322_v43, %v1861_v12  ;;  %v1844_v9 = vmul.f32 %v20497_v53, %v20371_v15 }
 0x1dd   : > { %18644 = vmatpush3.bf16.msra.mxu0 %v18641_v22  ;;  %v1974_v12 = vmul.f32 %v15082_v41, %v20302_v29 }
 0x1de   : > { %18646 = vmatprep.subr.bf16.mxu0 %v18645_v14  ;;  %2937 = vperm.xlu1 %19761, %v20545_v3   ;;  %v18653_v55 = vpack.c.bf16 %v1867_v58, %v1866_v54  ;;  %v18657_v34 = vpack.c.bf16 %v1869_v7, %v1868_v4  ;;  %v1877_v40 = vrot.slane %v1844_v9, 7  ;;  %v20607_v4 = vrot.slane %v20404_v49, 7  ;;  %v15087_v49 = vld [vmem:[%s20076_s27 + $0x140] sm:$0xff] }
 0x1df   : > { %v2778_v47 = vpop.xlane.xlu1 %2777  ;;  %v1982_v7 = vmul.f32 %v20322_v43, %v1974_v12  ;;  %v1976_v9 = vmul.f32 %v15084_v51, %v20312_v37  ;;  %v15092_v51 = vld [vmem:[%s20076_s27 + $0x168] sm:$0xff] }
 0x1e0   : > { %17068 = vmatmul.mubr.msk.f32.vlgmr.msra.gmra.mrb[0].mxu0 %vm1384_vm1, %v1753_v27  ;;  %v20573_v22 = vadd.f32 %v2789_v45, %v2778_v47  ;;  %v1977_v27 = vmul.f32 %v20322_v43, %v1969_v10  ;;  %v1972_v45 = vmul.f32 %v15080_v20, %v20295_v21  ;;  %v15081_v47 = vld [vmem:[%s20076_s27 + $0x120] sm:$0xff]  ;;  %v1878_v58 = vsel %vm1873_vm11, %v1875_v61, %v1877_v40  ;;  %v15088_v10 = vld [vmem:[%s20076_s27 + $0x148] sm:$0xff] }
 0x1e1   : > { %18648 = vmatpush3.bf16.msra.mxu0 %v18645_v14  ;;  %17086 = vmatprep.mubr.msk.f32.mxu0 %vm1384_vm1, %v1876_v33  ;;  %v15079_v14 = vld [vmem:[%s20076_s27 + $0x110] sm:$0xff]  ;;  %v1978_v33 = vmul.f32 %v20322_v43, %v1970_v13  ;;  %v1973_v46 = vmul.f32 %v15081_v47, %v20314_v38  ;;  %v15090_v47 = vld [vmem:[%s20076_s27 + $0x158] sm:$0xff] }
 0x1e2   : > { %18650 = vmatprep.subr.bf16.mxu0 %v18649_v8  ;;  %2947 = vperm.xlu1 %19761, %v20561_v36   ;;  %v1971_v42 = vmul.f32 %v15079_v14, %v20304_v30  ;;  %v1980_v54 = vmul.f32 %v20322_v43, %v1972_v45  ;;  %v15089_v45 = vld [vmem:[%s20076_s27 + $0x150] sm:$0xff] }
 0x1e3   : > { %v18661_v48 = vpack.c.bf16 %v1978_v33, %v1977_v27  ;;  %v1981_v61 = vmul.f32 %v20322_v43, %v1973_v46  ;;  %v2084_v27 = vmul.f32 %v15087_v49, %v20297_v25  ;;  %v2085_v33 = vmul.f32 %v15088_v10, %v20293_v16  ;;  %v15093_v10 = vld [vmem:[%s20076_s27 + $0x170] sm:$0xff] }
 0x1e5   : > { %18652 = vmatpush3.bf16.msra.mxu0 %v18649_v8  ;;  %v1979_v8 = vmul.f32 %v20322_v43, %v1971_v42  ;;  %v18669_v14 = vpack.c.bf16 %v1982_v7, %v1981_v61 }
 0x1e6   : > { %18654 = vmatprep.subr.bf16.mxu0 %v18653_v55  ;;  %2957 = vperm.xlu1 %19761, %v20573_v22  }
 0x1e7   : > { %v18665_v35 = vpack.c.bf16 %v1980_v54, %v1979_v8  ;;  %v2093_v8 = vmul.f32 %v20322_v43, %v2085_v33  ;;  %v2086_v54 = vmul.f32 %v15089_v45, %v20304_v30  ;;  %v2090_v33 = vmul.f32 %v15093_v10, %v20340_v56  ;;  %v15097_v45 = vld [vmem:[%s20076_s27 + $0x180] sm:$0xff] }
 0x1e9   : > { %18656 = vmatpush3.bf16.msra.mxu0 %v18653_v55  ;;  %v20604_v55 = vrot.slane %v20401_v32, 7  ;;  %v1975_v32 = vmul.f32 %v15083_v60, %v20340_v56  ;;  %v15091_v60 = vld [vmem:[%s20076_s27 + $0x160] sm:$0xff]  ;;  %v2094_v61 = vmul.f32 %v20322_v43, %v2086_v54 }
 0x1ea   : > { %18658 = vmatprep.subr.bf16.mxu0 %v18657_v34 }
 0x1eb   : > { %v20621_v13 = vsel %vm1873_vm11, %v20604_v55, %v20607_v4  ;;  %v1983_v20 = vmul.f32 %v20322_v43, %v1975_v32  ;;  %v2072_v40 = vmul.f32 %v20604_v55, %v20258_v23  ;;  %v2088_v32 = vmul.f32 %v15091_v60, %v20314_v38 }
 0x1ec   : > { %v20631_v42 = vmul.f32 %v20621_v13, %v20371_v15  ;;  %v2189_v60 = vmul.f32 %v20345_v59, %v20258_v23 }
 0x1ed   : > { %18660 = vmatpush3.bf16.msra.mxu0 %v18657_v34  ;;  %v1984_v34 = vmul.f32 %v20322_v43, %v1976_v9  ;;  %v2103_v46 = vrot.slane %v2072_v40, 1  ;;  %v2089_v9 = vmul.f32 %v15092_v51, %v20302_v29  ;;  %v20670_v51 = vmul.f32 %v20364_v11, %v20371_v15 }
 0x1ee   : > { %18662 = vmatprep.subr.bf16.mxu0 %v18661_v48  ;;  %v2104_v12 = vrot.slane %v20631_v42, 1  ;;  %v20656_v42 = vld [vmem:[#allocation2 + $0x18] sm:$0xff] }
 0x1ef   : > { %v18673_v41 = vpack.c.bf16 %v1984_v34, %v1983_v20  ;;  %v2096_v34 = vmul.f32 %v20322_v43, %v2088_v32  ;;  %v2074_v54 = vmul.f32 %v20607_v4, %v20656_v42 }
 0x1f0   : > { %17087 = vmatmul.mubr.msk.f32.vlgmr.msra.gmra.mrb[0].mxu0 %vm1384_vm1, %v1878_v58  ;;  %v2087_v58 = vmul.f32 %v15090_v47, %v20295_v21  ;;  %v2105_v49 = vsel %vm1835_vm10, %v2103_v46, %v2104_v12  ;;  %v15098_v47 = vld [vmem:[%s20076_s27 + $0x188] sm:$0xff] }
 0x1f1   : > { %18664 = vmatpush3.bf16.msra.mxu0 %v18661_v48  ;;  %17105 = vmatprep.mubr.msk.f32.mxu0 %vm1384_vm1, %v20258_v23  ;;  %v2092_v48 = vmul.f32 %v20322_v43, %v2084_v27  ;;  %v2097_v27 = vmul.f32 %v20322_v43, %v2089_v9  ;;  %v2202_v46 = vmul.f32 %v15098_v47, %v20293_v16 }
 0x1f2   : > { %18666 = vmatprep.subr.bf16.mxu0 %v18665_v35  ;;  %v2095_v7 = vmul.f32 %v20322_v43, %v2087_v58  ;;  %v2201_v58 = vmul.f32 %v15097_v45, %v20297_v25 }
 0x1f3   : > { %v2210_v9 = vmul.f32 %v20322_v43, %v2202_v46 }
 0x1f4   : > { %v18681_v20 = vpack.c.bf16 %v2095_v7, %v2094_v61  ;;  %v15100_v61 = vld [vmem:[%s20076_s27 + $0x198] sm:$0xff]  ;;  %v2209_v32 = vmul.f32 %v20322_v43, %v2201_v58 }
 0x1f5   : > { %18668 = vmatpush3.bf16.msra.mxu0 %v18665_v35  ;;  %v18677_v35 = vpack.c.bf16 %v2093_v8, %v2092_v48  ;;  %v2098_v48 = vmul.f32 %v20322_v43, %v2090_v33  ;;  %v2204_v23 = vmul.f32 %v15100_v61, %v20295_v21  ;;  %v15104_v58 = vld [vmem:[%s20076_s27 + $0x1b8] sm:$0xff]  ;;  %v15107_v61 = vld [vmem:[%s20076_s27 + $0x1c0] sm:$0xff] }
 0x1f6   : > { %18670 = vmatprep.subr.bf16.mxu0 %v18669_v14  ;;  %v18693_v33 = vpack.c.bf16 %v2210_v9, %v2209_v32 }
 0x1f7   : > { %v2212_v45 = vmul.f32 %v20322_v43, %v2204_v23  ;;  %v2315_v23 = vmul.f32 %v15107_v61, %v20297_v25  ;;  %v15113_v61 = vld [vmem:[%s20076_s27 + $0x1f0] sm:$0xff] }
 0x1f9   : > { %18672 = vmatpush3.bf16.msra.mxu0 %v18669_v14  ;;  %v15094_v14 = vld [vmem:[%s20076_s27 + $0x178] sm:$0xff] }
 0x1fa   : > { %18674 = vmatprep.subr.bf16.mxu0 %v18673_v41  ;;  %v2091_v40 = vmul.f32 %v15094_v14, %v20312_v37  ;;  %v2220_v14 = vrot.slane %v2189_v60, 3 }
 0x1fc   : > { %v2099_v8 = vmul.f32 %v20322_v43, %v2091_v40 }
 0x1fd   : > { %18676 = vmatpush3.bf16.msra.mxu0 %v18673_v41  ;;  %v18685_v41 = vpack.c.bf16 %v2097_v27, %v2096_v34  ;;  %v15101_v34 = vld [vmem:[%s20076_s27 + $0x1a0] sm:$0xff]  ;;  %v15102_v27 = vld [vmem:[%s20076_s27 + $0x1a8] sm:$0xff] }
 0x1fe   : > { %18678 = vmatprep.subr.bf16.mxu0 %v18677_v35  ;;  %v18689_v7 = vpack.c.bf16 %v2099_v8, %v2098_v48  ;;  %v2206_v48 = vmul.f32 %v15102_v27, %v20302_v29  ;;  %v15110_v27 = vld [vmem:[%s20076_s27 + $0x1d8] sm:$0xff] }
 0x200   : > { %17106 = vmatmul.mubr.msk.f32.vlgmr.msra.gmra.mrb[0].mxu0 %vm1384_vm1, %v20371_v15 }
 0x201   : > { %18680 = vmatpush3.bf16.msra.mxu0 %v18677_v35  ;;  %17124 = vmatprep.mubr.msk.f32.mxu0 %vm1384_vm1, %v2105_v49  ;;  %v15099_v35 = vld [vmem:[%s20076_s27 + $0x190] sm:$0xff]  ;;  %v2106_v49 = vrot.slane %v2074_v54, 1 }
 0x202   : > { %18682 = vmatprep.subr.bf16.mxu0 %v18681_v20  ;;  %v2203_v10 = vmul.f32 %v15099_v35, %v20304_v30  ;;  %v15103_v54 = vld [vmem:[%s20076_s27 + $0x1b0] sm:$0xff]  ;;  %v2208_v35 = vmul.f32 %v15104_v58, %v20312_v37 }
 0x203   : > { %v2107_v47 = vsel %vm1835_vm10, %v2104_v12, %v2106_v49  ;;  %v2207_v12 = vmul.f32 %v15103_v54, %v20340_v56  ;;  %v15112_v54 = vld [vmem:[%s20076_s27 + $0x1e8] sm:$0xff] }
 0x204   : > { %v2211_v40 = vmul.f32 %v20322_v43, %v2203_v10  ;;  %v2216_v49 = vmul.f32 %v20322_v43, %v2208_v35  ;;  %v2191_v10 = vmul.f32 %v20351_v0, %v20656_v42  ;;  %v2320_v35 = vmul.f32 %v15112_v54, %v20302_v29 }
 0x205   : > { %18684 = vmatpush3.bf16.msra.mxu0 %v18681_v20  ;;  %v2221_v20 = vrot.slane %v20670_v51, 3  ;;  %v2214_v51 = vmul.f32 %v20322_v43, %v2206_v48  ;;  %v2215_v9 = vmul.f32 %v20322_v43, %v2207_v12  ;;  %v2318_v48 = vmul.f32 %v15110_v27, %v20295_v21 }
 0x206   : > { %18686 = vmatprep.subr.bf16.mxu0 %v18685_v41  ;;  %v18697_v46 = vpack.c.bf16 %v2212_v45, %v2211_v40  ;;  %v2323_v40 = vmul.f32 %v20322_v43, %v2315_v23  ;;  %v15117_v23 = vld [vmem:[%s20076_s27 + $0x200] sm:$0xff] }
 0x207   : > { %v2222_v8 = vsel %vm1625_vm8, %v2220_v14, %v2221_v20 }
 0x209   : > { %18688 = vmatpush3.bf16.msra.mxu0 %v18685_v41  ;;  %v2205_v41 = vmul.f32 %v15101_v34, %v20314_v38  ;;  %v15109_v34 = vld [vmem:[%s20076_s27 + $0x1d0] sm:$0xff] }
 0x20a   : > { %18690 = vmatprep.subr.bf16.mxu0 %v18689_v7 }
 0x20b   : > { %v2213_v60 = vmul.f32 %v20322_v43, %v2205_v41  ;;  %v2317_v41 = vmul.f32 %v15109_v34, %v20304_v30 }
 0x20d   : > { %18692 = vmatpush3.bf16.msra.mxu0 %v18689_v7  ;;  %v15108_v7 = vld [vmem:[%s20076_s27 + $0x1c8] sm:$0xff]  ;;  %v18701_v32 = vpack.c.bf16 %v2214_v51, %v2213_v60  ;;  %v2326_v60 = vmul.f32 %v20322_v43, %v2318_v48  ;;  %v15119_v48 = vld [vmem:[%s20076_s27 + $0x210] sm:$0xff] }
 0x20e   : > { %18694 = vmatprep.subr.bf16.mxu0 %v18693_v33  ;;  %v2316_v14 = vmul.f32 %v15108_v7, %v20293_v16  ;;  %v15114_v7 = vld [vmem:[%s20076_s27 + $0x1f8] sm:$0xff] }
 0x210   : > { %17125 = vmatmul.mubr.msk.f32.vlgmr.msra.gmra.mrb[0].mxu0 %vm1384_vm1, %v2107_v47  ;;  %v2324_v45 = vmul.f32 %v20322_v43, %v2316_v14  ;;  %v2223_v47 = vrot.slane %v2191_v10, 3  ;;  %v2322_v10 = vmul.f32 %v15114_v7, %v20312_v37  ;;  %v15118_v14 = vld [vmem:[%s20076_s27 + $0x208] sm:$0xff] }
 0x211   : > { %18696 = vmatpush3.bf16.msra.mxu0 %v18693_v33  ;;  %17143 = vmatprep.mubr.msk.f32.mxu0 %vm1384_vm1, %v2222_v8  ;;  %v18705_v33 = vpack.c.bf16 %v2216_v49, %v2215_v9  ;;  %v15111_v8 = vld [vmem:[%s20076_s27 + $0x1e0] sm:$0xff]  ;;  %v2328_v49 = vmul.f32 %v20322_v43, %v2320_v35 }
 0x212   : > { %18698 = vmatprep.subr.bf16.mxu0 %v18697_v46  ;;  %v18709_v58 = vpack.c.bf16 %v2324_v45, %v2323_v40  ;;  %v2224_v51 = vsel %vm1625_vm8, %v2221_v20, %v2223_v47  ;;  %v2319_v12 = vmul.f32 %v15111_v8, %v20314_v38  ;;  %v2321_v20 = vmul.f32 %v15113_v61, %v20340_v56  ;;  %v19847_v45 = vld [vmem:[#allocation2 + $0x8] sm:$0xff]  ;;  %v15120_v8 = vld [vmem:[%s20076_s27 + $0x218] sm:$0xff]  ;;  %v15121_v35 = vld [vmem:[%s20076_s27 + $0x220] sm:$0xff] }
 0x213   : > { %v2425_v40 = vmul.f32 %v15117_v23, %v20297_v25  ;;  %v2413_v47 = vmul.f32 %v19847_v45, %v20420_v62  ;;  %v2332_v25 = vrot.slane %v20656_v42, 4  ;;  %v15122_v61 = vld [vmem:[%s20076_s27 + $0x228] sm:$0xff]  ;;  %v15124_v23 = vld [vmem:[%s20076_s27 + $0x238] sm:$0xff] }
 0x214   : > { %v2327_v9 = vmul.f32 %v20322_v43, %v2319_v12  ;;  %v2329_v27 = vmul.f32 %v20322_v43, %v2321_v20  ;;  %v2430_v20 = vmul.f32 %v15122_v61, %v20302_v29  ;;  %v2432_v29 = vmul.f32 %v15124_v23, %v20312_v37 }
 0x215   : > { %18700 = vmatpush3.bf16.msra.mxu0 %v18697_v46  ;;  %v2325_v46 = vmul.f32 %v20322_v43, %v2317_v41  ;;  %v2414_v41 = vmul.f32 %v20444_v17, %v20371_v15 }
 0x216   : > { %18702 = vmatprep.subr.bf16.mxu0 %v18701_v32  ;;  %v18717_v34 = vpack.c.bf16 %v2328_v49, %v2327_v9  ;;  %v2333_v49 = vsel %vm1537_vm2, %v1541_v39, %v2332_v25 }
 0x217   : > { %v2445_v12 = vrot.slane %v2414_v41, 5  ;;  %v15133_v41 = vld [vmem:[%s20016_s12 + $0x50] sm:$0xff] }
 0x219   : > { %18704 = vmatpush3.bf16.msra.mxu0 %v18701_v32  ;;  %v18713_v32 = vpack.c.bf16 %v2326_v60, %v2325_v46  ;;  %v2428_v60 = vmul.f32 %v15120_v8, %v20295_v21 }
 0x21a   : > { %18706 = vmatprep.subr.bf16.mxu0 %v18705_v33 }
 0x21b   : > { %v2436_v9 = vmul.f32 %v20322_v43, %v2428_v60 }
 0x21d   : > { %18708 = vmatpush3.bf16.msra.mxu0 %v18705_v33  ;;  %v2330_v33 = vmul.f32 %v20322_v43, %v2322_v10  ;;  %v15123_v10 = vld [vmem:[%s20076_s27 + $0x230] sm:$0xff] }
 0x21e   : > { %18710 = vmatprep.subr.bf16.mxu0 %v18709_v58  ;;  %v2431_v15 = vmul.f32 %v15123_v10, %v20340_v56  ;;  %v15137_v10 = vld [vmem:[%s20016_s12 + $0x70] sm:$0xff] }
 0x21f   : > { %v18721_v54 = vpack.c.bf16 %v2330_v33, %v2329_v27  ;;  %v2438_v27 = vmul.f32 %v20322_v43, %v2430_v20  ;;  %v2440_v33 = vmul.f32 %v20322_v43, %v2432_v29 }
 0x220   : > { %17144 = vmatmul.mubr.msk.f32.vlgmr.msra.gmra.mrb[0].mxu0 %vm1384_vm1, %v2224_v51  ;;  %v2444_v51 = vrot.slane %v2413_v47, 5  ;;  %v2439_v39 = vmul.f32 %v20322_v43, %v2431_v15  ;;  %v15132_v47 = vld [vmem:[%s20016_s12 + $0x48] sm:$0xff] }
 0x221   : > { %18712 = vmatpush3.bf16.msra.mxu0 %v18709_v58  ;;  %17162 = vmatprep.mubr.msk.f32.mxu0 %vm1384_vm1, %v20415_v57  ;;  %v2426_v57 = vmul.f32 %v15118_v14, %v20293_v16  ;;  %v2433_v58 = vmul.f32 %v20322_v43, %v2425_v40  ;;  %v2427_v16 = vmul.f32 %v15119_v48, %v20304_v30 }
 0x222   : > { %18714 = vmatprep.subr.bf16.mxu0 %v18713_v32  ;;  %v2429_v30 = vmul.f32 %v15121_v35, %v20314_v38  ;;  %v2446_v21 = vsel %vm1435_vm5, %v2444_v51, %v2445_v12  ;;  %v2415_v40 = vmul.f32 %v20423_v63, %v20656_v42 }
 0x223   : > { %v2434_v46 = vmul.f32 %v20322_v43, %v2426_v57  ;;  %v18737_v57 = vpack.c.bf16 %v2440_v33, %v2439_v39 }
 0x224   : > { %v2447_v45 = vrot.slane %v2415_v40, 5  ;;  %v15138_v40 = vld [vmem:[%s20016_s12 + $0x78] sm:$0xff] }
 0x225   : > { %18716 = vmatpush3.bf16.msra.mxu0 %v18713_v32  ;;  %v18725_v7 = vpack.c.bf16 %v2434_v46, %v2433_v58  ;;  %v2435_v32 = vmul.f32 %v20322_v43, %v2427_v16  ;;  %v15127_v46 = vld [vmem:[%s20066_s8] ss:$0 sm:$0xff] }
 0x226   : > { %18718 = vmatprep.subr.bf16.mxu0 %v18717_v34  ;;  %v2448_v56 = vsel %vm1435_vm5, %v2445_v12, %v2447_v45 }
 0x227   : > { %v18729_v14 = vpack.c.bf16 %v2436_v9, %v2435_v32 }
 0x229   : > { %18720 = vmatpush3.bf16.msra.mxu0 %v18717_v34  ;;  %v2437_v34 = vmul.f32 %v20322_v43, %v2429_v30  ;;  %v15134_v30 = vld [vmem:[%s20016_s12 + $0x58] sm:$0xff] }
 0x22a   : > { %18722 = vmatprep.subr.bf16.mxu0 %v18721_v54 }
 0x22b   : > { %v18733_v38 = vpack.c.bf16 %v2438_v27, %v2437_v34  ;;  %v15136_v34 = vld [vmem:[%s20016_s12 + $0x68] sm:$0xff] }
 0x22d   : > { %18724 = vmatpush3.bf16.msra.mxu0 %v18721_v54 }
 0x22e   : > { %18726 = vmatprep.subr.bf16.mxu0 %v18725_v7 }
 0x230   : > { %17163 = vmatmul.mubr.msk.f32.vlgmr.msra.gmra.mrb[0].mxu0 %vm1384_vm1, %v2333_v49 }
 0x231   : > { %18728 = vmatpush3.bf16.msra.mxu0 %v18725_v7  ;;  %17181 = vmatprep.mubr.msk.f32.mxu0 %vm1384_vm1, %v2446_v21  ;;  %v15135_v7 = vld [vmem:[%s20016_s12 + $0x60] sm:$0xff] }
 0x232   : > { %18730 = vmatprep.subr.bf16.mxu0 %v18729_v14 }
 0x234   : > { %v20765_v37 = vpop.permute.xlu0 %2927 }
 0x235   : > { %18732 = vmatpush3.bf16.msra.mxu0 %v18729_v14  ;;  %v2985_v48 = vmul.f32 %v15133_v41, %v20765_v37 }
 0x236   : > { %18734 = vmatprep.subr.bf16.mxu0 %v18733_v38 }
 0x239   : > { %18736 = vmatpush3.bf16.msra.mxu0 %v18733_v38  ;;  %v15139_v38 = vld [vmem:[%s20016_s12 + $0x80] sm:$0xff] }
 0x23a   : > { %18738 = vmatprep.subr.bf16.mxu0 %v18737_v57 }
 0x23c   : > { %v20785_v21 = vpop.permute.xlu0 %2942 }
 0x23d   : > { %18740 = vmatpush3.bf16.msra.mxu0 %v18737_v57  ;;  %v2988_v39 = vmul.f32 %v15136_v34, %v20785_v21  ;;  %v2916_v34 = vld [vmem:[%s20016_s12 + $0x28] sm:$0xff] }
 0x240   : > { %17182 = vmatmul.mubr.msk.f32.vlgmr.msra.gmra.mrb[0].mxu0 %vm1384_vm1, %v2448_v56  ;;  %v20797_v33 = vpop.permute.xlu0 %2952 }
 0x241   : > { %v2990_v56 = vmul.f32 %v15138_v40, %v20797_v33  ;;  %v2915_v40 = vld [vmem:[%s20016_s12 + $0x20] sm:$0xff] }
 0x244   : > { %v20802_v41 = vpop.permute.xlu0 %2962 }
 0x255   : > { %v20769_v43 = vpop.permute.xlu1 %2922 }
 0x256   : > { %v2984_v42 = vmul.f32 %v15132_v47, %v20769_v43 }
 0x258   : > { %v18757_v8 = vpack.c.bf16 %v2985_v48, %v2984_v42  ;;  %v15140_v42 = vld [vmem:[%s20016_s12 + $0x88] sm:$0xff]  ;;  %v2911_v48 = vld [vmem:[%s20016_s12] sm:$0xff] }
 0x259   : > { %v20773_v54 = vpop.permute.xlu1 %2932 }
 0x25a   : > { %18758 = vmatprep.subr.bf16.mxu1 %v18757_v8  ;;  %v2986_v14 = vmul.f32 %v15134_v30, %v20773_v54 }
 0x25d   : > { %v20776_v25 = vpop.permute.xlu1 %2937 }
 0x261   : > { %v20781_v9 = vpop.permute.xlu1 %2947 }
 0x262   : > { %v2989_v15 = vmul.f32 %v15137_v10, %v20781_v9 }
 0x264   : > { %v18765_v57 = vpack.c.bf16 %v2989_v15, %v2988_v39 }
 0x265   : > { %v20793_v29 = vpop.permute.xlu1 %2957 }
 0x266   : > { %v2991_v45 = vmul.f32 %v15139_v38, %v20793_v29 }
 0x268   : > { %v18769_v47 = vpack.c.bf16 %v2991_v45, %v2990_v56  ;;  %v2970_v56 = vmul.f32 %v20781_v9, %v2916_v34 }
 0x313   : > { %v17183_v58 = vpop.f32.mrb[0].mxu0 }
 0x314   : > { %v2543_v16 = vadd.f32 %v17183_v58, %v20336_v52  ;;  %v2519_v60 = vpop.f32.mrb[1].mxu0  ;;  %v2987_v52 = vmul.f32 %v15135_v7, %v20776_v25  ;;  %v2992_v58 = vmul.f32 %v15140_v42, %v20802_v41  ;;  %v2914_v7 = vld [vmem:[%s20016_s12 + $0x18] sm:$0xff]  ;;  %v2969_v42 = vmul.f32 %v20785_v21, %v2915_v40 }
 0x315   : > { %v2542_v51 = vadd.f32 %v20499_v24, %v2519_v60  ;;  %v2968_v10 = vmul.f32 %v20776_v25, %v2914_v7 }
 0x316   : > { %v2552_v12 = vadd.f32 %v15127_v46, %v2543_v16  ;;  %v18761_v27 = vpack.c.bf16 %v2987_v52, %v2986_v14  ;;  %v2913_v52 = vld [vmem:[%s20016_s12 + $0x10] sm:$0xff] }
 0x317   : > { %v2551_v35 = vadd.f32 %v15127_v46, %v2542_v51  ;;  %v2965_v46 = vmul.f32 %v20769_v43, %v2911_v48  ;;  %v2967_v38 = vmul.f32 %v20773_v54, %v2913_v52  ;;  %v2917_v48 = vld [vmem:[%s20016_s12 + $0x30] sm:$0xff]  ;;  %v15148_v52 = vld [vmem:[%s20016_s12 + $0xa8] sm:$0xff] }
 0x318   : > { %vm2554_vm12 = vcmp.ge.f32.partialorder %v2552_v12, 0.0  ;;  %v2556_v61 = vmul.f32 0.2, %v2552_v12  ;;  %v3183_v40 = vmul.f32 %v15148_v52, %v20776_v25  ;;  %v15156_v52 = vld [vmem:[%s20016_s12 + $0xd8] sm:$0xff] }
 0x319   : > { %vm2553_vm13 = vcmp.ge.f32.partialorder %v2551_v35, 0.0  ;;  %v2555_v32 = vmul.f32 0.2, %v2551_v35 }
 0x31a   : > { %v2558_v49 = vsel %vm2554_vm12, %v2552_v12, %v2556_v61 }
 0x31b   : > { %v2557_v20 = vsel %vm2553_vm13, %v2551_v35, %v2555_v32  ;;  %v2560_v23 = vmul.f32 1.4142135, %v2558_v49  ;;  %v20820_v35 = vld [vmem:[#allocation3] sm:$0xff] }
 0x31c   : > { %v2559_v24 = vmul.f32 1.4142135, %v2557_v20  ;;  %v2908_v61 = vmul.f32 %v20820_v35, %v20345_v59  ;;  %v2996_v32 = vrot.slane %v20820_v35, 4 }
 0x31e   : > { %17205 = vmatprep.mubr.msk.f32.mxu1 %vm1384_vm1, %v2559_v24  ;;  %v3083_v14 = vrot.slane %v2908_v61, 3  ;;  %v3167_v61 = vmul.f32 %v20820_v35, %v20420_v62 }
 0x31f   : > { %17206 = vmatmul.mubr.msk.f32.vlgmr.msra.gmra.mrb[0].mxu1 %vm1384_vm1, %v2560_v23 }
 0x320   : > { %18760 = vmatpush3.bf16.msra.mxu1 %v18757_v8  ;;  %v2912_v8 = vld [vmem:[%s20016_s12 + $0x8] sm:$0xff] }
 0x321   : > { %18762 = vmatprep.subr.bf16.mxu1 %v18761_v27  ;;  %v2966_v16 = vmul.f32 %v20765_v37, %v2912_v8  ;;  %v18781_v8 = vpack.c.bf16 %v2970_v56, %v2969_v42  ;;  %v15149_v42 = vld [vmem:[%s20016_s12 + $0xb0] sm:$0xff] }
 0x323   : > { %v18773_v60 = vpack.c.bf16 %v2966_v16, %v2965_v46  ;;  %v2971_v46 = vmul.f32 %v20797_v33, %v2917_v48 }
 0x324   : > { %18764 = vmatpush3.bf16.msra.mxu1 %v18761_v27 }
 0x325   : > { %18766 = vmatprep.subr.bf16.mxu1 %v18765_v57 }
 0x328   : > { %18768 = vmatpush3.bf16.msra.mxu1 %v18765_v57  ;;  %v18777_v57 = vpack.c.bf16 %v2968_v10, %v2967_v38 }
 0x329   : > { %18770 = vmatprep.subr.bf16.mxu1 %v18769_v47 }
 0x32c   : > { %18772 = vmatpush3.bf16.msra.mxu1 %v18769_v47  ;;  %v2918_v47 = vld [vmem:[%s20016_s12 + $0x38] sm:$0xff] }
 0x32d   : > { %17224 = vmatprep.subr.mxu1 %v2992_v58 }
 0x330   : > { %17225 = vmatpush3.msra.mxu1 %v2992_v58  ;;  %v2972_v58 = vmul.f32 %v20793_v29, %v2918_v47 }
 0x331   : > { %18774 = vmatprep.subr.bf16.mxu1 %v18773_v60 }
 0x332   : > { %v18785_v16 = vpack.c.bf16 %v2972_v58, %v2971_v46  ;;  %v15152_v46 = vld [vmem:[%s20016_s12 + $0xc8] sm:$0xff] }
 0x3f2   : > { %v17207_v51 = vpop.f32.mrb[0].mxu1 }
 0x3f3   : > { %2903 = vst.msk [vmem:[#allocation3 + $0x10] sm:$0xff] %vm2897_vm14, %v17207_v51  ;;  %v2724_v12 = vpop.f32.mrb[1].mxu1 }
 0x3f4   : > { %2902 = vst.msk [vmem:[#allocation3 + $0x8] sm:$0xff] %vm2897_vm14, %v2724_v12  ;;  %v15145_v12 = vld [vmem:[%s20016_s12 + $0x90] sm:$0xff] }
 0x3f5   : > { %v3180_v10 = vmul.f32 %v15145_v12, %v20769_v43 }
 0x3fa   : > { %v20826_v49 = vld [vmem:[#allocation3 + $0x10] sm:$0xff] }
 0x3fb   : > { %v20828_v30 = vld [vmem:[#allocation3 + $0x8] sm:$0xff]  ;;  %v2999_v20 = vrot.slane %v20826_v49, 4  ;;  %v2910_v51 = vmul.f32 %v20826_v49, %v20351_v0 }
 0x3fc   : > { %v2997_v24 = vrot.slane %v20828_v30, 4  ;;  %v2909_v23 = vmul.f32 %v20828_v30, %v20364_v11  ;;  %v3168_v7 = vmul.f32 %v20828_v30, %v20444_v17 }
 0x3fe   : > { %v2998_v27 = vsel %vm1537_vm2, %v2996_v32, %v2997_v24  ;;  %v20841_v15 = vsel %vm1537_vm2, %v2997_v24, %v2999_v20  ;;  %v3084_v39 = vrot.slane %v2909_v23, 3  ;;  %v15146_v32 = vld [vmem:[%s20016_s12 + $0x98] sm:$0xff]  ;;  %v3086_v23 = vrot.slane %v2910_v51, 3 }
 0x3ff   : > { %17226 = vmatprep.mubr.msk.f32.mxu1 %vm2897_vm14, %v2998_v27  ;;  %v3181_v34 = vmul.f32 %v15146_v32, %v20765_v37  ;;  %v3192_v27 = vrot.slane %v3167_v61, 5  ;;  %v3193_v38 = vrot.slane %v3168_v7, 5  ;;  %v3187_v51 = vmul.f32 %v15152_v46, %v20793_v29  ;;  %v15153_v7 = vld [vmem:[%s20016_s12 + $0xd0] sm:$0xff] }
 0x400   : > { %17227 = vmatmul.mubr.msk.f32.vlgmr.msra.gmra.mrb[2].mxu1 %vm2897_vm14, %v20841_v15  ;;  %v3085_v45 = vsel %vm1625_vm8, %v3083_v14, %v3084_v39  ;;  %v15147_v14 = vld [vmem:[%s20016_s12 + $0xa0] sm:$0xff]  ;;  %v3087_v47 = vsel %vm1625_vm8, %v3084_v39, %v3086_v23  ;;  %v3169_v32 = vmul.f32 %v20826_v49, %v20423_v63 }
 0x401   : > { %18776 = vmatpush3.bf16.msra.mxu1 %v18773_v60  ;;  %17247 = vmatprep.mubr.msk.f32.mxu1 %vm2897_vm14, %v3085_v45  ;;  %v2919_v60 = vld [vmem:[%s20016_s12 + $0x40] sm:$0xff]  ;;  %v18789_v45 = vpack.c.bf16 %v3181_v34, %v3180_v10  ;;  %v3182_v56 = vmul.f32 %v15147_v14, %v20773_v54  ;;  %v3194_v48 = vsel %vm1435_vm5, %v3192_v27, %v3193_v38  ;;  %v15159_v14 = vld [vmem:[%s20016_s12 + $0xf0] sm:$0xff] }
 0x402   : > { %18778 = vmatprep.subr.bf16.mxu1 %v18777_v57  ;;  %v2973_v24 = vmul.f32 %v20802_v41, %v2919_v60  ;;  %v15151_v39 = vld [vmem:[%s20016_s12 + $0xc0] sm:$0xff]  ;;  %v3279_v10 = vmul.f32 %v20828_v30, %v20514_v26  ;;  %v3188_v34 = vmul.f32 %v15153_v7, %v20802_v41  ;;  %v3291_v27 = vmul.f32 %v15156_v52, %v20769_v43 }
 0x403   : > { %v3186_v12 = vmul.f32 %v15151_v39, %v20797_v33  ;;  %v15157_v23 = vld [vmem:[%s20016_s12 + $0xe0] sm:$0xff]  ;;  %v15163_v39 = vld [vmem:[%s20016_s12 + $0x110] sm:$0xff]  ;;  %v3280_v52 = vmul.f32 %v20826_v49, %v20497_v53  ;;  %v15172_v53 = vld [vmem:[%s20016_s12 + $0x148] sm:$0xff] }
 0x405   : > { %18780 = vmatpush3.bf16.msra.mxu1 %v18777_v57  ;;  %v15150_v57 = vld [vmem:[%s20016_s12 + $0xb8] sm:$0xff]  ;;  %v18801_v61 = vpack.c.bf16 %v3187_v51, %v3186_v12  ;;  %v3298_v12 = vmul.f32 %v15163_v39, %v20793_v29 }
 0x406   : > { %18782 = vmatprep.subr.bf16.mxu1 %v18781_v8  ;;  %v3185_v58 = vmul.f32 %v15150_v57, %v20781_v9  ;;  %v15158_v57 = vld [vmem:[%s20016_s12 + $0xe8] sm:$0xff] }
 0x409   : > { %18784 = vmatpush3.bf16.msra.mxu1 %v18781_v8  ;;  %v18793_v8 = vpack.c.bf16 %v3183_v40, %v3182_v56  ;;  %v3195_v40 = vrot.slane %v3169_v32, 5  ;;  %v15164_v32 = vld [vmem:[%s20016_s12 + $0x118] sm:$0xff] }
 0x40a   : > { %18786 = vmatprep.subr.bf16.mxu1 %v18785_v16 }
 0x40d   : > { %18788 = vmatpush3.bf16.msra.mxu1 %v18785_v16  ;;  %v3184_v16 = vmul.f32 %v15149_v42, %v20785_v21  ;;  %v3293_v42 = vmul.f32 %v15158_v57, %v20773_v54 }
 0x40e   : > { %17245 = vmatprep.subr.mxu1 %v2973_v24 }
 0x40f   : > { %v18797_v60 = vpack.c.bf16 %v3185_v58, %v3184_v16 }
 0x411   : > { %17246 = vmatpush3.msra.mxu1 %v2973_v24  ;;  %v3278_v24 = vmul.f32 %v20820_v35, %v20494_v50  ;;  %v3294_v50 = vmul.f32 %v15159_v14, %v20776_v25  ;;  %v15161_v35 = vld [vmem:[%s20016_s12 + $0x100] sm:$0xff]  ;;  %v3299_v14 = vmul.f32 %v15164_v32, %v20802_v41 }
 0x412   : > { %17248 = vmatmul.mubr.msk.f32.vlgmr.msra.gmra.mrb[2].mxu1 %vm2897_vm14, %v3087_v47  ;;  %18790 = vmatprep.subr.bf16.mxu1 %v18789_v45  ;;  %v3304_v47 = vrot.slane %v3279_v10, 7  ;;  %v3296_v16 = vmul.f32 %v15161_v35, %v20781_v9  ;;  %v15168_v10 = vld [vmem:[%s20016_s12 + $0x128] sm:$0xff]  ;;  %v15181_v32 = vld [vmem:[%s20016_s12 + $0x180] sm:$0xff] }
 0x413   : > { %18792 = vmatpush3.bf16.msra.mxu1 %v18789_v45  ;;  %17268 = vmatprep.mubr.msk.f32.mxu1 %vm2897_vm14, %v3194_v48  ;;  %v3292_v45 = vmul.f32 %v15157_v23, %v20765_v37  ;;  %v3303_v56 = vrot.slane %v3278_v24, 7  ;;  %v3196_v48 = vsel %vm1435_vm5, %v3193_v38, %v3195_v40  ;;  %v18809_v46 = vpack.c.bf16 %v3294_v50, %v3293_v42  ;;  %v15167_v24 = vld [vmem:[%s20016_s12 + $0x120] sm:$0xff]  ;;  %v15170_v23 = vld [vmem:[%s20016_s12 + $0x138] sm:$0xff]  ;;  %v15169_v40 = vld [vmem:[%s20016_s12 + $0x130] sm:$0xff] }
 0x414   : > { %18794 = vmatprep.subr.bf16.mxu1 %v18793_v8  ;;  %v3400_v57 = vmul.f32 %v15168_v10, %v20765_v37  ;;  %v3401_v50 = vmul.f32 %v15169_v40, %v20773_v54  ;;  %v15180_v10 = vld [vmem:[%s20016_s12 + $0x178] sm:$0xff] }
 0x415   : > { %v18805_v26 = vpack.c.bf16 %v3292_v45, %v3291_v27  ;;  %v3305_v58 = vsel %vm1873_vm11, %v3303_v56, %v3304_v47  ;;  %v3306_v27 = vrot.slane %v3280_v52, 7  ;;  %v3402_v45 = vmul.f32 %v15170_v23, %v20776_v25 }
 0x416   : > { %v3504_v40 = vmul.f32 %v15180_v10, %v20773_v54 }
 0x417   : > { %18796 = vmatpush3.bf16.msra.mxu1 %v18793_v8  ;;  %v15160_v8 = vld [vmem:[%s20016_s12 + $0xf8] sm:$0xff]  ;;  %v3307_v35 = vsel %vm1873_vm11, %v3304_v47, %v3306_v27  ;;  %v18825_v42 = vpack.c.bf16 %v3402_v45, %v3401_v50  ;;  %v15173_v47 = vld [vmem:[%s20016_s12 + $0x150] sm:$0xff]  ;;  %v15185_v50 = vld [vmem:[%s20016_s12 + $0x1a0] sm:$0xff] }
 0x418   : > { %18798 = vmatprep.subr.bf16.mxu1 %v18797_v60  ;;  %v3295_v38 = vmul.f32 %v15160_v8, %v20785_v21  ;;  %v15174_v8 = vld [vmem:[%s20016_s12 + $0x158] sm:$0xff]  ;;  %v3405_v39 = vmul.f32 %v15173_v47, %v20797_v33  ;;  %v15183_v27 = vld [vmem:[%s20016_s12 + $0x190] sm:$0xff] }
 0x41a   : > { %v18813_v51 = vpack.c.bf16 %v3296_v16, %v3295_v38  ;;  %v3406_v16 = vmul.f32 %v15174_v8, %v20793_v29 }
 0x41b   : > { %18800 = vmatpush3.bf16.msra.mxu1 %v18797_v60  ;;  %v15162_v60 = vld [vmem:[%s20016_s12 + $0x108] sm:$0xff] }
 0x41c   : > { %18802 = vmatprep.subr.bf16.mxu1 %v18801_v61  ;;  %v18833_v38 = vpack.c.bf16 %v3406_v16, %v3405_v39  ;;  %v15189_v39 = vld [vmem:[%s20016_s12 + $0x1b0] sm:$0xff] }
 0x41f   : > { %18804 = vmatpush3.bf16.msra.mxu1 %v18801_v61  ;;  %v3297_v61 = vmul.f32 %v15162_v60, %v20797_v33  ;;  %v15175_v60 = vld [vmem:[%s20016_s12 + $0x160] sm:$0xff] }
 0x420   : > { %17266 = vmatprep.subr.mxu1 %v3188_v34  ;;  %v3407_v52 = vmul.f32 %v15175_v60, %v20802_v41  ;;  %v3601_v60 = vmul.f32 %v20826_v49, %v20364_v11 }
 0x421   : > { %v18817_v7 = vpack.c.bf16 %v3298_v12, %v3297_v61  ;;  %v3489_v12 = vmul.f32 %v20828_v30, %v20604_v55  ;;  %v3490_v61 = vmul.f32 %v20826_v49, %v20621_v13  ;;  %v3505_v55 = vmul.f32 %v15181_v32, %v20776_v25 }
 0x422   : > { %v3626_v10 = vrot.slane %v3601_v60, 3  ;;  %v15202_v60 = vld [vmem:[%s20016_s12 + $0x208] sm:$0xff] }
 0x423   : > { %17267 = vmatpush3.msra.mxu1 %v3188_v34  ;;  %v3399_v34 = vmul.f32 %v15167_v24, %v20769_v43 }
 0x424   : > { %17269 = vmatmul.mubr.msk.f32.vlgmr.msra.gmra.mrb[2].mxu1 %vm2897_vm14, %v3196_v48  ;;  %18806 = vmatprep.subr.bf16.mxu1 %v18805_v26  ;;  %v3404_v48 = vmul.f32 %v15172_v53, %v20781_v9  ;;  %v18841_v53 = vpack.c.bf16 %v3505_v55, %v3504_v40 }
 0x425   : > { %18808 = vmatpush3.bf16.msra.mxu1 %v18805_v26  ;;  %17289 = vmatprep.mubr.msk.f32.mxu1 %vm2897_vm14, %v3305_v58  ;;  %v18821_v56 = vpack.c.bf16 %v3400_v57, %v3399_v34  ;;  %v15171_v26 = vld [vmem:[%s20016_s12 + $0x140] sm:$0xff]  ;;  %v3515_v34 = vrot.slane %v3490_v61, 1  ;;  %v15182_v57 = vld [vmem:[%s20016_s12 + $0x188] sm:$0xff] }
 0x426   : > { %18810 = vmatprep.subr.bf16.mxu1 %v18809_v46  ;;  %v3403_v58 = vmul.f32 %v15171_v26, %v20785_v21  ;;  %v15184_v26 = vld [vmem:[%s20016_s12 + $0x198] sm:$0xff] }
 0x427   : > { %v3508_v8 = vmul.f32 %v15184_v26, %v20797_v33 }
 0x429   : > { %18812 = vmatpush3.bf16.msra.mxu1 %v18809_v46  ;;  %v18829_v46 = vpack.c.bf16 %v3404_v48, %v3403_v58  ;;  %v3509_v48 = vmul.f32 %v15185_v50, %v20793_v29  ;;  %v20962_v58 = vld [vmem:[#allocation3 + $0x18] sm:$0xff] }
 0x42a   : > { %18814 = vmatprep.subr.bf16.mxu1 %v18813_v51  ;;  %v3491_v16 = vmul.f32 %v20962_v58, %v20607_v4 }
 0x42b   : > { %v18849_v47 = vpack.c.bf16 %v3509_v48, %v3508_v8  ;;  %v3602_v48 = vmul.f32 %v20962_v58, %v20351_v0  ;;  %v15200_v8 = vld [vmem:[%s20016_s12 + $0x1f8] sm:$0xff]  ;;  %v15205_v0 = vld [vmem:[%s20016_s12 + $0x220] sm:$0xff] }
 0x42c   : > { %v3517_v32 = vrot.slane %v3491_v16, 1 }
 0x42d   : > { %18816 = vmatpush3.bf16.msra.mxu1 %v18813_v51  ;;  %v15178_v51 = vld [vmem:[%s20016_s12 + $0x168] sm:$0xff] }
 0x42e   : > { %18818 = vmatprep.subr.bf16.mxu1 %v18817_v7  ;;  %v3502_v24 = vmul.f32 %v15178_v51, %v20769_v43  ;;  %v15190_v51 = vld [vmem:[%s20016_s12 + $0x1b8] sm:$0xff]  ;;  %v3518_v55 = vsel %vm1835_vm10, %v3515_v34, %v3517_v32 }
 0x42f   : > { %v3614_v4 = vmul.f32 %v15190_v51, %v20765_v37 }
 0x431   : > { %18820 = vmatpush3.bf16.msra.mxu1 %v18817_v7  ;;  %v15179_v7 = vld [vmem:[%s20016_s12 + $0x170] sm:$0xff] }
 0x432   : > { %17287 = vmatprep.subr.mxu1 %v3299_v14  ;;  %v3503_v23 = vmul.f32 %v15179_v7, %v20765_v37  ;;  %v3613_v7 = vmul.f32 %v15189_v39, %v20769_v43  ;;  %v3721_v39 = vmul.f32 %v15200_v8, %v20769_v43 }
 0x434   : > { %v18837_v13 = vpack.c.bf16 %v3503_v23, %v3502_v24  ;;  %v15194_v23 = vld [vmem:[%s20016_s12 + $0x1d8] sm:$0xff]  ;;  %v18853_v11 = vpack.c.bf16 %v3614_v4, %v3613_v7  ;;  %v3723_v7 = vmul.f32 %v15202_v60, %v20773_v54 }
 0x435   : > { %17288 = vmatpush3.msra.mxu1 %v3299_v14  ;;  %v3514_v14 = vrot.slane %v3489_v12, 1  ;;  %v15192_v12 = vld [vmem:[%s20016_s12 + $0x1c8] sm:$0xff] }
 0x436   : > { %17290 = vmatmul.mubr.msk.f32.vlgmr.msra.gmra.mrb[2].mxu1 %vm2897_vm14, %v3307_v35  ;;  %18822 = vmatprep.subr.bf16.mxu1 %v18821_v56  ;;  %v3506_v35 = vmul.f32 %v15182_v57, %v20785_v21  ;;  %v3618_v57 = vmul.f32 %v15194_v23, %v20781_v9 }
 0x437   : > { %18824 = vmatpush3.bf16.msra.mxu1 %v18821_v56  ;;  %17310 = vmatprep.mubr.msk.f32.mxu1 %vm2897_vm14, %v20828_v30  ;;  %v3516_v45 = vsel %vm1835_vm10, %v3514_v14, %v3515_v34  ;;  %v3507_v56 = vmul.f32 %v15183_v27, %v20781_v9  ;;  %v15193_v27 = vld [vmem:[%s20016_s12 + $0x1d0] sm:$0xff] }
 0x438   : > { %18826 = vmatprep.subr.bf16.mxu1 %v18825_v42  ;;  %v3617_v34 = vmul.f32 %v15193_v27, %v20785_v21 }
 0x43b   : > { %18828 = vmatpush3.bf16.msra.mxu1 %v18825_v42  ;;  %v18845_v42 = vpack.c.bf16 %v3507_v56, %v3506_v35  ;;  %v18861_v56 = vpack.c.bf16 %v3618_v57, %v3617_v34  ;;  %v3813_v57 = vmul.f32 %v20826_v49, %v20444_v17  ;;  %v15214_v34 = vld [vmem:[%s20016_s12 + $0x258] sm:$0xff]  ;;  %v15216_v17 = vld [vmem:[%s20016_s12 + $0x268] sm:$0xff] }
 0x43c   : > { %18830 = vmatprep.subr.bf16.mxu1 %v18829_v46 }
 0x43f   : > { %18832 = vmatpush3.bf16.msra.mxu1 %v18829_v46  ;;  %v15186_v46 = vld [vmem:[%s20016_s12 + $0x1a8] sm:$0xff] }
 0x440   : > { %18834 = vmatprep.subr.bf16.mxu1 %v18833_v38  ;;  %v3510_v61 = vmul.f32 %v15186_v46, %v20802_v41  ;;  %v15203_v46 = vld [vmem:[%s20016_s12 + $0x210] sm:$0xff] }
 0x443   : > { %18836 = vmatpush3.bf16.msra.mxu1 %v18833_v38  ;;  %v3600_v38 = vmul.f32 %v20828_v30, %v20345_v59  ;;  %v3616_v59 = vmul.f32 %v15192_v12, %v20776_v25  ;;  %v3724_v12 = vmul.f32 %v15203_v46, %v20776_v25 }
 0x444   : > { %17308 = vmatprep.subr.mxu1 %v3407_v52 }
 0x445   : > { %v3625_v24 = vrot.slane %v3600_v38, 3  ;;  %v3628_v38 = vrot.slane %v3602_v48, 3  ;;  %v18873_v4 = vpack.c.bf16 %v3724_v12, %v3723_v7  ;;  %v3925_v7 = vld [vmem:[%s25218_s18 + $0x10] sm:$0xff] }
 0x447   : > { %17309 = vmatpush3.msra.mxu1 %v3407_v52  ;;  %v15191_v52 = vld [vmem:[%s20016_s12 + $0x1c0] sm:$0xff]  ;;  %v3629_v32 = vsel %vm1625_vm8, %v3626_v10, %v3628_v38 }
 0x448   : > { %17311 = vmatmul.mubr.msk.f32.vlgmr.msra.gmra.mrb[2].mxu1 %vm2897_vm14, %v20826_v49  ;;  %18838 = vmatprep.subr.bf16.mxu1 %v18837_v13  ;;  %v3615_v14 = vmul.f32 %v15191_v52, %v20773_v54  ;;  %v15204_v52 = vld [vmem:[%s20016_s12 + $0x218] sm:$0xff]  ;;  %v15217_v49 = vld [vmem:[%s20016_s12 + $0x270] sm:$0xff] }
 0x449   : > { %18840 = vmatpush3.bf16.msra.mxu1 %v18837_v13  ;;  %17331 = vmatprep.mubr.msk.f32.mxu1 %vm2897_vm14, %v3516_v45  ;;  %v3627_v13 = vsel %vm1625_vm8, %v3625_v24, %v3626_v10  ;;  %v15196_v45 = vld [vmem:[%s20016_s12 + $0x1e8] sm:$0xff]  ;;  %v3726_v24 = vmul.f32 %v15205_v0, %v20781_v9  ;;  %v3725_v23 = vmul.f32 %v15204_v52, %v20785_v21  ;;  %v3923_v0 = vld [vmem:[%s25218_s18] sm:$0xff] }
 0x44a   : > { %18842 = vmatprep.subr.bf16.mxu1 %v18841_v53  ;;  %v18857_v40 = vpack.c.bf16 %v3616_v59, %v3615_v14  ;;  %v3620_v50 = vmul.f32 %v15196_v45, %v20793_v29  ;;  %v15207_v59 = vld [vmem:[%s20016_s12 + $0x230] sm:$0xff]  ;;  %v15206_v10 = vld [vmem:[%s20016_s12 + $0x228] sm:$0xff]  ;;  %v3831_v38 = vmul.f32 %v15217_v49, %v20797_v33  ;;  %17417 = vmatprep.mubr.msk.f32.mxu0 %vm3948_vm15, %v3923_v0  ;;  %v3927_v52 = vld [vmem:[%s25218_s18 + $0x20] sm:$0xff] }
 0x44b   : > { %v3728_v14 = vmul.f32 %v15207_v59, %v20793_v29  ;;  %v15212_v45 = vld [vmem:[%s20016_s12 + $0x248] sm:$0xff]  ;;  %v3929_v59 = vld [vmem:[%s25218_s18 + $0x30] sm:$0xff] }
 0x44c   : > { %v15248_v49 = vld [vmem:[%s25218_s18 + $0x90] sm:$0xff] }
 0x44d   : > { %18844 = vmatpush3.bf16.msra.mxu1 %v18841_v53  ;;  %v15195_v53 = vld [vmem:[%s20016_s12 + $0x1e0] sm:$0xff]  ;;  %v15228_v0 = vld [vmem:[%s25218_s18 + $0x70] sm:$0xff] }
 0x44e   : > { %18846 = vmatprep.subr.bf16.mxu1 %v18845_v42  ;;  %v3619_v35 = vmul.f32 %v15195_v53, %v20797_v33 }
 0x450   : > { %v18865_v26 = vpack.c.bf16 %v3620_v50, %v3619_v35  ;;  %v3731_v50 = vrot.slane %v20962_v58, 4  ;;  %v15213_v35 = vld [vmem:[%s20016_s12 + $0x250] sm:$0xff] }
 0x451   : > { %18848 = vmatpush3.bf16.msra.mxu1 %v18845_v42  ;;  %v15197_v42 = vld [vmem:[%s20016_s12 + $0x1f0] sm:$0xff]  ;;  %v3827_v8 = vmul.f32 %v15213_v35, %v20773_v54 }
 0x452   : > { %18850 = vmatprep.subr.bf16.mxu1 %v18849_v47  ;;  %v3621_v16 = vmul.f32 %v15197_v42, %v20802_v41 }
 0x455   : > { %18852 = vmatpush3.bf16.msra.mxu1 %v18849_v47  ;;  %v15201_v47 = vld [vmem:[%s20016_s12 + $0x200] sm:$0xff] }
 0x456   : > { %17329 = vmatprep.subr.mxu1 %v3510_v61  ;;  %v3722_v51 = vmul.f32 %v15201_v47, %v20765_v37  ;;  %v15215_v47 = vld [vmem:[%s20016_s12 + $0x260] sm:$0xff] }
 0x457   : > { %v3829_v54 = vmul.f32 %v15215_v47, %v20785_v21 }
 0x459   : > { %17330 = vmatpush3.msra.mxu1 %v3510_v61  ;;  %v18869_v61 = vpack.c.bf16 %v3722_v51, %v3721_v39  ;;  %v15219_v51 = vld [vmem:[%s20016_s12 + $0x280] sm:$0xff] }
 0x45a   : > { %17332 = vmatmul.mubr.msk.f32.vlgmr.msra.gmra.mrb[2].mxu1 %vm2897_vm14, %v3518_v55  ;;  %18854 = vmatprep.subr.bf16.mxu1 %v18853_v11  ;;  %v3727_v55 = vmul.f32 %v15206_v10, %v20797_v33  ;;  %v3833_v12 = vmul.f32 %v15219_v51, %v20802_v41  ;;  %v15246_v10 = vld [vmem:[%s25218_s18 + $0x80] sm:$0xff]  ;;  %v15225_v51 = vld [vmem:[%s25218_s18 + $0x58] sm:$0xff] }
 0x45b   : > { %18856 = vmatpush3.bf16.msra.mxu1 %v18853_v11  ;;  %17352 = vmatprep.mubr.msk.f32.mxu1 %vm2897_vm14, %v3627_v13  ;;  %v18877_v11 = vpack.c.bf16 %v3726_v24, %v3725_v23  ;;  %v15208_v13 = vld [vmem:[%s20016_s12 + $0x238] sm:$0xff]  ;;  %v3928_v24 = vld [vmem:[%s25218_s18 + $0x28] sm:$0xff] }
 0x45c   : > { %18858 = vmatprep.subr.bf16.mxu1 %v18857_v40  ;;  %v18881_v27 = vpack.c.bf16 %v3728_v14, %v3727_v55  ;;  %v3729_v53 = vmul.f32 %v15208_v13, %v20802_v41  ;;  %v3930_v23 = vld [vmem:[%s25218_s18 + $0x38] sm:$0xff]  ;;  %v21150_v14 = vld [vmem:[%s20168_s11] sm:$0x3f] }
 0x45f   : > { %18860 = vmatpush3.bf16.msra.mxu1 %v18857_v40  ;;  %v15211_v40 = vld [vmem:[%s20016_s12 + $0x240] sm:$0xff] }
 0x460   : > { %18862 = vmatprep.subr.bf16.mxu1 %v18861_v56 }
 0x463   : > { %18864 = vmatpush3.bf16.msra.mxu1 %v18861_v56  ;;  %v3825_v56 = vmul.f32 %v15211_v40, %v20769_v43  ;;  %v3732_v43 = vsel %vm1537_vm2, %v2999_v20, %v3731_v50  ;;  %v4624_v40 = vld [vmem:[%s25219_s28 + $0x10] sm:$0xff] }
 0x464   : > { %18866 = vmatprep.subr.bf16.mxu1 %v18865_v26 }
 0x467   : > { %18868 = vmatpush3.bf16.msra.mxu1 %v18865_v26  ;;  %v3826_v26 = vmul.f32 %v15212_v45, %v20765_v37  ;;  %v4625_v45 = vld [vmem:[%s25219_s28 + $0x18] sm:$0xff] }
 0x468   : > { %17350 = vmatprep.subr.mxu1 %v3621_v16 }
 0x469   : > { %v18885_v48 = vpack.c.bf16 %v3826_v26, %v3825_v56 }
 0x46b   : > { %17351 = vmatpush3.msra.mxu1 %v3621_v16  ;;  %v15218_v16 = vld [vmem:[%s20016_s12 + $0x278] sm:$0xff] }
 0x46c   : > { %17353 = vmatmul.mubr.msk.f32.vlgmr.msra.gmra.mrb[2].mxu1 %vm2897_vm14, %v3629_v32  ;;  %18870 = vmatprep.subr.bf16.mxu1 %v18869_v61  ;;  %v3832_v20 = vmul.f32 %v15218_v16, %v20793_v29  ;;  %v3926_v32 = vld [vmem:[%s25218_s18 + $0x18] sm:$0xff] }
 0x46d   : > { %18872 = vmatpush3.bf16.msra.mxu1 %v18869_v61  ;;  %17373 = vmatprep.mubr.msk.f32.mxu1 %vm2897_vm14, %v20841_v15  ;;  %v3812_v15 = vmul.f32 %v20828_v30, %v20420_v62  ;;  %v3838_v62 = vrot.slane %v3813_v57, 5  ;;  %v3828_v30 = vmul.f32 %v15214_v34, %v20776_v25  ;;  %v3830_v25 = vmul.f32 %v15216_v17, %v20781_v9  ;;  %v3924_v61 = vld [vmem:[%s25218_s18 + $0x8] sm:$0xff] }
 0x46e   : > { %18874 = vmatprep.subr.bf16.mxu1 %v18873_v4  ;;  %v18897_v60 = vpack.c.bf16 %v3832_v20, %v3831_v38  ;;  %v3814_v9 = vmul.f32 %v20962_v58, %v20423_v63  ;;  %v4623_v34 = vld [vmem:[%s25219_s28 + $0x8] sm:$0xff]  ;;  %v2813_v17 = vmul.f32 %v20393_v44, %v20393_v44  ;;  %v15224_v20 = vld [vmem:[%s25218_s18 + $0x50] sm:$0xff]  ;;  %v15249_v38 = vld [vmem:[%s25218_s18 + $0x98] sm:$0xff] }
 0x46f   : > { %v3837_v42 = vrot.slane %v3812_v15, 5  ;;  %v18889_v46 = vpack.c.bf16 %v3828_v30, %v3827_v8  ;;  %v18893_v39 = vpack.c.bf16 %v3830_v25, %v3829_v54  ;;  %v2811_v30 = vmul.f32 %v20534_v31, %v20534_v31 }
 0x470   : > { %v3840_v21 = vrot.slane %v3814_v9, 5  ;;  %v2814_v8 = vmul.f32 %v20561_v36, %v20561_v36  ;;  %v2816_v31 = vmul.f32 %v20573_v22, %v20573_v22  ;;  %v15247_v22 = vld [vmem:[%s25218_s18 + $0x88] sm:$0xff]  ;;  %v15226_v9 = vld [vmem:[%s25218_s18 + $0x60] sm:$0xff] }
 0x471   : > { %18876 = vmatpush3.bf16.msra.mxu1 %v18873_v4  ;;  %v3839_v37 = vsel %vm1435_vm5, %v3837_v42, %v3838_v62  ;;  %v15222_v4 = vld [vmem:[%s25218_s18 + $0x40] sm:$0xff]  ;;  %v2809_v42 = vmul.f32 %v20518_v5, %v20518_v5  ;;  %v2815_v5 = vmul.f32 %v20425_v2, %v20425_v2 }
 0x472   : > { %18878 = vmatprep.subr.bf16.mxu1 %v18877_v11  ;;  %v3841_v29 = vsel %vm1435_vm5, %v3838_v62, %v3840_v21  ;;  %v2810_v62 = vmul.f32 %v20355_v6, %v20355_v6  ;;  %v2817_v6 = vmul.f32 %v20446_v18, %v20446_v18  ;;  %v15252_v21 = vld [vmem:[%s25218_s18 + $0xb0] sm:$0xff] }
 0x475   : > { %18880 = vmatpush3.bf16.msra.mxu1 %v18877_v11  ;;  %v4628_v11 = vsub.s32 2, %v20163_v1 }
 0x476   : > { %18882 = vmatprep.subr.bf16.mxu1 %v18881_v27 }
 0x477   : > { %v4629_v55 = vrot.slane %v21150_v14, %v4628_v11  ;;  %v4648_v11 = vld [vmem:[%s25220_s1 + $0x10] sm:$0xff] }
 0x479   : > { %18884 = vmatpush3.bf16.msra.mxu1 %v18881_v27  ;;  %v4622_v27 = vld [vmem:[%s25219_s28] sm:$0xff]  ;;  %v4632_v57 = vmul.f32 %v4629_v55, %v4624_v40  ;;  %v4633_v56 = vmul.f32 %v4629_v55, %v4625_v45  ;;  %v4631_v50 = vmul.f32 %v4629_v55, %v4623_v34 }
 0x47a   : > { %17371 = vmatprep.subr.mxu1 %v3729_v53  ;;  %v4630_v13 = vmul.f32 %v4629_v55, %v4622_v27 }
 0x47b   : > { %v4643_v35 = vsel %vm1279_vm0, %v4633_v56, 0.0  ;;  %v4637_v26 = vsel %vm1279_vm0, %v4631_v50, 0.0  ;;  %v4519_v50 = vld [vmem:[%s25221_s2] sm:$0xff] }
 0x47c   : > { %v4634_v15 = vsel %vm1279_vm0, %v4630_v13, 0.0 }
 0x47d   : > { %17372 = vmatpush3.msra.mxu1 %v3729_v53  ;;  %v4640_v53 = vsel %vm1279_vm0, %v4632_v57, 0.0  ;;  %v4649_v57 = vld [vmem:[%s25220_s1 + $0x18] sm:$0xff] }
 0x47e   : > { %17374 = vmatmul.mubr.msk.f32.vlgmr.msra.gmra.mrb[2].mxu1 %vm2897_vm14, %v3732_v43  ;;  %18886 = vmatprep.subr.bf16.mxu1 %v18885_v48 }
 0x47f   : > { %18888 = vmatpush3.bf16.msra.mxu1 %v18885_v48  ;;  %17394 = vmatprep.mubr.msk.f32.mxu1 %vm2897_vm14, %v3839_v37  ;;  %v2812_v48 = vmul.f32 %v20545_v3, %v20545_v3 }
 0x480   : > { %18890 = vmatprep.subr.bf16.mxu1 %v18889_v46 }
 0x483   : > { %18892 = vmatpush3.bf16.msra.mxu1 %v18889_v46 }
 0x484   : > { %18894 = vmatprep.subr.bf16.mxu1 %v18893_v39 }
 0x487   : > { %18896 = vmatpush3.bf16.msra.mxu1 %v18893_v39  ;;  %v15223_v39 = vld [vmem:[%s25218_s18 + $0x48] sm:$0xff] }
 0x488   : > { %18898 = vmatprep.subr.bf16.mxu1 %v18897_v60 }
 0x48b   : > { %18900 = vmatpush3.bf16.msra.mxu1 %v18897_v60  ;;  %v15250_v60 = vld [vmem:[%s25218_s18 + $0xa0] sm:$0xff] }
 0x48c   : > { %17392 = vmatprep.subr.mxu1 %v3833_v12 }
 0x48f   : > { %17393 = vmatpush3.msra.mxu1 %v3833_v12  ;;  %v15251_v12 = vld [vmem:[%s25218_s18 + $0xa8] sm:$0xff] }
 0x490   : > { %17395 = vmatmul.mubr.msk.f32.vlgmr.msra.gmra.mrb[2].mxu1 %vm2897_vm14, %v3841_v29  ;;  %v15227_v29 = vld [vmem:[%s25218_s18 + $0x68] sm:$0xff] }
 0x491   : > { %17401 = vmatprep.mubr.msk.f32.mxu1 %vm3948_vm15, %v15222_v4  ;;  %v15268_v4 = vld [vmem:[%s25218_s18 + $0xf0] sm:$0xff] }
 0x563   : > { %v17396_v63 = vpop.f32.mrb[2].mxu1 }
 0x564   : > { %v3912_v33 = vpop.f32.mrb[3].mxu1 }
 0x565   : > { %v19767_v41 = vpack.i.bf16 %v17396_v63, %v3912_v33  ;;  %v18905_v58 = vpack.c.bf16 %v17396_v63, %v3912_v33  ;;  %v15253_v63 = vld [vmem:[%s25218_s18 + $0xb8] sm:$0xff]  ;;  %v15262_v33 = vld [vmem:[%s25218_s18 + $0xc0] sm:$0xff] }
 0x567   : > { %19768 = vrot.lane.b32.xlu0 %v19767_v41, %s25050_s22  ;;  %19763 = vrot.lane.b32.xlu1 %v19767_v41, %s19933_s23  ;;  %s25225_s23 = sld [smem:[#allocation30_spill]] }
 0x568   : > { %18906 = vmatprep.subr.bf16.mxu0 %v18905_v58  ;;  %s25229_s22 = sld [smem:[#allocation14_spill]] }
 0x569   : > { %18908 = vmatpush3.bf16.msra.mxu0 %v18905_v58  ;;  %v15263_v58 = vld [vmem:[%s25218_s18 + $0xc8] sm:$0xff] }
 0x56b   : > { %19773 = vrot.lane.b32.xlu1 %v19767_v41, %s19934_s26  ;;  %v15229_v41 = vld [vmem:[%s25218_s18 + $0x78] sm:$0xff]  ;;  %s25226_s26 = sld [smem:[#allocation29_spill]] }
 0x56c   : > { %17418 = vmatmul.mubr.msk.f32.vlgmr.msra.gmra.mrb[2].mxu0 %vm3948_vm15, %v3924_v61  ;;  %v15264_v61 = vld [vmem:[%s25218_s18 + $0xd0] sm:$0xff] }
 0x56d   : > { %17420 = vmatprep.mubr.msk.f32.mxu0 %vm3948_vm15, %v3925_v7  ;;  %v15265_v7 = vld [vmem:[%s25218_s18 + $0xd8] sm:$0xff] }
 0x570   : > { %17421 = vmatmul.mubr.msk.f32.gmra.mrb[4].mxu0 %vm3948_vm15, %v3926_v32  ;;  %v15266_v32 = vld [vmem:[%s25218_s18 + $0xe0] sm:$0xff] }
 0x571   : > { %17423 = vmatprep.mubr.msk.f32.mxu0 %vm3948_vm15, %v3927_v52  ;;  %v15267_v52 = vld [vmem:[%s25218_s18 + $0xe8] sm:$0xff] }
 0x574   : > { %17424 = vmatmul.mubr.msk.f32.gmra.mrb[6].mxu0 %vm3948_vm15, %v3928_v24  ;;  %v15269_v24 = vld [vmem:[%s25218_s18 + $0xf8] sm:$0xff] }
 0x575   : > { %17426 = vmatprep.mubr.msk.f32.mxu0 %vm3948_vm15, %v3929_v59  ;;  %v4646_v59 = vld [vmem:[%s25220_s1] sm:$0xff] }
 0x578   : > { %17427 = vmatmul.mubr.msk.f32.gmra.mrb[8].mxu0 %vm3948_vm15, %v3930_v23 }
 0x579   : > { %17433 = vmatprep.mubr.msk.f32.mxu0 %vm3948_vm15, %v15246_v10 }
 0x586   : > { %4635 = vadd.xlane.f32.xlu0 %v4634_v15  ;;  %v4647_v15 = vld [vmem:[%s25220_s1 + $0x8] sm:$0xff]  ;;  %s25267_s1 = sld [smem:[#allocation27_spill]] }
 0x58a   : > { %4641 = vadd.xlane.f32.xlu0 %v4640_v53 }
 0x58e   : > { %4644 = vadd.xlane.f32.xlu0 %v4643_v35 }
 0x58f   : > { %4638 = vadd.xlane.f32.xlu1 %v4637_v26 }
 0x5a0   : > { %2820 = vperm.xlu1 %19761, %v2809_v42   ;;  %v4521_v42 = vld [vmem:[%s25221_s2 + $0x10] sm:$0xff] }
 0x5a4   : > { %2825 = vperm.xlu0 %19760, %v2810_v62   ;;  %2830 = vperm.xlu1 %19761, %v2811_v30   ;;  %v4520_v62 = vld [vmem:[%s25221_s2 + $0x8] sm:$0xff]  ;;  %v4523_v30 = vld [vmem:[%s25221_s2 + $0x20] sm:$0xff] }
 0x5a8   : > { %2840 = vperm.xlu0 %19760, %v2813_v17   ;;  %2835 = vperm.xlu1 %19761, %v2812_v48   ;;  %v4522_v17 = vld [vmem:[%s25221_s2 + $0x18] sm:$0xff]  ;;  %v4525_v48 = vld [vmem:[%s25221_s2 + $0x30] sm:$0xff] }
 0x5ac   : > { %2850 = vperm.xlu0 %19760, %v2815_v5   ;;  %2845 = vperm.xlu1 %19761, %v2814_v8   ;;  %v4524_v5 = vld [vmem:[%s25221_s2 + $0x28] sm:$0xff]  ;;  %v4526_v8 = vld [vmem:[%s25221_s2 + $0x38] sm:$0xff]  ;;  %s25269_s2 = sld [smem:[#allocation18_spill]] }
 0x5b0   : > { %2860 = vperm.xlu0 %19760, %v2817_v6   ;;  %2855 = vperm.xlu1 %19761, %v2816_v31   ;;  %v6425_v6 = vsub.s32 3, %v20163_v1 }
 0x5b2   : > { %v6426_v31 = vrot.slane %v21150_v14, %v6425_v6  ;;  %v2807_v6 = vld [vmem:[%s25224_s16 + $0x38] sm:$0xff] }
 0x5d9   : > { %v19769_v44 = vpop.permute.xlu0 %19768  ;;  %v19764_v3 = vpop.permute.xlu1 %19763 }
 0x5da   : > { %v19771_v43 = vunpack.i.h.bf16 %v19769_v44  ;;  %v19770_v2 = vunpack.i.l.bf16 %v19769_v44  ;;  %v19766_v47 = vunpack.i.h.bf16 %v19764_v3  ;;  %v19765_v37 = vunpack.i.l.bf16 %v19764_v3  ;;  %v6419_v44 = vld [vmem:[%s25222_s0] sm:$0xff] }
 0x5db   : > { %v6427_v3 = vmul.f32 %v6426_v31, %v6419_v44 }
 0x5dc   : > { %v18901_v36 = vpack.c.bf16 %v19771_v43, %v19770_v2  ;;  %v18909_v46 = vpack.c.bf16 %v19766_v47, %v19765_v37  ;;  %v6422_v43 = vld [vmem:[%s25222_s0 + $0x18] sm:$0xff]  ;;  %v6420_v2 = vld [vmem:[%s25222_s0 + $0x8] sm:$0xff] }
 0x5dd   : > { %v19774_v25 = vpop.permute.xlu1 %19773  ;;  %v6431_v47 = vsel %vm1279_vm0, %v6427_v3, 0.0  ;;  %v6430_v37 = vmul.f32 %v6426_v31, %v6422_v43 }
 0x5de   : > { %v19776_v18 = vunpack.i.h.bf16 %v19774_v25  ;;  %v19775_v16 = vunpack.i.l.bf16 %v19774_v25  ;;  %18902 = vmatprep.subr.bf16.mxu1 %v18901_v36  ;;  %18910 = vmatprep.subr.bf16.mxu0 %v18909_v46 }
 0x5df   : > { %18904 = vmatpush3.bf16.msra.mxu1 %v18901_v36  ;;  %18912 = vmatpush3.bf16.msra.mxu0 %v18909_v46  ;;  %v6428_v36 = vmul.f32 %v6426_v31, %v6420_v2  ;;  %v6421_v46 = vld [vmem:[%s25222_s0 + $0x10] sm:$0xff]  ;;  %v6440_v25 = vsel %vm1279_vm0, %v6430_v37, 0.0  ;;  %s25266_s0 = sld [smem:[#allocation12_spill]] }
 0x5e0   : > { %v18913_v54 = vpack.c.bf16 %v19776_v18, %v19775_v16  ;;  %v6429_v16 = vmul.f32 %v6426_v31, %v6421_v46 }
 0x5e1   : > { %v6434_v18 = vsel %vm1279_vm0, %v6428_v36, 0.0 }
 0x5e2   : > { %17434 = vmatmul.mubr.msk.f32.vlgmr.msra.gmra.mrb[2].mxu0 %vm3948_vm15, %v15247_v22  ;;  %18914 = vmatprep.subr.bf16.mxu0 %v18913_v54  ;;  %v6437_v14 = vsel %vm1279_vm0, %v6429_v16, 0.0  ;;  %v21245_v22 = vld [vmem:[#allocation4 + $0x8] sm:$0xff]  ;;  %v21303_v16 = vld [vmem:[#allocation4 + $0x50] sm:$0xff] }
 0x5e3   : > { %18916 = vmatpush3.bf16.msra.mxu0 %v18913_v54  ;;  %17436 = vmatprep.mubr.msk.f32.mxu0 %vm3948_vm15, %v15248_v49  ;;  %6499 = vst.msk [vmem:[#allocation4 + $0x8] sm:$0xff] %vm1279_vm0, %v25053_v19  ;;  %v6317_v54 = vld [vmem:[%s25223_s15 + $0x8] sm:$0xff]  ;;  %v4721_v49 = vld [vmem:[#allocation4] sm:$0xff]  ;;  %6508 = vst.msk [vmem:[#allocation4 + $0x50] sm:$0xff] %vm1279_vm0, %v25053_v19 }
 0x5e4   : > { %17402 = vmatmul.mubr.msk.f32.vlgmr.msra.gmra.mrb[4].mxu1 %vm3948_vm15, %v15223_v39  ;;  %v4739_v39 = vand.u32 7, %v20163_v1  ;;  %6498 = vst.msk [vmem:[#allocation4] sm:$0xff] %vm1279_vm0, %v25053_v19 }
 0x5e5   : > { %17404 = vmatprep.mubr.msk.f32.mxu1 %vm3948_vm15, %v15224_v20  ;;  %v4740_v20 = vand.u32 7, %v20300_v28 }
 0x5e6   : > { %17437 = vmatmul.mubr.msk.f32.gmra.mrb[4].mxu0 %vm3948_vm15, %v15249_v38  ;;  %v6318_v38 = vld [vmem:[%s25223_s15 + $0x10] sm:$0xff]  ;;  %vm4747_vm2 = vcmp.ge.s32.totalorder %v4739_v39, 1 }
 0x5e7   : > { %17439 = vmatprep.mubr.msk.f32.mxu0 %vm3948_vm15, %v15250_v60  ;;  %vm4748_vm3 = vcmp.ge.s32.totalorder %v4740_v20, 1  ;;  %v4755_v60 = vsel %vm4747_vm2, 1.0, %v25053_v19 }
 0x5e8   : > { %17405 = vmatmul.mubr.msk.f32.gmra.mrb[6].mxu1 %vm3948_vm15, %v15225_v51  ;;  %v21263_v51 = vsel %vm4748_vm3, 1.0, %v25053_v19 }
 0x5e9   : > { %17407 = vmatprep.mubr.msk.f32.mxu1 %vm3948_vm15, %v15226_v9  ;;  %v21265_v9 = vrot.slane %v4755_v60, 1  ;;  %v4656_v60 = vld [vmem:[%s25225_s23 + $0x10] sm:$0xff] }
 0x5ea   : > { %17440 = vmatmul.mubr.msk.f32.gmra.mrb[6].mxu0 %vm3948_vm15, %v15251_v12  ;;  %v4788_v12 = vrot.slane %v21263_v51, 1 }
 0x5eb   : > { %17442 = vmatprep.mubr.msk.f32.mxu0 %vm3948_vm15, %v15252_v21 }
 0x5ec   : > { %17408 = vmatmul.mubr.msk.f32.gmra.mrb[8].mxu1 %vm3948_vm15, %v15227_v29  ;;  %v21272_v21 = vsel %vm1835_vm10, %v21265_v9, %v4788_v12  ;;  %v4811_v29 = vmul.f32 %v21265_v9, %v4721_v49  ;;  %v4654_v49 = vld [vmem:[%s25225_s23] sm:$0xff] }
 0x5ed   : > { %17410 = vmatprep.mubr.msk.f32.mxu1 %vm3948_vm15, %v15228_v0 }
 0x5ee   : > { %17443 = vmatmul.mubr.msk.f32.gmra.mrb[8].mxu0 %vm3948_vm15, %v15253_v63  ;;  %v6316_v63 = vld [vmem:[%s25223_s15] sm:$0xff] }
 0x5ef   : > { %17449 = vmatprep.mubr.msk.f32.mxu0 %vm3948_vm15, %v15262_v33  ;;  %v21278_v33 = vmul.f32 %v21272_v21, %v21245_v22 }
 0x5f0   : > { %17411 = vmatmul.mubr.msk.f32.gmra.mrb[10].mxu1 %vm3948_vm15, %v15229_v41  ;;  %v5003_v41 = vrot.slane %v4811_v29, 7 }
 0x5f1   : > { %17469 = vmatprep.mubr.msk.f32.mxu1 %vm1279_vm0, %v21245_v22 }
 0x5f2   : > { %17450 = vmatmul.mubr.msk.f32.vlgmr.msra.gmra.mrb[2].mxu0 %vm3948_vm15, %v15263_v58  ;;  %v5004_v58 = vrot.slane %v21278_v33, 7 }
 0x5f3   : > { %17452 = vmatprep.mubr.msk.f32.mxu0 %vm3948_vm15, %v15264_v61  ;;  %v2801_v61 = vld [vmem:[%s25224_s16 + $0x8] sm:$0xff] }
 0x5f6   : > { %17453 = vmatmul.mubr.msk.f32.gmra.mrb[4].mxu0 %vm3948_vm15, %v15265_v7 }
 0x5f7   : > { %17455 = vmatprep.mubr.msk.f32.mxu0 %vm3948_vm15, %v15266_v32  ;;  %v21285_v32 = vsel %vm1873_vm11, %v5003_v41, %v5004_v58 }
 0x5fa   : > { %17456 = vmatmul.mubr.msk.f32.gmra.mrb[6].mxu0 %vm3948_vm15, %v15267_v52  ;;  %v2800_v52 = vld [vmem:[%s25224_s16] sm:$0xff] }
 0x5fb   : > { %17458 = vmatprep.mubr.msk.f32.mxu0 %vm3948_vm15, %v15268_v4 }
 0x5fe   : > { %17459 = vmatmul.mubr.msk.f32.gmra.mrb[8].mxu0 %vm3948_vm15, %v15269_v24 }
 0x613   : > { %v4636_v23 = vpop.xlane.xlu0 %4635 }
 0x614   : > { %v4650_v10 = vadd.f32 %v4646_v59, %v4636_v23  ;;  %v2802_v59 = vld [vmem:[%s25224_s16 + $0x10] sm:$0xff] }
 0x616   : > { %v4658_v55 = vmul.f32 %v4650_v10, %v4650_v10 }
 0x617   : > { %v4642_v27 = vpop.xlane.xlu0 %4641 }
 0x618   : > { %v4652_v13 = vadd.f32 %v4648_v11, %v4642_v27  ;;  %4664 = vperm.xlu1 %19761, %v4658_v55   ;;  %v2803_v55 = vld [vmem:[%s25224_s16 + $0x18] sm:$0xff] }
 0x61a   : > { %v4660_v40 = vmul.f32 %v4652_v13, %v4652_v13 }
 0x61b   : > { %v4645_v45 = vpop.xlane.xlu0 %4644 }
 0x61c   : > { %4674 = vperm.xlu1 %19761, %v4660_v40   ;;  %v4639_v34 = vpop.xlane.xlu1 %4638  ;;  %v4653_v56 = vadd.f32 %v4649_v57, %v4645_v45 }
 0x61d   : > { %v4651_v53 = vadd.f32 %v4647_v15, %v4639_v34  ;;  %v2804_v34 = vld [vmem:[%s25224_s16 + $0x20] sm:$0xff] }
 0x61e   : > { %v4661_v26 = vmul.f32 %v4653_v56, %v4653_v56 }
 0x61f   : > { %v4659_v35 = vmul.f32 %v4651_v53, %v4651_v53 }
 0x620   : > { %4529 = vperm.xlu1 %19761, %v4519_v50   ;;  %v2821_v0 = vpop.permute.xlu1 %2820  ;;  %v2805_v50 = vld [vmem:[%s25224_s16 + $0x28] sm:$0xff] }
 0x621   : > { %4669 = vperm.xlu0 %19760, %v4659_v35   ;;  %v2863_v23 = vmul.f32 %v2821_v0, %v2800_v52  ;;  %v4655_v0 = vld [vmem:[%s25225_s23 + $0x8] sm:$0xff] }
 0x623   : > { %v2826_v7 = vpop.permute.xlu0 %2825 }
 0x624   : > { %4826 = vperm.xlu1 %19761, %v4650_v10   ;;  %v2831_v4 = vpop.permute.xlu1 %2830  ;;  %v2864_v24 = vmul.f32 %v2826_v7, %v2801_v61 }
 0x625   : > { %4679 = vperm.xlu0 %19760, %v4661_v26   ;;  %v2865_v11 = vmul.f32 %v2831_v4, %v2802_v59  ;;  %v4657_v4 = vld [vmem:[%s25225_s23 + $0x18] sm:$0xff] }
 0x626   : > { %v2873_v10 = vsel %vm1279_vm0, %v2864_v24, 0.0 }
 0x627   : > { %v2875_v15 = vsel %vm1279_vm0, %v2865_v11, 0.0 }
 0x628   : > { %4539 = vperm.xlu1 %19761, %v4521_v42   ;;  %v2836_v27 = vpop.permute.xlu1 %2835 }
 0x629   : > { %4534 = vperm.xlu0 %19760, %v4520_v62   ;;  %v2866_v57 = vmul.f32 %v2836_v27, %v2803_v55 }
 0x62c   : > { %4836 = vperm.xlu1 %19761, %v4652_v13   ;;  %v2872_v13 = vsel %vm1279_vm0, %v2863_v23, 0.0  ;;  %v2846_v35 = vpop.permute.xlu1 %2845 }
 0x62d   : > { %4831 = vperm.xlu0 %19760, %v4651_v53   ;;  %v2874_v40 = vadd.f32 %v2873_v10, %v2872_v13  ;;  %v2841_v53 = vpop.permute.xlu0 %2840  ;;  %v2868_v62 = vmul.f32 %v2846_v35, %v2805_v50 }
 0x62e   : > { %v2867_v26 = vmul.f32 %v2841_v53, %v2804_v34 }
 0x62f   : > { %v2876_v45 = vadd.f32 %v2875_v15, %v2874_v40 }
 0x630   : > { %4549 = vperm.xlu1 %19761, %v4523_v30   ;;  %v2879_v30 = vsel %vm1279_vm0, %v2867_v26, 0.0  ;;  %v2856_v31 = vpop.permute.xlu1 %2855 }
 0x631   : > { %4544 = vperm.xlu0 %19760, %v4522_v17   ;;  %v2806_v17 = vld [vmem:[%s25224_s16 + $0x30] sm:$0xff]  ;;  %v2870_v43 = vmul.f32 %v2856_v31, %v2807_v6 }
 0x633   : > { %v2885_v46 = vsel %vm1279_vm0, %v2870_v43, 0.0 }
 0x634   : > { %4559 = vperm.xlu1 %19761, %v4525_v48   ;;  %v2851_v48 = vpop.permute.xlu0 %2850 }
 0x635   : > { %4841 = vperm.xlu0 %19760, %v4653_v56   ;;  %v2877_v56 = vsel %vm1279_vm0, %v2866_v57, 0.0  ;;  %v2869_v44 = vmul.f32 %v2851_v48, %v2806_v17 }
 0x636   : > { %v2878_v42 = vadd.f32 %v2877_v56, %v2876_v45 }
 0x637   : > { %v2883_v2 = vsel %vm1279_vm0, %v2869_v44, 0.0 }
 0x638   : > { %v2861_v37 = vpop.permute.xlu0 %2860 }
 0x639   : > { %4554 = vperm.xlu0 %19760, %v4524_v5   ;;  %v2880_v5 = vadd.f32 %v2879_v30, %v2878_v42 }
 0x63d   : > { %4564 = vperm.xlu0 %19760, %v4526_v8   ;;  %v2881_v8 = vsel %vm1279_vm0, %v2868_v62, 0.0 }
 0x63e   : > { %v2882_v3 = vadd.f32 %v2881_v8, %v2880_v5 }
 0x640   : > { %v2884_v36 = vadd.f32 %v2883_v2, %v2882_v3  ;;  %v21329_v2 = vadd.s32 16, %v20163_v1 }
 0x642   : > { %25227 = vst [vmem:[#allocation33_spill] sm:$0xff] %v21329_v2 }
 0x658   : > { %6432 = vadd.xlane.f32.xlu1 %v6431_v47  ;;  %v2808_v47 = vld [vmem:[%s25224_s16 + $0x40] sm:$0xff] }
 0x65c   : > { %6441 = vadd.xlane.f32.xlu1 %v6440_v25  ;;  %6435 = vadd.xlane.f32.xlu0 %v6434_v18  ;;  %v2871_v25 = vmul.f32 %v2861_v37, %v2808_v47 }
 0x660   : > { %6438 = vadd.xlane.f32.xlu0 %v6437_v14  ;;  %v2886_v14 = vadd.f32 %v2885_v46, %v2884_v36  ;;  %v15279_v36 = vld [vmem:[%s25226_s26 + $0x20] sm:$0xff] }
 0x66d   : > { %6331 = vperm.xlu1 %19761, %v6317_v54   ;;  %v2887_v54 = vsel %vm1279_vm0, %v2871_v25, 0.0 }
 0x671   : > { %6336 = vperm.xlu1 %19761, %v6318_v38   ;;  %v2888_v38 = vadd.f32 %v2887_v54, %v2886_v14  ;;  %v15281_v14 = vld [vmem:[%s25226_s26 + $0x30] sm:$0xff]  ;;  %v15282_v54 = vld [vmem:[%s25226_s26 + $0x38] sm:$0xff] }
 0x673   : > { %v2889_v61 = vrot.slane %v2888_v38, 4 }
 0x675   : > { %v2890_v11 = vadd.f32 %v2889_v61, %v2888_v38 }
 0x676   : > { %6326 = vperm.xlu0 %19760, %v6316_v63  }
 0x677   : > { %v2891_v57 = vrot.slane %v2890_v11, 2 }
 0x679   : > { %v2892_v50 = vadd.f32 %v2891_v57, %v2890_v11 }
 0x67b   : > { %v2893_v42 = vrot.slane %v2892_v50, 1 }
 0x67d   : > { %v2894_v5 = vadd.f32 %v2893_v42, %v2892_v50 }
 0x67f   : > { %v2895_v43 = vadd.f32 1e-08, %v2894_v5 }
 0x697   : > { %v4665_v18 = vpop.permute.xlu1 %4664 }
 0x698   : > { %v4682_v63 = vmul.f32 %v4665_v18, %v4654_v49  ;;  %v15280_v18 = vld [vmem:[%s25226_s26 + $0x28] sm:$0xff]  ;;  %v4741_v49 = vand.u32 7, %v21329_v2 }
 0x69a   : > { %v4686_v24 = vsel %vm1279_vm0, %v4682_v63, 0.0  ;;  %vm4749_vm4 = vcmp.ge.s32.totalorder %v4741_v49, 1 }
 0x69b   : > { %v4675_v29 = vpop.permute.xlu1 %4674  ;;  %v21369_v50 = vsel %vm4749_vm4, 1.0, %v25053_v19 }
 0x69c   : > { %v4684_v7 = vmul.f32 %v4675_v29, %v4656_v60  ;;  %v21345_v29 = vadd.s32 24, %v20163_v1 }
 0x69e   : > { %v4689_v55 = vsel %vm1279_vm0, %v4684_v7, 0.0  ;;  %25228 = vst [vmem:[#allocation34_spill] sm:$0xff] %v21345_v29  ;;  %v4742_v57 = vand.u32 7, %v21345_v29 }
 0x69f   : > { %v21316_v34 = vpop.permute.xlu1 %4529 }
 0x6a0   : > { %v4670_v41 = vpop.permute.xlu0 %4669  ;;  %vm4750_vm5 = vcmp.ge.s32.totalorder %v4742_v57, 1 }
 0x6a1   : > { %v4683_v52 = vmul.f32 %v4670_v41, %v4655_v0 }
 0x6a3   : > { %v4687_v59 = vsel %vm1279_vm0, %v4683_v52, 0.0  ;;  %v21320_v62 = vpop.permute.xlu1 %4826  ;;  %v4820_v52 = vld [vmem:[%s25226_s26] sm:$0xff] }
 0x6a4   : > { %v4688_v23 = vadd.f32 %v4687_v59, %v4686_v24  ;;  %v4680_v10 = vpop.permute.xlu0 %4679  ;;  %v4857_v0 = vmul.f32 %v15279_v36, %v21320_v62 }
 0x6a5   : > { %v4685_v27 = vmul.f32 %v4680_v10, %v4657_v4  ;;  %v4821_v4 = vld [vmem:[%s25226_s26 + $0x8] sm:$0xff] }
 0x6a6   : > { %v4690_v13 = vadd.f32 %v4689_v55, %v4688_v23 }
 0x6a7   : > { %v4691_v40 = vsel %vm1279_vm0, %v4685_v27, 0.0  ;;  %v21324_v6 = vpop.permute.xlu1 %4539 }
 0x6a8   : > { %v4692_v15 = vadd.f32 %v4691_v40, %v4690_v13  ;;  %v21318_v56 = vpop.permute.xlu0 %4534  ;;  %v4844_v40 = vmul.f32 %v21320_v62, %v4820_v52 }
 0x6aa   : > { %v4693_v45 = vrot.slane %v4692_v15, 4 }
 0x6ab   : > { %v21332_v46 = vpop.permute.xlu1 %4836 }
 0x6ac   : > { %v4694_v53 = vadd.f32 %v4693_v45, %v4692_v15  ;;  %v21322_v17 = vpop.permute.xlu0 %4831  ;;  %v4859_v41 = vmul.f32 %v15281_v14, %v21332_v46 }
 0x6ad   : > { %v4858_v63 = vmul.f32 %v15280_v18, %v21322_v17  ;;  %v4845_v15 = vmul.f32 %v21322_v17, %v4821_v4 }
 0x6ae   : > { %v4695_v35 = vrot.slane %v4694_v53, 2 }
 0x6b0   : > { %v4696_v26 = vadd.f32 %v4695_v35, %v4694_v53  ;;  %v21326_v44 = vpop.permute.xlu0 %4544  ;;  %v21372_v35 = vadd.s32 32, %v20163_v1 }
 0x6b2   : > { %v4697_v30 = vrot.slane %v4696_v26, 1  ;;  %25230 = vst [vmem:[#allocation35_spill] sm:$0xff] %v21372_v35  ;;  %v4743_v52 = vand.u32 7, %v21372_v35 }
 0x6b4   : > { %v4698_v48 = vadd.f32 %v4697_v30, %v4696_v26  ;;  %v21334_v25 = vpop.permute.xlu0 %4841  ;;  %vm21422_vm9 = vcmp.ge.s32.totalorder %v4743_v52, 1 }
 0x6b5   : > { %v4860_v61 = vmul.f32 %v15282_v54, %v21334_v25 }
 0x6b6   : > { %v4699_v8 = vadd.f32 1e-08, %v4698_v48 }
 0x6b7   : > { %v17403_v31 = vpop.f32.mrb[4].mxu1 }
 0x6b8   : > { %19839 = vrsqrt.f32 %v4699_v8  ;;  %v4039_v3 = vpop.f32.mrb[5].mxu1 }
 0x6b9   : > { %19841 = vrsqrt.f32 %v2895_v43  ;;  %v21383_v43 = vld [vmem:[%s25229_s22] ss:$0 sm:$0xff]  ;;  %s25244_s22 = sld [smem:[#allocation8_spill]] }
 0x6bb   : > { %v17406_v47 = vpop.f32.mrb[6].mxu1 }
 0x6bc   : > { %v4049_v37 = vpop.f32.mrb[7].mxu1 }
 0x6bf   : > { %v21340_v38 = vpop.f32.mrb[8].mxu1 }
 0x6c0   : > { %v21342_v60 = vpop.f32.mrb[9].mxu1 }
 0x6c2   : > { %v21351_v7 = vpop.eup %19839 }
 0x6c3   : > { %v4861_v24 = vmul.f32 %v21351_v7, %v4857_v0  ;;  %v4862_v59 = vmul.f32 %v21351_v7, %v4858_v63  ;;  %v4863_v23 = vmul.f32 %v21351_v7, %v4859_v41  ;;  %v4864_v10 = vmul.f32 %v21351_v7, %v4860_v61  ;;  %v21361_v11 = vpop.f32.mrb[10].mxu1  ;;  %v21374_v26 = vpop.eup %19841 }
 0x6c4   : > { %v21363_v55 = vpop.f32.mrb[11].mxu1  ;;  %v4848_v48 = vmul.f32 %v21351_v7, %v4844_v40  ;;  %v4849_v5 = vmul.f32 %v21351_v7, %v4845_v15  ;;  %v4790_v0 = vrot.slane %v21369_v50, 1 }
 0x6c5   : > { %v17451_v27 = vpop.f32.mrb[2].mxu0  ;;  %v18917_v13 = vpack.c.bf16 %v4862_v59, %v4861_v24  ;;  %v18921_v30 = vpack.c.bf16 %v4864_v10, %v4863_v23  ;;  %v21397_v59 = vsel %vm4750_vm5, 1.0, %v25053_v19  ;;  %v21405_v10 = vadd.s32 48, %v20163_v1 }
 0x6c6   : > { %v19165_v45 = vadd.f32 %v17451_v27, %v17403_v31  ;;  %v4464_v53 = vpop.f32.mrb[3].mxu0  ;;  %v21380_v31 = vadd.s32 40, %v20163_v1  ;;  %v21391_v61 = vpack.c.bf16 %v4849_v5, %v4848_v48  ;;  %v21408_v27 = vadd.s32 56, %v20163_v1  ;;  %v4555_v48 = vpop.permute.xlu0 %4554 }
 0x6c7   : > { %v19166_v42 = vadd.f32 %v4464_v53, %v4039_v3  ;;  %18918 = vmatprep.subr.bf16.mxu1 %v18917_v13  ;;  %25232 = vst [vmem:[#allocation37_spill] sm:$0xff] %v21405_v10  ;;  %vm21476_vm5 = vcmp.le.s32.totalorder %v4739_v39, 6 }
 0x6c8   : > { %v4512_v8 = vmul.f32 %v21374_v26, %v19165_v45  ;;  %18920 = vmatpush3.bf16.msra.mxu1 %v18917_v13  ;;  %25231 = vst [vmem:[#allocation36_spill] sm:$0xff] %v21380_v31  ;;  %25233 = vst [vmem:[#allocation38_spill] sm:$0xff] %v21408_v27 }
 0x6c9   : > { %v4511_v36 = vmul.f32 %v21374_v26, %v19166_v42  ;;  %v17454_v18 = vpop.f32.mrb[4].mxu0  ;;  %18922 = vmatprep.subr.bf16.mxu1 %v18921_v30 }
 0x6ca   : > { %v4568_v3 = vadd.f32 %v21318_v56, %v4512_v8  ;;  %v19167_v14 = vadd.f32 %v17454_v18, %v17406_v47  ;;  %v4474_v54 = vpop.f32.mrb[5].mxu0  ;;  %v4744_v56 = vand.u32 7, %v21380_v31 }
 0x6cb   : > { %v4567_v63 = vadd.f32 %v21316_v34, %v4511_v36  ;;  %v19168_v41 = vadd.f32 %v4474_v54, %v4049_v37  ;;  %v4822_v37 = vld [vmem:[%s25226_s26 + $0x10] sm:$0xff] }
 0x6cc   : > { %v4583_v4 = vadd.f32 %v21383_v43, %v4568_v3  ;;  %v4514_v24 = vmul.f32 %v21374_v26, %v19167_v14  ;;  %18924 = vmatpush3.bf16.msra.mxu1 %v18921_v30  ;;  %v4846_v18 = vmul.f32 %v21332_v46, %v4822_v37  ;;  %v4550_v3 = vpop.permute.xlu1 %4549  ;;  %vm21440_vm2 = vcmp.ge.s32.totalorder %v4744_v56, 1 }
 0x6cd   : > { %v4582_v47 = vadd.f32 %v21383_v43, %v4567_v63  ;;  %v4513_v23 = vmul.f32 %v21374_v26, %v19168_v41  ;;  %v17457_v34 = vpop.f32.mrb[6].mxu0  ;;  %18926 = vmatprep.subr.bf16.mxu1 %v21391_v61  ;;  %v4823_v41 = vld [vmem:[%s25226_s26 + $0x18] sm:$0xff] }
 0x6ce   : > { %vm4591_vm6 = vcmp.ge.f32.partialorder %v4583_v4, 0.0  ;;  %v4599_v13 = vmul.f32 0.2, %v4583_v4  ;;  %v4570_v40 = vadd.f32 %v21326_v44, %v4514_v24  ;;  %v19169_v15 = vadd.f32 %v17457_v34, %v21340_v38  ;;  %v4484_v45 = vpop.f32.mrb[7].mxu0 }
 0x6cf   : > { %vm4590_vm7 = vcmp.ge.f32.partialorder %v4582_v47, 0.0  ;;  %v4598_v53 = vmul.f32 0.2, %v4582_v47  ;;  %v4569_v42 = vadd.f32 %v21324_v6, %v4513_v23  ;;  %v19170_v30 = vadd.f32 %v4484_v45, %v21342_v60 }
 0x6d0   : > { %v4607_v5 = vsel %vm4591_vm6, %v4583_v4, %v4599_v13  ;;  %v4585_v8 = vadd.f32 %v21383_v43, %v4570_v40  ;;  %v4516_v36 = vmul.f32 %v21374_v26, %v19169_v15  ;;  %v4847_v45 = vmul.f32 %v21334_v25, %v4823_v41 }
 0x6d1   : > { %v4615_v44 = vmul.f32 1.4142135, %v4607_v5  ;;  %v4606_v14 = vsel %vm4590_vm7, %v4582_v47, %v4598_v53  ;;  %v4584_v38 = vadd.f32 %v21383_v43, %v4569_v42  ;;  %v4515_v54 = vmul.f32 %v21374_v26, %v19170_v30  ;;  %v17460_v63 = vpop.f32.mrb[8].mxu0  ;;  %v4565_v5 = vpop.permute.xlu0 %4564 }
 0x6d2   : > { %v4614_v6 = vmul.f32 1.4142135, %v4606_v14  ;;  %vm4593_vm8 = vcmp.ge.f32.partialorder %v4585_v8, 0.0  ;;  %v4601_v60 = vmul.f32 0.2, %v4585_v8  ;;  %v4572_v24 = vadd.f32 %v4555_v48, %v4516_v36  ;;  %v4494_v4 = vpop.f32.mrb[9].mxu0 }
 0x6d3   : > { %4714 = vst.msk [vmem:[#allocation4 + $0x18] sm:$0xff] %vm1279_vm0, %v4615_v44  ;;  %vm4592_vm12 = vcmp.ge.f32.partialorder %v4584_v38, 0.0  ;;  %v4600_v47 = vmul.f32 0.2, %v4584_v38  ;;  %v4571_v34 = vadd.f32 %v4550_v3, %v4515_v54  ;;  %v19171_v37 = vadd.f32 %v17460_v63, %v21361_v11  ;;  %v4560_v44 = vpop.permute.xlu1 %4559  ;;  %v15300_v54 = vld [vmem:[%s25226_s26 + $0x48] sm:$0xff] }
 0x6d4   : > { %4713 = vst.msk [vmem:[#allocation4 + $0x10] sm:$0xff] %vm1279_vm0, %v4614_v6  ;;  %v4609_v13 = vsel %vm4593_vm8, %v4585_v8, %v4601_v60  ;;  %v4587_v40 = vadd.f32 %v21383_v43, %v4572_v24  ;;  %v19172_v15 = vadd.f32 %v4494_v4, %v21363_v55  ;;  %v15299_v8 = vld [vmem:[%s25226_s26 + $0x40] sm:$0xff]  ;;  %v4851_v6 = vmul.f32 %v21351_v7, %v4847_v45 }
 0x6d5   : > { %v4617_v53 = vmul.f32 1.4142135, %v4609_v13  ;;  %v4608_v42 = vsel %vm4592_vm12, %v4584_v38, %v4600_v47  ;;  %v4586_v30 = vadd.f32 %v21383_v43, %v4571_v34  ;;  %v4518_v48 = vmul.f32 %v21374_v26, %v19171_v37 }
 0x6d6   : > { %v4616_v36 = vmul.f32 1.4142135, %v4608_v42  ;;  %vm4595_vm13 = vcmp.ge.f32.partialorder %v4587_v40, 0.0  ;;  %v4603_v11 = vmul.f32 0.2, %v4587_v40  ;;  %v4517_v3 = vmul.f32 %v21374_v26, %v19172_v15 }
 0x6d7   : > { %4716 = vst.msk [vmem:[#allocation4 + $0x28] sm:$0xff] %vm1279_vm0, %v4617_v53  ;;  %vm4594_vm14 = vcmp.ge.f32.partialorder %v4586_v30, 0.0  ;;  %v4602_v55 = vmul.f32 0.2, %v4586_v30  ;;  %v4574_v14 = vadd.f32 %v4565_v5, %v4518_v48  ;;  %v4850_v26 = vmul.f32 %v21351_v7, %v4846_v18 }
 0x6d8   : > { %4715 = vst.msk [vmem:[#allocation4 + $0x20] sm:$0xff] %vm1279_vm0, %v4616_v36  ;;  %v4611_v63 = vsel %vm4595_vm13, %v4587_v40, %v4603_v11  ;;  %v4573_v41 = vadd.f32 %v4560_v44, %v4517_v3  ;;  %v5187_v47 = vmul.f32 %v15299_v8, %v21320_v62  ;;  %v5188_v15 = vmul.f32 %v15300_v54, %v21322_v17 }
 0x6d9   : > { %v4619_v60 = vmul.f32 1.4142135, %v4611_v63  ;;  %v4610_v24 = vsel %vm4594_vm14, %v4586_v30, %v4602_v55  ;;  %v4589_v4 = vadd.f32 %v21383_v43, %v4574_v14  ;;  %v4745_v40 = vand.u32 7, %v21405_v10  ;;  %v6320_v10 = vld [vmem:[%s25223_s15 + $0x20] sm:$0xff] }
 0x6da   : > { %v4618_v34 = vmul.f32 1.4142135, %v4610_v24  ;;  %v4588_v37 = vadd.f32 %v21383_v43, %v4573_v41  ;;  %v21450_v13 = vld [vmem:[#allocation4 + $0x18] sm:$0xff]  ;;  %v5191_v53 = vmul.f32 %v21351_v7, %v5187_v47  ;;  %v25052_v42 = vand.u32 7, %v21408_v27 }
 0x6db   : > { %4718 = vst.msk [vmem:[#allocation4 + $0x38] sm:$0xff] %vm1279_vm0, %v4619_v60  ;;  %vm4597_vm3 = vcmp.ge.f32.partialorder %v4589_v4, 0.0  ;;  %v4605_v18 = vmul.f32 0.2, %v4589_v4  ;;  %v21455_v45 = vld [vmem:[#allocation4 + $0x10] sm:$0xff]  ;;  %6501 = vst.msk [vmem:[#allocation4 + $0x18] sm:$0xff] %vm1279_vm0, %v25053_v19  ;;  %v18929_v30 = vpack.c.bf16 %v4851_v6, %v4850_v26  ;;  %v5192_v48 = vmul.f32 %v21351_v7, %v5188_v15 }
 0x6dc   : > { %4717 = vst.msk [vmem:[#allocation4 + $0x30] sm:$0xff] %vm1279_vm0, %v4618_v34  ;;  %vm4596_vm4 = vcmp.ge.f32.partialorder %v4588_v37, 0.0  ;;  %v4604_v43 = vmul.f32 0.2, %v4588_v37  ;;  %17470 = vmatmul.mubr.msk.f32.vlgmr.msra.gmra.mrb[12].mxu1 %vm1279_vm0, %v21455_v45  ;;  %6500 = vst.msk [vmem:[#allocation4 + $0x10] sm:$0xff] %vm1279_vm0, %v25053_v19  ;;  %v4792_v36 = vrot.slane %v21397_v59, 1 }
 0x6dd   : > { %v4613_v5 = vsel %vm4597_vm3, %v4589_v4, %v4605_v18  ;;  %18928 = vmatpush3.bf16.msra.mxu1 %v21391_v61  ;;  %17472 = vmatprep.mubr.msk.f32.mxu1 %vm1279_vm0, %v21450_v13  ;;  %v4759_v11 = vsel %vm21422_vm9, 1.0, %v25053_v19  ;;  %v4760_v61 = vsel %vm21440_vm2, 1.0, %v25053_v19  ;;  %vm21487_vm6 = vcmp.ge.s32.totalorder %v4745_v40, 1  ;;  %v6443_v4 = vld [vmem:[%s25244_s22] sm:$0xff]  ;;  %v15301_v34 = vld [vmem:[%s25226_s26 + $0x50] sm:$0xff] }
 0x6de   : > { %v4621_v8 = vmul.f32 1.4142135, %v4613_v5  ;;  %v4612_v44 = vsel %vm4596_vm4, %v4588_v37, %v4604_v43  ;;  %18930 = vmatprep.subr.bf16.mxu1 %v18929_v30  ;;  %v21480_v55 = vld [vmem:[#allocation4 + $0x28] sm:$0xff]  ;;  %vm21497_vm7 = vcmp.le.s32.totalorder %v4740_v20, 6  ;;  %v21506_v54 = vpack.c.bf16 %v5192_v48, %v5191_v53  ;;  %v15302_v37 = vld [vmem:[%s25226_s26 + $0x58] sm:$0xff]  ;;  %v15311_v5 = vld [vmem:[%s25226_s26 + $0x60] sm:$0xff] }
 0x6df   : > { %v4620_v23 = vmul.f32 1.4142135, %v4612_v44  ;;  %v21491_v39 = vld [vmem:[#allocation4 + $0x20] sm:$0xff]  ;;  %6503 = vst.msk [vmem:[#allocation4 + $0x28] sm:$0xff] %vm1279_vm0, %v25053_v19  ;;  %v21513_v20 = vsel %vm1835_vm10, %v4788_v12, %v4790_v0  ;;  %vm21517_vm8 = vcmp.ge.s32.totalorder %v25052_v42, 1  ;;  %vm21523_vm9 = vcmp.le.s32.totalorder %v4741_v49, 6 }
 0x6e0   : > { %4720 = vst.msk [vmem:[#allocation4 + $0x48] sm:$0xff] %vm1279_vm0, %v4621_v8  ;;  %17473 = vmatmul.mubr.msk.f32.gmra.mrb[14].mxu1 %vm1279_vm0, %v21491_v39  ;;  %6502 = vst.msk [vmem:[#allocation4 + $0x20] sm:$0xff] %vm1279_vm0, %v25053_v19  ;;  %v4794_v51 = vrot.slane %v4759_v11, 1  ;;  %v4796_v12 = vrot.slane %v4760_v61, 1  ;;  %v4761_v41 = vsel %vm21487_vm6, 1.0, %v25053_v19  ;;  %v4771_v49 = vsel %vm21476_vm5, 1.0, %v25053_v19 }
 0x6e1   : > { %4719 = vst.msk [vmem:[#allocation4 + $0x40] sm:$0xff] %vm1279_vm0, %v4620_v23  ;;  %18932 = vmatpush3.bf16.msra.mxu1 %v18929_v30  ;;  %17475 = vmatprep.mubr.msk.f32.mxu1 %vm1279_vm0, %v21480_v55  ;;  %v21542_v6 = vsel %vm1835_vm10, %v4790_v0, %v4792_v36  ;;  %v21547_v60 = vsel %vm21497_vm7, 1.0, %v25053_v19  ;;  %v4762_v47 = vsel %vm21517_vm8, 1.0, %v25053_v19  ;;  %v21560_v50 = vsel %vm21523_vm9, 1.0, %v25053_v19  ;;  %v15312_v8 = vld [vmem:[%s25226_s26 + $0x68] sm:$0xff] }
 0x6e2   : > { %18934 = vmatprep.subr.bf16.mxu1 %v21506_v54  ;;  %v21537_v26 = vld [vmem:[#allocation4 + $0x38] sm:$0xff]  ;;  %v4813_v0 = vmul.f32 %v21513_v20, %v21455_v45  ;;  %v4798_v15 = vrot.slane %v4761_v41, 1  ;;  %v21570_v18 = vrot.slane %v4771_v49, 7  ;;  %v21576_v43 = vmul.f32 %v21542_v6, %v21450_v13  ;;  %v6444_v23 = vld [vmem:[%s25244_s22 + $0x8] sm:$0xff] }
 0x6e3   : > { %v21549_v24 = vld [vmem:[#allocation4 + $0x30] sm:$0xff]  ;;  %6505 = vst.msk [vmem:[#allocation4 + $0x38] sm:$0xff] %vm1279_vm0, %v25053_v19  ;;  %v21579_v30 = vsel %vm1835_vm10, %v4792_v36, %v4794_v51  ;;  %v21582_v48 = vsel %vm1835_vm10, %v4794_v51, %v4796_v12  ;;  %v5150_v11 = vrot.slane %v21547_v60, 7  ;;  %v21589_v44 = vrot.slane %v4762_v47, 1  ;;  %v21613_v41 = vld [vmem:[#allocation4 + $0x58] sm:$0xff] }
 0x6e4   : > { %17476 = vmatmul.mubr.msk.f32.gmra.mrb[16].mxu1 %vm1279_vm0, %v21549_v24  ;;  %6504 = vst.msk [vmem:[#allocation4 + $0x30] sm:$0xff] %vm1279_vm0, %v25053_v19  ;;  %v21593_v61 = vmul.f32 %v21570_v18, %v21245_v22  ;;  %v5189_v36 = vmul.f32 %v15301_v34, %v21332_v46  ;;  %v5190_v14 = vmul.f32 %v15302_v37, %v21334_v25  ;;  %vm21601_vm12 = vcmp.le.s32.totalorder %v4742_v57, 6 }
 0x6e5   : > { %v6433_v53 = vpop.xlane.xlu1 %6432  ;;  %17478 = vmatprep.mubr.msk.f32.mxu1 %vm1279_vm0, %v21537_v26  ;;  %vm21607_vm13 = vcmp.le.s32.totalorder %v4743_v52, 6  ;;  %v5006_v60 = vrot.slane %v4813_v0, 7  ;;  %v4815_v57 = vmul.f32 %v21579_v30, %v21491_v39  ;;  %v21622_v47 = vsel %vm1835_vm10, %v4796_v12, %v4798_v15  ;;  %6509 = vst.msk [vmem:[#allocation4 + $0x58] sm:$0xff] %vm1279_vm0, %v25053_v19  ;;  %v6319_v0 = vld [vmem:[%s25223_s15 + $0x18] sm:$0xff] }
 0x6e6   : > { %v21586_v3 = vadd.f32 %v6443_v4, %v6433_v53  ;;  %v5364_v4 = vmul.f32 %v15311_v5, %v21320_v62  ;;  %v5008_v34 = vrot.slane %v21576_v43, 7  ;;  %v5193_v12 = vmul.f32 %v21351_v7, %v5189_v36  ;;  %v6445_v36 = vld [vmem:[%s25244_s22 + $0x10] sm:$0xff] }
 0x6e7   : > { %v21611_v51 = vld [vmem:[#allocation4 + $0x48] sm:$0xff]  ;;  %v5194_v37 = vmul.f32 %v21351_v7, %v5190_v14  ;;  %v4816_v53 = vmul.f32 %v21582_v48, %v21480_v55  ;;  %v5365_v42 = vmul.f32 %v15312_v8, %v21322_v17  ;;  %v21645_v59 = vsel %vm1835_vm10, %v4798_v15, %v21589_v44 }
 0x6e8   : > { %25249 = vst [vmem:[#allocation39_spill] sm:$0xff] %v21586_v3  ;;  %6545 = vperm.xlu0 %19760, %v21586_v3   ;;  %v21616_v49 = vld [vmem:[#allocation4 + $0x40] sm:$0xff]  ;;  %6507 = vst.msk [vmem:[#allocation4 + $0x48] sm:$0xff] %vm1279_vm0, %v25053_v19  ;;  %vm21649_vm14 = vcmp.le.s32.totalorder %v4744_v56, 6  ;;  %v21663_v15 = vsel %vm21607_vm13, 1.0, %v25053_v19  ;;  %vm21667_vm2 = vcmp.le.s32.totalorder %v4745_v40, 6  ;;  %v5007_v8 = vsel %vm1873_vm11, %v5004_v58, %v5006_v60 }
 0x6e9   : > { %17479 = vmatmul.mubr.msk.f32.gmra.mrb[18].mxu1 %vm1279_vm0, %v21616_v49  ;;  %6506 = vst.msk [vmem:[#allocation4 + $0x40] sm:$0xff] %vm1279_vm0, %v25053_v19  ;;  %v6436_v52 = vpop.xlane.xlu0 %6435  ;;  %v5010_v14 = vrot.slane %v4815_v57, 7  ;;  %v5369_v38 = vmul.f32 %v21351_v7, %v5365_v42  ;;  %v4817_v63 = vmul.f32 %v21622_v47, %v21549_v24  ;;  %v5012_v35 = vrot.slane %v4816_v53, 7 }
 0x6ea   : > { %v21638_v5 = vadd.f32 %v6444_v23, %v6436_v52  ;;  %17489 = vmatprep.mubr.msk.f32.mxu1 %vm1279_vm0, %v21285_v32  ;;  %v5368_v23 = vmul.f32 %v21351_v7, %v5364_v4  ;;  %v21658_v32 = vsel %vm21601_vm12, 1.0, %v25053_v19  ;;  %v6446_v4 = vld [vmem:[%s25244_s22 + $0x18] sm:$0xff]  ;;  %v5009_v52 = vsel %vm1873_vm11, %v5006_v60, %v5008_v34 }
 0x6eb   : > { %v18937_v19 = vpack.c.bf16 %v5194_v37, %v5193_v12  ;;  %v4818_v33 = vmul.f32 %v21645_v59, %v21537_v26  ;;  %v21690_v42 = vsel %vm1873_vm11, %v21570_v18, %v5150_v11  ;;  %v25259_v57 = vrot.slane %v21560_v50, 7  ;;  %v6442_v12 = vpop.xlane.xlu1 %6441 }
 0x6ec   : > { %6550 = vperm.xlu1 %19761, %v21638_v5   ;;  %6341 = vperm.xlu0 %19760, %v6319_v0   ;;  %v5154_v0 = vrot.slane %v21658_v32, 7  ;;  %v25260_v37 = vmov 0.0   ;;  %v21711_v32 = vadd.f32 %v6446_v4, %v6442_v12  ;;  %v5014_v43 = vrot.slane %v4817_v63, 7 }
 0x6ed   : > { %17490 = vmatmul.mubr.msk.f32.vlgmr.msra.gmra.mrb[12].mxu1 %vm1279_vm0, %v5007_v8  ;;  %v6439_v40 = vpop.xlane.xlu0 %6438  ;;  %v21695_v60 = vsel %vm1873_vm11, %v5150_v11, %v25259_v57  ;;  %v4776_v53 = vsel %vm21649_vm14, 1.0, %v25260_v37  ;;  %v25261_v8 = vand.u32 7, %v21408_v27  ;;  %v5013_v56 = vsel %vm1873_vm11, %v5010_v14, %v5012_v35  ;;  %v6321_v57 = vld [vmem:[%s25223_s15 + $0x28] sm:$0xff]  ;;  %v6323_v11 = vld [vmem:[%s25223_s15 + $0x38] sm:$0xff] }
 0x6ee   : > { %18936 = vmatpush3.bf16.msra.mxu1 %v21506_v54  ;;  %v21685_v58 = vadd.f32 %v6445_v36, %v6439_v40  ;;  %17492 = vmatprep.mubr.msk.f32.mxu1 %vm1279_vm0, %v5009_v52  ;;  %v5156_v54 = vrot.slane %v21663_v15, 7  ;;  %v4777_v36 = vsel %vm21667_vm2, 1.0, %v25260_v37  ;;  %25264 = vst [vmem:[#allocation41_spill] sm:$0xff] %v21711_v32  ;;  %v5011_v15 = vsel %vm1873_vm11, %v5008_v34, %v5010_v14 }
 0x6ef   : > { %18938 = vmatprep.subr.bf16.mxu1 %v18937_v19  ;;  %vm21707_vm3 = vcmp.le.s32.totalorder %v25261_v8, 6  ;;  %v4819_v40 = vmul.f32 %v21589_v44, %v21616_v49  ;;  %v18941_v52 = vpack.c.bf16 %v5369_v38, %v5368_v23  ;;  %v5016_v8 = vrot.slane %v4818_v33, 7  ;;  %v15313_v23 = vld [vmem:[%s25226_s26 + $0x70] sm:$0xff] }
 0x6f0   : > { %25258 = vst [vmem:[#allocation40_spill] sm:$0xff] %v21685_v58  ;;  %6346 = vperm.xlu1 %19761, %v6320_v10   ;;  %6555 = vperm.xlu0 %19760, %v21685_v58   ;;  %v5174_v10 = vmul.f32 %v21690_v42, %v21455_v45  ;;  %v25265_v34 = vrot.slane %v21560_v50, 7  ;;  %v5158_v4 = vrot.slane %v4776_v53, 7  ;;  %v5160_v14 = vrot.slane %v4777_v36, 7  ;;  %v15314_v53 = vld [vmem:[%s25226_s26 + $0x78] sm:$0xff] }
 0x6f1   : > { %17493 = vmatmul.mubr.msk.f32.gmra.mrb[14].mxu1 %vm1279_vm0, %v5011_v15  ;;  %v4778_v38 = vsel %vm21707_vm3, 1.0, %v25260_v37  ;;  %v5018_v33 = vrot.slane %v4819_v40, 7  ;;  %v5204_v50 = vrot.slane %v21593_v61, 1  ;;  %v5175_v12 = vmul.f32 %v21695_v60, %v21450_v13  ;;  %v15323_v15 = vld [vmem:[%s25226_s26 + $0x80] sm:$0xff] }
 0x6f2   : > { %18940 = vmatpush3.bf16.msra.mxu1 %v18937_v19  ;;  %17495 = vmatprep.mubr.msk.f32.mxu1 %vm1279_vm0, %v5013_v56  ;;  %v21726_v63 = vsel %vm1873_vm11, %v25265_v34, %v5154_v0  ;;  %v5015_v19 = vsel %vm1873_vm11, %v5012_v35, %v5014_v43  ;;  %v5017_v36 = vsel %vm1873_vm11, %v5014_v43, %v5016_v8  ;;  %v6322_v56 = vld [vmem:[%s25223_s15 + $0x30] sm:$0xff]  ;;  %v21753_v27 = vrot.slane %v4778_v38, 7 }
 0x6f3   : > { %18942 = vmatprep.subr.bf16.mxu1 %v18941_v52  ;;  %v5176_v34 = vmul.f32 %v21726_v63, %v21491_v39  ;;  %v21746_v35 = vsel %vm1873_vm11, %v5154_v0, %v5156_v54  ;;  %v5366_v61 = vmul.f32 %v15313_v23, %v21332_v46  ;;  %v21751_v40 = vsel %vm1873_vm11, %v5156_v54, %v5158_v4 }
 0x6f4   : > { %6351 = vperm.xlu0 %19760, %v6321_v57   ;;  %6560 = vperm.xlu1 %19761, %v21711_v32   ;;  %v5205_v57 = vrot.slane %v5174_v10, 1  ;;  %v5367_v43 = vmul.f32 %v15314_v53, %v21334_v25  ;;  %v5532_v10 = vmul.f32 %v15323_v15, %v21320_v62  ;;  %v21759_v31 = vsel %vm1873_vm11, %v5158_v4, %v5160_v14 }
 0x6f5   : > { %17496 = vmatmul.mubr.msk.f32.gmra.mrb[16].mxu1 %vm1279_vm0, %v5015_v19  ;;  %v15324_v19 = vld [vmem:[%s25226_s26 + $0x88] sm:$0xff]  ;;  %v5019_v0 = vsel %vm1873_vm11, %v5016_v8, %v5018_v33  ;;  %v5370_v23 = vmul.f32 %v21351_v7, %v5366_v61  ;;  %v5177_v54 = vmul.f32 %v21746_v35, %v21480_v55  ;;  %v5209_v53 = vrot.slane %v5176_v34, 1 }
 0x6f6   : > { %17498 = vmatprep.mubr.msk.f32.mxu1 %vm1279_vm0, %v5017_v36  ;;  %v5207_v36 = vrot.slane %v5175_v12, 1  ;;  %v5206_v38 = vsel %vm1835_vm10, %v5204_v50, %v5205_v57  ;;  %v5371_v15 = vmul.f32 %v21351_v7, %v5367_v43  ;;  %v5178_v4 = vmul.f32 %v21751_v40, %v21549_v24 }
 0x6f7   : > { %v5533_v8 = vmul.f32 %v15324_v19, %v21322_v17  ;;  %v21774_v33 = vsel %vm1873_vm11, %v5160_v14, %v21753_v27  ;;  %v5536_v12 = vmul.f32 %v21351_v7, %v5532_v10  ;;  %v5179_v34 = vmul.f32 %v21759_v31, %v21537_v26 }
 0x6f8   : > { %6361 = vperm.xlu0 %19760, %v6323_v11   ;;  %6356 = vperm.xlu1 %19761, %v6322_v56   ;;  %v5208_v11 = vsel %vm1835_vm10, %v5205_v57, %v5207_v36  ;;  %v5211_v56 = vrot.slane %v5177_v54, 1  ;;  %v5210_v61 = vsel %vm1835_vm10, %v5207_v36, %v5209_v53  ;;  %v18945_v43 = vpack.c.bf16 %v5371_v15, %v5370_v23 }
 0x6f9   : > { %17499 = vmatmul.mubr.msk.f32.gmra.mrb[18].mxu1 %vm1279_vm0, %v5019_v0  ;;  %v5537_v50 = vmul.f32 %v21351_v7, %v5533_v8  ;;  %v5213_v19 = vrot.slane %v5178_v4, 1  ;;  %v5180_v14 = vmul.f32 %v21774_v33, %v21616_v49  ;;  %v5215_v10 = vrot.slane %v5179_v34, 1  ;;  %v15326_v8 = vld [vmem:[%s25226_s26 + $0x98] sm:$0xff] }
 0x6fa   : > { %17509 = vmatprep.mubr.msk.f32.mxu1 %vm1279_vm0, %v5206_v38  ;;  %v5212_v57 = vsel %vm1835_vm10, %v5209_v53, %v5211_v56  ;;  %v5181_v0 = vmul.f32 %v21753_v27, %v21611_v51  ;;  %v5350_v36 = vmul.f32 %v21265_v9, %v21245_v22  ;;  %v5351_v38 = vmul.f32 %v21272_v21, %v21455_v45  ;;  %v15325_v53 = vld [vmem:[%s25226_s26 + $0x90] sm:$0xff] }
 0x6fb   : > { %v5214_v23 = vsel %vm1835_vm10, %v5211_v56, %v5213_v19  ;;  %v18949_v54 = vpack.c.bf16 %v5537_v50, %v5536_v12  ;;  %v5216_v15 = vsel %vm1835_vm10, %v5213_v19, %v5215_v10  ;;  %v5352_v22 = vmul.f32 %v21513_v20, %v21450_v13  ;;  %v15336_v19 = vld [vmem:[%s25226_s26 + $0xa8] sm:$0xff] }
 0x6fc   : > { %v5219_v4 = vrot.slane %v5181_v0, 1  ;;  %v5381_v56 = vrot.slane %v5350_v36, 7  ;;  %v5382_v50 = vrot.slane %v5351_v38, 7  ;;  %v5353_v34 = vmul.f32 %v21542_v6, %v21491_v39 }
 0x6fd   : > { %17510 = vmatmul.mubr.msk.f32.vlgmr.msra.gmra.mrb[12].mxu1 %vm1279_vm0, %v5208_v11  ;;  %v15335_v11 = vld [vmem:[%s25226_s26 + $0xa0] sm:$0xff]  ;;  %v5384_v0 = vrot.slane %v5352_v22, 7 }
 0x6fe   : > { %18944 = vmatpush3.bf16.msra.mxu1 %v18941_v52  ;;  %17512 = vmatprep.mubr.msk.f32.mxu1 %vm1279_vm0, %v5210_v61  ;;  %v5217_v52 = vrot.slane %v5180_v14, 1  ;;  %v5534_v61 = vmul.f32 %v15325_v53, %v21332_v46  ;;  %v5670_v14 = vmul.f32 %v15335_v11, %v21320_v62  ;;  %v5383_v36 = vsel %vm1873_vm11, %v5381_v56, %v5382_v50 }
 0x6ff   : > { %18946 = vmatprep.subr.bf16.mxu1 %v18945_v43  ;;  %v5386_v38 = vrot.slane %v5353_v34, 7  ;;  %v5385_v22 = vsel %vm1873_vm11, %v5382_v50, %v5384_v0 }
 0x700   : > { %v5218_v12 = vsel %vm1835_vm10, %v5215_v10, %v5217_v52  ;;  %v5354_v10 = vmul.f32 %v21579_v30, %v21480_v55 }
 0x701   : > { %17513 = vmatmul.mubr.msk.f32.gmra.mrb[14].mxu1 %vm1279_vm0, %v5212_v57  ;;  %v5220_v57 = vsel %vm1835_vm10, %v5217_v52, %v5219_v4  ;;  %v5671_v52 = vmul.f32 %v15336_v19, %v21322_v17  ;;  %v5674_v4 = vmul.f32 %v21351_v7, %v5670_v14  ;;  %v5387_v56 = vsel %vm1873_vm11, %v5384_v0, %v5386_v38 }
 0x702   : > { %18948 = vmatpush3.bf16.msra.mxu1 %v18945_v43  ;;  %17515 = vmatprep.mubr.msk.f32.mxu1 %vm1279_vm0, %v5214_v23  ;;  %v5535_v43 = vmul.f32 %v15326_v8, %v21334_v25  ;;  %v5538_v23 = vmul.f32 %v21351_v7, %v5534_v61  ;;  %v5388_v8 = vrot.slane %v5354_v10, 7  ;;  %v5358_v14 = vmul.f32 %v21589_v44, %v21611_v51 }
 0x703   : > { %18950 = vmatprep.subr.bf16.mxu1 %v18949_v54  ;;  %v5675_v11 = vmul.f32 %v21351_v7, %v5671_v52 }
 0x704   : > { %v5539_v53 = vmul.f32 %v21351_v7, %v5535_v43  ;;  %v5357_v43 = vmul.f32 %v21645_v59, %v21616_v49  ;;  %v5389_v50 = vsel %vm1873_vm11, %v5386_v38, %v5388_v8  ;;  %v5396_v10 = vrot.slane %v5358_v14, 7  ;;  %v15338_v38 = vld [vmem:[%s25226_s26 + $0xb8] sm:$0xff] }
 0x705   : > { %17516 = vmatmul.mubr.msk.f32.gmra.mrb[16].mxu1 %vm1279_vm0, %v5216_v15  ;;  %v5355_v15 = vmul.f32 %v21582_v48, %v21549_v24  ;;  %v18957_v0 = vpack.c.bf16 %v5675_v11, %v5674_v4  ;;  %v5673_v52 = vmul.f32 %v15338_v38, %v21334_v25  ;;  %v5656_v14 = vmul.f32 %v21570_v18, %v21455_v45 }
 0x706   : > { %17518 = vmatprep.mubr.msk.f32.mxu1 %vm1279_vm0, %v5218_v12  ;;  %v5356_v12 = vmul.f32 %v21622_v47, %v21537_v26  ;;  %v18953_v34 = vpack.c.bf16 %v5539_v53, %v5538_v23  ;;  %v5394_v23 = vrot.slane %v5357_v43, 7 }
 0x707   : > { %v5390_v61 = vrot.slane %v5355_v15, 7 }
 0x708   : > { %v5392_v19 = vrot.slane %v5356_v12, 7  ;;  %v5397_v4 = vsel %vm1873_vm11, %v5394_v23, %v5396_v10  ;;  %v5677_v12 = vmul.f32 %v21351_v7, %v5673_v52  ;;  %v15350_v10 = vld [vmem:[%s25226_s26 + $0xd8] sm:$0xff] }
 0x709   : > { %17519 = vmatmul.mubr.msk.f32.gmra.mrb[18].mxu1 %vm1279_vm0, %v5220_v57  ;;  %v5391_v57 = vsel %vm1873_vm11, %v5388_v8, %v5390_v61  ;;  %v15348_v8 = vld [vmem:[%s25226_s26 + $0xc8] sm:$0xff]  ;;  %v5850_v52 = vmul.f32 %v15350_v10, %v21334_v25 }
 0x70a   : > { %17529 = vmatprep.mubr.msk.f32.mxu1 %vm1279_vm0, %v5383_v36  ;;  %v15337_v36 = vld [vmem:[%s25226_s26 + $0xb0] sm:$0xff]  ;;  %v5395_v53 = vsel %vm1873_vm11, %v5392_v19, %v5394_v23  ;;  %v5659_v23 = vmul.f32 %v21726_v63, %v21480_v55 }
 0x70b   : > { %v5672_v15 = vmul.f32 %v15337_v36, %v21332_v46  ;;  %v5687_v36 = vrot.slane %v5656_v14, 1 }
 0x70d   : > { %17530 = vmatmul.mubr.msk.f32.vlgmr.msra.gmra.mrb[12].mxu1 %vm1279_vm0, %v5385_v22  ;;  %v15347_v22 = vld [vmem:[%s25226_s26 + $0xc0] sm:$0xff]  ;;  %v5676_v11 = vmul.f32 %v21351_v7, %v5672_v15 }
 0x70e   : > { %18952 = vmatpush3.bf16.msra.mxu1 %v18949_v54  ;;  %17532 = vmatprep.mubr.msk.f32.mxu1 %vm1279_vm0, %v5387_v56  ;;  %v5393_v54 = vsel %vm1873_vm11, %v5390_v61, %v5392_v19  ;;  %v5847_v56 = vmul.f32 %v15347_v22, %v21320_v62  ;;  %v5692_v22 = vrot.slane %v5659_v23, 1 }
 0x70f   : > { %18954 = vmatprep.subr.bf16.mxu1 %v18953_v34  ;;  %v18961_v61 = vpack.c.bf16 %v5677_v12, %v5676_v11  ;;  %v15360_v11 = vld [vmem:[%s25226_s26 + $0xe8] sm:$0xff] }
 0x710   : > { %v5851_v43 = vmul.f32 %v21351_v7, %v5847_v56 }
 0x711   : > { %17533 = vmatmul.mubr.msk.f32.gmra.mrb[14].mxu1 %vm1279_vm0, %v5389_v50 }
 0x712   : > { %18956 = vmatpush3.bf16.msra.mxu1 %v18953_v34  ;;  %17535 = vmatprep.mubr.msk.f32.mxu1 %vm1279_vm0, %v5391_v57  ;;  %v5848_v34 = vmul.f32 %v15348_v8, %v21322_v17  ;;  %v5657_v57 = vmul.f32 %v21690_v42, %v21450_v13  ;;  %v5660_v8 = vmul.f32 %v21746_v35, %v21549_v24 }
 0x713   : > { %18958 = vmatprep.subr.bf16.mxu1 %v18957_v0 }
 0x714   : > { %v5852_v50 = vmul.f32 %v21351_v7, %v5848_v34  ;;  %v5688_v38 = vrot.slane %v5657_v57, 1  ;;  %v5694_v23 = vrot.slane %v5660_v8, 1  ;;  %v5833_v8 = vmul.f32 %v21265_v9, %v21455_v45 }
 0x715   : > { %17536 = vmatmul.mubr.msk.f32.gmra.mrb[16].mxu1 %vm1279_vm0, %v5393_v54  ;;  %v15349_v54 = vld [vmem:[%s25226_s26 + $0xd0] sm:$0xff] }
 0x716   : > { %17538 = vmatprep.mubr.msk.f32.mxu1 %vm1279_vm0, %v5395_v53  ;;  %v18965_v19 = vpack.c.bf16 %v5852_v50, %v5851_v43  ;;  %v15359_v53 = vld [vmem:[%s25226_s26 + $0xe0] sm:$0xff]  ;;  %v5849_v15 = vmul.f32 %v15349_v54, %v21332_v46  ;;  %v5689_v56 = vsel %vm1835_vm10, %v5687_v36, %v5688_v38  ;;  %v5661_v43 = vmul.f32 %v21751_v40, %v21537_v26 }
 0x717   : > { %v6015_v12 = vmul.f32 %v15359_v53, %v21320_v62  ;;  %v6016_v50 = vmul.f32 %v15360_v11, %v21322_v17  ;;  %v5662_v54 = vmul.f32 %v21759_v31, %v21616_v49 }
 0x718   : > { %v5853_v34 = vmul.f32 %v21351_v7, %v5849_v15  ;;  %v5696_v36 = vrot.slane %v5661_v43, 1  ;;  %v5663_v15 = vmul.f32 %v21774_v33, %v21611_v51  ;;  %v15362_v43 = vld [vmem:[%s25226_s26 + $0xf8] sm:$0xff] }
 0x719   : > { %17539 = vmatmul.mubr.msk.f32.gmra.mrb[18].mxu1 %vm1279_vm0, %v5397_v4  ;;  %v6019_v14 = vmul.f32 %v21351_v7, %v6015_v12  ;;  %v6020_v53 = vmul.f32 %v21351_v7, %v6016_v50 }
 0x71a   : > { %17549 = vmatprep.mubr.msk.f32.mxu1 %vm1279_vm0, %v21455_v45  ;;  %v5697_v11 = vsel %vm1835_vm10, %v5694_v23, %v5696_v36 }
 0x71b   : > { %v18973_v12 = vpack.c.bf16 %v6020_v53, %v6019_v14  ;;  %v5864_v14 = vrot.slane %v5833_v8, 7  ;;  %v15371_v53 = vld [vmem:[%s25226_s26 + $0x100] sm:$0xff] }
 0x71d   : > { %17550 = vmatmul.mubr.msk.f32.vlgmr.msra.gmra.mrb[12].mxu1 %vm1279_vm0, %v21450_v13 }
 0x71e   : > { %18960 = vmatpush3.bf16.msra.mxu1 %v18957_v0  ;;  %17552 = vmatprep.mubr.msk.f32.mxu1 %vm1279_vm0, %v21491_v39  ;;  %v5658_v0 = vmul.f32 %v21695_v60, %v21491_v39 }
 0x71f   : > { %18962 = vmatprep.subr.bf16.mxu1 %v18961_v61 }
 0x720   : > { %v5690_v4 = vrot.slane %v5658_v0, 1 }
 0x721   : > { %17553 = vmatmul.mubr.msk.f32.gmra.mrb[14].mxu1 %vm1279_vm0, %v21480_v55 }
 0x722   : > { %18964 = vmatpush3.bf16.msra.mxu1 %v18961_v61  ;;  %17555 = vmatprep.mubr.msk.f32.mxu1 %vm1279_vm0, %v21549_v24  ;;  %v5854_v61 = vmul.f32 %v21351_v7, %v5850_v52  ;;  %v5691_v57 = vsel %vm1835_vm10, %v5688_v38, %v5690_v4  ;;  %v5693_v0 = vsel %vm1835_vm10, %v5690_v4, %v5692_v22  ;;  %v5698_v52 = vrot.slane %v5662_v54, 1 }
 0x723   : > { %18966 = vmatprep.subr.bf16.mxu1 %v18965_v19  ;;  %v5695_v38 = vsel %vm1835_vm10, %v5692_v22, %v5694_v23  ;;  %v5664_v4 = vmul.f32 %v21753_v27, %v21303_v16  ;;  %v5835_v22 = vmul.f32 %v21513_v20, %v21491_v39 }
 0x724   : > { %v18969_v10 = vpack.c.bf16 %v5854_v61, %v5853_v34  ;;  %v15361_v34 = vld [vmem:[%s25226_s26 + $0xf0] sm:$0xff]  ;;  %v5699_v45 = vsel %vm1835_vm10, %v5696_v36, %v5698_v52  ;;  %v15372_v36 = vld [vmem:[%s25226_s26 + $0x108] sm:$0xff] }
 0x725   : > { %17556 = vmatmul.mubr.msk.f32.gmra.mrb[16].mxu1 %vm1279_vm0, %v21537_v26  ;;  %v5702_v61 = vrot.slane %v5664_v4, 1  ;;  %v6017_v23 = vmul.f32 %v15361_v34, %v21332_v46  ;;  %v5867_v54 = vrot.slane %v5835_v22, 7  ;;  %v6153_v22 = vmul.f32 %v15371_v53, %v21320_v62 }
 0x726   : > { %17558 = vmatprep.mubr.msk.f32.mxu1 %vm1279_vm0, %v21616_v49  ;;  %v5840_v62 = vmul.f32 %v21645_v59, %v21611_v51 }
 0x729   : > { %17559 = vmatmul.mubr.msk.f32.gmra.mrb[18].mxu1 %vm1279_vm0, %v21611_v51 }
 0x72a   : > { %17569 = vmatprep.mubr.msk.f32.mxu1 %vm1279_vm0, %v5689_v56  ;;  %v5834_v56 = vmul.f32 %v21272_v21, %v21450_v13 }
 0x72d   : > { %17570 = vmatmul.mubr.msk.f32.vlgmr.msra.gmra.mrb[12].mxu1 %vm1279_vm0, %v5691_v57  ;;  %v5865_v57 = vrot.slane %v5834_v56, 7  ;;  %v5838_v56 = vmul.f32 %v21582_v48, %v21537_v26 }
 0x72e   : > { %18968 = vmatpush3.bf16.msra.mxu1 %v18965_v19  ;;  %17572 = vmatprep.mubr.msk.f32.mxu1 %vm1279_vm0, %v5693_v0  ;;  %v5700_v19 = vrot.slane %v5663_v15, 1  ;;  %v5836_v0 = vmul.f32 %v21542_v6, %v21480_v55 }
 0x72f   : > { %18970 = vmatprep.subr.bf16.mxu1 %v18969_v10  ;;  %v5866_v4 = vsel %vm1873_vm11, %v5864_v14, %v5865_v57  ;;  %v5868_v34 = vsel %vm1873_vm11, %v5865_v57, %v5867_v54 }
 0x730   : > { %v5701_v50 = vsel %vm1835_vm10, %v5698_v52, %v5700_v19  ;;  %v5703_v15 = vsel %vm1835_vm10, %v5700_v19, %v5702_v61  ;;  %v5837_v52 = vmul.f32 %v21579_v30, %v21549_v24  ;;  %v5869_v8 = vrot.slane %v5836_v0, 7 }
 0x731   : > { %17573 = vmatmul.mubr.msk.f32.gmra.mrb[14].mxu1 %vm1279_vm0, %v5695_v38  ;;  %v6021_v38 = vmul.f32 %v21351_v7, %v6017_v23  ;;  %v6154_v19 = vmul.f32 %v15372_v36, %v21322_v17  ;;  %v6157_v61 = vmul.f32 %v21351_v7, %v6153_v22  ;;  %v5873_v23 = vrot.slane %v5838_v56, 7 }
 0x732   : > { %18972 = vmatpush3.bf16.msra.mxu1 %v18969_v10  ;;  %17575 = vmatprep.mubr.msk.f32.mxu1 %vm1279_vm0, %v5697_v11  ;;  %v6018_v10 = vmul.f32 %v15362_v43, %v21334_v25  ;;  %v5870_v14 = vsel %vm1873_vm11, %v5867_v54, %v5869_v8  ;;  %v5877_v36 = vrot.slane %v5840_v62, 7 }
 0x733   : > { %18974 = vmatprep.subr.bf16.mxu1 %v18973_v12  ;;  %v6158_v43 = vmul.f32 %v21351_v7, %v6154_v19 }
 0x734   : > { %v6022_v11 = vmul.f32 %v21351_v7, %v6018_v10  ;;  %v5841_v10 = vmul.f32 %v21589_v44, %v21303_v16 }
 0x735   : > { %17576 = vmatmul.mubr.msk.f32.gmra.mrb[16].mxu1 %vm1279_vm0, %v5699_v45  ;;  %v5871_v45 = vrot.slane %v5837_v52, 7  ;;  %v18981_v53 = vpack.c.bf16 %v6158_v43, %v6157_v61  ;;  %v15374_v52 = vld [vmem:[%s25226_s26 + $0x118] sm:$0xff]  ;;  %v6142_v61 = vmul.f32 %v21726_v63, %v21549_v24 }
 0x736   : > { %17578 = vmatprep.mubr.msk.f32.mxu1 %vm1279_vm0, %v5701_v50  ;;  %v5839_v50 = vmul.f32 %v21622_v47, %v21616_v49  ;;  %v18977_v0 = vpack.c.bf16 %v6022_v11, %v6021_v38  ;;  %v15373_v38 = vld [vmem:[%s25226_s26 + $0x110] sm:$0xff]  ;;  %v6156_v11 = vmul.f32 %v15374_v52, %v21334_v25  ;;  %v6139_v25 = vmul.f32 %v21570_v18, %v21450_v13 }
 0x737   : > { %v5872_v17 = vsel %vm1873_vm11, %v5869_v8, %v5871_v45  ;;  %v5874_v54 = vsel %vm1873_vm11, %v5871_v45, %v5873_v23  ;;  %v6155_v8 = vmul.f32 %v15373_v38, %v21332_v46  ;;  %v6140_v46 = vmul.f32 %v21690_v42, %v21491_v39 }
 0x738   : > { %v5875_v57 = vrot.slane %v5839_v50, 7  ;;  %v6160_v19 = vmul.f32 %v21351_v7, %v6156_v11  ;;  %v6143_v50 = vmul.f32 %v21746_v35, %v21537_v26 }
 0x739   : > { %17579 = vmatmul.mubr.msk.f32.gmra.mrb[18].mxu1 %vm1279_vm0, %v5703_v15  ;;  %v5879_v15 = vrot.slane %v5841_v10, 7  ;;  %v6159_v22 = vmul.f32 %v21351_v7, %v6155_v8  ;;  %v6141_v7 = vmul.f32 %v21695_v60, %v21480_v55  ;;  %v6171_v45 = vrot.slane %v6140_v46, 1  ;;  %v15385_v8 = vld [vmem:[%s25266_s0 + $0x28] sm:$0xff]  ;;  %v6539_v46 = vld [vmem:[%s25266_s0] sm:$0xff] }
 0x73a   : > { %17589 = vmatprep.mubr.msk.f32.mxu1 %vm1279_vm0, %v5866_v4  ;;  %v5878_v4 = vsel %vm1873_vm11, %v5875_v57, %v5877_v36 }
 0x73b   : > { %v5880_v56 = vsel %vm1873_vm11, %v5877_v36, %v5879_v15  ;;  %v6173_v43 = vrot.slane %v6141_v7, 1  ;;  %v22016_v36 = vpop.permute.xlu0 %6326  ;;  %v6540_v7 = vld [vmem:[%s25266_s0 + $0x8] sm:$0xff] }
 0x73d   : > { %17590 = vmatmul.mubr.msk.f32.vlgmr.msra.gmra.mrb[12].mxu1 %vm1279_vm0, %v5868_v34  ;;  %v18985_v34 = vpack.c.bf16 %v6160_v19, %v6159_v22 }
 0x73e   : > { %18976 = vmatpush3.bf16.msra.mxu1 %v18973_v12  ;;  %17592 = vmatprep.mubr.msk.f32.mxu1 %vm1279_vm0, %v5870_v14  ;;  %v5876_v12 = vsel %vm1873_vm11, %v5873_v23, %v5875_v57  ;;  %v6144_v14 = vmul.f32 %v21751_v40, %v21616_v49  ;;  %v6145_v23 = vmul.f32 %v21759_v31, %v21611_v51 }
 0x73f   : > { %18978 = vmatprep.subr.bf16.mxu1 %v18977_v0 }
 0x740   : > { %v6179_v62 = vrot.slane %v6144_v14, 1  ;;  %v6181_v10 = vrot.slane %v6145_v23, 1  ;;  %v15442_v14 = vld [vmem:[%s25266_s0 + $0xb0] sm:$0xff] }
 0x741   : > { %17593 = vmatmul.mubr.msk.f32.gmra.mrb[14].mxu1 %vm1279_vm0, %v5872_v17  ;;  %v6146_v17 = vmul.f32 %v21774_v33, %v21303_v16  ;;  %v15466_v23 = vld [vmem:[%s25266_s0 + $0xf0] sm:$0xff] }
 0x742   : > { %18980 = vmatpush3.bf16.msra.mxu1 %v18977_v0  ;;  %17595 = vmatprep.mubr.msk.f32.mxu1 %vm1279_vm0, %v5874_v54  ;;  %v6177_v0 = vrot.slane %v6143_v50, 1  ;;  %v22011_v54 = vpop.permute.xlu1 %6331  ;;  %v15387_v50 = vld [vmem:[%s25266_s0 + $0x38] sm:$0xff] }
 0x743   : > { %18982 = vmatprep.subr.bf16.mxu1 %v18981_v53 }
 0x745   : > { %17596 = vmatmul.mubr.msk.f32.gmra.mrb[16].mxu1 %vm1279_vm0, %v5876_v12 }
 0x746   : > { %17598 = vmatprep.mubr.msk.f32.mxu1 %vm1279_vm0, %v5878_v4  ;;  %v22023_v38 = vpop.permute.xlu1 %6336  ;;  %v15384_v4 = vld [vmem:[%s25266_s0 + $0x20] sm:$0xff] }
 0x749   : > { %17599 = vmatmul.mubr.msk.f32.gmra.mrb[18].mxu1 %vm1279_vm0, %v5880_v56 }
 0x74a   : > { %17609 = vmatprep.mubr.msk.f32.mxu1 %vm1279_vm0, %v21450_v13 }
 0x74d   : > { %17610 = vmatmul.mubr.msk.f32.vlgmr.msra.gmra.mrb[12].mxu1 %vm1279_vm0, %v21491_v39  ;;  %v6170_v39 = vrot.slane %v6139_v25, 1 }
 0x74e   : > { %18984 = vmatpush3.bf16.msra.mxu1 %v18981_v53  ;;  %17612 = vmatprep.mubr.msk.f32.mxu1 %vm1279_vm0, %v21480_v55  ;;  %v6175_v55 = vrot.slane %v6142_v61, 1  ;;  %v6183_v53 = vrot.slane %v6146_v17, 1  ;;  %v15406_v61 = vld [vmem:[%s25266_s0 + $0x50] sm:$0xff]  ;;  %v15407_v17 = vld [vmem:[%s25266_s0 + $0x58] sm:$0xff] }
 0x74f   : > { %18986 = vmatprep.subr.bf16.mxu1 %v18985_v34  ;;  %v6172_v13 = vsel %vm1835_vm10, %v6170_v39, %v6171_v45 }
 0x750   : > { %v6178_v57 = vsel %vm1835_vm10, %v6175_v55, %v6177_v0  ;;  %v6184_v12 = vsel %vm1835_vm10, %v6181_v10, %v6183_v53 }
 0x751   : > { %17613 = vmatmul.mubr.msk.f32.gmra.mrb[14].mxu1 %vm1279_vm0, %v21549_v24  ;;  %v6174_v24 = vsel %vm1835_vm10, %v6171_v45, %v6173_v43  ;;  %v6541_v45 = vld [vmem:[%s25266_s0 + $0x10] sm:$0xff] }
 0x752   : > { %18988 = vmatpush3.bf16.msra.mxu1 %v18985_v34  ;;  %17615 = vmatprep.mubr.msk.f32.mxu1 %vm1279_vm0, %v21537_v26  ;;  %v6176_v26 = vsel %vm1835_vm10, %v6173_v43, %v6175_v55  ;;  %v15386_v34 = vld [vmem:[%s25266_s0 + $0x30] sm:$0xff] }
 0x753   : > { %v15430_v55 = vld [vmem:[%s25266_s0 + $0x90] sm:$0xff] }
 0x755   : > { %17616 = vmatmul.mubr.msk.f32.gmra.mrb[16].mxu1 %vm1279_vm0, %v21616_v49  ;;  %v6147_v49 = vmul.f32 %v21753_v27, %v21613_v41  ;;  %v6182_v41 = vsel %vm1835_vm10, %v6179_v62, %v6181_v10 }
 0x756   : > { %17618 = vmatprep.mubr.msk.f32.mxu1 %vm1279_vm0, %v21611_v51  ;;  %v6180_v51 = vsel %vm1835_vm10, %v6177_v0, %v6179_v62  ;;  %v15454_v0 = vld [vmem:[%s25266_s0 + $0xd0] sm:$0xff] }
 0x759   : > { %17619 = vmatmul.mubr.msk.f32.gmra.mrb[18].mxu1 %vm1279_vm0, %v21303_v16  ;;  %v6185_v16 = vrot.slane %v6147_v49, 1  ;;  %v15419_v49 = vld [vmem:[%s25266_s0 + $0x78] sm:$0xff] }
 0x75a   : > { %17629 = vmatprep.mubr.msk.f32.mxu1 %vm1279_vm0, %v6172_v13  ;;  %v15418_v13 = vld [vmem:[%s25266_s0 + $0x70] sm:$0xff] }
 0x75b   : > { %v6186_v15 = vsel %vm1835_vm10, %v6183_v53, %v6185_v16 }
 0x75d   : > { %17630 = vmatmul.mubr.msk.f32.vlgmr.msra.gmra.mrb[12].mxu1 %vm1279_vm0, %v6174_v24  ;;  %v6542_v24 = vld [vmem:[%s25266_s0 + $0x18] sm:$0xff] }
 0x75e   : > { %17632 = vmatprep.mubr.msk.f32.mxu1 %vm1279_vm0, %v6176_v26 }
 0x761   : > { %17633 = vmatmul.mubr.msk.f32.gmra.mrb[14].mxu1 %vm1279_vm0, %v6178_v57  ;;  %v15431_v57 = vld [vmem:[%s25266_s0 + $0x98] sm:$0xff] }
 0x762   : > { %17635 = vmatprep.mubr.msk.f32.mxu1 %vm1279_vm0, %v6180_v51 }
 0x765   : > { %17636 = vmatmul.mubr.msk.f32.gmra.mrb[16].mxu1 %vm1279_vm0, %v6182_v41  ;;  %v15443_v41 = vld [vmem:[%s25266_s0 + $0xb8] sm:$0xff] }
 0x766   : > { %17638 = vmatprep.mubr.msk.f32.mxu1 %vm1279_vm0, %v6184_v12  ;;  %v15455_v12 = vld [vmem:[%s25266_s0 + $0xd8] sm:$0xff] }
 0x767   : > { %v22025_v52 = vpop.permute.xlu0 %6545 }
 0x768   : > { %v6572_v22 = vmul.f32 %v15384_v4, %v22025_v52  ;;  %v6563_v26 = vmul.f32 %v22025_v52, %v6539_v46 }
 0x769   : > { %17639 = vmatmul.mubr.msk.f32.gmra.mrb[18].mxu1 %vm1279_vm0, %v6186_v15  ;;  %v15467_v15 = vld [vmem:[%s25266_s0 + $0xf8] sm:$0xff] }
 0x76b   : > { %v22030_v11 = vpop.permute.xlu0 %6341  ;;  %v22032_v56 = vpop.permute.xlu1 %6550 }
 0x76c   : > { %v6573_v19 = vmul.f32 %v15385_v8, %v22032_v56  ;;  %v6564_v62 = vmul.f32 %v22032_v56, %v6540_v7 }
 0x76e   : > { %v18989_v25 = vpack.c.bf16 %v6573_v19, %v6572_v22 }
 0x76f   : > { %v6556_v39 = vpop.permute.xlu0 %6555  ;;  %v22041_v43 = vpop.permute.xlu1 %6346 }
 0x770   : > { %18990 = vmatprep.subr.bf16.mxu0 %v18989_v25  ;;  %v6574_v10 = vmul.f32 %v15386_v34, %v6556_v39  ;;  %v6565_v51 = vmul.f32 %v6556_v39, %v6541_v45  ;;  %v6868_v53 = vmul.f32 %v15406_v61, %v6556_v39  ;;  %v7041_v16 = vmul.f32 %v15418_v13, %v6556_v39  ;;  %v15478_v61 = vld [vmem:[%s25266_s0 + $0x110] sm:$0xff]  ;;  %v15479_v13 = vld [vmem:[%s25266_s0 + $0x118] sm:$0xff] }
 0x771   : > { %18992 = vmatpush3.bf16.msra.mxu0 %v18989_v25  ;;  %v7205_v8 = vmul.f32 %v15430_v55, %v6556_v39  ;;  %v7339_v22 = vmul.f32 %v15442_v14, %v6556_v39  ;;  %v7512_v19 = vmul.f32 %v15454_v0, %v6556_v39  ;;  %v7676_v25 = vmul.f32 %v15466_v23, %v6556_v39 }
 0x772   : > { %v22074_v23 = vpack.c.bf16 %v6564_v62, %v6563_v26 }
 0x773   : > { %v6561_v4 = vpop.permute.xlu1 %6560 }
 0x774   : > { %v6575_v46 = vmul.f32 %v15387_v50, %v6561_v4  ;;  %v6566_v29 = vmul.f32 %v6561_v4, %v6542_v24  ;;  %v6869_v7 = vmul.f32 %v15407_v17, %v6561_v4  ;;  %v7042_v2 = vmul.f32 %v15419_v49, %v6561_v4 }
 0x775   : > { %v7206_v37 = vmul.f32 %v15431_v57, %v6561_v4  ;;  %v7340_v28 = vmul.f32 %v15443_v41, %v6561_v4  ;;  %v7513_v34 = vmul.f32 %v15455_v12, %v6561_v4  ;;  %v7677_v45 = vmul.f32 %v15467_v15, %v6561_v4  ;;  %v6352_v41 = vpop.permute.xlu0 %6351 }
 0x776   : > { %v18993_v32 = vpack.c.bf16 %v6575_v46, %v6574_v10  ;;  %v22060_v58 = vpack.c.bf16 %v6566_v29, %v6565_v51  ;;  %v22062_v3 = vpack.c.bf16 %v6869_v7, %v6868_v53  ;;  %v22064_v55 = vpack.c.bf16 %v7042_v2, %v7041_v16  ;;  %v22079_v2 = vld [vmem:[#allocation4 + $0x8] sm:$0xff] }
 0x777   : > { %v22066_v14 = vpack.c.bf16 %v7206_v37, %v7205_v8  ;;  %v22068_v50 = vpack.c.bf16 %v7340_v28, %v7339_v22  ;;  %v22070_v24 = vpack.c.bf16 %v7513_v34, %v7512_v19  ;;  %v22072_v0 = vpack.c.bf16 %v7677_v45, %v7676_v25  ;;  %17649 = vmatprep.mubr.msk.f32.mxu0 %vm1279_vm0, %v22079_v2  ;;  %v15383_v37 = vld [vmem:[%s25267_s1] ss:$0 sm:$0xff]  ;;  %s25268_s1 = sld [smem:[#allocation11_spill]] }
 0x778   : > { %18994 = vmatprep.subr.bf16.mxu0 %v18993_v32  ;;  %v7810_v17 = vmul.f32 %v15478_v61, %v6556_v39  ;;  %v7811_v49 = vmul.f32 %v15479_v13, %v6561_v4 }
 0x779   : > { %18996 = vmatpush3.bf16.msra.mxu0 %v18993_v32  ;;  %v6362_v13 = vpop.permute.xlu0 %6361 }
 0x77a   : > { %18998 = vmatprep.subr.bf16.mxu0 %v22074_v23  ;;  %v22077_v29 = vpack.c.bf16 %v7811_v49, %v7810_v17 }
 0x830   : > { %v17631_v28 = vpop.f32.mrb[12].mxu1 }
 0x831   : > { %v6365_v57 = vadd.f32 %v17631_v28, %v22011_v54  ;;  %v6269_v10 = vpop.f32.mrb[13].mxu1 }
 0x832   : > { %v6364_v26 = vadd.f32 %v22016_v36, %v6269_v10  ;;  %v6357_v10 = vpop.permute.xlu1 %6356 }
 0x833   : > { %v6380_v62 = vadd.f32 %v15383_v37, %v6365_v57 }
 0x834   : > { %v6379_v39 = vadd.f32 %v15383_v37, %v6364_v26  ;;  %v17634_v51 = vpop.f32.mrb[14].mxu1 }
 0x835   : > { %vm6388_vm4 = vcmp.ge.f32.partialorder %v6380_v62, 0.0  ;;  %v6396_v32 = vmul.f32 0.2, %v6380_v62  ;;  %v6367_v53 = vadd.f32 %v17634_v51, %v22030_v11  ;;  %v6279_v16 = vpop.f32.mrb[15].mxu1 }
 0x836   : > { %vm6387_vm5 = vcmp.ge.f32.partialorder %v6379_v39, 0.0  ;;  %v6395_v12 = vmul.f32 0.2, %v6379_v39  ;;  %v6366_v15 = vadd.f32 %v22023_v38, %v6279_v16 }
 0x837   : > { %v6404_v4 = vsel %vm6388_vm4, %v6380_v62, %v6396_v32  ;;  %v6382_v8 = vadd.f32 %v15383_v37, %v6367_v53 }
 0x838   : > { %v6412_v22 = vmul.f32 1.4142135, %v6404_v4  ;;  %v6403_v54 = vsel %vm6387_vm5, %v6379_v39, %v6395_v12  ;;  %v6381_v19 = vadd.f32 %v15383_v37, %v6366_v15  ;;  %v17637_v25 = vpop.f32.mrb[16].mxu1  ;;  %v15405_v4 = vld [vmem:[%s25266_s0 + $0x48] sm:$0xff] }
 0x839   : > { %v6411_v36 = vmul.f32 1.4142135, %v6403_v54  ;;  %vm6390_vm6 = vcmp.ge.f32.partialorder %v6382_v8, 0.0  ;;  %v6398_v46 = vmul.f32 0.2, %v6382_v8  ;;  %v6369_v7 = vadd.f32 %v17637_v25, %v6352_v41  ;;  %v6289_v34 = vpop.f32.mrb[17].mxu1 }
 0x83a   : > { %6511 = vst.msk [vmem:[#allocation4 + $0x18] sm:$0xff] %vm1279_vm0, %v6412_v22  ;;  %vm6389_vm7 = vcmp.ge.f32.partialorder %v6381_v19, 0.0  ;;  %v6397_v11 = vmul.f32 0.2, %v6381_v19  ;;  %v6368_v45 = vadd.f32 %v22041_v43, %v6289_v34  ;;  %v15404_v25 = vld [vmem:[%s25266_s0 + $0x40] sm:$0xff] }
 0x83b   : > { %6510 = vst.msk [vmem:[#allocation4 + $0x10] sm:$0xff] %vm1279_vm0, %v6411_v36  ;;  %v6406_v38 = vsel %vm6390_vm6, %v6382_v8, %v6398_v46  ;;  %v6384_v61 = vadd.f32 %v15383_v37, %v6369_v7  ;;  %v6518_v36 = vld [vmem:[#allocation4] sm:$0xff] }
 0x83c   : > { %v6414_v17 = vmul.f32 1.4142135, %v6406_v38  ;;  %v6405_v49 = vsel %vm6389_vm7, %v6381_v19, %v6397_v11  ;;  %v6383_v28 = vadd.f32 %v15383_v37, %v6368_v45  ;;  %v17640_v57 = vpop.f32.mrb[18].mxu1  ;;  %v6866_v38 = vmul.f32 %v15404_v25, %v22025_v52 }
 0x83d   : > { %v6413_v26 = vmul.f32 1.4142135, %v6405_v49  ;;  %vm6392_vm8 = vcmp.ge.f32.partialorder %v6384_v61, 0.0  ;;  %v6400_v62 = vmul.f32 0.2, %v6384_v61  ;;  %v6371_v39 = vadd.f32 %v17640_v57, %v6362_v13  ;;  %v6299_v51 = vpop.f32.mrb[19].mxu1 }
 0x83e   : > { %6513 = vst.msk [vmem:[#allocation4 + $0x28] sm:$0xff] %vm1279_vm0, %v6414_v17  ;;  %vm6391_vm9 = vcmp.ge.f32.partialorder %v6383_v28, 0.0  ;;  %v6399_v43 = vmul.f32 0.2, %v6383_v28  ;;  %v6370_v32 = vadd.f32 %v6357_v10, %v6299_v51  ;;  %v6531_v17 = vmul.f32 %v22079_v2, %v21272_v21 }
 0x83f   : > { %6512 = vst.msk [vmem:[#allocation4 + $0x20] sm:$0xff] %vm1279_vm0, %v6413_v26  ;;  %v6408_v53 = vsel %vm6392_vm8, %v6384_v61, %v6400_v62  ;;  %v6386_v16 = vadd.f32 %v15383_v37, %v6371_v39  ;;  %v6530_v61 = vmul.f32 %v6518_v36, %v21265_v9 }
 0x840   : > { %v6416_v41 = vmul.f32 1.4142135, %v6408_v53  ;;  %v6407_v12 = vsel %vm6391_vm9, %v6383_v28, %v6399_v43  ;;  %v6385_v15 = vadd.f32 %v15383_v37, %v6370_v32  ;;  %v6867_v37 = vmul.f32 %v15405_v4, %v22032_v56 }
 0x841   : > { %v6415_v8 = vmul.f32 1.4142135, %v6407_v12  ;;  %vm6394_vm12 = vcmp.ge.f32.partialorder %v6386_v16, 0.0  ;;  %v6402_v22 = vmul.f32 0.2, %v6386_v16  ;;  %v22101_v7 = vld [vmem:[#allocation4 + $0x18] sm:$0xff] }
 0x842   : > { %6515 = vst.msk [vmem:[#allocation4 + $0x38] sm:$0xff] %vm1279_vm0, %v6416_v41  ;;  %vm6393_vm13 = vcmp.ge.f32.partialorder %v6385_v15, 0.0  ;;  %v6401_v54 = vmul.f32 0.2, %v6385_v15  ;;  %v22095_v19 = vld [vmem:[#allocation4 + $0x10] sm:$0xff]  ;;  %v19005_v49 = vpack.c.bf16 %v6867_v37, %v6866_v38  ;;  %v6714_v28 = vrot.slane %v6530_v61, 7 }
 0x843   : > { %6514 = vst.msk [vmem:[#allocation4 + $0x30] sm:$0xff] %vm1279_vm0, %v6415_v8  ;;  %v6410_v46 = vsel %vm6394_vm12, %v6386_v16, %v6402_v22  ;;  %17650 = vmatmul.mubr.msk.f32.vlgmr.msra.gmra.mrb[10].mxu0 %vm1279_vm0, %v22095_v19  ;;  %v6532_v10 = vmul.f32 %v22095_v19, %v21513_v20  ;;  %v6715_v62 = vrot.slane %v6531_v17, 7  ;;  %v15417_v41 = vld [vmem:[%s25266_s0 + $0x68] sm:$0xff]  ;;  %v15416_v12 = vld [vmem:[%s25266_s0 + $0x60] sm:$0xff]  ;;  %v6852_v38 = vmul.f32 %v22079_v2, %v21570_v18 }
 0x844   : > { %v6418_v34 = vmul.f32 1.4142135, %v6410_v46  ;;  %v6409_v11 = vsel %vm6393_vm13, %v6385_v15, %v6401_v54  ;;  %19000 = vmatpush3.bf16.msra.mxu0 %v22074_v23  ;;  %17652 = vmatprep.mubr.msk.f32.mxu0 %vm1279_vm0, %v22101_v7  ;;  %v7040_v8 = vmul.f32 %v15417_v41, %v22032_v56  ;;  %v7039_v46 = vmul.f32 %v15416_v12, %v22025_v52 }
 0x845   : > { %v6417_v45 = vmul.f32 1.4142135, %v6409_v11  ;;  %19002 = vmatprep.subr.bf16.mxu0 %v22060_v58  ;;  %v22118_v23 = vld [vmem:[#allocation4 + $0x28] sm:$0xff]  ;;  %v6716_v39 = vsel %vm1873_vm11, %v6714_v28, %v6715_v62  ;;  %v6717_v43 = vrot.slane %v6532_v10, 7 }
 0x846   : > { %6517 = vst.msk [vmem:[#allocation4 + $0x48] sm:$0xff] %vm1279_vm0, %v6418_v34  ;;  %v22111_v13 = vld [vmem:[#allocation4 + $0x20] sm:$0xff]  ;;  %v6535_v16 = vmul.f32 %v22118_v23, %v21582_v48  ;;  %v19013_v34 = vpack.c.bf16 %v7040_v8, %v7039_v46 }
 0x847   : > { %6516 = vst.msk [vmem:[#allocation4 + $0x40] sm:$0xff] %vm1279_vm0, %v6417_v45  ;;  %17653 = vmatmul.mubr.msk.f32.gmra.mrb[12].mxu0 %vm1279_vm0, %v22111_v13  ;;  %v6534_v32 = vmul.f32 %v22111_v13, %v21579_v30  ;;  %v6718_v15 = vsel %vm1873_vm11, %v6715_v62, %v6717_v43  ;;  %v6854_v62 = vmul.f32 %v22101_v7, %v21695_v60  ;;  %v15428_v8 = vld [vmem:[%s25266_s0 + $0x80] sm:$0xff] }
 0x848   : > { %19004 = vmatpush3.bf16.msra.mxu0 %v22060_v58  ;;  %17655 = vmatprep.mubr.msk.f32.mxu0 %vm1279_vm0, %v22118_v23  ;;  %v6533_v58 = vmul.f32 %v22101_v7, %v21542_v6  ;;  %v6723_v25 = vrot.slane %v6535_v16, 7  ;;  %v6856_v16 = vmul.f32 %v22118_v23, %v21746_v35 }
 0x849   : > { %19006 = vmatprep.subr.bf16.mxu0 %v19005_v49  ;;  %v22129_v26 = vld [vmem:[#allocation4 + $0x38] sm:$0xff]  ;;  %v6721_v4 = vrot.slane %v6534_v32, 7 }
 0x84a   : > { %v22123_v57 = vld [vmem:[#allocation4 + $0x30] sm:$0xff]  ;;  %v6719_v53 = vrot.slane %v6533_v58, 7  ;;  %v6537_v36 = vmul.f32 %v22129_v26, %v21645_v59 }
 0x84b   : > { %17656 = vmatmul.mubr.msk.f32.gmra.mrb[14].mxu0 %vm1279_vm0, %v22123_v57  ;;  %v6536_v22 = vmul.f32 %v22123_v57, %v21622_v47  ;;  %v6724_v61 = vsel %vm1873_vm11, %v6721_v4, %v6723_v25 }
 0x84c   : > { %17658 = vmatprep.mubr.msk.f32.mxu0 %vm1279_vm0, %v22129_v26  ;;  %v6720_v54 = vsel %vm1873_vm11, %v6717_v43, %v6719_v53  ;;  %v6722_v37 = vsel %vm1873_vm11, %v6719_v53, %v6721_v4  ;;  %v6727_v17 = vrot.slane %v6537_v36, 7  ;;  %v6882_v53 = vrot.slane %v6854_v62, 1  ;;  %v15429_v4 = vld [vmem:[%s25266_s0 + $0x88] sm:$0xff] }
 0x84d   : > { %v6725_v11 = vrot.slane %v6536_v22, 7  ;;  %v6858_v36 = vmul.f32 %v22129_v26, %v21759_v31 }
 0x84e   : > { %v22136_v51 = vld [vmem:[#allocation4 + $0x40] sm:$0xff] }
 0x84f   : > { %17659 = vmatmul.mubr.msk.f32.gmra.mrb[16].mxu0 %vm1279_vm0, %v22136_v51  ;;  %v6538_v45 = vmul.f32 %v22136_v51, %v21589_v44  ;;  %v6726_v28 = vsel %vm1873_vm11, %v6723_v25, %v6725_v11  ;;  %v6728_v58 = vsel %vm1873_vm11, %v6725_v11, %v6727_v17  ;;  %v7204_v25 = vmul.f32 %v15429_v4, %v22032_v56 }
 0x850   : > { %17669 = vmatprep.mubr.msk.f32.mxu0 %vm1279_vm0, %v6716_v39  ;;  %v6879_v39 = vrot.slane %v6852_v38, 1  ;;  %v6859_v11 = vmul.f32 %v22136_v51, %v21774_v33  ;;  %v7203_v38 = vmul.f32 %v15428_v8, %v22025_v52  ;;  %v7030_v8 = vmul.f32 %v22123_v57, %v21582_v48 }
 0x851   : > { %v6729_v10 = vrot.slane %v6538_v45, 7  ;;  %v22195_v45 = vld [vmem:[#allocation4 + $0x48] sm:$0xff] }
 0x852   : > { %v6892_v62 = vrot.slane %v6859_v11, 1  ;;  %v7061_v11 = vrot.slane %v7030_v8, 7 }
 0x853   : > { %17670 = vmatmul.mubr.msk.f32.vlgmr.msra.gmra.mrb[10].mxu0 %vm1279_vm0, %v6718_v15  ;;  %v6730_v32 = vsel %vm1873_vm11, %v6727_v17, %v6729_v10  ;;  %v6857_v15 = vmul.f32 %v22123_v57, %v21751_v40  ;;  %v19021_v17 = vpack.c.bf16 %v7204_v25, %v7203_v38  ;;  %v7025_v10 = vmul.f32 %v22079_v2, %v21265_v9 }
 0x854   : > { %19008 = vmatpush3.bf16.msra.mxu0 %v19005_v49  ;;  %17672 = vmatprep.mubr.msk.f32.mxu0 %vm1279_vm0, %v6720_v54  ;;  %v6853_v49 = vmul.f32 %v22095_v19, %v21690_v42  ;;  %v6886_v54 = vrot.slane %v6856_v16, 1  ;;  %v7027_v2 = vmul.f32 %v22101_v7, %v21513_v20 }
 0x855   : > { %19010 = vmatprep.subr.bf16.mxu0 %v22062_v3 }
 0x856   : > { %v6880_v43 = vrot.slane %v6853_v49, 1  ;;  %v6890_v49 = vrot.slane %v6858_v36, 1  ;;  %v15440_v36 = vld [vmem:[%s25266_s0 + $0xa0] sm:$0xff] }
 0x857   : > { %17673 = vmatmul.mubr.msk.f32.gmra.mrb[12].mxu0 %vm1279_vm0, %v6722_v37  ;;  %v6888_v37 = vrot.slane %v6857_v15, 1 }
 0x858   : > { %19012 = vmatpush3.bf16.msra.mxu0 %v22062_v3  ;;  %17675 = vmatprep.mubr.msk.f32.mxu0 %vm1279_vm0, %v6724_v61  ;;  %v6855_v3 = vmul.f32 %v22111_v13, %v21726_v63  ;;  %v6881_v41 = vsel %vm1835_vm10, %v6879_v39, %v6880_v43  ;;  %v6883_v22 = vsel %vm1835_vm10, %v6880_v43, %v6882_v53 }
 0x859   : > { %19014 = vmatprep.subr.bf16.mxu0 %v19013_v34  ;;  %v6891_v39 = vsel %vm1835_vm10, %v6888_v37, %v6890_v49 }
 0x85a   : > { %v6884_v12 = vrot.slane %v6855_v3, 1  ;;  %v6893_v3 = vsel %vm1835_vm10, %v6890_v49, %v6892_v62  ;;  %v7337_v49 = vmul.f32 %v15440_v36, %v22025_v52 }
 0x85b   : > { %17676 = vmatmul.mubr.msk.f32.gmra.mrb[14].mxu0 %vm1279_vm0, %v6726_v28  ;;  %v6860_v28 = vmul.f32 %v22195_v45, %v21753_v27 }
 0x85c   : > { %17678 = vmatprep.mubr.msk.f32.mxu0 %vm1279_vm0, %v6728_v58  ;;  %v6885_v46 = vsel %vm1835_vm10, %v6882_v53, %v6884_v12  ;;  %v6887_v61 = vsel %vm1835_vm10, %v6884_v12, %v6886_v54  ;;  %v7026_v58 = vmul.f32 %v22095_v19, %v21272_v21  ;;  %v7029_v12 = vmul.f32 %v22118_v23, %v21579_v30 }
 0x85d   : > { %v6894_v43 = vrot.slane %v6860_v28, 1 }
 0x85e   : > { %v7053_v53 = vrot.slane %v7026_v58, 7  ;;  %v7059_v25 = vrot.slane %v7029_v12, 7  ;;  %v7324_v12 = vmul.f32 %v22101_v7, %v21690_v42 }
 0x85f   : > { %17679 = vmatmul.mubr.msk.f32.gmra.mrb[16].mxu0 %vm1279_vm0, %v6730_v32  ;;  %v7052_v32 = vrot.slane %v7025_v10, 7  ;;  %v6895_v16 = vsel %vm1835_vm10, %v6892_v62, %v6894_v43 }
 0x860   : > { %17689 = vmatprep.mubr.msk.f32.mxu0 %vm1279_vm0, %v6881_v41  ;;  %v7055_v41 = vrot.slane %v7027_v2, 7  ;;  %v7062_v62 = vsel %vm1873_vm11, %v7059_v25, %v7061_v11  ;;  %v7351_v8 = vrot.slane %v7324_v12, 1  ;;  %v7498_v12 = vmul.f32 %v22111_v13, %v21513_v20 }
 0x861   : > { %v7054_v15 = vsel %vm1873_vm11, %v7052_v32, %v7053_v53  ;;  %v15452_v32 = vld [vmem:[%s25266_s0 + $0xc0] sm:$0xff] }
 0x863   : > { %17690 = vmatmul.mubr.msk.f32.vlgmr.msra.gmra.mrb[10].mxu0 %vm1279_vm0, %v6883_v22  ;;  %v15441_v22 = vld [vmem:[%s25266_s0 + $0xa8] sm:$0xff] }
 0x864   : > { %19016 = vmatpush3.bf16.msra.mxu0 %v19013_v34  ;;  %17692 = vmatprep.mubr.msk.f32.mxu0 %vm1279_vm0, %v6885_v46  ;;  %v6889_v34 = vsel %vm1835_vm10, %v6886_v54, %v6888_v37  ;;  %v7056_v54 = vsel %vm1873_vm11, %v7053_v53, %v7055_v41  ;;  %v7031_v46 = vmul.f32 %v22129_v26, %v21622_v47 }
 0x865   : > { %19018 = vmatprep.subr.bf16.mxu0 %v22064_v55  ;;  %v7338_v38 = vmul.f32 %v15441_v22, %v22032_v56  ;;  %v7326_v22 = vmul.f32 %v22118_v23, %v21726_v63 }
 0x866   : > { %v7063_v10 = vrot.slane %v7031_v46, 7  ;;  %v7328_v46 = vmul.f32 %v22129_v26, %v21751_v40 }
 0x867   : > { %17693 = vmatmul.mubr.msk.f32.gmra.mrb[12].mxu0 %vm1279_vm0, %v6887_v61  ;;  %v7032_v61 = vmul.f32 %v22136_v51, %v21645_v59  ;;  %v19029_v58 = vpack.c.bf16 %v7338_v38, %v7337_v49  ;;  %v7355_v36 = vrot.slane %v7326_v22, 1 }
 0x868   : > { %19020 = vmatpush3.bf16.msra.mxu0 %v22064_v55  ;;  %17695 = vmatprep.mubr.msk.f32.mxu0 %vm1279_vm0, %v6889_v34  ;;  %v7028_v55 = vmul.f32 %v22111_v13, %v21542_v6  ;;  %v7033_v34 = vmul.f32 %v22195_v45, %v21589_v44 }
 0x869   : > { %19022 = vmatprep.subr.bf16.mxu0 %v19021_v17 }
 0x86a   : > { %v7057_v4 = vrot.slane %v7028_v55, 7  ;;  %v7067_v43 = vrot.slane %v7033_v34, 7  ;;  %v7510_v55 = vmul.f32 %v15452_v32, %v22025_v52  ;;  %v7359_v34 = vrot.slane %v7328_v46, 1 }
 0x86b   : > { %17696 = vmatmul.mubr.msk.f32.gmra.mrb[14].mxu0 %vm1279_vm0, %v6891_v39  ;;  %v7064_v39 = vsel %vm1873_vm11, %v7061_v11, %v7063_v10  ;;  %v15464_v11 = vld [vmem:[%s25266_s0 + $0xe0] sm:$0xff]  ;;  %v7502_v46 = vmul.f32 %v22136_v51, %v21622_v47 }
 0x86c   : > { %17698 = vmatprep.mubr.msk.f32.mxu0 %vm1279_vm0, %v6893_v3  ;;  %v7058_v37 = vsel %vm1873_vm11, %v7055_v41, %v7057_v4  ;;  %v7060_v28 = vsel %vm1873_vm11, %v7057_v4, %v7059_v25  ;;  %v7323_v41 = vmul.f32 %v22095_v19, %v21570_v18 }
 0x86d   : > { %v7534_v47 = vrot.slane %v7502_v46, 7 }
 0x86e   : > { %v7350_v4 = vrot.slane %v7323_v41, 1 }
 0x86f   : > { %17699 = vmatmul.mubr.msk.f32.gmra.mrb[16].mxu0 %vm1279_vm0, %v6895_v16 }
 0x870   : > { %17709 = vmatprep.mubr.msk.f32.mxu0 %vm1279_vm0, %v7054_v15  ;;  %v7325_v15 = vmul.f32 %v22111_v13, %v21695_v60  ;;  %v7352_v25 = vsel %vm1835_vm10, %v7350_v4, %v7351_v8  ;;  %v7526_v4 = vrot.slane %v7498_v12, 7 }
 0x873   : > { %17710 = vmatmul.mubr.msk.f32.vlgmr.msra.gmra.mrb[10].mxu0 %vm1279_vm0, %v7056_v54  ;;  %v7327_v54 = vmul.f32 %v22123_v57, %v21746_v35 }
 0x874   : > { %19024 = vmatpush3.bf16.msra.mxu0 %v19021_v17  ;;  %17712 = vmatprep.mubr.msk.f32.mxu0 %vm1279_vm0, %v7058_v37  ;;  %v7065_v17 = vrot.slane %v7032_v61, 7  ;;  %v15465_v37 = vld [vmem:[%s25266_s0 + $0xe8] sm:$0xff] }
 0x875   : > { %19026 = vmatprep.subr.bf16.mxu0 %v22066_v14  ;;  %v7357_v61 = vrot.slane %v7327_v54, 1  ;;  %v7675_v49 = vmul.f32 %v15465_v37, %v22032_v56  ;;  %v15477_v54 = vld [vmem:[%s25266_s0 + $0x108] sm:$0xff] }
 0x876   : > { %v7066_v2 = vsel %vm1873_vm11, %v7063_v10, %v7065_v17  ;;  %v7068_v3 = vsel %vm1873_vm11, %v7065_v17, %v7067_v43  ;;  %v7674_v17 = vmul.f32 %v15464_v11, %v22025_v52  ;;  %v7809_v11 = vmul.f32 %v15477_v54, %v22032_v56 }
 0x877   : > { %17713 = vmatmul.mubr.msk.f32.gmra.mrb[12].mxu0 %vm1279_vm0, %v7060_v28  ;;  %v7329_v28 = vmul.f32 %v22136_v51, %v21759_v31 }
 0x878   : > { %19028 = vmatpush3.bf16.msra.mxu0 %v22066_v14  ;;  %17715 = vmatprep.mubr.msk.f32.mxu0 %vm1279_vm0, %v7062_v62  ;;  %v15453_v14 = vld [vmem:[%s25266_s0 + $0xc8] sm:$0xff]  ;;  %v7330_v62 = vmul.f32 %v22195_v45, %v21774_v33  ;;  %v19045_v43 = vpack.c.bf16 %v7675_v49, %v7674_v17  ;;  %v7796_v17 = vmul.f32 %v22118_v23, %v21695_v60 }
 0x879   : > { %19030 = vmatprep.subr.bf16.mxu0 %v19029_v58  ;;  %v7511_v53 = vmul.f32 %v15453_v14, %v22032_v56  ;;  %v7360_v14 = vsel %vm1835_vm10, %v7357_v61, %v7359_v34 }
 0x87a   : > { %v7363_v32 = vrot.slane %v7330_v62, 1  ;;  %v7794_v62 = vmul.f32 %v22101_v7, %v21570_v18 }
 0x87b   : > { %17716 = vmatmul.mubr.msk.f32.gmra.mrb[14].mxu0 %vm1279_vm0, %v7064_v39  ;;  %v19037_v16 = vpack.c.bf16 %v7511_v53, %v7510_v55  ;;  %v7358_v39 = vsel %vm1835_vm10, %v7355_v36, %v7357_v61  ;;  %v7496_v53 = vmul.f32 %v22095_v19, %v21265_v9  ;;  %v7497_v55 = vmul.f32 %v22101_v7, %v21272_v21 }
 0x87c   : > { %17718 = vmatprep.mubr.msk.f32.mxu0 %vm1279_vm0, %v7066_v2  ;;  %v7361_v2 = vrot.slane %v7329_v28, 1  ;;  %v7499_v21 = vmul.f32 %v22118_v23, %v21542_v6 }
 0x87d   : > { %v7523_v9 = vrot.slane %v7496_v53, 7 }
 0x87e   : > { %v7528_v22 = vrot.slane %v7499_v21, 7 }
 0x87f   : > { %17719 = vmatmul.mubr.msk.f32.gmra.mrb[16].mxu0 %vm1279_vm0, %v7068_v3 }
 0x880   : > { %17729 = vmatprep.mubr.msk.f32.mxu0 %vm1279_vm0, %v22095_v19  ;;  %v7524_v19 = vrot.slane %v7497_v55, 7 }
 0x882   : > { %v7525_v20 = vsel %vm1873_vm11, %v7523_v9, %v7524_v19  ;;  %v7527_v6 = vsel %vm1873_vm11, %v7524_v19, %v7526_v4 }
 0x883   : > { %17730 = vmatmul.mubr.msk.f32.vlgmr.msra.gmra.mrb[10].mxu0 %vm1279_vm0, %v22101_v7 }
 0x884   : > { %19032 = vmatpush3.bf16.msra.mxu0 %v19029_v58  ;;  %17732 = vmatprep.mubr.msk.f32.mxu0 %vm1279_vm0, %v22111_v13  ;;  %v22299_v58 = vld [vmem:[#allocation4 + $0x50] sm:$0xff] }
 0x885   : > { %19034 = vmatprep.subr.bf16.mxu0 %v22068_v50  ;;  %v7331_v3 = vmul.f32 %v22299_v58, %v21753_v27  ;;  %v7504_v49 = vmul.f32 %v22299_v58, %v21589_v44 }
 0x887   : > { %17733 = vmatmul.mubr.msk.f32.gmra.mrb[12].mxu0 %vm1279_vm0, %v22118_v23  ;;  %v7365_v41 = vrot.slane %v7331_v3, 1  ;;  %v7801_v3 = vmul.f32 %v22299_v58, %v21774_v33 }
 0x888   : > { %19036 = vmatpush3.bf16.msra.mxu0 %v22068_v50  ;;  %17735 = vmatprep.mubr.msk.f32.mxu0 %vm1279_vm0, %v22123_v57  ;;  %v7353_v50 = vrot.slane %v7325_v15, 1  ;;  %v7364_v15 = vsel %vm1835_vm10, %v7361_v2, %v7363_v32 }
 0x889   : > { %19038 = vmatprep.subr.bf16.mxu0 %v19037_v16 }
 0x88a   : > { %v7354_v38 = vsel %vm1835_vm10, %v7351_v8, %v7353_v50  ;;  %v7356_v10 = vsel %vm1835_vm10, %v7353_v50, %v7355_v36  ;;  %v7500_v8 = vmul.f32 %v22123_v57, %v21579_v30  ;;  %v7501_v50 = vmul.f32 %v22129_v26, %v21582_v48  ;;  %v15476_v36 = vld [vmem:[%s25266_s0 + $0x100] sm:$0xff]  ;;  %s19935_s0 = smov 112  }
 0x88b   : > { %17736 = vmatmul.mubr.msk.f32.gmra.mrb[14].mxu0 %vm1279_vm0, %v22129_v26  ;;  %v7529_v30 = vsel %vm1873_vm11, %v7526_v4, %v7528_v22  ;;  %v7503_v48 = vmul.f32 %v22195_v45, %v21645_v59  ;;  %v15488_v4 = vld [vmem:[%s25268_s1 + $0x100] sm:$0xff] }
 0x88c   : > { %17738 = vmatprep.mubr.msk.f32.mxu0 %vm1279_vm0, %v22136_v51  ;;  %v7532_v37 = vrot.slane %v7501_v50, 7  ;;  %17837 = vmatprep.mubr.msk.f32.mxu1 %vm1384_vm1, %v15488_v4  ;;  %v15509_v4 = vld [vmem:[%s25268_s1 + $0x1a8] sm:$0xff] }
 0x88e   : > { %v7535_v59 = vsel %vm1873_vm11, %v7532_v37, %v7534_v47 }
 0x88f   : > { %17739 = vmatmul.mubr.msk.f32.gmra.mrb[16].mxu0 %vm1279_vm0, %v22195_v45 }
 0x890   : > { %17749 = vmatprep.mubr.msk.f32.mxu0 %vm1279_vm0, %v7352_v25  ;;  %v7530_v25 = vrot.slane %v7500_v8, 7 }
 0x892   : > { %v7531_v61 = vsel %vm1873_vm11, %v7528_v22, %v7530_v25  ;;  %v7533_v56 = vsel %vm1873_vm11, %v7530_v25, %v7532_v37  ;;  %v9953_v25 = vsub.s32 4, %v20163_v1  ;;  %v9949_v37 = vld [vmem:[%s25269_s2] sm:$0xff] }
 0x893   : > { %17750 = vmatmul.mubr.msk.f32.vlgmr.msra.gmra.mrb[10].mxu0 %vm1279_vm0, %v7354_v38  ;;  %v7808_v38 = vmul.f32 %v15476_v36, %v22025_v52  ;;  %v7538_v52 = vrot.slane %v7504_v49, 7  ;;  %v22424_v36 = vld [vmem:[%s20168_s11] sm:$0x3f]  ;;  %v25271_v49 = vld [vmem:[#allocation39_spill] sm:$0xff]  ;;  %s25276_s11 = sld [smem:[#allocation10_spill]] }
 0x894   : > { %19040 = vmatpush3.bf16.msra.mxu0 %v19037_v16  ;;  %17752 = vmatprep.mubr.msk.f32.mxu0 %vm1279_vm0, %v7356_v10  ;;  %v7362_v16 = vsel %vm1835_vm10, %v7359_v34, %v7361_v2  ;;  %v7536_v10 = vrot.slane %v7503_v48, 7  ;;  %v7800_v2 = vmul.f32 %v22195_v45, %v21759_v31  ;;  %v7834_v31 = vrot.slane %v7801_v3, 1 }
 0x895   : > { %19042 = vmatprep.subr.bf16.mxu0 %v22070_v24  ;;  %v19053_v28 = vpack.c.bf16 %v7809_v11, %v7808_v38  ;;  %v9954_v46 = vrot.slane %v22424_v36, %v9953_v25 }
 0x896   : > { %v7537_v34 = vsel %vm1873_vm11, %v7534_v47, %v7536_v10  ;;  %v7539_v44 = vsel %vm1873_vm11, %v7536_v10, %v7538_v52  ;;  %v6456_v47 = vmul.f32 %v21638_v5, %v21638_v5 }
 0x897   : > { %17753 = vmatmul.mubr.msk.f32.gmra.mrb[12].mxu0 %vm1279_vm0, %v7358_v39  ;;  %v9955_v48 = vmul.f32 %v9954_v46, %v9949_v37  ;;  %v15516_v37 = vld [vmem:[%s25268_s1 + $0x1e0] sm:$0xff] }
 0x898   : > { %19044 = vmatpush3.bf16.msra.mxu0 %v22070_v24  ;;  %17755 = vmatprep.mubr.msk.f32.mxu0 %vm1279_vm0, %v7360_v14  ;;  %v7366_v24 = vsel %vm1835_vm10, %v7363_v32, %v7365_v41  ;;  %v7832_v14 = vrot.slane %v7800_v2, 1  ;;  %v15490_v2 = vld [vmem:[%s25268_s1 + $0x110] sm:$0xff] }
 0x899   : > { %19046 = vmatprep.subr.bf16.mxu0 %v19045_v43 }
 0x89a   : > { %v7835_v33 = vsel %vm1835_vm10, %v7832_v14, %v7834_v31 }
 0x89b   : > { %17756 = vmatmul.mubr.msk.f32.gmra.mrb[14].mxu0 %vm1279_vm0, %v7362_v16 }
 0x89c   : > { %17758 = vmatprep.mubr.msk.f32.mxu0 %vm1279_vm0, %v7364_v15 }
 0x89f   : > { %17759 = vmatmul.mubr.msk.f32.gmra.mrb[16].mxu0 %vm1279_vm0, %v7366_v24 }
 0x8a0   : > { %17769 = vmatprep.mubr.msk.f32.mxu0 %vm1279_vm0, %v7525_v20 }
 0x8a3   : > { %17770 = vmatmul.mubr.msk.f32.vlgmr.msra.gmra.mrb[10].mxu0 %vm1279_vm0, %v7527_v6 }
 0x8a4   : > { %19048 = vmatpush3.bf16.msra.mxu0 %v19045_v43  ;;  %17772 = vmatprep.mubr.msk.f32.mxu0 %vm1279_vm0, %v7529_v30  ;;  %v7797_v43 = vmul.f32 %v22123_v57, %v21726_v63  ;;  %v6529_v63 = vld [vmem:[#allocation4 + $0x58] sm:$0xff]  ;;  %v9950_v30 = vld [vmem:[%s25269_s2 + $0x8] sm:$0xff]  ;;  %s25279_s2 = sld [smem:[#allocation23_spill]] }
 0x8a5   : > { %19050 = vmatprep.subr.bf16.mxu0 %v22072_v0  ;;  %v9956_v11 = vmul.f32 %v9954_v46, %v9950_v30  ;;  %v15515_v46 = vld [vmem:[%s25268_s1 + $0x1d8] sm:$0xff] }
 0x8a6   : > { %v7826_v60 = vrot.slane %v7797_v43, 1 }
 0x8a7   : > { %17773 = vmatmul.mubr.msk.f32.gmra.mrb[12].mxu0 %vm1279_vm0, %v7531_v61  ;;  %v9960_v38 = vsel %vm1279_vm0, %v9956_v11, 0.0  ;;  %v9957_v61 = vsel %vm1279_vm0, %v9955_v48, 0.0  ;;  %v15517_v11 = vld [vmem:[%s25268_s1 + $0x1e8] sm:$0xff]  ;;  %v15518_v48 = vld [vmem:[%s25268_s1 + $0x1f0] sm:$0xff] }
 0x8a8   : > { %19052 = vmatpush3.bf16.msra.mxu0 %v22072_v0  ;;  %17775 = vmatprep.mubr.msk.f32.mxu0 %vm1279_vm0, %v7533_v56  ;;  %v7795_v0 = vmul.f32 %v22111_v13, %v21690_v42  ;;  %v7821_v42 = vrot.slane %v7794_v62, 1  ;;  %v6455_v56 = vmul.f32 %v25271_v49, %v25271_v49  ;;  %v7967_v49 = vld [vmem:[%s25268_s1] sm:$0xff] }
 0x8a9   : > { %19054 = vmatprep.subr.bf16.mxu0 %v19053_v28 }
 0x8aa   : > { %v7822_v39 = vrot.slane %v7795_v0, 1 }
 0x8ab   : > { %17776 = vmatmul.mubr.msk.f32.gmra.mrb[14].mxu0 %vm1279_vm0, %v7535_v59  ;;  %v25273_v59 = vld [vmem:[#allocation41_spill] sm:$0xff] }
 0x8ac   : > { %17778 = vmatprep.mubr.msk.f32.mxu0 %vm1279_vm0, %v7537_v34  ;;  %v7823_v18 = vsel %vm1835_vm10, %v7821_v42, %v7822_v39  ;;  %v6458_v52 = vmul.f32 %v25273_v59, %v25273_v59  ;;  %v7968_v59 = vld [vmem:[%s25268_s1 + $0x8] sm:$0xff] }
 0x8af   : > { %17779 = vmatmul.mubr.msk.f32.gmra.mrb[16].mxu0 %vm1279_vm0, %v7539_v44 }
 0x8b0   : > { %17789 = vmatprep.mubr.msk.f32.mxu0 %vm1279_vm0, %v22101_v7  ;;  %v7799_v7 = vmul.f32 %v22136_v51, %v21751_v40  ;;  %v7802_v40 = vmul.f32 %v6529_v63, %v21753_v27 }
 0x8b3   : > { %17790 = vmatmul.mubr.msk.f32.vlgmr.msra.gmra.mrb[10].mxu0 %vm1279_vm0, %v22111_v13  ;;  %v7798_v13 = vmul.f32 %v22129_v26, %v21746_v35 }
 0x8b4   : > { %19056 = vmatpush3.bf16.msra.mxu0 %v19053_v28  ;;  %17792 = vmatprep.mubr.msk.f32.mxu0 %vm1279_vm0, %v22118_v23  ;;  %v25272_v28 = vld [vmem:[#allocation40_spill] sm:$0xff] }
 0x8b5   : > { %19058 = vmatprep.subr.bf16.mxu0 %v22077_v29  ;;  %v6457_v10 = vmul.f32 %v25272_v28, %v25272_v28 }
 0x8b7   : > { %17793 = vmatmul.mubr.msk.f32.gmra.mrb[12].mxu0 %vm1279_vm0, %v22123_v57  ;;  %v7828_v57 = vrot.slane %v7798_v13, 1 }
 0x8b8   : > { %19060 = vmatpush3.bf16.msra.mxu0 %v22077_v29  ;;  %17795 = vmatprep.mubr.msk.f32.mxu0 %vm1279_vm0, %v22129_v26  ;;  %v7824_v29 = vrot.slane %v7796_v17, 1  ;;  %v7830_v26 = vrot.slane %v7799_v7, 1 }
 0x8ba   : > { %v7825_v23 = vsel %vm1835_vm10, %v7822_v39, %v7824_v29  ;;  %v7827_v35 = vsel %vm1835_vm10, %v7824_v29, %v7826_v60  ;;  %v7831_v32 = vsel %vm1835_vm10, %v7828_v57, %v7830_v26  ;;  %v7833_v53 = vsel %vm1835_vm10, %v7830_v26, %v7832_v14  ;;  %v15492_v26 = vld [vmem:[%s25268_s1 + $0x120] sm:$0xff] }
 0x8bb   : > { %17796 = vmatmul.mubr.msk.f32.gmra.mrb[14].mxu0 %vm1279_vm0, %v22136_v51  ;;  %v7829_v51 = vsel %vm1835_vm10, %v7826_v60, %v7828_v57  ;;  %v15489_v57 = vld [vmem:[%s25268_s1 + $0x108] sm:$0xff] }
 0x8bc   : > { %17798 = vmatprep.mubr.msk.f32.mxu0 %vm1279_vm0, %v22195_v45  ;;  %v7836_v45 = vrot.slane %v7802_v40, 1  ;;  %v15493_v40 = vld [vmem:[%s25268_s1 + $0x128] sm:$0xff] }
 0x8be   : > { %v7837_v27 = vsel %vm1835_vm10, %v7834_v31, %v7836_v45  ;;  %v15495_v31 = vld [vmem:[%s25268_s1 + $0x138] sm:$0xff]  ;;  %v15496_v45 = vld [vmem:[%s25268_s1 + $0x140] sm:$0xff] }
 0x8bf   : > { %17799 = vmatmul.mubr.msk.f32.gmra.mrb[16].mxu0 %vm1279_vm0, %v22299_v58 }
 0x8c0   : > { %17809 = vmatprep.mubr.msk.f32.mxu0 %vm1279_vm0, %v7823_v18 }
 0x8c3   : > { %17810 = vmatmul.mubr.msk.f32.vlgmr.msra.gmra.mrb[10].mxu0 %vm1279_vm0, %v7825_v23 }
 0x8c4   : > { %17812 = vmatprep.mubr.msk.f32.mxu0 %vm1279_vm0, %v7827_v35  ;;  %v15491_v35 = vld [vmem:[%s25268_s1 + $0x118] sm:$0xff] }
 0x8c7   : > { %17813 = vmatmul.mubr.msk.f32.gmra.mrb[12].mxu0 %vm1279_vm0, %v7829_v51  ;;  %v15494_v51 = vld [vmem:[%s25268_s1 + $0x130] sm:$0xff] }
 0x8c8   : > { %17815 = vmatprep.mubr.msk.f32.mxu0 %vm1279_vm0, %v7831_v32 }
 0x8cb   : > { %17816 = vmatmul.mubr.msk.f32.gmra.mrb[14].mxu0 %vm1279_vm0, %v7833_v53 }
 0x8cc   : > { %17818 = vmatprep.mubr.msk.f32.mxu0 %vm1279_vm0, %v7835_v33  ;;  %v15497_v33 = vld [vmem:[%s25268_s1 + $0x148] sm:$0xff] }
 0x8cf   : > { %17819 = vmatmul.mubr.msk.f32.gmra.mrb[16].mxu0 %vm1279_vm0, %v7837_v27  ;;  %v15498_v27 = vld [vmem:[%s25268_s1 + $0x150] sm:$0xff] }
 0x996   : > { %v17811_v58 = vpop.f32.mrb[10].mxu0 }
 0x997   : > { %v7920_v55 = vpop.f32.mrb[11].mxu0 }
 0x998   : > { %v19817_v16 = vpack.i.bf16 %v17811_v58, %v7920_v55  ;;  %v22408_v41 = vpack.c.bf16 %v17811_v58, %v7920_v55  ;;  %v15499_v58 = vld [vmem:[%s25268_s1 + $0x158] sm:$0xff]  ;;  %v15500_v55 = vld [vmem:[%s25268_s1 + $0x160] sm:$0xff] }
 0x99a   : > { %19778 = vrot.lane.b32.xlu1 %v19817_v16, %s19935_s0  ;;  %v17814_v12 = vpop.f32.mrb[12].mxu0 }
 0x99b   : > { %v7930_v15 = vpop.f32.mrb[13].mxu0 }
 0x99c   : > { %v19782_v9 = vpack.i.bf16 %v17814_v12, %v7930_v15  ;;  %v22410_v19 = vpack.c.bf16 %v17814_v12, %v7930_v15  ;;  %v15503_v12 = vld [vmem:[%s25268_s1 + $0x178] sm:$0xff]  ;;  %v15504_v15 = vld [vmem:[%s25268_s1 + $0x180] sm:$0xff] }
 0x99e   : > { %19783 = vrot.lane.b32.xlu0 %v19782_v9, %s19935_s0  ;;  %v17817_v21 = vpop.f32.mrb[14].mxu0 }
 0x99f   : > { %v7940_v24 = vpop.f32.mrb[15].mxu0 }
 0x9a0   : > { %v19827_v8 = vpack.i.bf16 %v17817_v21, %v7940_v24  ;;  %v22414_v20 = vpack.c.bf16 %v17817_v21, %v7940_v24  ;;  %v15507_v21 = vld [vmem:[%s25268_s1 + $0x198] sm:$0xff]  ;;  %v15508_v24 = vld [vmem:[%s25268_s1 + $0x1a0] sm:$0xff] }
 0x9a2   : > { %19788 = vrot.lane.b32.xlu1 %v19827_v8, %s19935_s0  ;;  %v17820_v22 = vpop.f32.mrb[16].mxu0 }
 0x9a3   : > { %v7950_v50 = vpop.f32.mrb[17].mxu0 }
 0x9a4   : > { %v19792_v54 = vpack.i.bf16 %v17820_v22, %v7950_v50  ;;  %v22416_v6 = vpack.c.bf16 %v17820_v22, %v7950_v50  ;;  %v15512_v22 = vld [vmem:[%s25268_s1 + $0x1c0] sm:$0xff] }
 0x9a6   : > { %19798 = vrot.lane.b32.xlu1 %v19817_v16, %s25270_s4  ;;  %19793 = vrot.lane.b32.xlu0 %v19792_v54, %s19935_s0  ;;  %s25277_s0 = sld [smem:[#allocation31_spill]] }
 0x9aa   : > { %19808 = vrot.lane.b32.xlu1 %v19827_v8, %s25270_s4  ;;  %19803 = vrot.lane.b32.xlu0 %v19782_v9, %s25270_s4 }
 0x9ae   : > { %19818 = vrot.lane.b32.xlu1 %v19817_v16, %s19936_s5  ;;  %19813 = vrot.lane.b32.xlu0 %v19792_v54, %s25270_s4  ;;  %v15501_v16 = vld [vmem:[%s25268_s1 + $0x168] sm:$0xff]  ;;  %s25275_s4 = sld [smem:[#allocation13_spill]] }
 0x9b2   : > { %19828 = vrot.lane.b32.xlu1 %v19827_v8, %s19936_s5  ;;  %19823 = vrot.lane.b32.xlu0 %v19782_v9, %s19936_s5  ;;  %v15505_v9 = vld [vmem:[%s25268_s1 + $0x188] sm:$0xff]  ;;  %v15510_v8 = vld [vmem:[%s25268_s1 + $0x1b0] sm:$0xff] }
 0x9b6   : > { %19833 = vrot.lane.b32.xlu0 %v19792_v54, %s19936_s5  ;;  %v15513_v54 = vld [vmem:[%s25268_s1 + $0x1c8] sm:$0xff]  ;;  %s25274_s5 = sld [smem:[#allocation19_spill]] }
 0x9d5   : > { %9961 = vadd.xlane.f32.xlu0 %v9960_v38 }
 0x9d6   : > { %9958 = vadd.xlane.f32.xlu1 %v9957_v61 }
 0x9e7   : > { %6466 = vperm.xlu1 %19761, %v6456_v47   ;;  %v15519_v47 = vld [vmem:[%s25268_s1 + $0x1f8] sm:$0xff] }
 0x9eb   : > { %6471 = vperm.xlu1 %19761, %v6457_v10   ;;  %6461 = vperm.xlu0 %19760, %v6455_v56  }
 0x9ef   : > { %6476 = vperm.xlu0 %19760, %v6458_v52  }
 0xa0c   : > { %v19779_v34 = vpop.permute.xlu1 %19778 }
 0xa0d   : > { %v19781_v44 = vunpack.i.h.bf16 %v19779_v34  ;;  %v19780_v0 = vunpack.i.l.bf16 %v19779_v34  ;;  %v7969_v34 = vld [vmem:[%s25268_s1 + $0x10] sm:$0xff] }
 0xa0f   : > { %v19061_v62 = vpack.c.bf16 %v19781_v44, %v19780_v0  ;;  %v9964_v44 = vld [vmem:[%s25274_s5 + $0x8] sm:$0xff] }
 0xa10   : > { %v19784_v17 = vpop.permute.xlu0 %19783 }
 0xa11   : > { %v19786_v39 = vunpack.i.h.bf16 %v19784_v17  ;;  %v19785_v5 = vunpack.i.l.bf16 %v19784_v17  ;;  %19062 = vmatprep.subr.bf16.mxu1 %v19061_v62 }
 0xa12   : > { %19064 = vmatpush3.bf16.msra.mxu1 %v19061_v62 }
 0xa13   : > { %v19065_v43 = vpack.c.bf16 %v19786_v39, %v19785_v5  ;;  %v9963_v39 = vld [vmem:[%s25274_s5] sm:$0xff] }
 0xa14   : > { %v19789_v42 = vpop.permute.xlu1 %19788 }
 0xa15   : > { %v19791_v29 = vunpack.i.h.bf16 %v19789_v42  ;;  %v19790_v13 = vunpack.i.l.bf16 %v19789_v42  ;;  %19066 = vmatprep.subr.bf16.mxu1 %v19065_v43 }
 0xa16   : > { %19068 = vmatpush3.bf16.msra.mxu1 %v19065_v43  ;;  %v7970_v43 = vld [vmem:[%s25268_s1 + $0x18] sm:$0xff] }
 0xa17   : > { %v19069_v18 = vpack.c.bf16 %v19791_v29, %v19790_v13  ;;  %v7971_v13 = vld [vmem:[%s25268_s1 + $0x20] sm:$0xff] }
 0xa18   : > { %v19794_v60 = vpop.permute.xlu0 %19793  ;;  %v19799_v3 = vpop.permute.xlu1 %19798 }
 0xa19   : > { %v19796_v7 = vunpack.i.h.bf16 %v19794_v60  ;;  %v19795_v63 = vunpack.i.l.bf16 %v19794_v60  ;;  %19070 = vmatprep.subr.bf16.mxu1 %v19069_v18  ;;  %v19801_v14 = vunpack.i.h.bf16 %v19799_v3  ;;  %v19800_v32 = vunpack.i.l.bf16 %v19799_v3  ;;  %v7973_v3 = vld [vmem:[%s25268_s1 + $0x30] sm:$0xff] }
 0xa1a   : > { %19072 = vmatpush3.bf16.msra.mxu1 %v19069_v18 }
 0xa1b   : > { %v19073_v23 = vpack.c.bf16 %v19796_v7, %v19795_v63  ;;  %v22460_v53 = vpack.c.bf16 %v19801_v14, %v19800_v32 }
 0xa1c   : > { %v19804_v50 = vpop.permute.xlu0 %19803  ;;  %v19809_v30 = vpop.permute.xlu1 %19808 }
 0xa1d   : > { %19074 = vmatprep.subr.bf16.mxu1 %v19073_v23  ;;  %v19806_v56 = vunpack.i.h.bf16 %v19804_v50  ;;  %v19805_v28 = vunpack.i.l.bf16 %v19804_v50  ;;  %v19811_v0 = vunpack.i.h.bf16 %v19809_v30  ;;  %v19810_v62 = vunpack.i.l.bf16 %v19809_v30  ;;  %v9564_v50 = vld [vmem:[%s25276_s11 + $0x30] sm:$0xff]  ;;  %v7983_v30 = vld [vmem:[%s25268_s1 + $0x80] sm:$0xff] }
 0xa1e   : > { %19076 = vmatpush3.bf16.msra.mxu1 %v19073_v23 }
 0xa1f   : > { %19078 = vmatprep.subr.bf16.mxu1 %v22408_v41  ;;  %v19097_v17 = vpack.c.bf16 %v19806_v56, %v19805_v28  ;;  %v19101_v60 = vpack.c.bf16 %v19811_v0, %v19810_v62  ;;  %v7986_v56 = vld [vmem:[%s25268_s1 + $0x98] sm:$0xff]  ;;  %v7987_v28 = vld [vmem:[%s25268_s1 + $0xa0] sm:$0xff]  ;;  %v7989_v0 = vld [vmem:[%s25268_s1 + $0xb0] sm:$0xff] }
 0xa20   : > { %v19814_v25 = vpop.permute.xlu0 %19813  ;;  %v19819_v61 = vpop.permute.xlu1 %19818  ;;  %v9573_v62 = vld [vmem:[%s25276_s11 + $0x78] sm:$0xff] }
 0xa21   : > { %17838 = vmatmul.mubr.msk.f32.vlgmr.msra.gmra.mrb[20].mxu1 %vm1384_vm1, %v15489_v57  ;;  %v19816_v7 = vunpack.i.h.bf16 %v19814_v25  ;;  %v19815_v63 = vunpack.i.l.bf16 %v19814_v25  ;;  %v19821_v14 = vunpack.i.h.bf16 %v19819_v61  ;;  %v19820_v32 = vunpack.i.l.bf16 %v19819_v61  ;;  %v9565_v25 = vld [vmem:[%s25276_s11 + $0x38] sm:$0xff]  ;;  %v7985_v61 = vld [vmem:[%s25268_s1 + $0x90] sm:$0xff] }
 0xa22   : > { %19080 = vmatpush3.bf16.msra.mxu1 %v22408_v41  ;;  %17840 = vmatprep.mubr.msk.f32.mxu1 %vm1384_vm1, %v15490_v2  ;;  %v15502_v41 = vld [vmem:[%s25268_s1 + $0x170] sm:$0xff]  ;;  %v6452_v2 = vld [vmem:[%s25275_s4 + $0x8] sm:$0xff] }
 0xa23   : > { %19082 = vmatprep.subr.bf16.mxu1 %v22410_v19 }
 0xa24   : > { %v22508_v38 = vpop.permute.xlu0 %19823  ;;  %v22519_v52 = vpop.permute.xlu1 %19828 }
 0xa25   : > { %17841 = vmatmul.mubr.msk.f32.gmra.mrb[22].mxu1 %vm1384_vm1, %v15491_v35  ;;  %v7972_v35 = vld [vmem:[%s25268_s1 + $0x28] sm:$0xff] }
 0xa26   : > { %19084 = vmatpush3.bf16.msra.mxu1 %v22410_v19  ;;  %17843 = vmatprep.mubr.msk.f32.mxu1 %vm1384_vm1, %v15492_v26  ;;  %v15506_v19 = vld [vmem:[%s25268_s1 + $0x190] sm:$0xff] }
 0xa27   : > { %19086 = vmatprep.subr.bf16.mxu1 %v22414_v20 }
 0xa28   : > { %v22515_v10 = vpop.permute.xlu0 %19833 }
 0xa29   : > { %17844 = vmatmul.mubr.msk.f32.gmra.mrb[24].mxu1 %vm1384_vm1, %v15493_v40  ;;  %v6451_v40 = vld [vmem:[%s25275_s4] sm:$0xff] }
 0xa2a   : > { %19088 = vmatpush3.bf16.msra.mxu1 %v22414_v20  ;;  %17846 = vmatprep.mubr.msk.f32.mxu1 %vm1384_vm1, %v15494_v51  ;;  %v15511_v20 = vld [vmem:[%s25268_s1 + $0x1b8] sm:$0xff]  ;;  %v9559_v51 = vld [vmem:[%s25276_s11 + $0x8] sm:$0xff] }
 0xa2b   : > { %19090 = vmatprep.subr.bf16.mxu1 %v22416_v6 }
 0xa2d   : > { %17847 = vmatmul.mubr.msk.f32.gmra.mrb[26].mxu1 %vm1384_vm1, %v15495_v31  ;;  %v19105_v31 = vpack.c.bf16 %v19816_v7, %v19815_v63  ;;  %v7994_v7 = vld [vmem:[%s25268_s1 + $0xd8] sm:$0xff]  ;;  %v7995_v63 = vld [vmem:[%s25268_s1 + $0xe0] sm:$0xff] }
 0xa2e   : > { %19092 = vmatpush3.bf16.msra.mxu1 %v22416_v6  ;;  %17849 = vmatprep.mubr.msk.f32.mxu1 %vm1384_vm1, %v15496_v45  ;;  %v15514_v6 = vld [vmem:[%s25268_s1 + $0x1d0] sm:$0xff] }
 0xa2f   : > { %19094 = vmatprep.subr.bf16.mxu1 %v22460_v53 }
 0xa31   : > { %17850 = vmatmul.mubr.msk.f32.gmra.mrb[28].mxu1 %vm1384_vm1, %v15497_v33 }
 0xa32   : > { %17852 = vmatprep.mubr.msk.f32.mxu1 %vm1384_vm1, %v15498_v27  ;;  %v7974_v27 = vld [vmem:[%s25268_s1 + $0x38] sm:$0xff] }
 0xa35   : > { %17853 = vmatmul.mubr.msk.f32.gmra.mrb[30].mxu1 %vm1384_vm1, %v15499_v58 }
 0xa36   : > { %17855 = vmatprep.mubr.msk.f32.mxu1 %vm1384_vm1, %v15500_v55  ;;  %v7975_v55 = vld [vmem:[%s25268_s1 + $0x40] sm:$0xff] }
 0xa39   : > { %17856 = vmatmul.mubr.msk.f32.gmra.mrb[32].mxu1 %vm1384_vm1, %v15501_v16  ;;  %v9561_v16 = vld [vmem:[%s25276_s11 + $0x18] sm:$0xff] }
 0xa3a   : > { %17858 = vmatprep.mubr.msk.f32.mxu1 %vm1384_vm1, %v15502_v41  ;;  %v22546_v41 = vpack.c.bf16 %v19821_v14, %v19820_v32  ;;  %v9583_v14 = vld [vmem:[%s25276_s11 + $0xc8] sm:$0xff]  ;;  %v19826_v32 = vunpack.i.h.bf16 %v22508_v38 }
 0xa3d   : > { %17859 = vmatmul.mubr.msk.f32.gmra.mrb[34].mxu1 %vm1384_vm1, %v15503_v12 }
 0xa3e   : > { %17861 = vmatprep.mubr.msk.f32.mxu1 %vm1384_vm1, %v15504_v15 }
 0xa41   : > { %17862 = vmatmul.mubr.msk.f32.gmra.mrb[36].mxu1 %vm1384_vm1, %v15505_v9  ;;  %v9560_v9 = vld [vmem:[%s25276_s11 + $0x10] sm:$0xff] }
 0xa42   : > { %17864 = vmatprep.mubr.msk.f32.mxu1 %vm1384_vm1, %v15506_v19 }
 0xa45   : > { %17865 = vmatmul.mubr.msk.f32.gmra.mrb[38].mxu1 %vm1384_vm1, %v15507_v21  ;;  %v7976_v21 = vld [vmem:[%s25268_s1 + $0x48] sm:$0xff] }
 0xa46   : > { %17867 = vmatprep.mubr.msk.f32.mxu1 %vm1384_vm1, %v15508_v24  ;;  %v7977_v24 = vld [vmem:[%s25268_s1 + $0x50] sm:$0xff] }
 0xa49   : > { %17868 = vmatmul.mubr.msk.f32.gmra.mrb[40].mxu1 %vm1384_vm1, %v15509_v4  ;;  %v9563_v4 = vld [vmem:[%s25276_s11 + $0x28] sm:$0xff] }
 0xa4a   : > { %17870 = vmatprep.mubr.msk.f32.mxu1 %vm1384_vm1, %v15510_v8  ;;  %v9562_v8 = vld [vmem:[%s25276_s11 + $0x20] sm:$0xff] }
 0xa4d   : > { %17871 = vmatmul.mubr.msk.f32.gmra.mrb[42].mxu1 %vm1384_vm1, %v15511_v20  ;;  %v7978_v20 = vld [vmem:[%s25268_s1 + $0x58] sm:$0xff] }
 0xa4e   : > { %17873 = vmatprep.mubr.msk.f32.mxu1 %vm1384_vm1, %v15512_v22  ;;  %v7979_v22 = vld [vmem:[%s25268_s1 + $0x60] sm:$0xff] }
 0xa51   : > { %17874 = vmatmul.mubr.msk.f32.gmra.mrb[44].mxu1 %vm1384_vm1, %v15513_v54  ;;  %v7980_v54 = vld [vmem:[%s25268_s1 + $0x68] sm:$0xff] }
 0xa52   : > { %17876 = vmatprep.mubr.msk.f32.mxu1 %vm1384_vm1, %v15514_v6  ;;  %v7981_v6 = vld [vmem:[%s25268_s1 + $0x70] sm:$0xff] }
 0xa55   : > { %17877 = vmatmul.mubr.msk.f32.gmra.mrb[46].mxu1 %vm1384_vm1, %v15515_v46  ;;  %v7982_v46 = vld [vmem:[%s25268_s1 + $0x78] sm:$0xff] }
 0xa56   : > { %17879 = vmatprep.mubr.msk.f32.mxu1 %vm1384_vm1, %v15516_v37  ;;  %v9567_v37 = vld [vmem:[%s25276_s11 + $0x48] sm:$0xff] }
 0xa59   : > { %17880 = vmatmul.mubr.msk.f32.gmra.mrb[48].mxu1 %vm1384_vm1, %v15517_v11  ;;  %v9566_v11 = vld [vmem:[%s25276_s11 + $0x40] sm:$0xff] }
 0xa5a   : > { %17882 = vmatprep.mubr.msk.f32.mxu1 %vm1384_vm1, %v15518_v48  ;;  %v7984_v48 = vld [vmem:[%s25268_s1 + $0x88] sm:$0xff] }
 0xa5d   : > { %17883 = vmatmul.mubr.msk.f32.gmra.mrb[50].mxu1 %vm1384_vm1, %v15519_v47  ;;  %v9569_v47 = vld [vmem:[%s25276_s11 + $0x58] sm:$0xff] }
 0xa5e   : > { %17901 = vmatprep.mubr.msk.f32.mxu1 %vm1384_vm1, %v7967_v49  ;;  %v9568_v49 = vld [vmem:[%s25276_s11 + $0x50] sm:$0xff] }
 0xa61   : > { %17902 = vmatmul.mubr.msk.f32.vlgmr.msra.gmra.mrb[20].mxu1 %vm1384_vm1, %v7968_v59  ;;  %v9571_v59 = vld [vmem:[%s25276_s11 + $0x68] sm:$0xff] }
 0xa62   : > { %19096 = vmatpush3.bf16.msra.mxu1 %v22460_v53  ;;  %v9962_v5 = vpop.xlane.xlu0 %9961  ;;  %17904 = vmatprep.mubr.msk.f32.mxu1 %vm1384_vm1, %v7969_v34  ;;  %v9558_v53 = vld [vmem:[%s25276_s11] sm:$0xff] }
 0xa63   : > { %v22528_v42 = vadd.f32 %v9964_v44, %v9962_v5  ;;  %19098 = vmatprep.subr.bf16.mxu1 %v19097_v17  ;;  %v9959_v29 = vpop.xlane.xlu1 %9958  ;;  %v9570_v34 = vld [vmem:[%s25276_s11 + $0x60] sm:$0xff]  ;;  %v7988_v44 = vld [vmem:[%s25268_s1 + $0xa8] sm:$0xff] }
 0xa64   : > { %v9965_v18 = vadd.f32 %v9963_v39, %v9959_v29  ;;  %v7990_v39 = vld [vmem:[%s25268_s1 + $0xb8] sm:$0xff]  ;;  %v7991_v5 = vld [vmem:[%s25268_s1 + $0xc0] sm:$0xff]  ;;  %v7992_v29 = vld [vmem:[%s25268_s1 + $0xc8] sm:$0xff] }
 0xa65   : > { %v9970_v23 = vmul.f32 %v22528_v42, %v22528_v42  ;;  %17905 = vmatmul.mubr.msk.f32.gmra.mrb[22].mxu1 %vm1384_vm1, %v7970_v43  ;;  %v9575_v43 = vld [vmem:[%s25276_s11 + $0x88] sm:$0xff] }
 0xa66   : > { %v9969_v57 = vmul.f32 %v9965_v18, %v9965_v18  ;;  %19100 = vmatpush3.bf16.msra.mxu1 %v19097_v17  ;;  %17907 = vmatprep.mubr.msk.f32.mxu1 %vm1384_vm1, %v7971_v13  ;;  %v9572_v17 = vld [vmem:[%s25276_s11 + $0x70] sm:$0xff] }
 0xa67   : > { %19102 = vmatprep.subr.bf16.mxu1 %v19101_v60  ;;  %v6467_v26 = vpop.permute.xlu1 %6466  ;;  %9978 = vperm.xlu0 %19760, %v9970_v23   ;;  %v7993_v13 = vld [vmem:[%s25268_s1 + $0xd0] sm:$0xff]  ;;  %v9579_v23 = vld [vmem:[%s25276_s11 + $0xa8] sm:$0xff] }
 0xa68   : > { %9973 = vperm.xlu1 %19761, %v9969_v57   ;;  %v6480_v45 = vmul.f32 %v6467_v26, %v6452_v2  ;;  %v9578_v57 = vld [vmem:[%s25276_s11 + $0xa0] sm:$0xff]  ;;  %v7996_v2 = vld [vmem:[%s25268_s1 + $0xe8] sm:$0xff]  ;;  %v9581_v26 = vld [vmem:[%s25276_s11 + $0xb8] sm:$0xff] }
 0xa69   : > { %17908 = vmatmul.mubr.msk.f32.gmra.mrb[24].mxu1 %vm1384_vm1, %v7972_v35  ;;  %v7997_v35 = vld [vmem:[%s25268_s1 + $0xf0] sm:$0xff] }
 0xa6a   : > { %19104 = vmatpush3.bf16.msra.mxu1 %v19101_v60  ;;  %v6462_v33 = vpop.permute.xlu0 %6461  ;;  %17910 = vmatprep.mubr.msk.f32.mxu1 %vm1384_vm1, %v7973_v3  ;;  %v6484_v12 = vsel %vm3948_vm15, %v6480_v45, 0.0  ;;  %v9576_v60 = vld [vmem:[%s25276_s11 + $0x90] sm:$0xff]  ;;  %v9582_v45 = vld [vmem:[%s25276_s11 + $0xc0] sm:$0xff] }
 0xa6b   : > { %v6479_v58 = vmul.f32 %v6462_v33, %v6451_v40  ;;  %19106 = vmatprep.subr.bf16.mxu1 %v19105_v31  ;;  %9597 = vperm.xlu0 %19760, %v9559_v51   ;;  %v9580_v3 = vld [vmem:[%s25276_s11 + $0xb0] sm:$0xff]  ;;  %v7998_v40 = vld [vmem:[%s25268_s1 + $0xf8] sm:$0xff]  ;;  %v15584_v51 = vld [vmem:[%s25268_s1 + $0x200] sm:$0xff] }
 0xa6c   : > { %9592 = vperm.xlu1 %19761, %v9558_v53   ;;  %v15585_v53 = vld [vmem:[%s25268_s1 + $0x208] sm:$0xff]  ;;  %v15586_v33 = vld [vmem:[%s25268_s1 + $0x210] sm:$0xff] }
 0xa6d   : > { %v6483_v15 = vsel %vm3948_vm15, %v6479_v58, 0.0  ;;  %17911 = vmatmul.mubr.msk.f32.gmra.mrb[26].mxu1 %vm1384_vm1, %v7974_v27  ;;  %v9585_v27 = vld [vmem:[%s25276_s11 + $0xd8] sm:$0xff]  ;;  %v19831_v58 = vunpack.i.h.bf16 %v22519_v52 }
 0xa6e   : > { %v22552_v19 = vadd.f32 %v6484_v12, %v6483_v15  ;;  %19108 = vmatpush3.bf16.msra.mxu1 %v19105_v31  ;;  %17913 = vmatprep.mubr.msk.f32.mxu1 %vm1384_vm1, %v7975_v55  ;;  %v19825_v31 = vunpack.i.l.bf16 %v22508_v38  ;;  %v19830_v55 = vunpack.i.l.bf16 %v22519_v52  ;;  %v9584_v38 = vld [vmem:[%s25276_s11 + $0xd0] sm:$0xff]  ;;  %v15587_v12 = vld [vmem:[%s25268_s1 + $0x218] sm:$0xff]  ;;  %v15588_v15 = vld [vmem:[%s25268_s1 + $0x220] sm:$0xff] }
 0xa6f   : > { %19110 = vmatprep.subr.bf16.mxu1 %v22546_v41  ;;  %9607 = vperm.xlu0 %19760, %v9561_v16  }
 0xa70   : > { %9602 = vperm.xlu1 %19761, %v9560_v9   ;;  %v19113_v16 = vpack.c.bf16 %v19826_v32, %v19825_v31  ;;  %v9587_v9 = vld [vmem:[%s25276_s11 + $0xe8] sm:$0xff]  ;;  %v19117_v52 = vpack.c.bf16 %v19831_v58, %v19830_v55  ;;  %v22719_v32 = vpop.permute.xlu1 %6471  ;;  %v15652_v31 = vld [vmem:[%s25268_s1 + $0x320] sm:$0xff] }
 0xa71   : > { %17914 = vmatmul.mubr.msk.f32.gmra.mrb[28].mxu1 %vm1384_vm1, %v7976_v21  ;;  %v19836_v21 = vunpack.i.h.bf16 %v22515_v10 }
 0xa72   : > { %17916 = vmatprep.mubr.msk.f32.mxu1 %vm1384_vm1, %v7977_v24  ;;  %v19835_v24 = vunpack.i.l.bf16 %v22515_v10  ;;  %v9588_v10 = vld [vmem:[%s25276_s11 + $0xf0] sm:$0xff] }
 0xa73   : > { %9617 = vperm.xlu0 %19760, %v9563_v4   ;;  %v15589_v4 = vld [vmem:[%s25268_s1 + $0x228] sm:$0xff] }
 0xa74   : > { %9612 = vperm.xlu1 %19761, %v9562_v8   ;;  %v15590_v8 = vld [vmem:[%s25268_s1 + $0x230] sm:$0xff] }
 0xa75   : > { %17917 = vmatmul.mubr.msk.f32.gmra.mrb[30].mxu1 %vm1384_vm1, %v7978_v20  ;;  %v9589_v20 = vld [vmem:[%s25276_s11 + $0xf8] sm:$0xff] }
 0xa76   : > { %17919 = vmatprep.mubr.msk.f32.mxu1 %vm1384_vm1, %v7979_v22  ;;  %v19121_v22 = vpack.c.bf16 %v19836_v21, %v19835_v24  ;;  %v15656_v24 = vld [vmem:[%s25268_s1 + $0x340] sm:$0xff] }
 0xa77   : > { %10451 = vperm.xlu0 %19760, %v9965_v18   ;;  %v9577_v18 = vld [vmem:[%s25276_s11 + $0x98] sm:$0xff] }
 0xa78   : > { %9622 = vperm.xlu1 %19761, %v9564_v50   ;;  %v15591_v50 = vld [vmem:[%s25268_s1 + $0x238] sm:$0xff] }
 0xa79   : > { %17920 = vmatmul.mubr.msk.f32.gmra.mrb[32].mxu1 %vm1384_vm1, %v7980_v54  ;;  %v15592_v54 = vld [vmem:[%s25268_s1 + $0x240] sm:$0xff] }
 0xa7a   : > { %17922 = vmatprep.mubr.msk.f32.mxu1 %vm1384_vm1, %v7981_v6  ;;  %v15593_v6 = vld [vmem:[%s25268_s1 + $0x248] sm:$0xff] }
 0xa7b   : > { %9627 = vperm.xlu0 %19760, %v9565_v25   ;;  %v15594_v25 = vld [vmem:[%s25268_s1 + $0x250] sm:$0xff] }
 0xa7c   : > { %10456 = vperm.xlu1 %19761, %v22528_v42   ;;  %v9574_v42 = vld [vmem:[%s25276_s11 + $0x80] sm:$0xff] }
 0xa7d   : > { %17923 = vmatmul.mubr.msk.f32.gmra.mrb[34].mxu1 %vm1384_vm1, %v7982_v46  ;;  %v15595_v46 = vld [vmem:[%s25268_s1 + $0x258] sm:$0xff] }
 0xa7e   : > { %17925 = vmatprep.mubr.msk.f32.mxu1 %vm1384_vm1, %v7983_v30  ;;  %v15596_v30 = vld [vmem:[%s25268_s1 + $0x260] sm:$0xff] }
 0xa7f   : > { %9637 = vperm.xlu0 %19760, %v9567_v37   ;;  %v15597_v37 = vld [vmem:[%s25268_s1 + $0x268] sm:$0xff] }
 0xa80   : > { %9632 = vperm.xlu1 %19761, %v9566_v11   ;;  %v15598_v11 = vld [vmem:[%s25268_s1 + $0x270] sm:$0xff] }
 0xa81   : > { %17926 = vmatmul.mubr.msk.f32.gmra.mrb[36].mxu1 %vm1384_vm1, %v7984_v48  ;;  %v15599_v48 = vld [vmem:[%s25268_s1 + $0x278] sm:$0xff] }
 0xa82   : > { %17928 = vmatprep.mubr.msk.f32.mxu1 %vm1384_vm1, %v7985_v61  ;;  %v15600_v61 = vld [vmem:[%s25268_s1 + $0x280] sm:$0xff] }
 0xa83   : > { %9647 = vperm.xlu0 %19760, %v9569_v47   ;;  %v14536_v47 = vsub.s32 5, %v20163_v1 }
 0xa84   : > { %9642 = vperm.xlu1 %19761, %v9568_v49   ;;  %v15601_v49 = vld [vmem:[%s25268_s1 + $0x288] sm:$0xff] }
 0xa85   : > { %17929 = vmatmul.mubr.msk.f32.gmra.mrb[38].mxu1 %vm1384_vm1, %v7986_v56  ;;  %v15602_v56 = vld [vmem:[%s25268_s1 + $0x290] sm:$0xff] }
 0xa86   : > { %17931 = vmatprep.mubr.msk.f32.mxu1 %vm1384_vm1, %v7987_v28  ;;  %v14537_v28 = vrot.slane %v22424_v36, %v14536_v47 }
 0xa87   : > { %9657 = vperm.xlu0 %19760, %v9571_v59   ;;  %v14533_v59 = vld [vmem:[%s25277_s0 + $0x8] sm:$0xff] }
 0xa88   : > { %9652 = vperm.xlu1 %19761, %v9570_v34   ;;  %v15603_v34 = vld [vmem:[%s25268_s1 + $0x298] sm:$0xff] }
 0xa89   : > { %17932 = vmatmul.mubr.msk.f32.gmra.mrb[40].mxu1 %vm1384_vm1, %v7988_v44  ;;  %v15604_v44 = vld [vmem:[%s25268_s1 + $0x2a0] sm:$0xff] }
 0xa8a   : > { %17934 = vmatprep.mubr.msk.f32.mxu1 %vm1384_vm1, %v7989_v0  ;;  %v14539_v0 = vmul.f32 %v14537_v28, %v14533_v59  ;;  %v15664_v59 = vld [vmem:[%s25268_s1 + $0x380] sm:$0xff] }
 0xa8b   : > { %9667 = vperm.xlu0 %19760, %v9573_v62   ;;  %v15605_v62 = vld [vmem:[%s25268_s1 + $0x2a8] sm:$0xff] }
 0xa8c   : > { %9662 = vperm.xlu1 %19761, %v9572_v17   ;;  %v14532_v17 = vld [vmem:[%s25277_s0] sm:$0xff]  ;;  %v14543_v36 = vsel %vm1279_vm0, %v14539_v0, 0.0  ;;  %s25278_s0 = sld [smem:[#allocation21_spill]] }
 0xa8d   : > { %17935 = vmatmul.mubr.msk.f32.gmra.mrb[42].mxu1 %vm1384_vm1, %v7990_v39  ;;  %v15606_v39 = vld [vmem:[%s25268_s1 + $0x2b0] sm:$0xff] }
 0xa8e   : > { %17937 = vmatprep.mubr.msk.f32.mxu1 %vm1384_vm1, %v7991_v5  ;;  %v14538_v5 = vmul.f32 %v14537_v28, %v14532_v17 }
 0xa8f   : > { %9677 = vperm.xlu0 %19760, %v9575_v43   ;;  %v15607_v43 = vld [vmem:[%s25268_s1 + $0x2b8] sm:$0xff] }
 0xa90   : > { %9672 = vperm.xlu1 %19761, %v9574_v42   ;;  %v15608_v42 = vld [vmem:[%s25268_s1 + $0x2c0] sm:$0xff] }
 0xa91   : > { %17938 = vmatmul.mubr.msk.f32.gmra.mrb[44].mxu1 %vm1384_vm1, %v7992_v29  ;;  %v14540_v29 = vsel %vm1279_vm0, %v14538_v5, 0.0 }
 0xa92   : > { %17940 = vmatprep.mubr.msk.f32.mxu1 %vm1384_vm1, %v7993_v13  ;;  %v15609_v13 = vld [vmem:[%s25268_s1 + $0x2c8] sm:$0xff] }
 0xa93   : > { %9687 = vperm.xlu0 %19760, %v9577_v18   ;;  %v15610_v18 = vld [vmem:[%s25268_s1 + $0x2d0] sm:$0xff] }
 0xa94   : > { %9682 = vperm.xlu1 %19761, %v9576_v60   ;;  %v15611_v60 = vld [vmem:[%s25268_s1 + $0x2d8] sm:$0xff] }
 0xa95   : > { %17941 = vmatmul.mubr.msk.f32.gmra.mrb[46].mxu1 %vm1384_vm1, %v7994_v7  ;;  %v15612_v7 = vld [vmem:[%s25268_s1 + $0x2e0] sm:$0xff] }
 0xa96   : > { %17943 = vmatprep.mubr.msk.f32.mxu1 %vm1384_vm1, %v7995_v63  ;;  %v15613_v63 = vld [vmem:[%s25268_s1 + $0x2e8] sm:$0xff] }
 0xa97   : > { %9697 = vperm.xlu0 %19760, %v9579_v23   ;;  %v15614_v23 = vld [vmem:[%s25268_s1 + $0x2f0] sm:$0xff] }
 0xa98   : > { %9692 = vperm.xlu1 %19761, %v9578_v57   ;;  %v15615_v57 = vld [vmem:[%s25268_s1 + $0x2f8] sm:$0xff] }
 0xa99   : > { %17944 = vmatmul.mubr.msk.f32.gmra.mrb[48].mxu1 %vm1384_vm1, %v7996_v2  ;;  %v15648_v2 = vld [vmem:[%s25268_s1 + $0x300] sm:$0xff] }
 0xa9a   : > { %17946 = vmatprep.mubr.msk.f32.mxu1 %vm1384_vm1, %v7997_v35  ;;  %v14141_v35 = vld [vmem:[%s25278_s0] sm:$0xff] }
 0xa9b   : > { %9707 = vperm.xlu0 %19760, %v9581_v26   ;;  %v14142_v26 = vld [vmem:[%s25278_s0 + $0x8] sm:$0xff] }
 0xa9c   : > { %9702 = vperm.xlu1 %19761, %v9580_v3   ;;  %v15649_v3 = vld [vmem:[%s25268_s1 + $0x308] sm:$0xff] }
 0xa9d   : > { %17947 = vmatmul.mubr.msk.f32.gmra.mrb[50].mxu1 %vm1384_vm1, %v7998_v40  ;;  %v15650_v40 = vld [vmem:[%s25268_s1 + $0x310] sm:$0xff] }
 0xa9e   : > { %17965 = vmatprep.mubr.msk.f32.mxu1 %vm1384_vm1, %v15584_v51  ;;  %v22715_v51 = vpop.permute.xlu0 %6476 }
 0xa9f   : > { %9717 = vperm.xlu0 %19760, %v9583_v14   ;;  %v15651_v14 = vld [vmem:[%s25268_s1 + $0x318] sm:$0xff] }
 0xaa0   : > { %9712 = vperm.xlu1 %19761, %v9582_v45   ;;  %v9968_v45 = vld [vmem:[%s25279_s2 + $0x8] sm:$0xff] }
 0xaa1   : > { %17966 = vmatmul.mubr.msk.f32.vlgmr.msra.gmra.mrb[20].mxu1 %vm1384_vm1, %v15585_v53  ;;  %v9967_v53 = vld [vmem:[%s25279_s2] sm:$0xff]  ;;  %s25280_s2 = sld [smem:[#allocation22_spill]] }
 0xaa2   : > { %19112 = vmatpush3.bf16.msra.mxu1 %v22546_v41  ;;  %17968 = vmatprep.mubr.msk.f32.mxu1 %vm1384_vm1, %v15586_v33  ;;  %v9586_v41 = vld [vmem:[%s25276_s11 + $0xe0] sm:$0xff] }
 0xaa3   : > { %19114 = vmatprep.subr.bf16.mxu1 %v19113_v16  ;;  %9727 = vperm.xlu0 %19760, %v9585_v27   ;;  %v15653_v27 = vld [vmem:[%s25268_s1 + $0x328] sm:$0xff] }
 0xaa4   : > { %9722 = vperm.xlu1 %19761, %v9584_v38  }
 0xaa5   : > { %17969 = vmatmul.mubr.msk.f32.gmra.mrb[22].mxu1 %vm1384_vm1, %v15587_v12 }
 0xaa6   : > { %19116 = vmatpush3.bf16.msra.mxu1 %v19113_v16  ;;  %17971 = vmatprep.mubr.msk.f32.mxu1 %vm1384_vm1, %v15588_v15  ;;  %v15654_v16 = vld [vmem:[%s25268_s1 + $0x330] sm:$0xff] }
 0xaa7   : > { %19118 = vmatprep.subr.bf16.mxu1 %v19117_v52  ;;  %9737 = vperm.xlu0 %19760, %v9587_v9   ;;  %v15655_v9 = vld [vmem:[%s25268_s1 + $0x338] sm:$0xff]  ;;  %v15779_v0 = vld [vmem:[%s25280_s2 + $0x20] sm:$0xff] }
 0xaa8   : > { %9732 = vperm.xlu1 %19761, %v9586_v41   ;;  %v10447_v5 = vld [vmem:[%s25280_s2] sm:$0xff] }
 0xaa9   : > { %17972 = vmatmul.mubr.msk.f32.gmra.mrb[24].mxu1 %vm1384_vm1, %v15589_v4 }
 0xaaa   : > { %19120 = vmatpush3.bf16.msra.mxu1 %v19117_v52  ;;  %17974 = vmatprep.mubr.msk.f32.mxu1 %vm1384_vm1, %v15590_v8  ;;  %v15657_v8 = vld [vmem:[%s25268_s1 + $0x348] sm:$0xff] }
 0xaab   : > { %19122 = vmatprep.subr.bf16.mxu1 %v19121_v22  ;;  %9747 = vperm.xlu0 %19760, %v9589_v20  }
 0xaac   : > { %9742 = vperm.xlu1 %19761, %v9588_v10   ;;  %v15658_v10 = vld [vmem:[%s25268_s1 + $0x350] sm:$0xff] }
 0xaad   : > { %17975 = vmatmul.mubr.msk.f32.gmra.mrb[26].mxu1 %vm1384_vm1, %v15591_v50 }
 0xaae   : > { %19124 = vmatpush3.bf16.msra.mxu1 %v19121_v22  ;;  %17977 = vmatprep.mubr.msk.f32.mxu1 %vm1384_vm1, %v15592_v54  ;;  %v15659_v54 = vld [vmem:[%s25268_s1 + $0x358] sm:$0xff] }
 0xab1   : > { %17978 = vmatmul.mubr.msk.f32.gmra.mrb[28].mxu1 %vm1384_vm1, %v15593_v6 }
 0xab2   : > { %17980 = vmatprep.mubr.msk.f32.mxu1 %vm1384_vm1, %v15594_v25 }
 0xab5   : > { %17981 = vmatmul.mubr.msk.f32.gmra.mrb[30].mxu1 %vm1384_vm1, %v15595_v46  ;;  %v15660_v46 = vld [vmem:[%s25268_s1 + $0x360] sm:$0xff] }
 0xab6   : > { %17983 = vmatprep.mubr.msk.f32.mxu1 %vm1384_vm1, %v15596_v30 }
 0xab9   : > { %17984 = vmatmul.mubr.msk.f32.gmra.mrb[32].mxu1 %vm1384_vm1, %v15597_v37 }
 0xaba   : > { %17986 = vmatprep.mubr.msk.f32.mxu1 %vm1384_vm1, %v15598_v11  ;;  %v15661_v11 = vld [vmem:[%s25268_s1 + $0x368] sm:$0xff] }
 0xabd   : > { %17987 = vmatmul.mubr.msk.f32.gmra.mrb[34].mxu1 %vm1384_vm1, %v15599_v48 }
 0xabe   : > { %17989 = vmatprep.mubr.msk.f32.mxu1 %vm1384_vm1, %v15600_v61  ;;  %v15662_v61 = vld [vmem:[%s25268_s1 + $0x370] sm:$0xff] }
 0xac1   : > { %17990 = vmatmul.mubr.msk.f32.gmra.mrb[36].mxu1 %vm1384_vm1, %v15601_v49 }
 0xac2   : > { %17992 = vmatprep.mubr.msk.f32.mxu1 %vm1384_vm1, %v15602_v56  ;;  %v15663_v56 = vld [vmem:[%s25268_s1 + $0x378] sm:$0xff] }
 0xac5   : > { %17993 = vmatmul.mubr.msk.f32.gmra.mrb[38].mxu1 %vm1384_vm1, %v15603_v34  ;;  %v15665_v34 = vld [vmem:[%s25268_s1 + $0x388] sm:$0xff] }
 0xac6   : > { %17995 = vmatprep.mubr.msk.f32.mxu1 %vm1384_vm1, %v15604_v44  ;;  %v15666_v44 = vld [vmem:[%s25268_s1 + $0x390] sm:$0xff] }
 0xac9   : > { %17996 = vmatmul.mubr.msk.f32.gmra.mrb[40].mxu1 %vm1384_vm1, %v15605_v62  ;;  %v15713_v62 = vld [vmem:[%s25280_s2 + $0x10] sm:$0xff] }
 0xaca   : > { %14544 = vadd.xlane.f32.xlu0 %v14543_v36  ;;  %17998 = vmatprep.mubr.msk.f32.mxu1 %vm1384_vm1, %v15606_v39  ;;  %v15780_v36 = vld [vmem:[%s25280_s2 + $0x28] sm:$0xff]  ;;  %v15714_v39 = vld [vmem:[%s25280_s2 + $0x18] sm:$0xff] }
 0xacd   : > { %17999 = vmatmul.mubr.msk.f32.gmra.mrb[42].mxu1 %vm1384_vm1, %v15607_v43  ;;  %v15813_v43 = vld [vmem:[%s25280_s2 + $0x30] sm:$0xff] }
 0xace   : > { %18001 = vmatprep.mubr.msk.f32.mxu1 %vm1384_vm1, %v15608_v42  ;;  %v15847_v42 = vld [vmem:[%s25280_s2 + $0x40] sm:$0xff] }
 0xad0   : > { %14541 = vadd.xlane.f32.xlu1 %v14540_v29  ;;  %v15667_v29 = vld [vmem:[%s25268_s1 + $0x398] sm:$0xff] }
 0xad1   : > { %18002 = vmatmul.mubr.msk.f32.gmra.mrb[44].mxu1 %vm1384_vm1, %v15609_v13  ;;  %v15881_v13 = vld [vmem:[%s25280_s2 + $0x50] sm:$0xff] }
 0xad2   : > { %18004 = vmatprep.mubr.msk.f32.mxu1 %vm1384_vm1, %v15610_v18  ;;  %v15915_v18 = vld [vmem:[%s25280_s2 + $0x60] sm:$0xff] }
 0xad5   : > { %18005 = vmatmul.mubr.msk.f32.gmra.mrb[46].mxu1 %vm1384_vm1, %v15611_v60  ;;  %v15949_v60 = vld [vmem:[%s25280_s2 + $0x70] sm:$0xff] }
 0xad6   : > { %18007 = vmatprep.mubr.msk.f32.mxu1 %vm1384_vm1, %v15612_v7 }
 0xad9   : > { %18008 = vmatmul.mubr.msk.f32.gmra.mrb[48].mxu1 %vm1384_vm1, %v15613_v63  ;;  %v10448_v63 = vld [vmem:[%s25280_s2 + $0x8] sm:$0xff] }
 0xada   : > { %18010 = vmatprep.mubr.msk.f32.mxu1 %vm1384_vm1, %v15614_v23  ;;  %v15814_v23 = vld [vmem:[%s25280_s2 + $0x38] sm:$0xff] }
 0xadd   : > { %18011 = vmatmul.mubr.msk.f32.gmra.mrb[50].mxu1 %vm1384_vm1, %v15615_v57  ;;  %v15848_v57 = vld [vmem:[%s25280_s2 + $0x48] sm:$0xff] }
 0xade   : > { %18029 = vmatprep.mubr.msk.f32.mxu1 %vm1384_vm1, %v15648_v2 }
 0xae0   : > { %14175 = vperm.xlu0 %19760, %v14141_v35  }
 0xae1   : > { %14180 = vperm.xlu1 %19761, %v14142_v26   ;;  %18030 = vmatmul.mubr.msk.f32.vlgmr.msra.gmra.mrb[20].mxu1 %vm1384_vm1, %v15649_v3 }
 0xae2   : > { %18032 = vmatprep.mubr.msk.f32.mxu1 %vm1384_vm1, %v15650_v40  ;;  %v15882_v40 = vld [vmem:[%s25280_s2 + $0x58] sm:$0xff] }
 0xae5   : > { %18033 = vmatmul.mubr.msk.f32.gmra.mrb[22].mxu1 %vm1384_vm1, %v15651_v14  ;;  %v15916_v14 = vld [vmem:[%s25280_s2 + $0x68] sm:$0xff] }
 0xae6   : > { %v9979_v33 = vpop.permute.xlu0 %9978  ;;  %18035 = vmatprep.mubr.msk.f32.mxu1 %vm1384_vm1, %v15652_v31  ;;  %v15950_v31 = vld [vmem:[%s25280_s2 + $0x78] sm:$0xff] }
 0xae7   : > { %v9982_v58 = vmul.f32 %v9979_v33, %v9968_v45  ;;  %v9974_v55 = vpop.permute.xlu1 %9973  ;;  %v15668_v45 = vld [vmem:[%s25268_s1 + $0x3a0] sm:$0xff] }
 0xae8   : > { %v9981_v38 = vmul.f32 %v9974_v55, %v9967_v53 }
 0xae9   : > { %v9984_v12 = vsel %vm3948_vm15, %v9982_v58, 0.0  ;;  %18036 = vmatmul.mubr.msk.f32.gmra.mrb[24].mxu1 %vm1384_vm1, %v15653_v27 }
 0xaea   : > { %v9983_v15 = vsel %vm3948_vm15, %v9981_v38, 0.0  ;;  %18038 = vmatprep.mubr.msk.f32.mxu1 %vm1384_vm1, %v15654_v16  ;;  %v22736_v4 = vpop.permute.xlu0 %9597 }
 0xaeb   : > { %v9985_v52 = vadd.f32 %v9984_v12, %v9983_v15  ;;  %v22733_v21 = vpop.permute.xlu1 %9592 }
 0xaed   : > { %v9986_v41 = vrot.slane %v9985_v52, 4  ;;  %18039 = vmatmul.mubr.msk.f32.gmra.mrb[26].mxu1 %vm1384_vm1, %v15655_v9 }
 0xaee   : > { %18041 = vmatprep.mubr.msk.f32.mxu1 %vm1384_vm1, %v15656_v24  ;;  %v22747_v25 = vpop.permute.xlu0 %9607 }
 0xaef   : > { %v9987_v20 = vadd.f32 %v9986_v41, %v9985_v52  ;;  %v22741_v22 = vpop.permute.xlu1 %9602 }
 0xaf1   : > { %v9988_v50 = vrot.slane %v9987_v20, 2  ;;  %18042 = vmatmul.mubr.msk.f32.gmra.mrb[28].mxu1 %vm1384_vm1, %v15657_v8  ;;  %v15669_v8 = vld [vmem:[%s25268_s1 + $0x3a8] sm:$0xff] }
 0xaf2   : > { %18044 = vmatprep.mubr.msk.f32.mxu1 %vm1384_vm1, %v15658_v10  ;;  %v22756_v49 = vpop.permute.xlu0 %9617 }
 0xaf3   : > { %v9989_v6 = vadd.f32 %v9988_v50, %v9987_v20  ;;  %v22750_v37 = vpop.permute.xlu1 %9612 }
 0xaf5   : > { %v9990_v30 = vrot.slane %v9989_v6, 1  ;;  %18045 = vmatmul.mubr.msk.f32.gmra.mrb[30].mxu1 %vm1384_vm1, %v15659_v54 }
 0xaf6   : > { %18047 = vmatprep.mubr.msk.f32.mxu1 %vm1384_vm1, %v15660_v46  ;;  %v22770_v17 = vpop.permute.xlu0 %10451 }
 0xaf7   : > { %v9991_v48 = vadd.f32 %v9990_v30, %v9989_v6  ;;  %v22761_v28 = vpop.permute.xlu1 %9622  ;;  %v11342_v2 = vmul.f32 %v15779_v0, %v22770_v17  ;;  %v10466_v35 = vmul.f32 %v15713_v62, %v22770_v17  ;;  %v10459_v26 = vmul.f32 %v22770_v17, %v10447_v5 }
 0xaf8   : > { %v11801_v3 = vmul.f32 %v15813_v43, %v22770_v17  ;;  %v12227_v53 = vmul.f32 %v15847_v42, %v22770_v17  ;;  %v12530_v33 = vmul.f32 %v15881_v13, %v22770_v17  ;;  %v12989_v27 = vmul.f32 %v15915_v18, %v22770_v17  ;;  %v15983_v42 = vld [vmem:[%s25280_s2 + $0x80] sm:$0xff] }
 0xaf9   : > { %v9992_v47 = vadd.f32 1e-08, %v9991_v48  ;;  %18048 = vmatmul.mubr.msk.f32.gmra.mrb[32].mxu1 %vm1384_vm1, %v15661_v11  ;;  %v13415_v58 = vmul.f32 %v15949_v60, %v22770_v17  ;;  %v15672_v18 = vld [vmem:[%s25268_s1 + $0x3c0] sm:$0xff] }
 0xafa   : > { %18050 = vmatprep.mubr.msk.f32.mxu1 %vm1384_vm1, %v15662_v61  ;;  %v22820_v13 = vpop.permute.xlu0 %9627 }
 0xafb   : > { %19843 = vrsqrt.f32 %v9992_v47  ;;  %v22781_v7 = vpop.permute.xlu1 %10456 }
 0xafc   : > { %v11343_v55 = vmul.f32 %v15780_v36, %v22781_v7  ;;  %v10467_v16 = vmul.f32 %v15714_v39, %v22781_v7  ;;  %v10460_v38 = vmul.f32 %v22781_v7, %v10448_v63  ;;  %v11802_v12 = vmul.f32 %v15814_v23, %v22781_v7  ;;  %v15671_v36 = vld [vmem:[%s25268_s1 + $0x3b8] sm:$0xff] }
 0xafd   : > { %18051 = vmatmul.mubr.msk.f32.gmra.mrb[34].mxu1 %vm1384_vm1, %v15663_v56  ;;  %v12228_v9 = vmul.f32 %v15848_v57, %v22781_v7  ;;  %v12531_v52 = vmul.f32 %v15882_v40, %v22781_v7  ;;  %v12990_v24 = vmul.f32 %v15916_v14, %v22781_v7  ;;  %v13416_v41 = vmul.f32 %v15950_v31, %v22781_v7  ;;  %v15674_v40 = vld [vmem:[%s25268_s1 + $0x3d0] sm:$0xff] }
 0xafe   : > { %18053 = vmatprep.mubr.msk.f32.mxu1 %vm1384_vm1, %v15664_v59  ;;  %v15670_v59 = vld [vmem:[%s25268_s1 + $0x3b0] sm:$0xff] }
 0xb01   : > { %18054 = vmatmul.mubr.msk.f32.gmra.mrb[36].mxu1 %vm1384_vm1, %v15665_v34 }
 0xb02   : > { %18056 = vmatprep.mubr.msk.f32.mxu1 %vm1384_vm1, %v15666_v44 }
 0xb05   : > { %v19844_v15 = vpop.eup %19843  ;;  %18057 = vmatmul.mubr.msk.f32.gmra.mrb[38].mxu1 %vm1384_vm1, %v15667_v29  ;;  %v15984_v29 = vld [vmem:[%s25280_s2 + $0x88] sm:$0xff] }
 0xb06   : > { %18059 = vmatprep.mubr.msk.f32.mxu1 %vm1384_vm1, %v15668_v45  ;;  %v11344_v20 = vmul.f32 %v19844_v15, %v11342_v2  ;;  %v11345_v10 = vmul.f32 %v19844_v15, %v11343_v55  ;;  %v10468_v50 = vmul.f32 %v19844_v15, %v10466_v35  ;;  %v10469_v54 = vmul.f32 %v19844_v15, %v10467_v16  ;;  %v22837_v45 = vpop.permute.xlu0 %9637  ;;  %v15678_v55 = vld [vmem:[%s25268_s1 + $0x3f0] sm:$0xff]  ;;  %v15679_v16 = vld [vmem:[%s25268_s1 + $0x3f8] sm:$0xff] }
 0xb07   : > { %v10461_v6 = vmul.f32 %v19844_v15, %v10459_v26  ;;  %v10462_v46 = vmul.f32 %v19844_v15, %v10460_v38  ;;  %v11803_v30 = vmul.f32 %v19844_v15, %v11801_v3  ;;  %v11804_v11 = vmul.f32 %v19844_v15, %v11802_v12  ;;  %v15673_v3 = vld [vmem:[%s25268_s1 + $0x3c8] sm:$0xff] }
 0xb08   : > { %v19133_v48 = vpack.c.bf16 %v11345_v10, %v11344_v20  ;;  %v19125_v61 = vpack.c.bf16 %v10469_v54, %v10468_v50  ;;  %v12229_v47 = vmul.f32 %v19844_v15, %v12227_v53  ;;  %v12230_v56 = vmul.f32 %v19844_v15, %v12228_v9  ;;  %v22856_v38 = vld [vmem:[#allocation5 + $0x8] sm:$0xff]  ;;  %v22865_v9 = vld [vmem:[#allocation5 + $0x10] sm:$0xff] }
 0xb09   : > { %18060 = vmatmul.mubr.msk.f32.gmra.mrb[40].mxu1 %vm1384_vm1, %v15669_v8  ;;  %v19129_v34 = vpack.c.bf16 %v10462_v46, %v10461_v6  ;;  %v22813_v44 = vpack.c.bf16 %v11804_v11, %v11803_v30  ;;  %v12532_v0 = vmul.f32 %v19844_v15, %v12530_v33  ;;  %v12533_v62 = vmul.f32 %v19844_v15, %v12531_v52  ;;  %v15675_v33 = vld [vmem:[%s25268_s1 + $0x3d8] sm:$0xff] }
 0xb0a   : > { %19134 = vmatprep.subr.bf16.mxu0 %v19133_v48  ;;  %19126 = vmatprep.subr.bf16.mxu1 %v19125_v61  ;;  %v22816_v39 = vpack.c.bf16 %v12230_v56, %v12229_v47  ;;  %v12991_v5 = vmul.f32 %v19844_v15, %v12989_v27  ;;  %v12992_v43 = vmul.f32 %v19844_v15, %v12990_v24  ;;  %v22848_v27 = vpop.permute.xlu1 %9632 }
 0xb0b   : > { %19128 = vmatpush3.bf16.msra.mxu1 %v19125_v61  ;;  %19136 = vmatpush3.bf16.msra.mxu0 %v19133_v48  ;;  %v22823_v60 = vpack.c.bf16 %v12533_v62, %v12532_v0  ;;  %v13417_v63 = vmul.f32 %v19844_v15, %v13415_v58  ;;  %v13418_v23 = vmul.f32 %v19844_v15, %v13416_v41  ;;  %v22850_v58 = vpop.permute.xlu0 %9647  ;;  %v14547_v0 = vld [vmem:[%s20136_s17 + $0x8] sm:$0xff] }
 0xb0c   : > { %18062 = vmatprep.mubr.msk.f32.mxu1 %vm1384_vm1, %v15670_v59  ;;  %19130 = vmatprep.subr.bf16.mxu1 %v19129_v34  ;;  %v22826_v57 = vpack.c.bf16 %v12992_v43, %v12991_v5  ;;  %v13718_v35 = vmul.f32 %v15983_v42, %v22770_v17  ;;  %v13719_v26 = vmul.f32 %v15984_v29, %v22781_v7  ;;  %v15676_v17 = vld [vmem:[%s25268_s1 + $0x3e0] sm:$0xff]  ;;  %v15677_v7 = vld [vmem:[%s25268_s1 + $0x3e8] sm:$0xff]  ;;  %v25296_v29 = vld [vmem:[#allocation32_spill] sm:$0xff] }
 0xb0d   : > { %25281 = vst [vmem:[#allocation39_spill] sm:$0xff] %v22823_v60  ;;  %19138 = vmatprep.subr.bf16.mxu0 %v22813_v44  ;;  %18063 = vmatmul.mubr.msk.f32.gmra.mrb[42].mxu1 %vm1384_vm1, %v15671_v36  ;;  %v22830_v2 = vpack.c.bf16 %v13418_v23, %v13417_v63  ;;  %v19937_v36 = vmov 1.0   ;;  %v14546_v23 = vld [vmem:[%s20136_s17] sm:$0xff] }
 0xb0e   : > { %25282 = vst [vmem:[#allocation40_spill] sm:$0xff] %v22826_v57  ;;  %18065 = vmatprep.mubr.msk.f32.mxu1 %vm1384_vm1, %v15672_v18  ;;  %v13720_v14 = vmul.f32 %v19844_v15, %v13718_v35  ;;  %v13721_v31 = vmul.f32 %v19844_v15, %v13719_v26  ;;  %v22858_v12 = vpop.permute.xlu1 %9642  ;;  %v22907_v5 = vrot.slane %v19937_v36, 7  ;;  %v10127_v18 = vand.u32 15, %v25296_v29 }
 0xb0f   : > { %25283 = vst [vmem:[#allocation41_spill] sm:$0xff] %v22830_v2  ;;  %v22860_v15 = vpop.permute.xlu0 %9657  ;;  %v25297_v26 = vmov 0.0  }
 0xb10   : > { %v22840_v53 = vpack.c.bf16 %v13721_v31, %v13720_v14  ;;  %25294 = vst [vmem:[#allocation52_spill] sm:$0xff] %v22907_v5  ;;  %vm10223_vm0 = vcmp.le.s32.totalorder %v10127_v18, 14  ;;  %v11306_v35 = vmul.f32 %v22907_v5, %v22856_v38  ;;  %v14144_v14 = vld [vmem:[%s25278_s0 + $0x18] sm:$0xff] }
 0xb11   : > { %18066 = vmatmul.mubr.msk.f32.gmra.mrb[44].mxu1 %vm1384_vm1, %v15673_v3  ;;  %v22916_v3 = vsel %vm10223_vm0, 1.0, %v25297_v26  ;;  %v14148_v18 = vld [vmem:[%s25278_s0 + $0x38] sm:$0xff] }
 0xb12   : > { %25284 = vst [vmem:[#allocation42_spill] sm:$0xff] %v22840_v53  ;;  %18068 = vmatprep.mubr.msk.f32.mxu1 %vm1384_vm1, %v15674_v40  ;;  %v22869_v52 = vpop.permute.xlu1 %9652  ;;  %v25075_v31 = vrot.slane %v22916_v3, 7  ;;  %v14172_v53 = vld [vmem:[%s25278_s0 + $0xf8] sm:$0xff] }
 0xb13   : > { %v22871_v24 = vpop.permute.xlu0 %9667 }
 0xb15   : > { %18069 = vmatmul.mubr.msk.f32.gmra.mrb[46].mxu1 %vm1384_vm1, %v15675_v33 }
 0xb16   : > { %18071 = vmatprep.mubr.msk.f32.mxu1 %vm1384_vm1, %v15676_v17  ;;  %v22873_v41 = vpop.permute.xlu1 %9662  ;;  %v22924_v17 = vsel %vm1873_vm11, %v22907_v5, %v25075_v31  ;;  %v22982_v31 = vrot.slane %v19937_v36, 1  ;;  %v10109_v36 = vadd.s32 120, %v20163_v1 }
 0xb17   : > { %v22875_v8 = vpop.permute.xlu0 %9677  ;;  %25298 = vst [vmem:[#allocation32_spill] sm:$0xff] %v22924_v17 }
 0xb19   : > { %18072 = vmatmul.mubr.msk.f32.gmra.mrb[48].mxu1 %vm1384_vm1, %v15677_v7  ;;  %v11379_v7 = vrot.slane %v11306_v35, 1  ;;  %v14147_v35 = vld [vmem:[%s25278_s0 + $0x30] sm:$0xff] }
 0xb1a   : > { %18074 = vmatprep.mubr.msk.f32.mxu1 %vm1384_vm1, %v15678_v55  ;;  %v22877_v20 = vpop.permute.xlu1 %9672 }
 0xb1b   : > { %v22879_v10 = vpop.permute.xlu0 %9687 }
 0xb1d   : > { %18075 = vmatmul.mubr.msk.f32.gmra.mrb[50].mxu1 %vm1384_vm1, %v15679_v16  ;;  %v22928_v16 = vmul.f32 %v22924_v17, %v22865_v9  ;;  %v10141_v17 = vand.u32 15, %v10109_v36 }
 0xb1e   : > { %18081 = vmatprep.mubr.msk.f32.mxu1 %vm3948_vm15, %v22856_v38  ;;  %v22881_v50 = vpop.permute.xlu1 %9682 }
 0xb1f   : > { %v22883_v54 = vpop.permute.xlu0 %9697  ;;  %vm10237_vm8 = vcmp.le.s32.totalorder %v10141_v17, 14 }
 0xb21   : > { %18082 = vmatmul.mubr.msk.f32.vlgmr.msra.gmra.mrb[52].mxu1 %vm3948_vm15, %v22865_v9 }
 0xb22   : > { %19132 = vmatpush3.bf16.msra.mxu1 %v19129_v34  ;;  %v22885_v6 = vpop.permute.xlu1 %9692 }
 0xb23   : > { %v22887_v46 = vpop.permute.xlu0 %9707 }
 0xb24   : > { %25285 = vst [vmem:[#allocation43_spill] sm:$0xff] %v22887_v46 }
 0xb26   : > { %v22889_v30 = vpop.permute.xlu1 %9702 }
 0xb27   : > { %25286 = vst [vmem:[#allocation44_spill] sm:$0xff] %v22889_v30  ;;  %v22891_v11 = vpop.permute.xlu0 %9717  ;;  %v10123_v30 = vadd.s32 232, %v20163_v1 }
 0xb28   : > { %25287 = vst [vmem:[#allocation45_spill] sm:$0xff] %v22891_v11 }
 0xb2a   : > { %v22893_v48 = vpop.permute.xlu1 %9712 }
 0xb2b   : > { %25288 = vst [vmem:[#allocation46_spill] sm:$0xff] %v22893_v48  ;;  %v22895_v61 = vpop.permute.xlu0 %9727 }
 0xb2c   : > { %25289 = vst [vmem:[#allocation47_spill] sm:$0xff] %v22895_v61 }
 0xb2e   : > { %v22897_v47 = vpop.permute.xlu1 %9722 }
 0xb2f   : > { %25290 = vst [vmem:[#allocation48_spill] sm:$0xff] %v22897_v47  ;;  %v22899_v56 = vpop.permute.xlu0 %9737 }
 0xb30   : > { %25291 = vst [vmem:[#allocation49_spill] sm:$0xff] %v22899_v56 }
 0xb32   : > { %v22901_v59 = vpop.permute.xlu1 %9732 }
 0xb33   : > { %25292 = vst [vmem:[#allocation50_spill] sm:$0xff] %v22901_v59  ;;  %v22903_v34 = vpop.permute.xlu0 %9747  ;;  %v10121_v59 = vadd.s32 216, %v20163_v1 }
 0xb34   : > { %25293 = vst [vmem:[#allocation51_spill] sm:$0xff] %v22903_v34 }
 0xb36   : > { %v22909_v42 = vpop.permute.xlu1 %9742 }
 0xb37   : > { %25295 = vst [vmem:[#allocation53_spill] sm:$0xff] %v22909_v42 }
 0xb57   : > { %v14545_v62 = vpop.xlane.xlu0 %14544 }
 0xb58   : > { %v14549_v43 = vadd.f32 %v14547_v0, %v14545_v62  ;;  %v14146_v0 = vld [vmem:[%s25278_s0 + $0x28] sm:$0xff]  ;;  %v25074_v62 = vrot.slane %v22928_v16, 1 }
 0xb5a   : > { %v14551_v63 = vmul.f32 0.25, %v14549_v43  ;;  %v14143_v43 = vld [vmem:[%s25278_s0 + $0x10] sm:$0xff]  ;;  %v11381_v29 = vsel %vm1835_vm10, %v11379_v7, %v25074_v62  ;;  %v14170_v62 = vld [vmem:[%s25278_s0 + $0xe8] sm:$0xff] }
 0xb5b   : > { %18185 = vmatprep.mubr.msk.f32.mxu0 %vm3948_vm15, %v11381_v29 }
 0xb5c   : > { %14561 = vperm.xlu0 %19760, %v14551_v63   ;;  %v14145_v63 = vld [vmem:[%s25278_s0 + $0x20] sm:$0xff] }
 0xb5d   : > { %v14542_v40 = vpop.xlane.xlu1 %14541 }
 0xb5e   : > { %v14548_v33 = vadd.f32 %v14546_v23, %v14542_v40  ;;  %v14150_v23 = vld [vmem:[%s25278_s0 + $0x48] sm:$0xff]  ;;  %v6453_v40 = vld [vmem:[%s25275_s4 + $0x10] sm:$0xff] }
 0xb5f   : > { %v6481_v7 = vmul.f32 %v22719_v32, %v6453_v40  ;;  %v14158_v40 = vld [vmem:[%s25278_s0 + $0x88] sm:$0xff] }
 0xb60   : > { %v14550_v55 = vmul.f32 0.25, %v14548_v33  ;;  %14190 = vperm.xlu0 %19760, %v14144_v14   ;;  %v14152_v14 = vld [vmem:[%s25278_s0 + $0x58] sm:$0xff]  ;;  %v14149_v33 = vld [vmem:[%s25278_s0 + $0x40] sm:$0xff] }
 0xb61   : > { %v6486_v29 = vsel %vm3948_vm15, %v6481_v7, 0.0 }
 0xb62   : > { %14556 = vperm.xlu1 %19761, %v14550_v55   ;;  %v6454_v55 = vld [vmem:[%s25275_s4 + $0x18] sm:$0xff] }
 0xb64   : > { %14200 = vperm.xlu0 %19760, %v14146_v0   ;;  %v14154_v0 = vld [vmem:[%s25278_s0 + $0x68] sm:$0xff] }
 0xb66   : > { %14185 = vperm.xlu1 %19761, %v14143_v43   ;;  %v14151_v43 = vld [vmem:[%s25278_s0 + $0x50] sm:$0xff] }
 0xb68   : > { %14210 = vperm.xlu0 %19760, %v14148_v18   ;;  %v6482_v18 = vmul.f32 %v22715_v51, %v6454_v55  ;;  %v14160_v51 = vld [vmem:[%s25278_s0 + $0x98] sm:$0xff]  ;;  %v14157_v55 = vld [vmem:[%s25278_s0 + $0x80] sm:$0xff] }
 0xb6a   : > { %14195 = vperm.xlu1 %19761, %v14145_v63   ;;  %v14156_v63 = vld [vmem:[%s25278_s0 + $0x78] sm:$0xff]  ;;  %v6488_v32 = vsel %vm3948_vm15, %v6482_v18, 0.0 }
 0xb6c   : > { %14220 = vperm.xlu0 %19760, %v14150_v23   ;;  %v6487_v23 = vadd.f32 %v6486_v29, %v22552_v19  ;;  %v14162_v19 = vld [vmem:[%s25278_s0 + $0xa8] sm:$0xff]  ;;  %v14164_v29 = vld [vmem:[%s25278_s0 + $0xb8] sm:$0xff] }
 0xb6e   : > { %14205 = vperm.xlu1 %19761, %v14147_v35   ;;  %v14153_v35 = vld [vmem:[%s25278_s0 + $0x60] sm:$0xff] }
 0xb70   : > { %14230 = vperm.xlu0 %19760, %v14152_v14   ;;  %v6489_v14 = vadd.f32 %v6488_v32, %v6487_v23  ;;  %v14166_v23 = vld [vmem:[%s25278_s0 + $0xc8] sm:$0xff] }
 0xb72   : > { %14215 = vperm.xlu1 %19761, %v14149_v33   ;;  %v14155_v33 = vld [vmem:[%s25278_s0 + $0x70] sm:$0xff]  ;;  %v6490_v7 = vrot.slane %v6489_v14, 4 }
 0xb74   : > { %14240 = vperm.xlu0 %19760, %v14154_v0   ;;  %v6491_v0 = vadd.f32 %v6490_v7, %v6489_v14  ;;  %v14165_v7 = vld [vmem:[%s25278_s0 + $0xc0] sm:$0xff] }
 0xb76   : > { %14225 = vperm.xlu1 %19761, %v14151_v43   ;;  %v14159_v43 = vld [vmem:[%s25278_s0 + $0x90] sm:$0xff]  ;;  %v6492_v18 = vrot.slane %v6491_v0, 2 }
 0xb78   : > { %14250 = vperm.xlu0 %19760, %v14156_v63   ;;  %v14161_v63 = vld [vmem:[%s25278_s0 + $0xa0] sm:$0xff]  ;;  %v6493_v32 = vadd.f32 %v6492_v18, %v6491_v0  ;;  %v10103_v18 = vadd.s32 72, %v20163_v1 }
 0xb7a   : > { %14235 = vperm.xlu1 %19761, %v14153_v35   ;;  %v10126_v35 = vand.u32 15, %v20163_v1  ;;  %v6494_v14 = vrot.slane %v6493_v32, 1 }
 0xb7c   : > { %14260 = vperm.xlu0 %19760, %v14158_v40   ;;  %v14163_v40 = vld [vmem:[%s25278_s0 + $0xb0] sm:$0xff]  ;;  %vm10158_vm1 = vcmp.ge.s32.totalorder %v10126_v35, 1  ;;  %v25302_v35 = vld [vmem:[#allocation38_spill] sm:$0xff] }
 0xb7e   : > { %14245 = vperm.xlu1 %19761, %v14155_v33   ;;  %v25299_v33 = vld [vmem:[#allocation33_spill] sm:$0xff] }
 0xb80   : > { %14270 = vperm.xlu0 %19760, %v14160_v51   ;;  %v10128_v51 = vand.u32 15, %v25299_v33  ;;  %v10133_v33 = vand.u32 15, %v25302_v35  ;;  %v14169_v35 = vld [vmem:[%s25278_s0 + $0xe0] sm:$0xff] }
 0xb82   : > { %14255 = vperm.xlu1 %19761, %v14157_v55   ;;  %v14168_v55 = vld [vmem:[%s25278_s0 + $0xd8] sm:$0xff]  ;;  %vm10160_vm14 = vcmp.ge.s32.totalorder %v10128_v51, 1  ;;  %vm10229_vm4 = vcmp.le.s32.totalorder %v10133_v33, 14 }
 0xb83   : > { %v22976_v51 = vsel %vm10160_vm14, 1.0, %v25297_v26 }
 0xb84   : > { %14280 = vperm.xlu0 %19760, %v14162_v19   ;;  %v25300_v19 = vld [vmem:[#allocation34_spill] sm:$0xff] }
 0xb85   : > { %25304 = vst [vmem:[#allocation34_spill] sm:$0xff] %v22982_v31 }
 0xb86   : > { %14265 = vperm.xlu1 %19761, %v14159_v43   ;;  %v10129_v43 = vand.u32 15, %v25300_v19 }
 0xb88   : > { %14290 = vperm.xlu0 %19760, %v14164_v29   ;;  %v10190_v29 = vsel %vm10158_vm1, 1.0, %v25297_v26  ;;  %vm10225_vm2 = vcmp.le.s32.totalorder %v10129_v43, 14 }
 0xb89   : > { %v22979_v19 = vrot.slane %v10190_v29, 1  ;;  %v10257_v29 = vsel %vm10225_vm2, 1.0, %v25297_v26 }
 0xb8a   : > { %14275 = vperm.xlu1 %19761, %v14161_v63   ;;  %v25301_v63 = vld [vmem:[#allocation36_spill] sm:$0xff] }
 0xb8b   : > { %v10131_v0 = vand.u32 15, %v25301_v63  ;;  %25303 = vst [vmem:[#allocation33_spill] sm:$0xff] %v22979_v19  ;;  %v10107_v63 = vadd.s32 104, %v20163_v1 }
 0xb8c   : > { %14300 = vperm.xlu0 %19760, %v14166_v23   ;;  %v10105_v23 = vadd.s32 88, %v20163_v1 }
 0xb8d   : > { %vm10227_vm3 = vcmp.le.s32.totalorder %v10131_v0, 14  ;;  %v10139_v0 = vand.u32 15, %v10107_v63 }
 0xb8e   : > { %14285 = vperm.xlu1 %19761, %v14163_v40   ;;  %v6495_v40 = vadd.f32 %v6494_v14, %v6493_v32  ;;  %v10137_v2 = vand.u32 15, %v10105_v23  ;;  %v25082_v32 = vrot.slane %v22976_v51, 1  ;;  %v10259_v43 = vsel %vm10227_vm3, 1.0, %v25297_v26 }
 0xb8f   : > { %v10111_v23 = vadd.s32 136, %v20163_v1  ;;  %v11219_v63 = vrot.slane %v10259_v43, 7  ;;  %vm10235_vm7 = vcmp.le.s32.totalorder %v10139_v0, 14 }
 0xb90   : > { %14310 = vperm.xlu0 %19760, %v14168_v55   ;;  %v14167_v55 = vld [vmem:[%s25278_s0 + $0xd0] sm:$0xff]  ;;  %v6496_v14 = vadd.f32 1e-08, %v6495_v40  ;;  %vm10233_vm6 = vcmp.le.s32.totalorder %v10137_v2, 14  ;;  %v23006_v40 = vsel %vm1835_vm10, %v22982_v31, %v25082_v32  ;;  %v10113_v32 = vadd.s32 152, %v20163_v1 }
 0xb91   : > { %25306 = vst [vmem:[#allocation38_spill] sm:$0xff] %v23006_v40  ;;  %v10265_v57 = vsel %vm10233_vm6, 1.0, %v25297_v26  ;;  %v10143_v60 = vand.u32 15, %v10111_v23 }
 0xb92   : > { %14295 = vperm.xlu1 %19761, %v14165_v7   ;;  %v10135_v7 = vand.u32 15, %v10103_v18  ;;  %v10261_v18 = vsel %vm10229_vm4, 1.0, %v25297_v26  ;;  %19845 = vrsqrt.f32 %v6496_v14  ;;  %v11231_v23 = vrot.slane %v10265_v57, 7 }
 0xb93   : > { %vm10239_vm9 = vcmp.le.s32.totalorder %v10143_v60, 14  ;;  %v10117_v57 = vadd.s32 184, %v20163_v1 }
 0xb94   : > { %14320 = vperm.xlu0 %19760, %v14170_v62   ;;  %v22993_v62 = vsel %vm1835_vm10, %v22979_v19, %v22982_v31  ;;  %vm10231_vm5 = vcmp.le.s32.totalorder %v10135_v7, 14  ;;  %v11223_v7 = vrot.slane %v10261_v18, 7  ;;  %v23074_v11 = vsel %vm1873_vm11, %v11231_v23, %v22907_v5 }
 0xb95   : > { %25305 = vst [vmem:[#allocation36_spill] sm:$0xff] %v22993_v62  ;;  %v23000_v33 = vmul.f32 %v22993_v62, %v22856_v38  ;;  %v10263_v2 = vsel %vm10231_vm5, 1.0, %v25297_v26  ;;  %v23013_v38 = vmul.f32 %v23006_v40, %v22865_v9  ;;  %v25308_v62 = vld [vmem:[#allocation35_spill] sm:$0xff]  ;;  %v10269_v40 = vsel %vm10237_vm8, 1.0, %v25297_v26 }
 0xb96   : > { %14305 = vperm.xlu1 %19761, %v14167_v55   ;;  %v14171_v55 = vld [vmem:[%s25278_s0 + $0xf0] sm:$0xff]  ;;  %v11227_v18 = vrot.slane %v10263_v2, 7  ;;  %v10145_v2 = vand.u32 15, %v10113_v32  ;;  %v23049_v17 = vsel %vm1873_vm11, %v11223_v7, %v22907_v5  ;;  %v23063_v32 = vsel %vm1873_vm11, %v22907_v5, %v11231_v23  ;;  %s25338_s0 = sld [smem:[#allocation9_spill]] }
 0xb97   : > { %25307 = vst [vmem:[#allocation54_spill] sm:$0xff] %v23013_v38  ;;  %25316 = vst [vmem:[#allocation60_spill] sm:$0xff] %v23049_v17  ;;  %v11239_v61 = vrot.slane %v10269_v40, 7  ;;  %v10149_v48 = vand.u32 15, %v10117_v57  ;;  %v10104_v23 = vadd.s32 80, %v20163_v1 }
 0xb98   : > { %14330 = vperm.xlu0 %19760, %v14172_v53   ;;  %v11215_v53 = vrot.slane %v10257_v29, 7  ;;  %v25309_v29 = vrot.slane %v22916_v3, 7  ;;  %v23039_v3 = vsel %vm1873_vm11, %v11219_v63, %v22907_v5  ;;  %v23055_v42 = vsel %vm1873_vm11, %v22907_v5, %v11227_v18  ;;  %25319 = vst [vmem:[#allocation63_spill] sm:$0xff] %v23063_v32 }
 0xb99   : > { %25314 = vst [vmem:[#allocation58_spill] sm:$0xff] %v23039_v3  ;;  %25317 = vst [vmem:[#allocation61_spill] sm:$0xff] %v23055_v42  ;;  %v23059_v60 = vsel %vm1873_vm11, %v11227_v18, %v22907_v5  ;;  %vm10241_vm13 = vcmp.le.s32.totalorder %v10145_v2, 14  ;;  %v10102_v18 = vadd.s32 64, %v20163_v1  ;;  %v10153_v32 = vand.u32 15, %v10121_v59 }
 0xb9a   : > { %14315 = vperm.xlu1 %19761, %v14169_v35   ;;  %v10130_v35 = vand.u32 15, %v25308_v62  ;;  %v23022_v36 = vsel %vm1873_vm11, %v25309_v29, %v22907_v5  ;;  %v23026_v43 = vsel %vm1873_vm11, %v22907_v5, %v11215_v53  ;;  %v23030_v0 = vsel %vm1873_vm11, %v11215_v53, %v22907_v5  ;;  %25318 = vst [vmem:[#allocation62_spill] sm:$0xff] %v23059_v60 }
 0xb9b   : > { %25310 = vst [vmem:[#allocation35_spill] sm:$0xff] %v23022_v36  ;;  %25311 = vst [vmem:[#allocation55_spill] sm:$0xff] %v23026_v43  ;;  %v10267_v62 = vsel %vm10235_vm7, 1.0, %v25297_v26  ;;  %v23043_v29 = vsel %vm1873_vm11, %v22907_v5, %v11223_v7  ;;  %v10115_v53 = vadd.s32 168, %v20163_v1  ;;  %v10273_v57 = vsel %vm10241_vm13, 1.0, %v25297_v26 }
 0xb9c   : > { %25312 = vst [vmem:[#allocation56_spill] sm:$0xff] %v23030_v0  ;;  %25315 = vst [vmem:[#allocation59_spill] sm:$0xff] %v23043_v29  ;;  %vm10162_vm12 = vcmp.ge.s32.totalorder %v10130_v35, 1  ;;  %v11235_v14 = vrot.slane %v10267_v62, 7  ;;  %v25320_v35 = vld [vmem:[#allocation37_spill] sm:$0xff]  ;;  %v10271_v62 = vsel %vm10239_vm9, 1.0, %v25297_v26  ;;  %v23069_v47 = vpop.eup %19845 }
 0xb9d   : > { %v10132_v7 = vand.u32 15, %v25320_v35  ;;  %v10147_v34 = vand.u32 15, %v10115_v53  ;;  %v10194_v56 = vsel %vm10162_vm12, 1.0, %v25297_v26  ;;  %25321 = vst [vmem:[#allocation37_spill] sm:$0xff] %v23074_v11  ;;  %v11243_v40 = vrot.slane %v10271_v62, 7 }
 0xb9e   : > { %14325 = vperm.xlu1 %19761, %v14171_v55   ;;  %v23035_v55 = vsel %vm1873_vm11, %v22907_v5, %v11219_v63  ;;  %v10119_v63 = vadd.s32 200, %v20163_v1  ;;  %v23078_v35 = vsel %vm1873_vm11, %v22907_v5, %v11235_v14  ;;  %v23083_v46 = vsel %vm1873_vm11, %v11235_v14, %v22907_v5 }
 0xb9f   : > { %25313 = vst [vmem:[#allocation57_spill] sm:$0xff] %v23035_v55  ;;  %25322 = vst [vmem:[#allocation64_spill] sm:$0xff] %v23078_v35  ;;  %v10325_v2 = vrot.slane %v10194_v56, 1  ;;  %vm10164_vm0 = vcmp.ge.s32.totalorder %v10132_v7, 1  ;;  %vm10243_vm1 = vcmp.le.s32.totalorder %v10147_v34, 14  ;;  %v23089_v11 = vsel %vm1873_vm11, %v22907_v5, %v11239_v61 }
 0xba0   : > { %v10151_v53 = vand.u32 15, %v10119_v63  ;;  %25323 = vst [vmem:[#allocation65_spill] sm:$0xff] %v23083_v46  ;;  %25324 = vst [vmem:[#allocation66_spill] sm:$0xff] %v23089_v11  ;;  %v23093_v63 = vsel %vm1873_vm11, %v11239_v61, %v22907_v5  ;;  %vm10245_vm14 = vcmp.le.s32.totalorder %v10149_v48, 14  ;;  %v10134_v14 = vand.u32 15, %v10102_v18 }
 0xba1   : > { %25325 = vst [vmem:[#allocation67_spill] sm:$0xff] %v23093_v63  ;;  %v10155_v62 = vand.u32 15, %v10123_v30  ;;  %v25326_v56 = vrot.slane %v22976_v51, 1  ;;  %v10196_v59 = vsel %vm10164_vm0, 1.0, %v25297_v26  ;;  %v23104_v7 = vsel %vm1873_vm11, %v22907_v5, %v11243_v40 }
 0xba2   : > { %vm10247_vm2 = vcmp.le.s32.totalorder %v10151_v53, 14  ;;  %25328 = vst [vmem:[#allocation69_spill] sm:$0xff] %v23104_v7  ;;  %v23108_v61 = vsel %vm1873_vm11, %v11243_v40, %v22907_v5  ;;  %v11247_v48 = vrot.slane %v10273_v57, 7  ;;  %v10275_v18 = vsel %vm10243_vm1, 1.0, %v25297_v26 }
 0xba3   : > { %v23099_v34 = vsel %vm1835_vm10, %v25326_v56, %v22982_v31  ;;  %25329 = vst [vmem:[#allocation70_spill] sm:$0xff] %v23108_v61  ;;  %v10277_v30 = vsel %vm10245_vm14, 1.0, %v25297_v26  ;;  %vm10249_vm3 = vcmp.le.s32.totalorder %v10153_v32, 14  ;;  %v23114_v51 = vsel %vm1835_vm10, %v22982_v31, %v10325_v2 }
 0xba4   : > { %25327 = vst [vmem:[#allocation68_spill] sm:$0xff] %v23099_v34  ;;  %25330 = vst [vmem:[#allocation71_spill] sm:$0xff] %v23114_v51  ;;  %v10136_v53 = vand.u32 15, %v10104_v23  ;;  %v10279_v56 = vsel %vm10247_vm2, 1.0, %v25297_v26  ;;  %v10064_v34 = vld [vmem:[#allocation5] sm:$0xff]  ;;  %v23119_v7 = vmul.f32 %v22979_v19, %v22865_v9  ;;  %v10329_v40 = vrot.slane %v10196_v59, 1 }
 0xba5   : > { %vm10166_vm4 = vcmp.ge.s32.totalorder %v10134_v14, 1  ;;  %v11251_v57 = vrot.slane %v10275_v18, 7  ;;  %vm10251_vm5 = vcmp.le.s32.totalorder %v10155_v62, 14  ;;  %v10125_v32 = vadd.s32 248, %v20163_v1 }
 0xba6   : > { %25331 = vst [vmem:[#allocation72_spill] sm:$0xff] %v23119_v7  ;;  %v23125_v63 = vsel %vm1873_vm11, %v22907_v5, %v11247_v48  ;;  %v23129_v23 = vsel %vm1873_vm11, %v11247_v48, %v22907_v5  ;;  %v11255_v51 = vrot.slane %v10277_v30, 7  ;;  %v10281_v9 = vsel %vm10249_vm3, 1.0, %v25297_v26 }
 0xba7   : > { %25332 = vst [vmem:[#allocation73_spill] sm:$0xff] %v23125_v63  ;;  %25333 = vst [vmem:[#allocation74_spill] sm:$0xff] %v23129_v23  ;;  %v11259_v11 = vrot.slane %v10279_v56, 7  ;;  %v10414_v14 = vmul.f32 %v22979_v19, %v10064_v34  ;;  %v10198_v62 = vsel %vm10166_vm4, 1.0, %v25297_v26  ;;  %vm10168_vm6 = vcmp.ge.s32.totalorder %v10136_v53, 1 }
 0xba8   : > { %v10283_v59 = vsel %vm10251_vm5, 1.0, %v25297_v26  ;;  %v23137_v18 = vsel %vm1835_vm10, %v10325_v2, %v22982_v31  ;;  %v23142_v48 = vsel %vm1835_vm10, %v22982_v31, %v10329_v40  ;;  %v23146_v30 = vsel %vm1873_vm11, %v22907_v5, %v11251_v57 }
 0xba9   : > { %25334 = vst [vmem:[#allocation75_spill] sm:$0xff] %v23137_v18  ;;  %25335 = vst [vmem:[#allocation76_spill] sm:$0xff] %v23142_v48  ;;  %v23150_v34 = vsel %vm1873_vm11, %v11251_v57, %v22907_v5  ;;  %v11263_v53 = vrot.slane %v10281_v9, 7  ;;  %v10157_v56 = vand.u32 15, %v10125_v32  ;;  %v23154_v2 = vsel %vm1873_vm11, %v22907_v5, %v11255_v51 }
 0xbaa   : > { %25336 = vst [vmem:[#allocation77_spill] sm:$0xff] %v23146_v30  ;;  %25337 = vst [vmem:[#allocation78_spill] sm:$0xff] %v23150_v34  ;;  %v23158_v61 = vsel %vm1873_vm11, %v11255_v51, %v22907_v5  ;;  %v10333_v19 = vrot.slane %v10198_v62, 1  ;;  %v23161_v7 = vsel %vm10168_vm6, 1.0, %v25297_v26  ;;  %v23165_v57 = vsel %vm1873_vm11, %v22907_v5, %v11259_v11 }
 0xbab   : > { %25339 = vst [vmem:[#allocation79_spill] sm:$0xff] %v23154_v2  ;;  %25340 = vst [vmem:[#allocation80_spill] sm:$0xff] %v23158_v61  ;;  %v11267_v9 = vrot.slane %v10283_v59, 7  ;;  %v10824_v18 = vrot.slane %v10414_v14, 7  ;;  %v25343_v32 = vrot.slane %v23013_v38, 7  ;;  %v25344_v34 = vrot.slane %v23000_v33, 7 }
 0xbac   : > { %25341 = vst [vmem:[#allocation81_spill] sm:$0xff] %v23161_v7  ;;  %25342 = vst [vmem:[#allocation82_spill] sm:$0xff] %v23165_v57  ;;  %v23177_v61 = vsel %vm1873_vm11, %v11259_v11, %v22907_v5  ;;  %v23181_v30 = vsel %vm1835_vm10, %v10329_v40, %v22982_v31  ;;  %v10106_v14 = vadd.s32 96, %v20163_v1  ;;  %v23185_v59 = vld [vmem:[%s25338_s0] ss:$0 sm:$0xff]  ;;  %vm10253_vm7 = vcmp.le.s32.totalorder %v10157_v56, 14 }
 0xbad   : > { %v23172_v2 = vsel %vm1873_vm11, %v25344_v34, %v25343_v32  ;;  %25346 = vst [vmem:[#allocation84_spill] sm:$0xff] %v23177_v61  ;;  %25347 = vst [vmem:[#allocation85_spill] sm:$0xff] %v23181_v30  ;;  %v23190_v34 = vsel %vm1873_vm11, %v22907_v5, %v11263_v53  ;;  %v23196_v32 = vsel %vm1873_vm11, %v11263_v53, %v22907_v5  ;;  %v10108_v30 = vadd.s32 112, %v20163_v1  ;;  %s25556_s0 = sld [smem:[#allocation20_spill]] }
 0xbae   : > { %25345 = vst [vmem:[#allocation83_spill] sm:$0xff] %v23172_v2  ;;  %25348 = vst [vmem:[#allocation86_spill] sm:$0xff] %v23190_v34  ;;  %v23200_v40 = vsel %vm1835_vm10, %v22982_v31, %v10333_v19  ;;  %v23206_v56 = vsel %vm1873_vm11, %v22907_v5, %v11267_v9  ;;  %v23215_v53 = vsel %vm1873_vm11, %v11267_v9, %v22907_v5 }
 0xbaf   : > { %25349 = vst [vmem:[#allocation87_spill] sm:$0xff] %v23196_v32  ;;  %25350 = vst [vmem:[#allocation88_spill] sm:$0xff] %v23200_v40 }
 0xbb0   : > { %25351 = vst [vmem:[#allocation89_spill] sm:$0xff] %v23206_v56  ;;  %25354 = vst [vmem:[#allocation91_spill] sm:$0xff] %v23215_v53 }
 0xbb4   : > { %v18031_v48 = vpop.f32.mrb[20].mxu1 }
 0xbb5   : > { %v9527_v51 = vmul.f32 %v23069_v47, %v18031_v48  ;;  %v9335_v62 = vpop.f32.mrb[21].mxu1  ;;  %v25352_v48 = vrot.slane %v23000_v33, 7  ;;  %v23224_v33 = vsel %vm1835_vm10, %v10333_v19, %v22982_v31 }
 0xbb6   : > { %v9526_v38 = vmul.f32 %v23069_v47, %v9335_v62  ;;  %25355 = vst [vmem:[#allocation92_spill] sm:$0xff] %v23224_v33 }
 0xbb7   : > { %v9751_v11 = vadd.f32 %v22736_v4, %v9527_v51  ;;  %v23211_v4 = vsel %vm1873_vm11, %v10824_v18, %v25352_v48  ;;  %v25356_v18 = vrot.slane %v23161_v7, 1 }
 0xbb8   : > { %v9750_v62 = vadd.f32 %v22733_v21, %v9526_v38  ;;  %v18034_v2 = vpop.f32.mrb[22].mxu1  ;;  %25353 = vst [vmem:[#allocation90_spill] sm:$0xff] %v23211_v4  ;;  %v10285_v21 = vsel %vm10253_vm7, 1.0, %v25297_v26  ;;  %v10138_v38 = vand.u32 15, %v10106_v14 }
 0xbb9   : > { %v9790_v51 = vadd.f32 %v23185_v59, %v9751_v11  ;;  %v9529_v40 = vmul.f32 %v23069_v47, %v18034_v2  ;;  %v9345_v32 = vpop.f32.mrb[23].mxu1  ;;  %v23230_v9 = vsel %vm1835_vm10, %v22982_v31, %v25356_v18  ;;  %v10140_v11 = vand.u32 15, %v10108_v30 }
 0xbba   : > { %v9789_v34 = vadd.f32 %v23185_v59, %v9750_v62  ;;  %v9528_v56 = vmul.f32 %v23069_v47, %v9345_v32  ;;  %25357 = vst [vmem:[#allocation93_spill] sm:$0xff] %v23230_v9  ;;  %v23234_v4 = vrot.slane %v10285_v21, 7  ;;  %vm23238_vm12 = vcmp.ge.s32.totalorder %v10138_v38, 1 }
 0xbbb   : > { %vm9822_vm8 = vcmp.ge.f32.partialorder %v9790_v51, 0.0  ;;  %v9854_v2 = vmul.f32 0.2, %v9790_v51  ;;  %v9753_v48 = vadd.f32 %v22747_v25, %v9529_v40  ;;  %vm23247_vm1 = vcmp.ge.s32.totalorder %v10140_v11, 1 }
 0xbbc   : > { %vm9821_vm9 = vcmp.ge.f32.partialorder %v9789_v34, 0.0  ;;  %v9853_v14 = vmul.f32 0.2, %v9789_v34  ;;  %v9752_v62 = vadd.f32 %v22741_v22, %v9528_v56  ;;  %v18037_v32 = vpop.f32.mrb[24].mxu1  ;;  %25358 = vst [vmem:[#allocation94_spill] sm:$0xff] %v23234_v4 }
 0xbbd   : > { %v9886_v19 = vsel %vm9822_vm8, %v9790_v51, %v9854_v2  ;;  %v9792_v33 = vadd.f32 %v23185_v59, %v9753_v48  ;;  %v9531_v7 = vmul.f32 %v23069_v47, %v18037_v32  ;;  %v9355_v53 = vpop.f32.mrb[25].mxu1 }
 0xbbe   : > { %v9918_v9 = vmul.f32 1.4142135, %v9886_v19  ;;  %v9885_v25 = vsel %vm9821_vm9, %v9789_v34, %v9853_v14  ;;  %v9791_v30 = vadd.f32 %v23185_v59, %v9752_v62  ;;  %v9530_v40 = vmul.f32 %v23069_v47, %v9355_v53 }
 0xbbf   : > { %v9917_v22 = vmul.f32 1.4142135, %v9885_v25  ;;  %vm9824_vm13 = vcmp.ge.f32.partialorder %v9792_v33, 0.0  ;;  %v9856_v56 = vmul.f32 0.2, %v9792_v33  ;;  %v9755_v51 = vadd.f32 %v22756_v49, %v9531_v7 }
 0xbc0   : > { %10033 = vst.msk [vmem:[#allocation5 + $0x20] sm:$0xff] %vm3948_vm15, %v9918_v9  ;;  %vm9823_vm0 = vcmp.ge.f32.partialorder %v9791_v30, 0.0  ;;  %v9855_v21 = vmul.f32 0.2, %v9791_v30  ;;  %v9754_v38 = vadd.f32 %v22750_v37, %v9530_v40  ;;  %v18040_v2 = vpop.f32.mrb[26].mxu1  ;;  %v23255_v49 = vadd.s32 128, %v20163_v1 }
 0xbc1   : > { %10032 = vst.msk [vmem:[#allocation5 + $0x18] sm:$0xff] %vm3948_vm15, %v9917_v22  ;;  %v9888_v34 = vsel %vm9824_vm13, %v9792_v33, %v9856_v56  ;;  %v9794_v53 = vadd.f32 %v23185_v59, %v9755_v51  ;;  %v9533_v14 = vmul.f32 %v23069_v47, %v18040_v2  ;;  %v9365_v62 = vpop.f32.mrb[27].mxu1 }
 0xbc2   : > { %v9920_v7 = vmul.f32 1.4142135, %v9888_v34  ;;  %v9887_v9 = vsel %vm9823_vm0, %v9791_v30, %v9855_v21  ;;  %v9793_v37 = vadd.f32 %v23185_v59, %v9754_v38  ;;  %v9532_v11 = vmul.f32 %v23069_v47, %v9365_v62 }
 0xbc3   : > { %v9919_v32 = vmul.f32 1.4142135, %v9887_v9  ;;  %vm9826_vm14 = vcmp.ge.f32.partialorder %v9794_v53, 0.0  ;;  %v9858_v19 = vmul.f32 0.2, %v9794_v53  ;;  %v9757_v25 = vadd.f32 %v22820_v13, %v9533_v14 }
 0xbc4   : > { %10035 = vst.msk [vmem:[#allocation5 + $0x30] sm:$0xff] %vm3948_vm15, %v9920_v7  ;;  %vm9825_vm2 = vcmp.ge.f32.partialorder %v9793_v37, 0.0  ;;  %v9857_v33 = vmul.f32 0.2, %v9793_v37  ;;  %v9756_v40 = vadd.f32 %v22761_v28, %v9532_v11  ;;  %v18043_v22 = vpop.f32.mrb[28].mxu1  ;;  %v23265_v30 = vsel %vm23238_vm12, 1.0, %v25297_v26 }
 0xbc5   : > { %10034 = vst.msk [vmem:[#allocation5 + $0x28] sm:$0xff] %vm3948_vm15, %v9919_v32  ;;  %v9890_v56 = vsel %vm9826_vm14, %v9794_v53, %v9858_v19  ;;  %v9796_v51 = vadd.f32 %v23185_v59, %v9757_v25  ;;  %v9535_v21 = vmul.f32 %v23069_v47, %v18043_v22  ;;  %v9375_v13 = vpop.f32.mrb[29].mxu1  ;;  %v23273_v38 = vsel %vm23247_vm1, 1.0, %v25297_v26 }
 0xbc6   : > { %v9922_v28 = vmul.f32 1.4142135, %v9890_v56  ;;  %v9889_v2 = vsel %vm9825_vm2, %v9793_v37, %v9857_v33  ;;  %v9795_v34 = vadd.f32 %v23185_v59, %v9756_v40  ;;  %v9534_v18 = vmul.f32 %v23069_v47, %v9375_v13 }
 0xbc7   : > { %v9921_v14 = vmul.f32 1.4142135, %v9889_v2  ;;  %vm9828_vm3 = vcmp.ge.f32.partialorder %v9796_v51, 0.0  ;;  %v9860_v62 = vmul.f32 0.2, %v9796_v51  ;;  %v9759_v53 = vadd.f32 %v22837_v45, %v9535_v21  ;;  %v23278_v7 = vld [vmem:[#allocation5 + $0x20] sm:$0xff] }
 0xbc8   : > { %10037 = vst.msk [vmem:[#allocation5 + $0x40] sm:$0xff] %vm3948_vm15, %v9922_v28  ;;  %vm9827_vm4 = vcmp.ge.f32.partialorder %v9795_v34, 0.0  ;;  %v9859_v9 = vmul.f32 0.2, %v9795_v34  ;;  %v9758_v48 = vadd.f32 %v22848_v27, %v9534_v18  ;;  %v18046_v11 = vpop.f32.mrb[30].mxu1  ;;  %v23282_v32 = vld [vmem:[#allocation5 + $0x18] sm:$0xff]  ;;  %v23286_v37 = vmul.f32 %v23026_v43, %v23278_v7 }
 0xbc9   : > { %10036 = vst.msk [vmem:[#allocation5 + $0x38] sm:$0xff] %vm3948_vm15, %v9921_v14  ;;  %v9892_v19 = vsel %vm9828_vm3, %v9796_v51, %v9860_v62  ;;  %v9798_v45 = vadd.f32 %v23185_v59, %v9759_v53  ;;  %v9537_v25 = vmul.f32 %v23069_v47, %v18046_v11  ;;  %v9385_v33 = vpop.f32.mrb[31].mxu1  ;;  %18084 = vmatprep.mubr.msk.f32.mxu1 %vm3948_vm15, %v23282_v32  ;;  %v25403_v43 = vld [vmem:[#allocation75_spill] sm:$0xff] }
 0xbca   : > { %v11308_v27 = vmul.f32 %v23022_v36, %v23282_v32  ;;  %v9924_v40 = vmul.f32 1.4142135, %v9892_v19  ;;  %v9891_v22 = vsel %vm9827_vm4, %v9795_v34, %v9859_v9  ;;  %v9797_v56 = vadd.f32 %v23185_v59, %v9758_v48  ;;  %18085 = vmatmul.mubr.msk.f32.gmra.mrb[54].mxu1 %vm3948_vm15, %v23278_v7 }
 0xbcb   : > { %v9536_v21 = vmul.f32 %v23069_v47, %v9385_v33  ;;  %v9923_v51 = vmul.f32 1.4142135, %v9891_v22  ;;  %vm9830_vm5 = vcmp.ge.f32.partialorder %v9798_v45, 0.0  ;;  %v9862_v13 = vmul.f32 0.2, %v9798_v45 }
 0xbcc   : > { %v9761_v28 = vadd.f32 %v22850_v58, %v9537_v25  ;;  %10039 = vst.msk [vmem:[#allocation5 + $0x50] sm:$0xff] %vm3948_vm15, %v9924_v40  ;;  %vm9829_vm6 = vcmp.ge.f32.partialorder %v9797_v56, 0.0  ;;  %v9861_v2 = vmul.f32 0.2, %v9797_v56  ;;  %v18049_v14 = vpop.f32.mrb[32].mxu1  ;;  %v23302_v34 = vld [vmem:[#allocation5 + $0x28] sm:$0xff] }
 0xbcd   : > { %v9760_v18 = vadd.f32 %v22858_v12, %v9536_v21  ;;  %v11382_v62 = vrot.slane %v11308_v27, 1  ;;  %10038 = vst.msk [vmem:[#allocation5 + $0x48] sm:$0xff] %vm3948_vm15, %v9923_v51  ;;  %v9894_v53 = vsel %vm9830_vm5, %v9798_v45, %v9862_v13  ;;  %v9539_v48 = vmul.f32 %v23069_v47, %v18049_v14  ;;  %v9395_v11 = vpop.f32.mrb[33].mxu1  ;;  %18087 = vmatprep.mubr.msk.f32.mxu1 %vm3948_vm15, %v23302_v34  ;;  %v23309_v58 = vld [vmem:[#allocation5 + $0x30] sm:$0xff] }
 0xbce   : > { %v9800_v9 = vadd.f32 %v23185_v59, %v9761_v28  ;;  %v11384_v19 = vrot.slane %v23286_v37, 1  ;;  %v9926_v12 = vmul.f32 1.4142135, %v9894_v53  ;;  %v9893_v25 = vsel %vm9829_vm6, %v9797_v56, %v9861_v2  ;;  %18088 = vmatmul.mubr.msk.f32.gmra.mrb[56].mxu1 %vm3948_vm15, %v23309_v58 }
 0xbcf   : > { %v9799_v33 = vadd.f32 %v23185_v59, %v9760_v18  ;;  %v9538_v27 = vmul.f32 %v23069_v47, %v9395_v11  ;;  %v9925_v45 = vmul.f32 1.4142135, %v9893_v25  ;;  %v9763_v22 = vadd.f32 %v22860_v15, %v9539_v48 }
 0xbd0   : > { %vm9832_vm7 = vcmp.ge.f32.partialorder %v9800_v9, 0.0  ;;  %v9864_v40 = vmul.f32 0.2, %v9800_v9  ;;  %10041 = vst.msk [vmem:[#allocation5 + $0x60] sm:$0xff] %vm3948_vm15, %v9926_v12  ;;  %v25363_v56 = vrot.slane %v22928_v16, 1  ;;  %v18052_v28 = vpop.f32.mrb[34].mxu1  ;;  %v11385_v15 = vsel %vm1835_vm10, %v11382_v62, %v11384_v19 }
 0xbd1   : > { %vm9831_vm8 = vcmp.ge.f32.partialorder %v9799_v33, 0.0  ;;  %v9863_v21 = vmul.f32 0.2, %v9799_v33  ;;  %v9762_v51 = vadd.f32 %v22869_v52, %v9538_v27  ;;  %v23322_v2 = vld [vmem:[#allocation5 + $0x38] sm:$0xff]  ;;  %10040 = vst.msk [vmem:[#allocation5 + $0x58] sm:$0xff] %vm3948_vm15, %v9925_v45  ;;  %v9802_v14 = vadd.f32 %v23185_v59, %v9763_v22  ;;  %v9405_v53 = vpop.f32.mrb[35].mxu1 }
 0xbd2   : > { %v11383_v13 = vsel %vm1835_vm10, %v25363_v56, %v11382_v62  ;;  %v9896_v18 = vsel %vm9832_vm7, %v9800_v9, %v9864_v40  ;;  %v9541_v52 = vmul.f32 %v23069_v47, %v18052_v28  ;;  %v9540_v9 = vmul.f32 %v23069_v47, %v9405_v53  ;;  %18090 = vmatprep.mubr.msk.f32.mxu1 %vm3948_vm15, %v23322_v2  ;;  %v23339_v27 = vld [vmem:[#allocation5 + $0x40] sm:$0xff]  ;;  %v23359_v53 = vpop.permute.xlu0 %14175 }
 0xbd3   : > { %18186 = vmatmul.mubr.msk.f32.vlgmr.msra.gmra.mrb[18].mxu0 %vm3948_vm15, %v11383_v13  ;;  %v9928_v16 = vmul.f32 1.4142135, %v9896_v18  ;;  %v9895_v48 = vsel %vm9831_vm8, %v9799_v33, %v9863_v21  ;;  %v9801_v11 = vadd.f32 %v23185_v59, %v9762_v51  ;;  %vm9834_vm9 = vcmp.ge.f32.partialorder %v9802_v14, 0.0  ;;  %18091 = vmatmul.mubr.msk.f32.gmra.mrb[58].mxu1 %vm3948_vm15, %v23339_v27  ;;  %25364 = vst [vmem:[#allocation95_spill] sm:$0xff] %v23359_v53 }
 0xbd4   : > { %19140 = vmatpush3.bf16.msra.mxu0 %v22813_v44  ;;  %18188 = vmatprep.mubr.msk.f32.mxu0 %vm3948_vm15, %v11385_v15  ;;  %v9927_v12 = vmul.f32 1.4142135, %v9895_v48  ;;  %v9866_v25 = vmul.f32 0.2, %v9802_v14  ;;  %v9765_v62 = vadd.f32 %v22871_v24, %v9541_v52  ;;  %v9764_v33 = vadd.f32 %v22873_v41, %v9540_v9  ;;  %v18055_v40 = vpop.f32.mrb[36].mxu1  ;;  %v23347_v22 = vld [vmem:[#allocation5 + $0x48] sm:$0xff] }
 0xbd5   : > { %19142 = vmatprep.subr.bf16.mxu0 %v22816_v39  ;;  %10043 = vst.msk [vmem:[#allocation5 + $0x70] sm:$0xff] %vm3948_vm15, %v9928_v16  ;;  %vm9833_vm12 = vcmp.ge.f32.partialorder %v9801_v11, 0.0  ;;  %v9865_v44 = vmul.f32 0.2, %v9801_v11  ;;  %v11310_v45 = vmul.f32 %v23030_v0, %v23302_v34  ;;  %v11311_v51 = vmul.f32 %v23035_v55, %v23309_v58  ;;  %v9415_v41 = vpop.f32.mrb[37].mxu1  ;;  %18093 = vmatprep.mubr.msk.f32.mxu1 %vm3948_vm15, %v23347_v22  ;;  %v23357_v52 = vld [vmem:[#allocation5 + $0x50] sm:$0xff] }
 0xbd6   : > { %10042 = vst.msk [vmem:[#allocation5 + $0x68] sm:$0xff] %vm3948_vm15, %v9927_v12  ;;  %v9898_v24 = vsel %vm9834_vm9, %v9802_v14, %v9866_v25  ;;  %v9804_v21 = vadd.f32 %v23185_v59, %v9765_v62  ;;  %v9543_v56 = vmul.f32 %v23069_v47, %v18055_v40  ;;  %v9803_v18 = vadd.f32 %v23185_v59, %v9764_v33 }
 0xbd7   : > { %v9930_v13 = vmul.f32 1.4142135, %v9898_v24  ;;  %v9897_v28 = vsel %vm9833_vm12, %v9801_v11, %v9865_v44  ;;  %v11386_v15 = vrot.slane %v11310_v45, 1  ;;  %v11388_v48 = vrot.slane %v11311_v51, 1  ;;  %18094 = vmatmul.mubr.msk.f32.gmra.mrb[60].mxu1 %vm3948_vm15, %v23357_v52 }
 0xbd8   : > { %v9929_v14 = vmul.f32 1.4142135, %v9897_v28  ;;  %vm9836_vm13 = vcmp.ge.f32.partialorder %v9804_v21, 0.0  ;;  %v9868_v16 = vmul.f32 0.2, %v9804_v21  ;;  %vm9835_vm0 = vcmp.ge.f32.partialorder %v9803_v18, 0.0 }
 0xbd9   : > { %10045 = vst.msk [vmem:[#allocation5 + $0x80] sm:$0xff] %vm3948_vm15, %v9930_v13  ;;  %v9867_v9 = vmul.f32 0.2, %v9803_v18  ;;  %v11387_v12 = vsel %vm1835_vm10, %v11384_v19, %v11386_v15  ;;  %v9767_v11 = vadd.f32 %v22875_v8, %v9543_v56  ;;  %v18058_v25 = vpop.f32.mrb[38].mxu1  ;;  %v23368_v62 = vld [vmem:[#allocation5 + $0x58] sm:$0xff]  ;;  %v11389_v33 = vsel %vm1835_vm10, %v11386_v15, %v11388_v48  ;;  %v23384_v28 = vld [vmem:[#allocation5 + $0x60] sm:$0xff] }
 0xbda   : > { %10044 = vst.msk [vmem:[#allocation5 + $0x78] sm:$0xff] %vm3948_vm15, %v9929_v14  ;;  %v9900_v44 = vsel %vm9836_vm13, %v9804_v21, %v9868_v16  ;;  %18189 = vmatmul.mubr.msk.f32.gmra.mrb[20].mxu0 %vm3948_vm15, %v11387_v12  ;;  %v9542_v37 = vmul.f32 %v23069_v47, %v9415_v41  ;;  %v11312_v19 = vmul.f32 %v23039_v3, %v23322_v2  ;;  %v9425_v8 = vpop.f32.mrb[39].mxu1  ;;  %v14553_v15 = vld [vmem:[%s20146_s6 + $0x8] sm:$0xff] }
 0xbdb   : > { %v9932_v45 = vmul.f32 1.4142135, %v9900_v44  ;;  %v9899_v40 = vsel %vm9835_vm0, %v9803_v18, %v9867_v9  ;;  %18191 = vmatprep.mubr.msk.f32.mxu0 %vm3948_vm15, %v11389_v33  ;;  %v9806_v24 = vadd.f32 %v23185_v59, %v9767_v11  ;;  %v11313_v21 = vmul.f32 %v23043_v29, %v23339_v27  ;;  %18096 = vmatprep.mubr.msk.f32.mxu1 %vm3948_vm15, %v23368_v62  ;;  %v14562_v18 = vpop.permute.xlu0 %14561 }
 0xbdc   : > { %v9931_v51 = vmul.f32 1.4142135, %v9899_v40  ;;  %v9766_v56 = vadd.f32 %v22877_v20, %v9542_v37  ;;  %v11390_v41 = vrot.slane %v11312_v19, 1  ;;  %v9545_v13 = vmul.f32 %v23069_v47, %v18058_v25  ;;  %18097 = vmatmul.mubr.msk.f32.gmra.mrb[62].mxu1 %vm3948_vm15, %v23384_v28  ;;  %v18061_v12 = vpop.f32.mrb[40].mxu1 }
 0xbdd   : > { %10047 = vst.msk [vmem:[#allocation5 + $0x90] sm:$0xff] %vm3948_vm15, %v9932_v45  ;;  %vm9838_vm1 = vcmp.ge.f32.partialorder %v9806_v24, 0.0  ;;  %v9870_v14 = vmul.f32 0.2, %v9806_v24  ;;  %v11392_v16 = vrot.slane %v11313_v21, 1  ;;  %v9544_v9 = vmul.f32 %v23069_v47, %v9425_v8  ;;  %v23391_v11 = vld [vmem:[#allocation5 + $0x68] sm:$0xff]  ;;  %v23406_v21 = vpop.permute.xlu1 %14180 }
 0xbde   : > { %10046 = vst.msk [vmem:[#allocation5 + $0x88] sm:$0xff] %vm3948_vm15, %v9931_v51  ;;  %v9805_v20 = vadd.f32 %v23185_v59, %v9766_v56  ;;  %v11391_v25 = vsel %vm1835_vm10, %v11388_v48, %v11390_v41  ;;  %v9769_v44 = vadd.f32 %v22879_v10, %v9545_v13  ;;  %v11314_v33 = vmul.f32 %v23049_v17, %v23347_v22  ;;  %v9435_v37 = vpop.f32.mrb[41].mxu1  ;;  %v23410_v56 = vld [vmem:[#allocation5 + $0x70] sm:$0xff] }
 0xbdf   : > { %18099 = vmatprep.mubr.msk.f32.mxu1 %vm3948_vm15, %v23391_v11  ;;  %v9902_v19 = vsel %vm9838_vm1, %v9806_v24, %v9870_v14  ;;  %18192 = vmatmul.mubr.msk.f32.gmra.mrb[22].mxu0 %vm3948_vm15, %v11391_v25  ;;  %v11393_v8 = vsel %vm1835_vm10, %v11390_v41, %v11392_v16  ;;  %v9768_v45 = vadd.f32 %v22881_v50, %v9544_v9 }
 0xbe0   : > { %v23404_v40 = vmul.f32 %v14562_v18, %v14553_v15  ;;  %25365 = vst [vmem:[#allocation96_spill] sm:$0xff] %v23406_v21  ;;  %v9934_v48 = vmul.f32 1.4142135, %v9902_v19  ;;  %vm9837_vm14 = vcmp.ge.f32.partialorder %v9805_v20, 0.0  ;;  %v9869_v10 = vmul.f32 0.2, %v9805_v20  ;;  %18194 = vmatprep.mubr.msk.f32.mxu0 %vm3948_vm15, %v11393_v8  ;;  %18100 = vmatmul.mubr.msk.f32.gmra.mrb[64].mxu1 %vm3948_vm15, %v23410_v56 }
 0xbe1   : > { %v9808_v51 = vadd.f32 %v23185_v59, %v9769_v44  ;;  %v9807_v24 = vadd.f32 %v23185_v59, %v9768_v45  ;;  %v11394_v13 = vrot.slane %v11314_v33, 1  ;;  %v11315_v41 = vmul.f32 %v23055_v42, %v23357_v52  ;;  %v18064_v15 = vpop.f32.mrb[42].mxu1  ;;  %v23418_v18 = vld [vmem:[#allocation5 + $0x78] sm:$0xff]  ;;  %v14557_v53 = vpop.permute.xlu1 %14556 }
 0xbe2   : > { %v9547_v50 = vmul.f32 %v23069_v47, %v18061_v12  ;;  %10049 = vst.msk [vmem:[#allocation5 + $0xa0] sm:$0xff] %vm3948_vm15, %v9934_v48  ;;  %v9901_v14 = vsel %vm9837_vm14, %v9805_v20, %v9869_v10  ;;  %v9546_v25 = vmul.f32 %v23069_v47, %v9435_v37  ;;  %v9445_v44 = vpop.f32.mrb[43].mxu1  ;;  %18102 = vmatprep.mubr.msk.f32.mxu1 %vm3948_vm15, %v23418_v18  ;;  %v14552_v10 = vld [vmem:[%s20146_s6] sm:$0xff] }
 0xbe3   : > { %vm9840_vm2 = vcmp.ge.f32.partialorder %v9808_v51, 0.0  ;;  %v9872_v9 = vmul.f32 0.2, %v9808_v51  ;;  %v9933_v33 = vmul.f32 1.4142135, %v9901_v14  ;;  %vm9839_vm3 = vcmp.ge.f32.partialorder %v9807_v24, 0.0 }
 0xbe4   : > { %v9871_v12 = vmul.f32 0.2, %v9807_v24  ;;  %v11395_v19 = vsel %vm1835_vm10, %v11392_v16, %v11394_v13  ;;  %v11396_v45 = vrot.slane %v11315_v41, 1  ;;  %v9771_v48 = vadd.f32 %v22883_v54, %v9547_v50  ;;  %v23429_v37 = vld [vmem:[#allocation5 + $0x80] sm:$0xff]  ;;  %v25366_v16 = vld [vmem:[#allocation63_spill] sm:$0xff]  ;;  %v18067_v54 = vpop.f32.mrb[44].mxu1 }
 0xbe5   : > { %v9904_v8 = vsel %vm9840_vm2, %v9808_v51, %v9872_v9  ;;  %18195 = vmatmul.mubr.msk.f32.gmra.mrb[24].mxu0 %vm3948_vm15, %v11395_v19  ;;  %v9770_v20 = vadd.f32 %v22885_v6, %v9546_v25  ;;  %10048 = vst.msk [vmem:[#allocation5 + $0x98] sm:$0xff] %vm3948_vm15, %v9933_v33  ;;  %v11316_v42 = vmul.f32 %v23059_v60, %v23368_v62  ;;  %v23438_v41 = vld [vmem:[#allocation5 + $0x88] sm:$0xff] }
 0xbe6   : > { %v9936_v21 = vmul.f32 1.4142135, %v9904_v8  ;;  %v9903_v14 = vsel %vm9839_vm3, %v9807_v24, %v9871_v12  ;;  %v11317_v51 = vmul.f32 %v25366_v16, %v23384_v28  ;;  %18103 = vmatmul.mubr.msk.f32.gmra.mrb[66].mxu1 %vm3948_vm15, %v23429_v37  ;;  %v11397_v50 = vsel %vm1835_vm10, %v11394_v13, %v11396_v45  ;;  %v9455_v24 = vpop.f32.mrb[45].mxu1 }
 0xbe7   : > { %v9935_v6 = vmul.f32 1.4142135, %v9903_v14  ;;  %v9810_v9 = vadd.f32 %v23185_v59, %v9771_v48  ;;  %v9809_v25 = vadd.f32 %v23185_v59, %v9770_v20  ;;  %18105 = vmatprep.mubr.msk.f32.mxu1 %vm3948_vm15, %v23438_v41  ;;  %18197 = vmatprep.mubr.msk.f32.mxu0 %vm3948_vm15, %v11397_v50  ;;  %v11398_v33 = vrot.slane %v11316_v42, 1  ;;  %v23448_v14 = vld [vmem:[#allocation5 + $0x90] sm:$0xff] }
 0xbe8   : > { %10051 = vst.msk [vmem:[#allocation5 + $0xb0] sm:$0xff] %vm3948_vm15, %v9936_v21  ;;  %v11400_v12 = vrot.slane %v11317_v51, 1  ;;  %v9549_v19 = vmul.f32 %v23069_v47, %v18064_v15  ;;  %v14564_v8 = vmul.f32 %v14557_v53, %v14552_v10  ;;  %v25367_v21 = vld [vmem:[#allocation43_spill] sm:$0xff]  ;;  %v18070_v53 = vpop.f32.mrb[46].mxu1  ;;  %v9548_v51 = vmul.f32 %v23069_v47, %v9445_v44 }
 0xbe9   : > { %10050 = vst.msk [vmem:[#allocation5 + $0xa8] sm:$0xff] %vm3948_vm15, %v9935_v6  ;;  %vm9842_vm4 = vcmp.ge.f32.partialorder %v9810_v9, 0.0  ;;  %v9874_v13 = vmul.f32 0.2, %v9810_v9  ;;  %vm9841_vm5 = vcmp.ge.f32.partialorder %v9809_v25, 0.0  ;;  %v11399_v20 = vsel %vm1835_vm10, %v11396_v45, %v11398_v33  ;;  %v25368_v6 = vld [vmem:[#allocation37_spill] sm:$0xff] }
 0xbea   : > { %v9873_v48 = vmul.f32 0.2, %v9809_v25  ;;  %v11401_v16 = vsel %vm1835_vm10, %v11398_v33, %v11400_v12  ;;  %v9773_v60 = vadd.f32 %v25367_v21, %v9549_v19  ;;  %v23455_v42 = vpack.c.bf16 %v23404_v40, %v14564_v8  ;;  %18106 = vmatmul.mubr.msk.f32.gmra.mrb[68].mxu1 %vm3948_vm15, %v23448_v14  ;;  %18198 = vmatmul.mubr.msk.f32.gmra.mrb[26].mxu0 %vm3948_vm15, %v11399_v20  ;;  %v9465_v50 = vpop.f32.mrb[47].mxu1  ;;  %v23479_v21 = vld [vmem:[#allocation5 + $0xa0] sm:$0xff] }
 0xbeb   : > { %v9906_v15 = vsel %vm9842_vm4, %v9810_v9, %v9874_v13  ;;  %v11318_v45 = vmul.f32 %v25368_v6, %v23391_v11  ;;  %18200 = vmatprep.mubr.msk.f32.mxu0 %vm3948_vm15, %v11401_v16  ;;  %v11319_v19 = vmul.f32 %v23078_v35, %v23410_v56  ;;  %v25369_v9 = vld [vmem:[#allocation44_spill] sm:$0xff]  ;;  %v9551_v44 = vmul.f32 %v23069_v47, %v18067_v54  ;;  %v25372_v35 = vld [vmem:[#allocation66_spill] sm:$0xff] }
 0xbec   : > { %v9905_v10 = vsel %vm9841_vm5, %v9809_v25, %v9873_v48  ;;  %v9938_v33 = vmul.f32 1.4142135, %v9906_v15  ;;  %v9812_v40 = vadd.f32 %v23185_v59, %v9773_v60  ;;  %19162 = vmatprep.subr.bf16.mxu1 %v23455_v42  ;;  %v9772_v25 = vadd.f32 %v25369_v9, %v9548_v51  ;;  %v23471_v48 = vld [vmem:[#allocation5 + $0x98] sm:$0xff]  ;;  %v18073_v54 = vpop.f32.mrb[48].mxu1 }
 0xbed   : > { %v9937_v17 = vmul.f32 1.4142135, %v9905_v10  ;;  %v11402_v8 = vrot.slane %v11318_v45, 1  ;;  %v9550_v13 = vmul.f32 %v23069_v47, %v9455_v24  ;;  %v11404_v16 = vrot.slane %v11319_v19, 1  ;;  %18108 = vmatprep.mubr.msk.f32.mxu1 %vm3948_vm15, %v23471_v48  ;;  %v25370_v10 = vld [vmem:[#allocation45_spill] sm:$0xff]  ;;  %v25371_v45 = vld [vmem:[#allocation46_spill] sm:$0xff] }
 0xbee   : > { %10053 = vst.msk [vmem:[#allocation5 + $0xc0] sm:$0xff] %vm3948_vm15, %v9938_v33  ;;  %vm9844_vm6 = vcmp.ge.f32.partialorder %v9812_v40, 0.0  ;;  %v9876_v60 = vmul.f32 0.2, %v9812_v40  ;;  %v11320_v20 = vmul.f32 %v23083_v46, %v23418_v18  ;;  %v9811_v24 = vadd.f32 %v23185_v59, %v9772_v25  ;;  %18109 = vmatmul.mubr.msk.f32.gmra.mrb[70].mxu1 %vm3948_vm15, %v23479_v21  ;;  %v9475_v33 = vpop.f32.mrb[49].mxu1 }
 0xbef   : > { %10052 = vst.msk [vmem:[#allocation5 + $0xb8] sm:$0xff] %vm3948_vm15, %v9937_v17  ;;  %v11403_v15 = vsel %vm1835_vm10, %v11400_v12, %v11402_v8  ;;  %v9775_v51 = vadd.f32 %v25370_v10, %v9551_v44  ;;  %v9774_v17 = vadd.f32 %v25371_v45, %v9550_v13  ;;  %v11405_v9 = vsel %vm1835_vm10, %v11402_v8, %v11404_v16 }
 0xbf0   : > { %v9908_v19 = vsel %vm9844_vm6, %v9812_v40, %v9876_v60  ;;  %18201 = vmatmul.mubr.msk.f32.gmra.mrb[28].mxu0 %vm3948_vm15, %v11403_v15  ;;  %v11406_v46 = vrot.slane %v11320_v20, 1  ;;  %v11321_v6 = vmul.f32 %v25372_v35, %v23429_v37  ;;  %v23491_v25 = vld [vmem:[#allocation5 + $0xa8] sm:$0xff]  ;;  %vm9843_vm7 = vcmp.ge.f32.partialorder %v9811_v24, 0.0  ;;  %v23500_v15 = vld [vmem:[#allocation5 + $0xb0] sm:$0xff]  ;;  %v18076_v10 = vpop.f32.mrb[50].mxu1 }
 0xbf1   : > { %v9940_v12 = vmul.f32 1.4142135, %v9908_v19  ;;  %v9875_v44 = vmul.f32 0.2, %v9811_v24  ;;  %18203 = vmatprep.mubr.msk.f32.mxu0 %vm3948_vm15, %v11405_v9  ;;  %v9814_v13 = vadd.f32 %v23185_v59, %v9775_v51  ;;  %18111 = vmatprep.mubr.msk.f32.mxu1 %vm3948_vm15, %v23491_v25  ;;  %v9813_v40 = vadd.f32 %v23185_v59, %v9774_v17  ;;  %v9485_v9 = vpop.f32.mrb[51].mxu1 }
 0xbf2   : > { %v11407_v8 = vsel %vm1835_vm10, %v11404_v16, %v11406_v46  ;;  %v11408_v60 = vrot.slane %v11321_v6, 1  ;;  %v9553_v20 = vmul.f32 %v23069_v47, %v18070_v53  ;;  %v9552_v51 = vmul.f32 %v23069_v47, %v9465_v50  ;;  %18112 = vmatmul.mubr.msk.f32.gmra.mrb[72].mxu1 %vm3948_vm15, %v23500_v15  ;;  %v25375_v50 = vld [vmem:[#allocation67_spill] sm:$0xff] }
 0xbf3   : > { %10055 = vst.msk [vmem:[#allocation5 + $0xd0] sm:$0xff] %vm3948_vm15, %v9940_v12  ;;  %v9907_v45 = vsel %vm9843_vm7, %v9811_v24, %v9875_v44  ;;  %vm9846_vm8 = vcmp.ge.f32.partialorder %v9814_v13, 0.0  ;;  %v9878_v19 = vmul.f32 0.2, %v9814_v13  ;;  %vm9845_vm9 = vcmp.ge.f32.partialorder %v9813_v40, 0.0  ;;  %v25373_v12 = vld [vmem:[#allocation47_spill] sm:$0xff] }
 0xbf4   : > { %v9939_v17 = vmul.f32 1.4142135, %v9907_v45  ;;  %v9877_v16 = vmul.f32 0.2, %v9813_v40  ;;  %18204 = vmatmul.mubr.msk.f32.gmra.mrb[30].mxu0 %vm3948_vm15, %v11407_v8  ;;  %v11409_v53 = vsel %vm1835_vm10, %v11406_v46, %v11408_v60  ;;  %v9777_v24 = vadd.f32 %v25373_v12, %v9553_v20  ;;  %v25374_v44 = vld [vmem:[#allocation48_spill] sm:$0xff]  ;;  %v25376_v8 = vld [vmem:[#allocation69_spill] sm:$0xff] }
 0xbf5   : > { %v9910_v6 = vsel %vm9846_vm8, %v9814_v13, %v9878_v19  ;;  %18206 = vmatprep.mubr.msk.f32.mxu0 %vm3948_vm15, %v11409_v53  ;;  %v9776_v35 = vadd.f32 %v25374_v44, %v9552_v51  ;;  %v11322_v29 = vmul.f32 %v25375_v50, %v23438_v41  ;;  %v11323_v0 = vmul.f32 %v25376_v8, %v23448_v14  ;;  %v23521_v13 = vld [vmem:[#allocation5 + $0xc0] sm:$0xff] }
 0xbf6   : > { %v23513_v3 = vld [vmem:[#allocation5 + $0xb8] sm:$0xff]  ;;  %10054 = vst.msk [vmem:[#allocation5 + $0xc8] sm:$0xff] %vm3948_vm15, %v9939_v17  ;;  %v9942_v45 = vmul.f32 1.4142135, %v9910_v6  ;;  %v9909_v55 = vsel %vm9845_vm9, %v9813_v40, %v9877_v16  ;;  %v9555_v46 = vmul.f32 %v23069_v47, %v18073_v54  ;;  %v9816_v19 = vadd.f32 %v23185_v59, %v9777_v24  ;;  %v25378_v6 = vld [vmem:[#allocation70_spill] sm:$0xff] }
 0xbf7   : > { %18114 = vmatprep.mubr.msk.f32.mxu1 %vm3948_vm15, %v23513_v3  ;;  %v9941_v20 = vmul.f32 1.4142135, %v9909_v55  ;;  %v9815_v51 = vadd.f32 %v23185_v59, %v9776_v35  ;;  %v11410_v53 = vrot.slane %v11322_v29, 1  ;;  %v11412_v40 = vrot.slane %v11323_v0, 1  ;;  %v25377_v17 = vld [vmem:[#allocation49_spill] sm:$0xff]  ;;  %v25379_v0 = vld [vmem:[#allocation50_spill] sm:$0xff] }
 0xbf8   : > { %18115 = vmatmul.mubr.msk.f32.gmra.mrb[74].mxu1 %vm3948_vm15, %v23521_v13  ;;  %10057 = vst.msk [vmem:[#allocation5 + $0xe0] sm:$0xff] %vm3948_vm15, %v9942_v45  ;;  %v9779_v16 = vadd.f32 %v25377_v17, %v9555_v46  ;;  %v9554_v54 = vmul.f32 %v23069_v47, %v9475_v33  ;;  %v11324_v12 = vmul.f32 %v25378_v6, %v23471_v48  ;;  %vm9848_vm12 = vcmp.ge.f32.partialorder %v9816_v19, 0.0 }
 0xbf9   : > { %10056 = vst.msk [vmem:[#allocation5 + $0xd8] sm:$0xff] %vm3948_vm15, %v9941_v20  ;;  %v9880_v55 = vmul.f32 0.2, %v9816_v19  ;;  %vm9847_vm13 = vcmp.ge.f32.partialorder %v9815_v51, 0.0  ;;  %v9879_v35 = vmul.f32 0.2, %v9815_v51  ;;  %v11411_v29 = vsel %vm1835_vm10, %v11408_v60, %v11410_v53 }
 0xbfa   : > { %v11413_v24 = vsel %vm1835_vm10, %v11410_v53, %v11412_v40  ;;  %v9818_v44 = vadd.f32 %v23185_v59, %v9779_v16  ;;  %v9778_v45 = vadd.f32 %v25379_v0, %v9554_v54  ;;  %18207 = vmatmul.mubr.msk.f32.gmra.mrb[32].mxu0 %vm3948_vm15, %v11411_v29  ;;  %v11414_v33 = vrot.slane %v11324_v12, 1 }
 0xbfb   : > { %v9912_v46 = vsel %vm9848_vm12, %v9816_v19, %v9880_v55  ;;  %v9911_v17 = vsel %vm9847_vm13, %v9815_v51, %v9879_v35  ;;  %v11325_v20 = vmul.f32 %v23125_v63, %v23479_v21  ;;  %18209 = vmatprep.mubr.msk.f32.mxu0 %vm3948_vm15, %v11413_v24  ;;  %v9557_v19 = vmul.f32 %v23069_v47, %v18076_v10  ;;  %v25380_v35 = vld [vmem:[#allocation51_spill] sm:$0xff]  ;;  %v23558_v24 = vld [vmem:[#allocation5 + $0xd0] sm:$0xff] }
 0xbfc   : > { %v9944_v6 = vmul.f32 1.4142135, %v9912_v46  ;;  %v9943_v8 = vmul.f32 1.4142135, %v9911_v17  ;;  %vm9850_vm0 = vcmp.ge.f32.partialorder %v9818_v44, 0.0  ;;  %v9817_v60 = vadd.f32 %v23185_v59, %v9778_v45 }
 0xbfd   : > { %v9882_v53 = vmul.f32 0.2, %v9818_v44  ;;  %v11415_v16 = vsel %vm1835_vm10, %v11412_v40, %v11414_v33  ;;  %v11416_v50 = vrot.slane %v11325_v20, 1  ;;  %v23544_v51 = vld [vmem:[#allocation5 + $0xc8] sm:$0xff]  ;;  %v9556_v12 = vmul.f32 %v23069_v47, %v9485_v9  ;;  %v25382_v9 = vld [vmem:[#allocation53_spill] sm:$0xff] }
 0xbfe   : > { %10059 = vst.msk [vmem:[#allocation5 + $0xf0] sm:$0xff] %vm3948_vm15, %v9944_v6  ;;  %10058 = vst.msk [vmem:[#allocation5 + $0xe8] sm:$0xff] %vm3948_vm15, %v9943_v8  ;;  %vm9849_vm1 = vcmp.ge.f32.partialorder %v9817_v60, 0.0  ;;  %v9881_v54 = vmul.f32 0.2, %v9817_v60  ;;  %v11326_v55 = vmul.f32 %v23129_v23, %v23491_v25  ;;  %18117 = vmatprep.mubr.msk.f32.mxu1 %vm3948_vm15, %v23544_v51  ;;  %18210 = vmatmul.mubr.msk.f32.gmra.mrb[34].mxu0 %vm3948_vm15, %v11415_v16  ;;  %v25381_v6 = vld [vmem:[#allocation77_spill] sm:$0xff] }
 0xbff   : > { %v9914_v40 = vsel %vm9850_vm0, %v9818_v44, %v9882_v53  ;;  %v11417_v10 = vsel %vm1835_vm10, %v11414_v33, %v11416_v50  ;;  %v9781_v29 = vadd.f32 %v25380_v35, %v9557_v19  ;;  %v11327_v8 = vmul.f32 %v25381_v6, %v23500_v15  ;;  %18118 = vmatmul.mubr.msk.f32.gmra.mrb[76].mxu1 %vm3948_vm15, %v23558_v24  ;;  %v25384_v53 = vld [vmem:[#allocation78_spill] sm:$0xff]  ;;  %v25413_v23 = vld [vmem:[#allocation85_spill] sm:$0xff] }
 0xc00   : > { %v9946_v0 = vmul.f32 1.4142135, %v9914_v40  ;;  %v9913_v47 = vsel %vm9849_vm1, %v9817_v60, %v9881_v54  ;;  %18212 = vmatprep.mubr.msk.f32.mxu0 %vm3948_vm15, %v11417_v10  ;;  %v9780_v45 = vadd.f32 %v25382_v9, %v9556_v12  ;;  %v11418_v46 = vrot.slane %v11326_v55, 1  ;;  %v23564_v44 = vld [vmem:[#allocation5 + $0xd8] sm:$0xff]  ;;  %v25385_v54 = vld [vmem:[#allocation79_spill] sm:$0xff]  ;;  %v25386_v55 = vld [vmem:[#allocation80_spill] sm:$0xff] }
 0xc01   : > { %25383 = vst [vmem:[#allocation43_spill] sm:$0xff] %v23564_v44  ;;  %v9945_v17 = vmul.f32 1.4142135, %v9913_v47  ;;  %v9820_v33 = vadd.f32 %v23185_v59, %v9781_v29  ;;  %v11420_v20 = vrot.slane %v11327_v8, 1  ;;  %v11328_v16 = vmul.f32 %v25384_v53, %v23513_v3  ;;  %18120 = vmatprep.mubr.msk.f32.mxu1 %vm3948_vm15, %v23564_v44  ;;  %v23581_v8 = vld [vmem:[#allocation5 + $0xe0] sm:$0xff] }
 0xc02   : > { %10061 = vst.msk [vmem:[#allocation5 + $0x100] sm:$0xff] %vm3948_vm15, %v9946_v0  ;;  %v9819_v60 = vadd.f32 %v23185_v59, %v9780_v45  ;;  %v11419_v19 = vsel %vm1835_vm10, %v11416_v50, %v11418_v46  ;;  %v11329_v12 = vmul.f32 %v25385_v54, %v23521_v13  ;;  %v11330_v40 = vmul.f32 %v25386_v55, %v23544_v51  ;;  %v25399_v54 = vld [vmem:[#allocation81_spill] sm:$0xff] }
 0xc03   : > { %10060 = vst.msk [vmem:[#allocation5 + $0xf8] sm:$0xff] %vm3948_vm15, %v9945_v17  ;;  %vm9852_vm14 = vcmp.ge.f32.partialorder %v9820_v33, 0.0  ;;  %v9884_v10 = vmul.f32 0.2, %v9820_v33  ;;  %18213 = vmatmul.mubr.msk.f32.gmra.mrb[36].mxu0 %vm3948_vm15, %v11419_v19  ;;  %v11421_v35 = vsel %vm1835_vm10, %v11418_v46, %v11420_v20  ;;  %v11422_v29 = vrot.slane %v11328_v16, 1  ;;  %25387 = vst [vmem:[#allocation44_spill] sm:$0xff] %v23581_v8  ;;  %18121 = vmatmul.mubr.msk.f32.gmra.mrb[78].mxu1 %vm3948_vm15, %v23581_v8 }
 0xc04   : > { %vm9851_vm2 = vcmp.ge.f32.partialorder %v9819_v60, 0.0  ;;  %v9883_v59 = vmul.f32 0.2, %v9819_v60  ;;  %18215 = vmatprep.mubr.msk.f32.mxu0 %vm3948_vm15, %v11421_v35  ;;  %v11424_v50 = vrot.slane %v11329_v12, 1  ;;  %v11426_v0 = vrot.slane %v11330_v40, 1 }
 0xc05   : > { %v9916_v47 = vsel %vm9852_vm14, %v9820_v33, %v9884_v10  ;;  %v11423_v9 = vsel %vm1835_vm10, %v11420_v20, %v11422_v29  ;;  %v11331_v45 = vmul.f32 %v23165_v57, %v23558_v24  ;;  %v23589_v17 = vld [vmem:[#allocation5 + $0xe8] sm:$0xff]  ;;  %v11332_v46 = vmul.f32 %v23177_v61, %v23564_v44  ;;  %v23596_v12 = vld [vmem:[#allocation5 + $0xf0] sm:$0xff]  ;;  %v25390_v10 = vld [vmem:[#allocation86_spill] sm:$0xff] }
 0xc06   : > { %25388 = vst [vmem:[#allocation45_spill] sm:$0xff] %v23589_v17  ;;  %v9948_v16 = vmul.f32 1.4142135, %v9916_v47  ;;  %v9915_v19 = vsel %vm9851_vm2, %v9819_v60, %v9883_v59  ;;  %v11425_v35 = vsel %vm1835_vm10, %v11422_v29, %v11424_v50  ;;  %18123 = vmatprep.mubr.msk.f32.mxu1 %vm3948_vm15, %v23589_v17  ;;  %25389 = vst [vmem:[#allocation46_spill] sm:$0xff] %v23596_v12  ;;  %v10142_v33 = vand.u32 15, %v23255_v49  ;;  %v25391_v49 = vld [vmem:[#allocation87_spill] sm:$0xff] }
 0xc07   : > { %v9947_v20 = vmul.f32 1.4142135, %v9915_v19  ;;  %18216 = vmatmul.mubr.msk.f32.gmra.mrb[38].mxu0 %vm3948_vm15, %v11423_v9  ;;  %v11428_v40 = vrot.slane %v11331_v45, 1  ;;  %v11333_v57 = vmul.f32 %v25390_v10, %v23581_v8  ;;  %v10112_v61 = vadd.s32 144, %v20163_v1  ;;  %18124 = vmatmul.mubr.msk.f32.gmra.mrb[80].mxu1 %vm3948_vm15, %v23596_v12  ;;  %v25392_v47 = vld [vmem:[#allocation68_spill] sm:$0xff] }
 0xc08   : > { %10063 = vst.msk [vmem:[#allocation5 + $0x110] sm:$0xff] %vm3948_vm15, %v9948_v16  ;;  %18218 = vmatprep.mubr.msk.f32.mxu0 %vm3948_vm15, %v11425_v35  ;;  %v11427_v60 = vsel %vm1835_vm10, %v11424_v50, %v11426_v0  ;;  %v11430_v29 = vrot.slane %v11332_v46, 1  ;;  %v11334_v59 = vmul.f32 %v25391_v49, %v23589_v17  ;;  %v10417_v9 = vmul.f32 %v25392_v47, %v23282_v32  ;;  %v25393_v16 = vld [vmem:[#allocation89_spill] sm:$0xff]  ;;  %v25397_v49 = vld [vmem:[#allocation71_spill] sm:$0xff]  ;;  %v25418_v8 = vld [vmem:[#allocation92_spill] sm:$0xff] }
 0xc09   : > { %10062 = vst.msk [vmem:[#allocation5 + $0x108] sm:$0xff] %vm3948_vm15, %v9947_v20  ;;  %v11429_v45 = vsel %vm1835_vm10, %v11426_v0, %v11428_v40  ;;  %v11432_v19 = vrot.slane %v11333_v57, 1  ;;  %v11335_v35 = vmul.f32 %v25393_v16, %v23596_v12  ;;  %v10341_v50 = vrot.slane %v23265_v30, 1  ;;  %v23619_v55 = vld [vmem:[#allocation5 + $0x100] sm:$0xff]  ;;  %v25398_v30 = vld [vmem:[#allocation91_spill] sm:$0xff] }
 0xc0a   : > { %v23617_v10 = vld [vmem:[#allocation5 + $0xf8] sm:$0xff]  ;;  %25395 = vst [vmem:[#allocation48_spill] sm:$0xff] %v23619_v55  ;;  %v23624_v46 = vsel %vm1873_vm11, %v22907_v5, %v23234_v4  ;;  %v10418_v20 = vmul.f32 %v25397_v49, %v23278_v7  ;;  %v10114_v57 = vadd.s32 160, %v20163_v1  ;;  %v25400_v53 = vrot.slane %v25399_v54, 1 }
 0xc0b   : > { %25394 = vst [vmem:[#allocation47_spill] sm:$0xff] %v23617_v10  ;;  %25396 = vst [vmem:[#allocation49_spill] sm:$0xff] %v23624_v46  ;;  %18219 = vmatmul.mubr.msk.f32.gmra.mrb[40].mxu0 %vm3948_vm15, %v11427_v60  ;;  %18126 = vmatprep.mubr.msk.f32.mxu1 %vm3948_vm15, %v23617_v10  ;;  %v11336_v16 = vmul.f32 %v25398_v30, %v23617_v10  ;;  %vm23641_vm3 = vcmp.ge.s32.totalorder %v10142_v33, 1  ;;  %v10144_v0 = vand.u32 15, %v10112_v61  ;;  %v11434_v63 = vrot.slane %v11334_v59, 1  ;;  %v25404_v33 = vld [vmem:[#allocation90_spill] sm:$0xff] }
 0xc0c   : > { %v23639_v6 = vsel %vm1835_vm10, %v25400_v53, %v22982_v31  ;;  %18221 = vmatprep.mubr.msk.f32.mxu0 %vm3948_vm15, %v11429_v45  ;;  %v11431_v60 = vsel %vm1835_vm10, %v11428_v40, %v11430_v29  ;;  %18127 = vmatmul.mubr.msk.f32.gmra.mrb[82].mxu1 %vm3948_vm15, %v23619_v55  ;;  %v10829_v30 = vrot.slane %v10417_v9, 7  ;;  %v10419_v54 = vmul.f32 %v25403_v43, %v23302_v34 }
 0xc0d   : > { %v11433_v53 = vsel %vm1835_vm10, %v11430_v29, %v11432_v19  ;;  %v11436_v36 = vrot.slane %v11335_v35, 1  ;;  %18133 = vmatprep.mubr.msk.f32.mxu1 %vm3948_vm15, %v25404_v33  ;;  %v11337_v61 = vmul.f32 %v23624_v46, %v23619_v55  ;;  %v23658_v40 = vsel %vm1835_vm10, %v22982_v31, %v10341_v50  ;;  %v25406_v46 = vld [vmem:[#allocation76_spill] sm:$0xff]  ;;  %v25409_v55 = vld [vmem:[#allocation83_spill] sm:$0xff] }
 0xc0e   : > { %v10831_v45 = vrot.slane %v10418_v20, 7  ;;  %v23662_v59 = vsel %vm1835_vm10, %v10341_v50, %v22982_v31  ;;  %v25405_v9 = vrot.slane %v23273_v38, 1  ;;  %v10146_v35 = vand.u32 15, %v10114_v57  ;;  %v25410_v57 = vld [vmem:[#allocation54_spill] sm:$0xff] }
 0xc0f   : > { %18222 = vmatmul.mubr.msk.f32.gmra.mrb[42].mxu0 %vm3948_vm15, %v11431_v60  ;;  %v11438_v33 = vrot.slane %v11336_v16, 1  ;;  %v10420_v5 = vmul.f32 %v25406_v46, %v23309_v58  ;;  %v10206_v20 = vsel %vm23641_vm3, 1.0, %v25297_v26  ;;  %vm23676_vm4 = vcmp.ge.s32.totalorder %v10144_v0, 1 }
 0xc10   : > { %v23668_v29 = vsel %vm1835_vm10, %v22982_v31, %v25405_v9  ;;  %18224 = vmatprep.mubr.msk.f32.mxu0 %vm3948_vm15, %v11433_v53  ;;  %v11435_v9 = vsel %vm1835_vm10, %v11432_v19, %v11434_v63  ;;  %18134 = vmatmul.mubr.msk.f32.vlgmr.msra.gmra.mrb[52].mxu1 %vm3948_vm15, %v25409_v55  ;;  %v25411_v16 = vrot.slane %v25410_v57, 7  ;;  %v23687_v10 = vld [vmem:[#allocation5 + $0x108] sm:$0xff]  ;;  %v10833_v12 = vrot.slane %v10419_v54, 7 }
 0xc11   : > { %25412 = vst [vmem:[#allocation50_spill] sm:$0xff] %v23687_v10  ;;  %v10421_v0 = vmul.f32 %v25413_v23, %v23322_v2  ;;  %v11437_v17 = vsel %vm1835_vm10, %v11434_v63, %v11436_v36  ;;  %19164 = vmatpush3.bf16.msra.mxu1 %v23455_v42  ;;  %v11440_v19 = vrot.slane %v11337_v61, 1  ;;  %v11338_v55 = vmul.f32 %v23234_v4, %v23687_v10  ;;  %v25416_v61 = vld [vmem:[#allocation36_spill] sm:$0xff] }
 0xc12   : > { %v10830_v60 = vsel %vm1873_vm11, %v25411_v16, %v10829_v30  ;;  %v10116_v53 = vadd.s32 176, %v20163_v1  ;;  %v10832_v57 = vsel %vm1873_vm11, %v10829_v30, %v10831_v45  ;;  %v10349_v16 = vrot.slane %v10206_v20, 1  ;;  %v25417_v30 = vld [vmem:[#allocation88_spill] sm:$0xff] }
 0xc13   : > { %18136 = vmatprep.mubr.msk.f32.mxu1 %vm3948_vm15, %v10830_v60  ;;  %v23701_v54 = vsel %vm23676_vm4, 1.0, %v25297_v26  ;;  %vm23703_vm5 = vcmp.ge.s32.totalorder %v10146_v35, 1  ;;  %18225 = vmatmul.mubr.msk.f32.gmra.mrb[44].mxu0 %vm3948_vm15, %v11435_v9  ;;  %v11439_v42 = vsel %vm1835_vm10, %v11436_v36, %v11438_v33  ;;  %v11766_v60 = vmul.f32 %v25416_v61, %v23282_v32 }
 0xc14   : > { %v10835_v4 = vrot.slane %v10420_v5, 7  ;;  %v10422_v20 = vmul.f32 %v25417_v30, %v23339_v27  ;;  %18227 = vmatprep.mubr.msk.f32.mxu0 %vm3948_vm15, %v11437_v17  ;;  %18137 = vmatmul.mubr.msk.f32.gmra.mrb[54].mxu1 %vm3948_vm15, %v10832_v57  ;;  %v11442_v50 = vrot.slane %v11338_v55, 1  ;;  %v10834_v35 = vsel %vm1873_vm11, %v10831_v45, %v10833_v12  ;;  %v25419_v17 = vld [vmem:[#allocation38_spill] sm:$0xff]  ;;  %v25421_v5 = vld [vmem:[#allocation93_spill] sm:$0xff] }
 0xc15   : > { %v10837_v10 = vrot.slane %v10421_v0, 7  ;;  %v10423_v9 = vmul.f32 %v25418_v8, %v23347_v22  ;;  %v11441_v36 = vsel %vm1835_vm10, %v11438_v33, %v11440_v19  ;;  %18139 = vmatprep.mubr.msk.f32.mxu1 %vm3948_vm15, %v10834_v35  ;;  %v10148_v32 = vand.u32 15, %v10116_v53 }
 0xc16   : > { %v10118_v61 = vadd.s32 192, %v20163_v1  ;;  %v11767_v44 = vmul.f32 %v25419_v17, %v23278_v7  ;;  %v25420_v55 = vrot.slane %v23273_v38, 1  ;;  %v23732_v0 = vsel %vm1835_vm10, %v22982_v31, %v10349_v16 }
 0xc17   : > { %v23737_v33 = vsel %vm23703_vm5, 1.0, %v25297_v26  ;;  %18228 = vmatmul.mubr.msk.f32.gmra.mrb[46].mxu0 %vm3948_vm15, %v11439_v42  ;;  %v11839_v53 = vrot.slane %v11766_v60, 7  ;;  %v10836_v7 = vsel %vm1873_vm11, %v10833_v12, %v10835_v4  ;;  %v11768_v38 = vmul.f32 %v25392_v47, %v23302_v34 }
 0xc18   : > { %v23728_v45 = vsel %vm1835_vm10, %v25420_v55, %v22982_v31  ;;  %v10839_v57 = vrot.slane %v10422_v20, 7  ;;  %18230 = vmatprep.mubr.msk.f32.mxu0 %vm3948_vm15, %v11441_v36  ;;  %v11443_v35 = vsel %vm1835_vm10, %v11440_v19, %v11442_v50  ;;  %18140 = vmatmul.mubr.msk.f32.gmra.mrb[56].mxu1 %vm3948_vm15, %v10836_v7  ;;  %v10838_v55 = vsel %vm1873_vm11, %v10835_v4, %v10837_v10  ;;  %v25425_v36 = vld [vmem:[#allocation72_spill] sm:$0xff] }
 0xc19   : > { %v10841_v63 = vrot.slane %v10423_v9, 7  ;;  %v10424_v17 = vmul.f32 %v25421_v5, %v23357_v52  ;;  %18142 = vmatprep.mubr.msk.f32.mxu1 %vm3948_vm15, %v10838_v55  ;;  %v10425_v12 = vmul.f32 %v23639_v6, %v23368_v62  ;;  %v25422_v34 = vrot.slane %v23701_v54, 1 }
 0xc1a   : > { %vm23758_vm6 = vcmp.ge.s32.totalorder %v10148_v32, 1  ;;  %v10150_v4 = vand.u32 15, %v10118_v61  ;;  %v11841_v60 = vrot.slane %v11767_v44, 7  ;;  %v11769_v20 = vmul.f32 %v25397_v49, %v23309_v58 }
 0xc1b   : > { %v23756_v42 = vsel %vm1835_vm10, %v22982_v31, %v25422_v34  ;;  %v23766_v50 = vsel %vm1835_vm10, %v10349_v16, %v22982_v31  ;;  %v10357_v9 = vrot.slane %v23737_v33, 1  ;;  %18231 = vmatmul.mubr.msk.f32.gmra.mrb[48].mxu0 %vm3948_vm15, %v11443_v35  ;;  %v25426_v7 = vrot.slane %v25425_v36, 7 }
 0xc1c   : > { %v11843_v55 = vrot.slane %v11768_v38, 7  ;;  %v10840_v34 = vsel %vm1873_vm11, %v10837_v10, %v10839_v57  ;;  %v11770_v44 = vmul.f32 %v25403_v43, %v23322_v2  ;;  %v10842_v58 = vsel %vm1873_vm11, %v10839_v57, %v10841_v63 }
 0xc1d   : > { %v11840_v32 = vsel %vm1873_vm11, %v25426_v7, %v11839_v53  ;;  %18143 = vmatmul.mubr.msk.f32.gmra.mrb[58].mxu1 %vm3948_vm15, %v10840_v34  ;;  %v10843_v16 = vrot.slane %v10424_v17, 7  ;;  %v10426_v61 = vmul.f32 %v23658_v40, %v23384_v28  ;;  %v23784_v35 = vsel %vm23758_vm6, 1.0, %v25297_v26 }
 0xc1e   : > { %18237 = vmatprep.mubr.msk.f32.mxu0 %vm3948_vm15, %v11840_v32  ;;  %18145 = vmatprep.mubr.msk.f32.mxu1 %vm3948_vm15, %v10842_v58  ;;  %v10845_v10 = vrot.slane %v10425_v12, 7  ;;  %v10427_v2 = vmul.f32 %v23662_v59, %v23391_v11  ;;  %vm23789_vm7 = vcmp.ge.s32.totalorder %v10150_v4, 1  ;;  %v10120_v17 = vadd.s32 208, %v20163_v1 }
 0xc1f   : > { %v11842_v57 = vsel %vm1873_vm11, %v11839_v53, %v11841_v60  ;;  %v11845_v36 = vrot.slane %v11769_v20, 7  ;;  %v11771_v19 = vmul.f32 %v25406_v46, %v23339_v27  ;;  %v23801_v12 = vsel %vm1835_vm10, %v22982_v31, %v10357_v9 }
 0xc20   : > { %18238 = vmatmul.mubr.msk.f32.vlgmr.msra.gmra.mrb[18].mxu0 %vm3948_vm15, %v11842_v57  ;;  %v11844_v4 = vsel %vm1873_vm11, %v11841_v60, %v11843_v55  ;;  %v11847_v7 = vrot.slane %v11770_v44, 7  ;;  %v11772_v32 = vmul.f32 %v25413_v23, %v23347_v22  ;;  %v10361_v53 = vrot.slane %v23784_v35, 1  ;;  %v25429_v44 = vld [vmem:[#allocation39_spill] sm:$0xff] }
 0xc21   : > { %19144 = vmatpush3.bf16.msra.mxu0 %v22816_v39  ;;  %18240 = vmatprep.mubr.msk.f32.mxu0 %vm3948_vm15, %v11844_v4  ;;  %v10844_v27 = vsel %vm1873_vm11, %v10841_v63, %v10843_v16  ;;  %v10847_v20 = vrot.slane %v10426_v61, 7  ;;  %v10428_v34 = vmul.f32 %v23668_v29, %v23410_v56  ;;  %v23816_v60 = vsel %vm23789_vm7, 1.0, %v25297_v26 }
 0xc22   : > { %19146 = vmatprep.subr.bf16.mxu0 %v25429_v44  ;;  %18146 = vmatmul.mubr.msk.f32.gmra.mrb[60].mxu1 %vm3948_vm15, %v10844_v27  ;;  %v10846_v22 = vsel %vm1873_vm11, %v10843_v16, %v10845_v10  ;;  %v10849_v39 = vrot.slane %v10427_v2, 7  ;;  %v10429_v58 = vmul.f32 %v23728_v45, %v23418_v18  ;;  %v10152_v63 = vand.u32 15, %v10120_v17 }
 0xc23   : > { %v11846_v61 = vsel %vm1873_vm11, %v11843_v55, %v11845_v36  ;;  %v11849_v57 = vrot.slane %v11771_v19, 7  ;;  %18148 = vmatprep.mubr.msk.f32.mxu1 %vm3948_vm15, %v10846_v22  ;;  %v11773_v38 = vmul.f32 %v25417_v30, %v23357_v52  ;;  %v25430_v4 = vrot.slane %v23701_v54, 1 }
 0xc24   : > { %18241 = vmatmul.mubr.msk.f32.gmra.mrb[20].mxu0 %vm3948_vm15, %v11846_v61  ;;  %v11848_v16 = vsel %vm1873_vm11, %v11845_v36, %v11847_v7  ;;  %v11851_v2 = vrot.slane %v11772_v32, 7  ;;  %v11774_v55 = vmul.f32 %v25418_v8, %v23368_v62  ;;  %v23841_v17 = vsel %vm1835_vm10, %v22982_v31, %v10361_v53 }
 0xc25   : > { %v23831_v27 = vsel %vm1835_vm10, %v25430_v4, %v22982_v31  ;;  %18243 = vmatprep.mubr.msk.f32.mxu0 %vm3948_vm15, %v11848_v16  ;;  %v10848_v52 = vsel %vm1873_vm11, %v10845_v10, %v10847_v20  ;;  %v10851_v54 = vrot.slane %v10428_v34, 7  ;;  %v10430_v19 = vmul.f32 %v23732_v0, %v23429_v37 }
 0xc26   : > { %v10365_v36 = vrot.slane %v23816_v60, 1  ;;  %18149 = vmatmul.mubr.msk.f32.gmra.mrb[62].mxu1 %vm3948_vm15, %v10848_v52  ;;  %v10850_v62 = vsel %vm1873_vm11, %v10847_v20, %v10849_v39  ;;  %v10853_v32 = vrot.slane %v10429_v58, 7  ;;  %v10431_v22 = vmul.f32 %v23766_v50, %v23438_v41 }
 0xc27   : > { %vm23852_vm8 = vcmp.ge.s32.totalorder %v10152_v63, 1  ;;  %v11850_v10 = vsel %vm1873_vm11, %v11847_v7, %v11849_v57  ;;  %v11853_v34 = vrot.slane %v11773_v38, 7  ;;  %18151 = vmatprep.mubr.msk.f32.mxu1 %vm3948_vm15, %v10850_v62  ;;  %v11775_v4 = vmul.f32 %v25421_v5, %v23384_v28 }
 0xc28   : > { %v10122_v16 = vadd.s32 224, %v20163_v1  ;;  %18244 = vmatmul.mubr.msk.f32.gmra.mrb[22].mxu0 %vm3948_vm15, %v11850_v10  ;;  %v11852_v20 = vsel %vm1873_vm11, %v11849_v57, %v11851_v2  ;;  %v11855_v58 = vrot.slane %v11774_v55, 7  ;;  %v11776_v63 = vmul.f32 %v23639_v6, %v23391_v11 }
 0xc29   : > { %v23869_v7 = vsel %vm1835_vm10, %v10357_v9, %v22982_v31  ;;  %18246 = vmatprep.mubr.msk.f32.mxu0 %vm3948_vm15, %v11852_v20  ;;  %v10852_v28 = vsel %vm1873_vm11, %v10849_v39, %v10851_v54  ;;  %v10855_v38 = vrot.slane %v10430_v19, 7  ;;  %v10432_v52 = vmul.f32 %v23756_v42, %v23448_v14 }
 0xc2a   : > { %v23879_v57 = vsel %vm1835_vm10, %v22982_v31, %v10365_v36  ;;  %18152 = vmatmul.mubr.msk.f32.gmra.mrb[64].mxu1 %vm3948_vm15, %v10852_v28  ;;  %v10854_v11 = vsel %vm1873_vm11, %v10851_v54, %v10853_v32  ;;  %v10857_v33 = vrot.slane %v10431_v22, 7  ;;  %v10433_v9 = vmul.f32 %v23831_v27, %v23471_v48 }
 0xc2b   : > { %v10216_v39 = vsel %vm23852_vm8, 1.0, %v25297_v26  ;;  %v11854_v55 = vsel %vm1873_vm11, %v11851_v2, %v11853_v34  ;;  %v11857_v19 = vrot.slane %v11775_v4, 7  ;;  %18154 = vmatprep.mubr.msk.f32.mxu1 %vm3948_vm15, %v10854_v11  ;;  %v11777_v62 = vmul.f32 %v23658_v40, %v23410_v56 }
 0xc2c   : > { %v10154_v10 = vand.u32 15, %v10122_v16  ;;  %18247 = vmatmul.mubr.msk.f32.gmra.mrb[24].mxu0 %vm3948_vm15, %v11854_v55  ;;  %v11856_v54 = vsel %vm1873_vm11, %v11853_v34, %v11855_v58  ;;  %v11859_v22 = vrot.slane %v11776_v63, 7  ;;  %v11778_v20 = vmul.f32 %v23662_v59, %v23418_v18 }
 0xc2d   : > { %v10124_v61 = vadd.s32 240, %v20163_v1  ;;  %18249 = vmatprep.mubr.msk.f32.mxu0 %vm3948_vm15, %v11856_v54  ;;  %v10856_v2 = vsel %vm1873_vm11, %v10853_v32, %v10855_v38  ;;  %v10859_v4 = vrot.slane %v10432_v52, 7  ;;  %v10434_v28 = vmul.f32 %v23801_v12, %v23479_v21 }
 0xc2e   : > { %v10369_v56 = vrot.slane %v10216_v39, 1  ;;  %18155 = vmatmul.mubr.msk.f32.gmra.mrb[66].mxu1 %vm3948_vm15, %v10856_v2  ;;  %v10858_v16 = vsel %vm1873_vm11, %v10855_v38, %v10857_v33  ;;  %v10861_v34 = vrot.slane %v10433_v9, 7  ;;  %v10435_v63 = vmul.f32 %v23869_v7, %v23491_v25 }
 0xc2f   : > { %v23909_v1 = vsel %vm1835_vm10, %v10361_v53, %v22982_v31  ;;  %v11858_v18 = vsel %vm1873_vm11, %v11855_v58, %v11857_v19  ;;  %v11861_v32 = vrot.slane %v11777_v62, 7  ;;  %18157 = vmatprep.mubr.msk.f32.mxu1 %vm3948_vm15, %v10858_v16  ;;  %v11779_v52 = vmul.f32 %v23668_v29, %v23429_v37 }
 0xc30   : > { %vm10186_vm9 = vcmp.ge.s32.totalorder %v10154_v10, 1  ;;  %18250 = vmatmul.mubr.msk.f32.gmra.mrb[26].mxu0 %vm3948_vm15, %v11858_v18  ;;  %v11860_v38 = vsel %vm1873_vm11, %v11857_v19, %v11859_v22  ;;  %v11863_v11 = vrot.slane %v11778_v20, 7  ;;  %v11780_v35 = vmul.f32 %v23728_v45, %v23438_v41 }
 0xc31   : > { %v10156_v9 = vand.u32 15, %v10124_v61  ;;  %18252 = vmatprep.mubr.msk.f32.mxu0 %vm3948_vm15, %v11860_v38  ;;  %v10860_v53 = vsel %vm1873_vm11, %v10857_v33, %v10859_v4  ;;  %v10863_v58 = vrot.slane %v10434_v28, 7  ;;  %v10436_v39 = vmul.f32 %v23841_v17, %v23500_v15 }
 0xc32   : > { %v23925_v37 = vsel %vm1835_vm10, %v22982_v31, %v10369_v56  ;;  %18158 = vmatmul.mubr.msk.f32.gmra.mrb[68].mxu1 %vm3948_vm15, %v10860_v53  ;;  %v10862_v55 = vsel %vm1873_vm11, %v10859_v4, %v10861_v34  ;;  %v10865_v19 = vrot.slane %v10435_v63, 7  ;;  %v10437_v41 = vmul.f32 %v23909_v1, %v23513_v3 }
 0xc33   : > { %v10218_v62 = vsel %vm10186_vm9, 1.0, %v25297_v26  ;;  %v11862_v33 = vsel %vm1873_vm11, %v11859_v22, %v11861_v32  ;;  %v11865_v10 = vrot.slane %v11779_v52, 7  ;;  %18160 = vmatprep.mubr.msk.f32.mxu1 %vm3948_vm15, %v10862_v55  ;;  %v11781_v54 = vmul.f32 %v23732_v0, %v23448_v14 }
 0xc34   : > { %v23940_v20 = vsel %vm1835_vm10, %v10365_v36, %v22982_v31  ;;  %18253 = vmatmul.mubr.msk.f32.gmra.mrb[28].mxu0 %vm3948_vm15, %v11862_v33  ;;  %v11864_v61 = vsel %vm1873_vm11, %v11861_v32, %v11863_v11  ;;  %v11867_v2 = vrot.slane %v11780_v35, 7  ;;  %v11782_v22 = vmul.f32 %v23766_v50, %v23471_v48 }
 0xc35   : > { %vm10188_vm12 = vcmp.ge.s32.totalorder %v10156_v9, 1  ;;  %18255 = vmatprep.mubr.msk.f32.mxu0 %vm3948_vm15, %v11864_v61  ;;  %v10864_v4 = vsel %vm1873_vm11, %v10861_v34, %v10863_v58  ;;  %v10867_v14 = vrot.slane %v10436_v39, 7  ;;  %v10438_v60 = vmul.f32 %v23879_v57, %v23521_v13  ;;  %v25433_v39 = vld [vmem:[#allocation43_spill] sm:$0xff] }
 0xc36   : > { %v10373_v28 = vrot.slane %v10218_v62, 1  ;;  %18161 = vmatmul.mubr.msk.f32.gmra.mrb[70].mxu1 %vm3948_vm15, %v10864_v4  ;;  %v10866_v36 = vsel %vm1873_vm11, %v10863_v58, %v10865_v19  ;;  %v10869_v16 = vrot.slane %v10437_v41, 7  ;;  %v10439_v63 = vmul.f32 %v23940_v20, %v23544_v51  ;;  %v25434_v4 = vld [vmem:[#allocation44_spill] sm:$0xff] }
 0xc37   : > { %v23956_v48 = vsel %vm1835_vm10, %v10369_v56, %v22982_v31  ;;  %v11866_v18 = vsel %vm1873_vm11, %v11863_v11, %v11865_v10  ;;  %v11869_v34 = vrot.slane %v11781_v54, 7  ;;  %18163 = vmatprep.mubr.msk.f32.mxu1 %vm3948_vm15, %v10866_v36  ;;  %v11783_v32 = vmul.f32 %v23756_v42, %v23479_v21 }
 0xc38   : > { %v10220_v52 = vsel %vm10188_vm12, 1.0, %v25297_v26  ;;  %18256 = vmatmul.mubr.msk.f32.gmra.mrb[30].mxu0 %vm3948_vm15, %v11866_v18  ;;  %v11868_v38 = vsel %vm1873_vm11, %v11865_v10, %v11867_v2  ;;  %v11871_v35 = vrot.slane %v11782_v22, 7  ;;  %v11784_v9 = vmul.f32 %v23831_v27, %v23491_v25 }
 0xc39   : > { %18258 = vmatprep.mubr.msk.f32.mxu0 %vm3948_vm15, %v11868_v38  ;;  %v10868_v56 = vsel %vm1873_vm11, %v10865_v19, %v10867_v14  ;;  %v10871_v11 = vrot.slane %v10438_v60, 7  ;;  %v10440_v53 = vmul.f32 %v23925_v37, %v23558_v24  ;;  %v23973_v21 = vsel %vm1835_vm10, %v22982_v31, %v10373_v28 }
 0xc3a   : > { %18164 = vmatmul.mubr.msk.f32.gmra.mrb[72].mxu1 %vm3948_vm15, %v10868_v56  ;;  %v10870_v26 = vsel %vm1873_vm11, %v10867_v14, %v10869_v16  ;;  %v10873_v58 = vrot.slane %v10439_v63, 7  ;;  %v10441_v25 = vmul.f32 %v23956_v48, %v25433_v39  ;;  %v10377_v55 = vrot.slane %v10220_v52, 1 }
 0xc3b   : > { %v11870_v41 = vsel %vm1873_vm11, %v11867_v2, %v11869_v34  ;;  %v11873_v19 = vrot.slane %v11783_v32, 7  ;;  %18166 = vmatprep.mubr.msk.f32.mxu1 %vm3948_vm15, %v10870_v26  ;;  %v11785_v62 = vmul.f32 %v23801_v12, %v23500_v15  ;;  %v23985_v33 = vsel %vm1835_vm10, %v10373_v28, %v22982_v31  ;;  %v25435_v28 = vld [vmem:[#allocation45_spill] sm:$0xff] }
 0xc3c   : > { %18259 = vmatmul.mubr.msk.f32.gmra.mrb[32].mxu0 %vm3948_vm15, %v11870_v41  ;;  %v11872_v10 = vsel %vm1873_vm11, %v11869_v34, %v11871_v35  ;;  %v11875_v54 = vrot.slane %v11784_v9, 7  ;;  %v11786_v61 = vmul.f32 %v23869_v7, %v23513_v3  ;;  %v10872_v2 = vsel %vm1873_vm11, %v10869_v16, %v10871_v11 }
 0xc3d   : > { %18261 = vmatprep.mubr.msk.f32.mxu0 %vm3948_vm15, %v11872_v10  ;;  %v10875_v22 = vrot.slane %v10440_v53, 7  ;;  %v10442_v15 = vmul.f32 %v23973_v21, %v25434_v4  ;;  %v10874_v14 = vsel %vm1873_vm11, %v10871_v11, %v10873_v58  ;;  %v10877_v60 = vrot.slane %v10441_v25, 7  ;;  %v25436_v11 = vld [vmem:[#allocation46_spill] sm:$0xff] }
 0xc3e   : > { %18167 = vmatmul.mubr.msk.f32.gmra.mrb[74].mxu1 %vm3948_vm15, %v10872_v2  ;;  %v10443_v36 = vmul.f32 %v23985_v33, %v25435_v28  ;;  %v24001_v63 = vsel %vm1835_vm10, %v22982_v31, %v10377_v55  ;;  %v11874_v18 = vsel %vm1873_vm11, %v11871_v35, %v11873_v19  ;;  %v11877_v34 = vrot.slane %v11785_v62, 7 }
 0xc3f   : > { %18169 = vmatprep.mubr.msk.f32.mxu1 %vm3948_vm15, %v10874_v14  ;;  %v11787_v16 = vmul.f32 %v23841_v17, %v23521_v13  ;;  %v24009_v32 = vsel %vm1835_vm10, %v10377_v55, %v22982_v31  ;;  %v11876_v52 = vsel %vm1873_vm11, %v11873_v19, %v11875_v54  ;;  %v11879_v38 = vrot.slane %v11786_v61, 7  ;;  %v25437_v55 = vld [vmem:[#allocation47_spill] sm:$0xff] }
 0xc40   : > { %18262 = vmatmul.mubr.msk.f32.gmra.mrb[34].mxu0 %vm3948_vm15, %v11874_v18  ;;  %v11788_v9 = vmul.f32 %v23909_v1, %v23544_v51  ;;  %v10876_v35 = vsel %vm1873_vm11, %v10873_v58, %v10875_v22  ;;  %v10879_v56 = vrot.slane %v10442_v15, 7  ;;  %v10444_v53 = vmul.f32 %v24001_v63, %v25436_v11 }
 0xc41   : > { %18264 = vmatprep.mubr.msk.f32.mxu0 %vm3948_vm15, %v11876_v52  ;;  %v10878_v26 = vsel %vm1873_vm11, %v10875_v22, %v10877_v60  ;;  %v10881_v25 = vrot.slane %v10443_v36, 7  ;;  %v10445_v41 = vmul.f32 %v24009_v32, %v25437_v55  ;;  %v11878_v19 = vsel %vm1873_vm11, %v11875_v54, %v11877_v34  ;;  %v25438_v54 = vld [vmem:[#allocation48_spill] sm:$0xff] }
 0xc42   : > { %18170 = vmatmul.mubr.msk.f32.gmra.mrb[76].mxu1 %vm3948_vm15, %v10876_v35  ;;  %v11881_v62 = vrot.slane %v11787_v16, 7  ;;  %v11789_v58 = vmul.f32 %v23879_v57, %v23558_v24  ;;  %v11880_v10 = vsel %vm1873_vm11, %v11877_v34, %v11879_v38  ;;  %v11883_v61 = vrot.slane %v11788_v9, 7 }
 0xc43   : > { %18172 = vmatprep.mubr.msk.f32.mxu1 %vm3948_vm15, %v10878_v26  ;;  %v11790_v2 = vmul.f32 %v23940_v20, %v25433_v39  ;;  %v10880_v22 = vsel %vm1873_vm11, %v10877_v60, %v10879_v56  ;;  %v10883_v15 = vrot.slane %v10444_v53, 7  ;;  %v10446_v14 = vmul.f32 %v22982_v31, %v25438_v54 }
 0xc44   : > { %18265 = vmatmul.mubr.msk.f32.gmra.mrb[36].mxu0 %vm3948_vm15, %v11878_v19  ;;  %v10882_v36 = vsel %vm1873_vm11, %v10879_v56, %v10881_v25  ;;  %v10885_v18 = vrot.slane %v10445_v41, 7  ;;  %v11882_v16 = vsel %vm1873_vm11, %v11879_v38, %v11881_v62  ;;  %v11885_v34 = vrot.slane %v11789_v58, 7 }
 0xc45   : > { %18267 = vmatprep.mubr.msk.f32.mxu0 %vm3948_vm15, %v11880_v10  ;;  %v11791_v52 = vmul.f32 %v23925_v37, %v25434_v4  ;;  %v11884_v60 = vsel %vm1873_vm11, %v11881_v62, %v11883_v61  ;;  %v11887_v9 = vrot.slane %v11790_v2, 7  ;;  %v11792_v35 = vmul.f32 %v23956_v48, %v25435_v28 }
 0xc46   : > { %18173 = vmatmul.mubr.msk.f32.gmra.mrb[78].mxu1 %vm3948_vm15, %v10880_v22  ;;  %v10884_v56 = vsel %vm1873_vm11, %v10881_v25, %v10883_v15  ;;  %v10887_v53 = vrot.slane %v10446_v14, 7  ;;  %v10886_v38 = vsel %vm1873_vm11, %v10883_v15, %v10885_v18  ;;  %v11886_v26 = vsel %vm1873_vm11, %v11883_v61, %v11885_v34 }
 0xc47   : > { %18175 = vmatprep.mubr.msk.f32.mxu1 %vm3948_vm15, %v10882_v36  ;;  %v11889_v41 = vrot.slane %v11791_v52, 7  ;;  %v11793_v19 = vmul.f32 %v23973_v21, %v25436_v11  ;;  %v11888_v62 = vsel %vm1873_vm11, %v11885_v34, %v11887_v9  ;;  %v11891_v58 = vrot.slane %v11792_v35, 7  ;;  %v25439_v36 = vld [vmem:[#allocation50_spill] sm:$0xff]  ;;  %v24067_v34 = vld [vmem:[#allocation5 + $0x110] sm:$0xff] }
 0xc48   : > { %18268 = vmatmul.mubr.msk.f32.gmra.mrb[38].mxu0 %vm3948_vm15, %v11882_v16  ;;  %v11794_v25 = vmul.f32 %v23985_v33, %v25437_v55  ;;  %v10888_v10 = vsel %vm1873_vm11, %v10885_v18, %v10887_v53  ;;  %v11795_v22 = vmul.f32 %v24001_v63, %v25438_v54  ;;  %v11796_v16 = vmul.f32 %v24009_v32, %v25439_v36 }
 0xc49   : > { %18270 = vmatprep.mubr.msk.f32.mxu0 %vm3948_vm15, %v11884_v60  ;;  %v11890_v61 = vsel %vm1873_vm11, %v11887_v9, %v11889_v41  ;;  %v11893_v2 = vrot.slane %v11793_v19, 7  ;;  %v11892_v15 = vsel %vm1873_vm11, %v11889_v41, %v11891_v58  ;;  %v11797_v60 = vmul.f32 %v22982_v31, %v24067_v34  ;;  %v24082_v41 = vld [vmem:[#allocation5 + $0x18] sm:$0xff]  ;;  %v24086_v19 = vld [vmem:[#allocation5 + $0x20] sm:$0xff] }
 0xc4a   : > { %18176 = vmatmul.mubr.msk.f32.gmra.mrb[80].mxu1 %vm3948_vm15, %v10884_v56  ;;  %v11895_v14 = vrot.slane %v11794_v25, 7  ;;  %v11897_v52 = vrot.slane %v11795_v22, 7  ;;  %v11899_v35 = vrot.slane %v11796_v16, 7  ;;  %v24098_v25 = vmul.f32 %v23831_v27, %v23513_v3 }
 0xc4b   : > { %18178 = vmatprep.mubr.msk.f32.mxu1 %vm3948_vm15, %v10886_v38  ;;  %v11894_v18 = vsel %vm1873_vm11, %v11891_v58, %v11893_v2  ;;  %v11901_v53 = vrot.slane %v11797_v60, 7  ;;  %v25440_v58 = vld [vmem:[#allocation40_spill] sm:$0xff]  ;;  %v12975_v22 = vmul.f32 %v23841_v17, %v23558_v24  ;;  %v12977_v27 = vmul.f32 %v23879_v57, %v25434_v4  ;;  %v24126_v60 = vld [vmem:[#allocation5 + $0x40] sm:$0xff] }
 0xc4c   : > { %18271 = vmatmul.mubr.msk.f32.gmra.mrb[40].mxu0 %vm3948_vm15, %v11886_v26  ;;  %v11896_v9 = vsel %vm1873_vm11, %v11893_v2, %v11895_v14  ;;  %v11898_v56 = vsel %vm1873_vm11, %v11895_v14, %v11897_v52  ;;  %v11900_v38 = vsel %vm1873_vm11, %v11897_v52, %v11899_v35  ;;  %v12974_v2 = vmul.f32 %v23869_v7, %v23544_v51 }
 0xc4d   : > { %18273 = vmatprep.mubr.msk.f32.mxu0 %vm3948_vm15, %v11888_v62  ;;  %v11902_v26 = vsel %vm1873_vm11, %v11899_v35, %v11901_v53  ;;  %v24091_v62 = vld [vmem:[#allocation5 + $0x28] sm:$0xff]  ;;  %v13069_v16 = vrot.slane %v12975_v22, 7  ;;  %v12978_v52 = vmul.f32 %v23940_v20, %v25435_v28  ;;  %v12979_v35 = vmul.f32 %v23925_v37, %v25436_v11 }
 0xc4e   : > { %18179 = vmatmul.mubr.msk.f32.gmra.mrb[82].mxu1 %vm3948_vm15, %v10888_v10  ;;  %v12973_v10 = vmul.f32 %v23801_v12, %v23521_v13  ;;  %v12976_v12 = vmul.f32 %v23909_v1, %v25433_v39  ;;  %v13067_v14 = vrot.slane %v12974_v2, 7  ;;  %v24130_v1 = vld [vmem:[#allocation5 + $0x118] sm:$0xff]  ;;  %v24142_v20 = vld [vmem:[#allocation5 + $0x48] sm:$0xff]  ;;  %v12983_v22 = vmul.f32 %v24001_v63, %v24067_v34 }
 0xc4f   : > { %v13077_v2 = vrot.slane %v12979_v35, 7 }
 0xc50   : > { %18274 = vmatmul.mubr.msk.f32.gmra.mrb[42].mxu0 %vm3948_vm15, %v11890_v61  ;;  %v24102_v61 = vld [vmem:[#allocation5 + $0x30] sm:$0xff]  ;;  %v13065_v3 = vrot.slane %v12973_v10, 7  ;;  %v13071_v17 = vrot.slane %v12976_v12, 7  ;;  %v12981_v10 = vmul.f32 %v23973_v21, %v25438_v54 }
 0xc51   : > { %18276 = vmatprep.mubr.msk.f32.mxu0 %vm3948_vm15, %v11892_v15  ;;  %v24111_v15 = vld [vmem:[#allocation5 + $0x38] sm:$0xff] }
 0xc52   : > { %v24133_v57 = vsel %vm1873_vm11, %v13065_v3, %v13067_v14  ;;  %v24147_v53 = vsel %vm1873_vm11, %v13069_v16, %v13071_v17  ;;  %v13081_v12 = vrot.slane %v12981_v10, 7  ;;  %v24198_v10 = vld [vmem:[#allocation5 + $0x68] sm:$0xff] }
 0xc54   : > { %18277 = vmatmul.mubr.msk.f32.gmra.mrb[44].mxu0 %vm3948_vm15, %v11894_v18  ;;  %v13073_v18 = vrot.slane %v12977_v27, 7  ;;  %v24163_v27 = vmul.f32 %v24009_v32, %v24130_v1 }
 0xc55   : > { %18279 = vmatprep.mubr.msk.f32.mxu0 %vm3948_vm15, %v11896_v9  ;;  %v24136_v9 = vsel %vm1873_vm11, %v13067_v14, %v13069_v16  ;;  %v24165_v14 = vld [vmem:[#allocation5 + $0x50] sm:$0xff]  ;;  %v13085_v16 = vrot.slane %v12983_v22, 7  ;;  %v24214_v22 = vld [vmem:[#allocation5 + $0x88] sm:$0xff] }
 0xc56   : > { %25441 = vst [vmem:[#allocation51_spill] sm:$0xff] %v24163_v27 }
 0xc58   : > { %18280 = vmatmul.mubr.msk.f32.gmra.mrb[46].mxu0 %vm3948_vm15, %v11898_v56  ;;  %v12980_v56 = vmul.f32 %v23956_v48, %v25437_v55  ;;  %v12982_v48 = vmul.f32 %v23985_v33, %v25439_v36 }
 0xc59   : > { %18282 = vmatprep.mubr.msk.f32.mxu0 %vm3948_vm15, %v11900_v38  ;;  %v24150_v38 = vsel %vm1873_vm11, %v13071_v17, %v13073_v18  ;;  %v24175_v17 = vld [vmem:[#allocation5 + $0x58] sm:$0xff] }
 0xc5a   : > { %v13079_v37 = vrot.slane %v12980_v56, 7  ;;  %v13083_v63 = vrot.slane %v12982_v48, 7  ;;  %v24210_v48 = vld [vmem:[#allocation5 + $0x80] sm:$0xff] }
 0xc5c   : > { %18283 = vmatmul.mubr.msk.f32.gmra.mrb[48].mxu0 %vm3948_vm15, %v11902_v26  ;;  %v13075_v26 = vrot.slane %v12978_v52, 7  ;;  %v24173_v33 = vsel %vm1873_vm11, %v13077_v2, %v13079_v37  ;;  %v24180_v32 = vsel %vm1873_vm11, %v13079_v37, %v13081_v12  ;;  %v24184_v52 = vsel %vm1873_vm11, %v13081_v12, %v13083_v63  ;;  %v24206_v37 = vld [vmem:[#allocation5 + $0x78] sm:$0xff]  ;;  %v24218_v12 = vld [vmem:[#allocation5 + $0x90] sm:$0xff] }
 0xc5d   : > { %18289 = vmatprep.mubr.msk.f32.mxu0 %vm3948_vm15, %v24082_v41  ;;  %25442 = vst [vmem:[#allocation53_spill] sm:$0xff] %v24173_v33  ;;  %25443 = vst [vmem:[#allocation68_spill] sm:$0xff] %v24180_v32  ;;  %v24187_v35 = vsel %vm1873_vm11, %v13083_v63, %v13085_v16  ;;  %v24222_v63 = vld [vmem:[#allocation5 + $0x98] sm:$0xff]  ;;  %v25455_v33 = vld [vmem:[#allocation59_spill] sm:$0xff] }
 0xc5e   : > { %v24170_v21 = vsel %vm1873_vm11, %v13075_v26, %v13077_v2  ;;  %25444 = vst [vmem:[#allocation71_spill] sm:$0xff] %v24184_v52  ;;  %25445 = vst [vmem:[#allocation81_spill] sm:$0xff] %v24187_v35  ;;  %v24202_v2 = vld [vmem:[#allocation5 + $0x70] sm:$0xff]  ;;  %v25451_v52 = vld [vmem:[#allocation55_spill] sm:$0xff] }
 0xc5f   : > { %v25449_v35 = vld [vmem:[#allocation32_spill] sm:$0xff]  ;;  %v25453_v32 = vld [vmem:[#allocation57_spill] sm:$0xff] }
 0xc60   : > { %18290 = vmatmul.mubr.msk.f32.vlgmr.msra.gmra.mrb[18].mxu0 %vm3948_vm15, %v24086_v19 }
 0xc61   : > { %19148 = vmatpush3.bf16.msra.mxu0 %v25429_v44  ;;  %18292 = vmatprep.mubr.msk.f32.mxu0 %vm3948_vm15, %v24091_v62  ;;  %v25165_v44 = vrot.slane %v24098_v25, 7 }
 0xc62   : > { %19150 = vmatprep.subr.bf16.mxu0 %v25440_v58 }
 0xc63   : > { %v24122_v7 = vsel %vm1873_vm11, %v25165_v44, %v13065_v3  ;;  %v24159_v3 = vsel %vm1873_vm11, %v13073_v18, %v13075_v26  ;;  %v25164_v18 = vrot.slane %v24163_v27, 7  ;;  %v24194_v26 = vld [vmem:[#allocation5 + $0x60] sm:$0xff]  ;;  %v24234_v44 = vld [vmem:[#allocation5 + $0xb0] sm:$0xff]  ;;  %v24238_v27 = vld [vmem:[#allocation5 + $0xb8] sm:$0xff] }
 0xc64   : > { %18293 = vmatmul.mubr.msk.f32.gmra.mrb[20].mxu0 %vm3948_vm15, %v24102_v61  ;;  %25447 = vst [vmem:[#allocation90_spill] sm:$0xff] %v24238_v27 }
 0xc65   : > { %18295 = vmatprep.mubr.msk.f32.mxu0 %vm3948_vm15, %v24111_v15  ;;  %v24192_v56 = vsel %vm1873_vm11, %v13085_v16, %v25164_v18  ;;  %v24226_v16 = vld [vmem:[#allocation5 + $0xa0] sm:$0xff]  ;;  %v24230_v18 = vld [vmem:[#allocation5 + $0xa8] sm:$0xff] }
 0xc66   : > { %25446 = vst [vmem:[#allocation75_spill] sm:$0xff] %v24192_v56  ;;  %v25448_v56 = vld [vmem:[#allocation52_spill] sm:$0xff] }
 0xc68   : > { %18296 = vmatmul.mubr.msk.f32.gmra.mrb[22].mxu0 %vm3948_vm15, %v24126_v60 }
 0xc69   : > { %18298 = vmatprep.mubr.msk.f32.mxu0 %vm3948_vm15, %v24142_v20 }
 0xc6c   : > { %18299 = vmatmul.mubr.msk.f32.gmra.mrb[24].mxu0 %vm3948_vm15, %v24165_v14 }
 0xc6d   : > { %18301 = vmatprep.mubr.msk.f32.mxu0 %vm3948_vm15, %v24175_v17 }
 0xc70   : > { %18302 = vmatmul.mubr.msk.f32.gmra.mrb[26].mxu0 %vm3948_vm15, %v24194_v26 }
 0xc71   : > { %18304 = vmatprep.mubr.msk.f32.mxu0 %vm3948_vm15, %v24198_v10 }
 0xc74   : > { %18305 = vmatmul.mubr.msk.f32.gmra.mrb[28].mxu0 %vm3948_vm15, %v24202_v2 }
 0xc75   : > { %18307 = vmatprep.mubr.msk.f32.mxu0 %vm3948_vm15, %v24206_v37 }
 0xc78   : > { %18308 = vmatmul.mubr.msk.f32.gmra.mrb[30].mxu0 %vm3948_vm15, %v24210_v48 }
 0xc79   : > { %18310 = vmatprep.mubr.msk.f32.mxu0 %vm3948_vm15, %v24214_v22 }
 0xc7c   : > { %18311 = vmatmul.mubr.msk.f32.gmra.mrb[32].mxu0 %vm3948_vm15, %v24218_v12 }
 0xc7d   : > { %18313 = vmatprep.mubr.msk.f32.mxu0 %vm3948_vm15, %v24222_v63 }
 0xc80   : > { %18314 = vmatmul.mubr.msk.f32.gmra.mrb[34].mxu0 %vm3948_vm15, %v24226_v16 }
 0xc81   : > { %18316 = vmatprep.mubr.msk.f32.mxu0 %vm3948_vm15, %v24230_v18 }
 0xc84   : > { %18317 = vmatmul.mubr.msk.f32.gmra.mrb[36].mxu0 %vm3948_vm15, %v24234_v44 }
 0xc85   : > { %18319 = vmatprep.mubr.msk.f32.mxu0 %vm3948_vm15, %v24238_v27 }
 0xc88   : > { %18320 = vmatmul.mubr.msk.f32.gmra.mrb[38].mxu0 %vm3948_vm15, %v23521_v13  ;;  %v12494_v13 = vmul.f32 %v24082_v41, %v25448_v56  ;;  %v25452_v56 = vld [vmem:[#allocation56_spill] sm:$0xff] }
 0xc89   : > { %18322 = vmatprep.mubr.msk.f32.mxu0 %vm3948_vm15, %v23544_v51  ;;  %v12495_v51 = vmul.f32 %v24086_v19, %v25449_v35  ;;  %v12498_v35 = vmul.f32 %v24111_v15, %v25452_v56 }
 0xc8c   : > { %18323 = vmatmul.mubr.msk.f32.gmra.mrb[40].mxu0 %vm3948_vm15, %v23558_v24  ;;  %v25450_v24 = vld [vmem:[#allocation35_spill] sm:$0xff] }
 0xc8d   : > { %18325 = vmatprep.mubr.msk.f32.mxu0 %vm3948_vm15, %v25433_v39  ;;  %v12496_v39 = vmul.f32 %v24091_v62, %v25450_v24 }
 0xc8f   : > { %v12570_v41 = vrot.slane %v12496_v39, 1 }
 0xc90   : > { %18326 = vmatmul.mubr.msk.f32.gmra.mrb[42].mxu0 %vm3948_vm15, %v25434_v4  ;;  %v12567_v4 = vrot.slane %v12494_v13, 1 }
 0xc91   : > { %18328 = vmatprep.mubr.msk.f32.mxu0 %vm3948_vm15, %v25435_v28  ;;  %v12568_v28 = vrot.slane %v12495_v51, 1  ;;  %v12574_v51 = vrot.slane %v12498_v35, 1 }
 0xc93   : > { %v12571_v13 = vsel %vm1835_vm10, %v12568_v28, %v12570_v41 }
 0xc94   : > { %18329 = vmatmul.mubr.msk.f32.gmra.mrb[44].mxu0 %vm3948_vm15, %v25436_v11  ;;  %v12497_v11 = vmul.f32 %v24102_v61, %v25451_v52  ;;  %v25454_v52 = vld [vmem:[#allocation58_spill] sm:$0xff] }
 0xc95   : > { %18331 = vmatprep.mubr.msk.f32.mxu0 %vm3948_vm15, %v25437_v55  ;;  %v12569_v55 = vsel %vm1835_vm10, %v12567_v4, %v12568_v28  ;;  %v12500_v39 = vmul.f32 %v24142_v20, %v25454_v52  ;;  %v12501_v4 = vmul.f32 %v24165_v14, %v25455_v33 }
 0xc96   : > { %v12572_v24 = vrot.slane %v12497_v11, 1  ;;  %v25456_v11 = vld [vmem:[#allocation41_spill] sm:$0xff] }
 0xc97   : > { %v12578_v35 = vrot.slane %v12500_v39, 1 }
 0xc98   : > { %18332 = vmatmul.mubr.msk.f32.gmra.mrb[46].mxu0 %vm3948_vm15, %v25438_v54  ;;  %v12499_v54 = vmul.f32 %v24126_v60, %v25453_v32  ;;  %v12573_v56 = vsel %vm1835_vm10, %v12570_v41, %v12572_v24  ;;  %v12575_v28 = vsel %vm1835_vm10, %v12572_v24, %v12574_v51  ;;  %v25459_v32 = vld [vmem:[#allocation62_spill] sm:$0xff] }
 0xc99   : > { %18334 = vmatprep.mubr.msk.f32.mxu0 %vm3948_vm15, %v25439_v36  ;;  %v12504_v24 = vmul.f32 %v24198_v10, %v25459_v32 }
 0xc9a   : > { %v12576_v31 = vrot.slane %v12499_v54, 1  ;;  %v12580_v54 = vrot.slane %v12501_v4, 1 }
 0xc9c   : > { %18335 = vmatmul.mubr.msk.f32.gmra.mrb[48].mxu0 %vm3948_vm15, %v24067_v34  ;;  %v12577_v41 = vsel %vm1835_vm10, %v12574_v51, %v12576_v31  ;;  %v12581_v39 = vsel %vm1835_vm10, %v12578_v35, %v12580_v54 }
 0xc9d   : > { %18341 = vmatprep.mubr.msk.f32.mxu0 %vm3948_vm15, %v12569_v55  ;;  %v25457_v55 = vld [vmem:[#allocation60_spill] sm:$0xff] }
 0xc9e   : > { %v12502_v52 = vmul.f32 %v24175_v17, %v25457_v55 }
 0xca0   : > { %18342 = vmatmul.mubr.msk.f32.vlgmr.msra.gmra.mrb[18].mxu0 %vm3948_vm15, %v12571_v13  ;;  %v25458_v13 = vld [vmem:[#allocation61_spill] sm:$0xff] }
 0xca1   : > { %19152 = vmatpush3.bf16.msra.mxu0 %v25440_v58  ;;  %18344 = vmatprep.mubr.msk.f32.mxu0 %vm3948_vm15, %v12573_v56  ;;  %v12503_v33 = vmul.f32 %v24194_v26, %v25458_v13  ;;  %v12579_v58 = vsel %vm1835_vm10, %v12576_v31, %v12578_v35  ;;  %v12582_v56 = vrot.slane %v12502_v52, 1  ;;  %v12586_v13 = vrot.slane %v12504_v24, 1 }
 0xca2   : > { %19154 = vmatprep.subr.bf16.mxu0 %v25456_v11 }
 0xca3   : > { %v12584_v55 = vrot.slane %v12503_v33, 1  ;;  %v12583_v4 = vsel %vm1835_vm10, %v12580_v54, %v12582_v56 }
 0xca4   : > { %18345 = vmatmul.mubr.msk.f32.gmra.mrb[20].mxu0 %vm3948_vm15, %v12575_v28  ;;  %v25460_v28 = vld [vmem:[#allocation63_spill] sm:$0xff] }
 0xca5   : > { %18347 = vmatprep.mubr.msk.f32.mxu0 %vm3948_vm15, %v12577_v41  ;;  %v12505_v51 = vmul.f32 %v24202_v2, %v25460_v28  ;;  %v25461_v41 = vld [vmem:[#allocation37_spill] sm:$0xff]  ;;  %v12585_v52 = vsel %vm1835_vm10, %v12582_v56, %v12584_v55  ;;  %v12587_v33 = vsel %vm1835_vm10, %v12584_v55, %v12586_v13 }
 0xca6   : > { %v12506_v31 = vmul.f32 %v24206_v37, %v25461_v41 }
 0xca7   : > { %v12588_v32 = vrot.slane %v12505_v51, 1 }
 0xca8   : > { %18348 = vmatmul.mubr.msk.f32.gmra.mrb[22].mxu0 %vm3948_vm15, %v12579_v58  ;;  %v25462_v58 = vld [vmem:[#allocation64_spill] sm:$0xff]  ;;  %v12590_v28 = vrot.slane %v12506_v31, 1 }
 0xca9   : > { %18350 = vmatprep.mubr.msk.f32.mxu0 %vm3948_vm15, %v12581_v39  ;;  %v12507_v35 = vmul.f32 %v24210_v48, %v25462_v58  ;;  %v25463_v39 = vld [vmem:[#allocation65_spill] sm:$0xff]  ;;  %v12589_v24 = vsel %vm1835_vm10, %v12586_v13, %v12588_v32 }
 0xcaa   : > { %v12508_v54 = vmul.f32 %v24214_v22, %v25463_v39  ;;  %v12591_v51 = vsel %vm1835_vm10, %v12588_v32, %v12590_v28 }
 0xcab   : > { %v12592_v41 = vrot.slane %v12507_v35, 1 }
 0xcac   : > { %18351 = vmatmul.mubr.msk.f32.gmra.mrb[24].mxu0 %vm3948_vm15, %v12583_v4  ;;  %v25464_v4 = vld [vmem:[#allocation66_spill] sm:$0xff]  ;;  %v12594_v58 = vrot.slane %v12508_v54, 1 }
 0xcad   : > { %18353 = vmatprep.mubr.msk.f32.mxu0 %vm3948_vm15, %v12585_v52  ;;  %v12509_v56 = vmul.f32 %v24218_v12, %v25464_v4  ;;  %v25465_v52 = vld [vmem:[#allocation67_spill] sm:$0xff]  ;;  %v12593_v31 = vsel %vm1835_vm10, %v12590_v28, %v12592_v41 }
 0xcae   : > { %v12510_v55 = vmul.f32 %v24222_v63, %v25465_v52  ;;  %v12595_v35 = vsel %vm1835_vm10, %v12592_v41, %v12594_v58 }
 0xcaf   : > { %v12596_v39 = vrot.slane %v12509_v56, 1 }
 0xcb0   : > { %18354 = vmatmul.mubr.msk.f32.gmra.mrb[26].mxu0 %vm3948_vm15, %v12587_v33  ;;  %v25466_v33 = vld [vmem:[#allocation69_spill] sm:$0xff]  ;;  %v12598_v4 = vrot.slane %v12510_v55, 1 }
 0xcb1   : > { %18356 = vmatprep.mubr.msk.f32.mxu0 %vm3948_vm15, %v12589_v24  ;;  %v12511_v13 = vmul.f32 %v24226_v16, %v25466_v33  ;;  %v25467_v24 = vld [vmem:[#allocation70_spill] sm:$0xff]  ;;  %v12597_v54 = vsel %vm1835_vm10, %v12594_v58, %v12596_v39  ;;  %v25471_v58 = vld [vmem:[#allocation77_spill] sm:$0xff] }
 0xcb2   : > { %v12512_v32 = vmul.f32 %v24230_v18, %v25467_v24  ;;  %v12599_v56 = vsel %vm1835_vm10, %v12596_v39, %v12598_v4  ;;  %v24347_v39 = vld [vmem:[#allocation5 + $0xc8] sm:$0xff] }
 0xcb3   : > { %v12600_v52 = vrot.slane %v12511_v13, 1  ;;  %25472 = vst [vmem:[#allocation83_spill] sm:$0xff] %v24347_v39 }
 0xcb4   : > { %18357 = vmatmul.mubr.msk.f32.gmra.mrb[28].mxu0 %vm3948_vm15, %v12591_v51  ;;  %v25468_v51 = vld [vmem:[#allocation73_spill] sm:$0xff]  ;;  %v12602_v33 = vrot.slane %v12512_v32, 1  ;;  %v25473_v32 = vld [vmem:[#allocation78_spill] sm:$0xff] }
 0xcb5   : > { %18359 = vmatprep.mubr.msk.f32.mxu0 %vm3948_vm15, %v12593_v31  ;;  %v12513_v28 = vmul.f32 %v24234_v44, %v25468_v51  ;;  %v25469_v31 = vld [vmem:[#allocation74_spill] sm:$0xff]  ;;  %v12601_v55 = vsel %vm1835_vm10, %v12598_v4, %v12600_v52 }
 0xcb6   : > { %v12514_v41 = vmul.f32 %v24238_v27, %v25469_v31  ;;  %v12516_v31 = vmul.f32 %v24347_v39, %v25473_v32  ;;  %v25475_v27 = vld [vmem:[#allocation79_spill] sm:$0xff]  ;;  %v25479_v39 = vld [vmem:[#allocation82_spill] sm:$0xff] }
 0xcb7   : > { %v12604_v24 = vrot.slane %v12513_v28, 1 }
 0xcb8   : > { %18360 = vmatmul.mubr.msk.f32.gmra.mrb[30].mxu0 %vm3948_vm15, %v12595_v35  ;;  %v24341_v35 = vld [vmem:[#allocation5 + $0xc0] sm:$0xff]  ;;  %v12606_v51 = vrot.slane %v12514_v41, 1  ;;  %v12610_v41 = vrot.slane %v12516_v31, 1 }
 0xcb9   : > { %18362 = vmatprep.mubr.msk.f32.mxu0 %vm3948_vm15, %v12597_v54  ;;  %25470 = vst [vmem:[#allocation76_spill] sm:$0xff] %v24341_v35  ;;  %v12515_v13 = vmul.f32 %v24341_v35, %v25471_v58  ;;  %v12603_v54 = vsel %vm1835_vm10, %v12600_v52, %v12602_v33  ;;  %v12605_v4 = vsel %vm1835_vm10, %v12602_v33, %v12604_v24  ;;  %v25477_v35 = vld [vmem:[#allocation80_spill] sm:$0xff] }
 0xcba   : > { %v12607_v52 = vsel %vm1835_vm10, %v12604_v24, %v12606_v51 }
 0xcbb   : > { %v12608_v28 = vrot.slane %v12515_v13, 1 }
 0xcbc   : > { %18363 = vmatmul.mubr.msk.f32.gmra.mrb[32].mxu0 %vm3948_vm15, %v12599_v56  ;;  %v24353_v56 = vld [vmem:[#allocation5 + $0xd0] sm:$0xff] }
 0xcbd   : > { %18365 = vmatprep.mubr.msk.f32.mxu0 %vm3948_vm15, %v12601_v55  ;;  %25474 = vst [vmem:[#allocation54_spill] sm:$0xff] %v24353_v56  ;;  %v12517_v58 = vmul.f32 %v24353_v56, %v25475_v27  ;;  %v24359_v55 = vld [vmem:[#allocation5 + $0xd8] sm:$0xff]  ;;  %v12609_v33 = vsel %vm1835_vm10, %v12606_v51, %v12608_v28  ;;  %v12611_v24 = vsel %vm1835_vm10, %v12608_v28, %v12610_v41  ;;  %v25481_v56 = vld [vmem:[#allocation84_spill] sm:$0xff] }
 0xcbe   : > { %25476 = vst [vmem:[#allocation85_spill] sm:$0xff] %v24359_v55  ;;  %v12518_v32 = vmul.f32 %v24359_v55, %v25477_v35  ;;  %v25483_v55 = vld [vmem:[#allocation86_spill] sm:$0xff] }
 0xcbf   : > { %v12612_v13 = vrot.slane %v12517_v58, 1 }
 0xcc0   : > { %18366 = vmatmul.mubr.msk.f32.gmra.mrb[34].mxu0 %vm3948_vm15, %v12603_v54  ;;  %v24365_v54 = vld [vmem:[#allocation5 + $0xe0] sm:$0xff]  ;;  %v12614_v31 = vrot.slane %v12518_v32, 1 }
 0xcc1   : > { %18368 = vmatprep.mubr.msk.f32.mxu0 %vm3948_vm15, %v12605_v4  ;;  %25478 = vst [vmem:[#allocation88_spill] sm:$0xff] %v24365_v54  ;;  %v12519_v27 = vmul.f32 %v24365_v54, %v25479_v39  ;;  %v24371_v4 = vld [vmem:[#allocation5 + $0xe8] sm:$0xff]  ;;  %v12613_v51 = vsel %vm1835_vm10, %v12610_v41, %v12612_v13 }
 0xcc2   : > { %25480 = vst [vmem:[#allocation92_spill] sm:$0xff] %v24371_v4  ;;  %v12520_v35 = vmul.f32 %v24371_v4, %v25481_v56  ;;  %v12615_v28 = vsel %vm1835_vm10, %v12612_v13, %v12614_v31  ;;  %v25484_v54 = vld [vmem:[#allocation87_spill] sm:$0xff]  ;;  %v25486_v4 = vld [vmem:[#allocation89_spill] sm:$0xff] }
 0xcc3   : > { %v12616_v58 = vrot.slane %v12519_v27, 1 }
 0xcc4   : > { %18369 = vmatmul.mubr.msk.f32.gmra.mrb[36].mxu0 %vm3948_vm15, %v12607_v52  ;;  %v24377_v52 = vld [vmem:[#allocation5 + $0xf0] sm:$0xff]  ;;  %v12618_v32 = vrot.slane %v12520_v35, 1 }
 0xcc5   : > { %18371 = vmatprep.mubr.msk.f32.mxu0 %vm3948_vm15, %v12609_v33  ;;  %25482 = vst [vmem:[#allocation93_spill] sm:$0xff] %v24377_v52  ;;  %v12521_v39 = vmul.f32 %v24377_v52, %v25483_v55  ;;  %v24383_v33 = vld [vmem:[#allocation5 + $0xf8] sm:$0xff]  ;;  %v12617_v41 = vsel %vm1835_vm10, %v12614_v31, %v12616_v58 }
 0xcc6   : > { %v12522_v56 = vmul.f32 %v24383_v33, %v25484_v54  ;;  %v12619_v13 = vsel %vm1835_vm10, %v12616_v58, %v12618_v32 }
 0xcc7   : > { %v12620_v27 = vrot.slane %v12521_v39, 1  ;;  %v25488_v39 = vld [vmem:[#allocation49_spill] sm:$0xff] }
 0xcc8   : > { %18372 = vmatmul.mubr.msk.f32.gmra.mrb[38].mxu0 %vm3948_vm15, %v12611_v24  ;;  %v24389_v24 = vld [vmem:[#allocation5 + $0x100] sm:$0xff]  ;;  %v12622_v35 = vrot.slane %v12522_v56, 1  ;;  %v12525_v31 = vmul.f32 %v25488_v39, %v24067_v34 }
 0xcc9   : > { %18374 = vmatprep.mubr.msk.f32.mxu0 %vm3948_vm15, %v12613_v51  ;;  %25485 = vst [vmem:[#allocation72_spill] sm:$0xff] %v24389_v24  ;;  %v12523_v55 = vmul.f32 %v24389_v24, %v25486_v4  ;;  %v25487_v51 = vld [vmem:[#allocation91_spill] sm:$0xff] }
 0xcca   : > { %v12524_v52 = vmul.f32 %v25487_v51, %v25439_v36  ;;  %v12623_v4 = vsel %vm1835_vm10, %v12620_v27, %v12622_v35  ;;  %v12628_v56 = vrot.slane %v12525_v31, 1  ;;  %v12956_v31 = vmul.f32 %v24111_v15, %v25392_v47 }
 0xccb   : > { %v12624_v54 = vrot.slane %v12523_v55, 1  ;;  %v25491_v55 = vld [vmem:[#allocation33_spill] sm:$0xff] }
 0xccc   : > { %18375 = vmatmul.mubr.msk.f32.gmra.mrb[40].mxu0 %vm3948_vm15, %v12615_v28  ;;  %v12621_v28 = vsel %vm1835_vm10, %v12618_v32, %v12620_v27  ;;  %v12626_v24 = vrot.slane %v12524_v52, 1  ;;  %v12953_v51 = vmul.f32 %v24086_v19, %v25491_v55  ;;  %v25492_v52 = vld [vmem:[#allocation38_spill] sm:$0xff]  ;;  %v13031_v55 = vrot.slane %v12956_v31, 7 }
 0xccd   : > { %18377 = vmatprep.mubr.msk.f32.mxu0 %vm3948_vm15, %v12617_v41  ;;  %v25489_v41 = vld [vmem:[#allocation94_spill] sm:$0xff]  ;;  %v12625_v36 = vsel %vm1835_vm10, %v12622_v35, %v12624_v54  ;;  %v12955_v39 = vmul.f32 %v24102_v61, %v25492_v52 }
 0xcce   : > { %v12526_v58 = vmul.f32 %v25489_v41, %v24130_v1 }
 0xccf   : > { %v13029_v19 = vrot.slane %v12955_v39, 7 }
 0xcd0   : > { %18378 = vmatmul.mubr.msk.f32.gmra.mrb[42].mxu0 %vm3948_vm15, %v12619_v13  ;;  %v25490_v13 = vld [vmem:[#allocation36_spill] sm:$0xff]  ;;  %v12630_v27 = vrot.slane %v12526_v58, 1 }
 0xcd1   : > { %18380 = vmatprep.mubr.msk.f32.mxu0 %vm3948_vm15, %v12621_v28  ;;  %v12954_v32 = vmul.f32 %v24091_v62, %v25490_v13  ;;  %v12627_v28 = vsel %vm1835_vm10, %v12624_v54, %v12626_v24  ;;  %v12957_v54 = vmul.f32 %v24126_v60, %v25397_v49  ;;  %v13032_v49 = vsel %vm1873_vm11, %v13029_v19, %v13031_v55 }
 0xcd2   : > { %v12631_v13 = vsel %vm1835_vm10, %v12628_v56, %v12630_v27 }
 0xcd3   : > { %v13027_v35 = vrot.slane %v12954_v32, 7  ;;  %v13033_v32 = vrot.slane %v12957_v54, 7 }
 0xcd4   : > { %18381 = vmatmul.mubr.msk.f32.gmra.mrb[44].mxu0 %vm3948_vm15, %v12623_v4  ;;  %v12629_v4 = vsel %vm1835_vm10, %v12626_v24, %v12628_v56  ;;  %v12958_v24 = vmul.f32 %v24142_v20, %v25403_v43  ;;  %v12960_v56 = vmul.f32 %v24175_v17, %v25413_v23  ;;  %v25493_v43 = vld [vmem:[#allocation42_spill] sm:$0xff]  ;;  %v12962_v23 = vmul.f32 %v24198_v10, %v25418_v8 }
 0xcd5   : > { %18383 = vmatprep.mubr.msk.f32.mxu0 %vm3948_vm15, %v12625_v36  ;;  %v13026_v36 = vrot.slane %v12953_v51, 7  ;;  %v13030_v47 = vsel %vm1873_vm11, %v13027_v35, %v13029_v19  ;;  %v12959_v51 = vmul.f32 %v24165_v14, %v25406_v46  ;;  %v12961_v46 = vmul.f32 %v24194_v26, %v25417_v30 }
 0xcd6   : > { %v13035_v39 = vrot.slane %v12958_v24, 7  ;;  %v12963_v30 = vmul.f32 %v24202_v2, %v25421_v5  ;;  %v13043_v19 = vrot.slane %v12962_v23, 7  ;;  %v12964_v8 = vmul.f32 %v24206_v37, %v23639_v6 }
 0xcd7   : > { %v13028_v58 = vsel %vm1873_vm11, %v13026_v36, %v13027_v35  ;;  %v13037_v27 = vrot.slane %v12959_v51, 7  ;;  %v13041_v36 = vrot.slane %v12961_v46, 7  ;;  %v12965_v5 = vmul.f32 %v24210_v48, %v23658_v40 }
 0xcd8   : > { %18384 = vmatmul.mubr.msk.f32.gmra.mrb[46].mxu0 %vm3948_vm15, %v12627_v28  ;;  %v13034_v28 = vsel %vm1873_vm11, %v13031_v55, %v13033_v32  ;;  %v13036_v52 = vsel %vm1873_vm11, %v13033_v32, %v13035_v39  ;;  %v13045_v24 = vrot.slane %v12963_v30, 7  ;;  %v13047_v32 = vrot.slane %v12964_v8, 7 }
 0xcd9   : > { %18386 = vmatprep.mubr.msk.f32.mxu0 %vm3948_vm15, %v12629_v4  ;;  %v13039_v4 = vrot.slane %v12960_v56, 7  ;;  %v13038_v31 = vsel %vm1873_vm11, %v13035_v39, %v13037_v27  ;;  %v12966_v6 = vmul.f32 %v24214_v22, %v23662_v59  ;;  %v13049_v56 = vrot.slane %v12965_v5, 7 }
 0xcda   : > { %v13046_v39 = vsel %vm1873_vm11, %v13043_v19, %v13045_v24  ;;  %v12967_v40 = vmul.f32 %v24218_v12, %v23668_v29  ;;  %v12968_v59 = vmul.f32 %v24222_v63, %v23728_v45  ;;  %v12969_v29 = vmul.f32 %v24226_v16, %v23732_v0 }
 0xcdb   : > { %v13042_v55 = vsel %vm1873_vm11, %v13039_v4, %v13041_v36  ;;  %v12970_v30 = vmul.f32 %v24230_v18, %v23766_v50  ;;  %v12971_v0 = vmul.f32 %v24234_v44, %v23756_v42 }
 0xcdc   : > { %18387 = vmatmul.mubr.msk.f32.gmra.mrb[48].mxu0 %vm3948_vm15, %v12631_v13  ;;  %v13040_v13 = vsel %vm1873_vm11, %v13037_v27, %v13039_v4  ;;  %v13051_v27 = vrot.slane %v12966_v6, 7  ;;  %v13050_v4 = vsel %vm1873_vm11, %v13047_v32, %v13049_v56  ;;  %v13053_v23 = vrot.slane %v12967_v40, 7 }
 0xcdd   : > { %18393 = vmatprep.mubr.msk.f32.mxu0 %vm3948_vm15, %v13028_v58  ;;  %v13057_v8 = vrot.slane %v12969_v29, 7  ;;  %v25494_v40 = vrot.slane %v24098_v25, 7 }
 0xce0   : > { %18394 = vmatmul.mubr.msk.f32.vlgmr.msra.gmra.mrb[18].mxu0 %vm3948_vm15, %v13030_v47  ;;  %v13044_v47 = vsel %vm1873_vm11, %v13041_v36, %v13043_v19  ;;  %v13055_v36 = vrot.slane %v12968_v59, 7  ;;  %v13054_v19 = vsel %vm1873_vm11, %v13051_v27, %v13053_v23 }
 0xce1   : > { %19156 = vmatpush3.bf16.msra.mxu0 %v25456_v11  ;;  %18396 = vmatprep.mubr.msk.f32.mxu0 %vm3948_vm15, %v13032_v49 }
 0xce2   : > { %19158 = vmatprep.subr.bf16.mxu0 %v25493_v43 }
 0xce3   : > { %v24443_v35 = vpop.f32.mrb[52].mxu1 }
 0xce4   : > { %18397 = vmatmul.mubr.msk.f32.gmra.mrb[20].mxu0 %vm3948_vm15, %v13034_v28  ;;  %v24448_v11 = vpop.f32.mrb[53].mxu1  ;;  %v13048_v28 = vsel %vm1873_vm11, %v13045_v24, %v13047_v32  ;;  %v13059_v24 = vrot.slane %v12970_v30, 7  ;;  %v13061_v32 = vrot.slane %v12971_v0, 7 }
 0xce5   : > { %18399 = vmatprep.mubr.msk.f32.mxu0 %vm3948_vm15, %v13036_v52 }
 0xce6   : > { %v13060_v6 = vsel %vm1873_vm11, %v13057_v8, %v13059_v24 }
 0xce7   : > { %v24455_v54 = vpop.f32.mrb[54].mxu1 }
 0xce8   : > { %18400 = vmatmul.mubr.msk.f32.gmra.mrb[22].mxu0 %vm3948_vm15, %v13038_v31  ;;  %v24460_v58 = vpop.f32.mrb[55].mxu1  ;;  %v13052_v31 = vsel %vm1873_vm11, %v13049_v56, %v13051_v27  ;;  %v13062_v56 = vsel %vm1873_vm11, %v13059_v24, %v13061_v32  ;;  %v25506_v24 = vld [vmem:[#allocation75_spill] sm:$0xff] }
 0xce9   : > { %18402 = vmatprep.mubr.msk.f32.mxu0 %vm3948_vm15, %v13040_v13 }
 0xceb   : > { %v24467_v51 = vpop.f32.mrb[56].mxu1 }
 0xcec   : > { %18403 = vmatmul.mubr.msk.f32.gmra.mrb[24].mxu0 %vm3948_vm15, %v13042_v55  ;;  %v24472_v49 = vpop.f32.mrb[57].mxu1  ;;  %v13056_v55 = vsel %vm1873_vm11, %v13053_v23, %v13055_v36 }
 0xced   : > { %18405 = vmatprep.mubr.msk.f32.mxu0 %vm3948_vm15, %v13044_v47  ;;  %v13058_v47 = vsel %vm1873_vm11, %v13055_v36, %v13057_v8  ;;  %v25499_v36 = vld [vmem:[#allocation34_spill] sm:$0xff] }
 0xcf0   : > { %18406 = vmatmul.mubr.msk.f32.gmra.mrb[26].mxu0 %vm3948_vm15, %v13046_v39  ;;  %v24479_v46 = vpop.f32.mrb[58].mxu1 }
 0xcf1   : > { %18408 = vmatprep.mubr.msk.f32.mxu0 %vm3948_vm15, %v13048_v28  ;;  %v24484_v52 = vpop.f32.mrb[59].mxu1  ;;  %v13064_v28 = vsel %vm1873_vm11, %v13061_v32, %v25494_v40 }
 0xcf4   : > { %18409 = vmatmul.mubr.msk.f32.gmra.mrb[28].mxu0 %vm3948_vm15, %v13050_v4 }
 0xcf5   : > { %18411 = vmatprep.mubr.msk.f32.mxu0 %vm3948_vm15, %v13052_v31  ;;  %v24494_v45 = vpop.f32.mrb[60].mxu1  ;;  %v24550_v31 = vld [vmem:[#allocation5 + $0x120] sm:$0xff] }
 0xcf6   : > { %v24496_v13 = vpop.f32.mrb[61].mxu1 }
 0xcf8   : > { %18412 = vmatmul.mubr.msk.f32.gmra.mrb[30].mxu0 %vm3948_vm15, %v13054_v19  ;;  %v25502_v19 = vld [vmem:[#allocation71_spill] sm:$0xff] }
 0xcf9   : > { %18414 = vmatprep.mubr.msk.f32.mxu0 %vm3948_vm15, %v13056_v55  ;;  %v24504_v50 = vpop.f32.mrb[62].mxu1  ;;  %v25505_v55 = vld [vmem:[#allocation81_spill] sm:$0xff] }
 0xcfa   : > { %v24506_v5 = vpop.f32.mrb[63].mxu1 }
 0xcfc   : > { %18415 = vmatmul.mubr.msk.f32.gmra.mrb[32].mxu0 %vm3948_vm15, %v13058_v47  ;;  %v25507_v47 = vld [vmem:[#allocation51_spill] sm:$0xff] }
 0xcfd   : > { %18417 = vmatprep.mubr.msk.f32.mxu0 %vm3948_vm15, %v13060_v6  ;;  %v24512_v42 = vpop.f32.mrb[64].mxu1  ;;  %v25508_v32 = vrot.slane %v25507_v47, 7  ;;  %v25521_v47 = vld [vmem:[#allocation92_spill] sm:$0xff] }
 0xcfe   : > { %v24514_v39 = vpop.f32.mrb[65].mxu1 }
 0xd00   : > { %18418 = vmatmul.mubr.msk.f32.gmra.mrb[34].mxu0 %vm3948_vm15, %v13062_v56 }
 0xd01   : > { %18420 = vmatprep.mubr.msk.f32.mxu0 %vm3948_vm15, %v13064_v28  ;;  %v24522_v27 = vpop.f32.mrb[66].mxu1 }
 0xd02   : > { %v24524_v59 = vpop.f32.mrb[67].mxu1 }
 0xd04   : > { %18421 = vmatmul.mubr.msk.f32.gmra.mrb[36].mxu0 %vm3948_vm15, %v24122_v7 }
 0xd05   : > { %18423 = vmatprep.mubr.msk.f32.mxu0 %vm3948_vm15, %v24133_v57  ;;  %v24530_v4 = vpop.f32.mrb[68].mxu1 }
 0xd06   : > { %v24532_v23 = vpop.f32.mrb[69].mxu1 }
 0xd08   : > { %18424 = vmatmul.mubr.msk.f32.gmra.mrb[38].mxu0 %vm3948_vm15, %v24136_v9  ;;  %v25497_v9 = vld [vmem:[#allocation53_spill] sm:$0xff] }
 0xd09   : > { %18426 = vmatprep.mubr.msk.f32.mxu0 %vm3948_vm15, %v24147_v53  ;;  %v24538_v25 = vpop.f32.mrb[70].mxu1 }
 0xd0a   : > { %v24540_v29 = vpop.f32.mrb[71].mxu1 }
 0xd0c   : > { %18427 = vmatmul.mubr.msk.f32.gmra.mrb[40].mxu0 %vm3948_vm15, %v24150_v38  ;;  %v12985_v38 = vmul.f32 %v25499_v36, %v24550_v31 }
 0xd0d   : > { %18429 = vmatprep.mubr.msk.f32.mxu0 %vm3948_vm15, %v24159_v3  ;;  %v24546_v7 = vpop.f32.mrb[72].mxu1  ;;  %v25501_v3 = vld [vmem:[#allocation68_spill] sm:$0xff] }
 0xd0e   : > { %25495 = vst [vmem:[#allocation39_spill] sm:$0xff] %v24546_v7  ;;  %v24548_v57 = vpop.f32.mrb[73].mxu1  ;;  %v13089_v0 = vrot.slane %v12985_v38, 7  ;;  %v25531_v7 = vld [vmem:[#allocation59_spill] sm:$0xff] }
 0xd0f   : > { %25496 = vst [vmem:[#allocation43_spill] sm:$0xff] %v24548_v57 }
 0xd10   : > { %18430 = vmatmul.mubr.msk.f32.gmra.mrb[42].mxu0 %vm3948_vm15, %v24170_v21  ;;  %v13090_v6 = vsel %vm1873_vm11, %v25508_v32, %v13089_v0  ;;  %v25518_v0 = vld [vmem:[#allocation54_spill] sm:$0xff]  ;;  %v25522_v32 = vld [vmem:[#allocation93_spill] sm:$0xff] }
 0xd11   : > { %18432 = vmatprep.mubr.msk.f32.mxu0 %vm3948_vm15, %v25497_v9  ;;  %v24556_v53 = vpop.f32.mrb[74].mxu1 }
 0xd12   : > { %25498 = vst [vmem:[#allocation44_spill] sm:$0xff] %v24556_v53  ;;  %v24560_v30 = vpop.f32.mrb[75].mxu1  ;;  %v25527_v53 = vld [vmem:[#allocation55_spill] sm:$0xff] }
 0xd13   : > { %25500 = vst [vmem:[#allocation45_spill] sm:$0xff] %v24560_v30  ;;  %v13685_v57 = vmul.f32 %v24126_v60, %v25527_v53 }
 0xd14   : > { %18433 = vmatmul.mubr.msk.f32.gmra.mrb[44].mxu0 %vm3948_vm15, %v25501_v3  ;;  %v25516_v3 = vld [vmem:[#allocation76_spill] sm:$0xff] }
 0xd15   : > { %18435 = vmatprep.mubr.msk.f32.mxu0 %vm3948_vm15, %v25502_v19  ;;  %v24566_v8 = vpop.f32.mrb[76].mxu1  ;;  %v25517_v19 = vld [vmem:[#allocation83_spill] sm:$0xff] }
 0xd16   : > { %25503 = vst [vmem:[#allocation46_spill] sm:$0xff] %v24566_v8  ;;  %v24568_v21 = vpop.f32.mrb[77].mxu1 }
 0xd17   : > { %25504 = vst [vmem:[#allocation47_spill] sm:$0xff] %v24568_v21 }
 0xd18   : > { %18436 = vmatmul.mubr.msk.f32.gmra.mrb[46].mxu0 %vm3948_vm15, %v25505_v55  ;;  %v25519_v55 = vld [vmem:[#allocation85_spill] sm:$0xff] }
 0xd19   : > { %18438 = vmatprep.mubr.msk.f32.mxu0 %vm3948_vm15, %v25506_v24  ;;  %v24577_v56 = vpop.f32.mrb[78].mxu1  ;;  %v25520_v24 = vld [vmem:[#allocation88_spill] sm:$0xff] }
 0xd1a   : > { %25509 = vst [vmem:[#allocation48_spill] sm:$0xff] %v24577_v56  ;;  %v24579_v40 = vpop.f32.mrb[79].mxu1  ;;  %v25526_v56 = vld [vmem:[#allocation35_spill] sm:$0xff] }
 0xd1b   : > { %25510 = vst [vmem:[#allocation50_spill] sm:$0xff] %v24579_v40  ;;  %v24651_v40 = vld [vmem:[#allocation5 + $0x108] sm:$0xff]  ;;  %v13684_v21 = vmul.f32 %v24111_v15, %v25526_v56  ;;  %v13760_v56 = vrot.slane %v13685_v57, 1 }
 0xd1c   : > { %18439 = vmatmul.mubr.msk.f32.gmra.mrb[48].mxu0 %vm3948_vm15, %v13090_v6  ;;  %v25523_v6 = vld [vmem:[#allocation72_spill] sm:$0xff] }
 0xd1d   : > { %18445 = vmatprep.mubr.msk.f32.mxu0 %vm3948_vm15, %v24091_v62  ;;  %v24584_v28 = vpop.f32.mrb[80].mxu1 }
 0xd1e   : > { %25511 = vst [vmem:[#allocation40_spill] sm:$0xff] %v24584_v28  ;;  %v24586_v9 = vpop.f32.mrb[81].mxu1 }
 0xd1f   : > { %25512 = vst [vmem:[#allocation41_spill] sm:$0xff] %v24586_v9  ;;  %v25525_v9 = vld [vmem:[#allocation32_spill] sm:$0xff] }
 0xd20   : > { %18446 = vmatmul.mubr.msk.f32.vlgmr.msra.gmra.mrb[18].mxu0 %vm3948_vm15, %v24102_v61  ;;  %v13683_v28 = vmul.f32 %v24102_v61, %v25525_v9  ;;  %v25528_v61 = vld [vmem:[#allocation56_spill] sm:$0xff] }
 0xd21   : > { %19160 = vmatpush3.bf16.msra.mxu0 %v25493_v43  ;;  %18448 = vmatprep.mubr.msk.f32.mxu0 %vm3948_vm15, %v24111_v15  ;;  %v24593_v36 = vpop.f32.mrb[82].mxu1  ;;  %v25515_v43 = vld [vmem:[#allocation90_spill] sm:$0xff]  ;;  %v13686_v9 = vmul.f32 %v24142_v20, %v25528_v61 }
 0xd22   : > { %25513 = vst [vmem:[#allocation94_spill] sm:$0xff] %v24593_v36  ;;  %v24595_v38 = vpop.f32.mrb[83].mxu1  ;;  %v13756_v30 = vrot.slane %v13683_v28, 1  ;;  %v25530_v28 = vld [vmem:[#allocation58_spill] sm:$0xff] }
 0xd23   : > { %25514 = vst [vmem:[#allocation36_spill] sm:$0xff] %v24595_v38  ;;  %v25524_v38 = vld [vmem:[#allocation52_spill] sm:$0xff]  ;;  %v13762_v53 = vrot.slane %v13686_v9, 1 }
 0xd24   : > { %18449 = vmatmul.mubr.msk.f32.gmra.mrb[20].mxu0 %vm3948_vm15, %v24126_v60  ;;  %v13682_v36 = vmul.f32 %v24091_v62, %v25524_v38  ;;  %v13758_v62 = vrot.slane %v13684_v21, 1  ;;  %v25529_v38 = vld [vmem:[#allocation57_spill] sm:$0xff]  ;;  %v13688_v21 = vmul.f32 %v24175_v17, %v25530_v28  ;;  %v25535_v28 = vld [vmem:[#allocation63_spill] sm:$0xff] }
 0xd25   : > { %18451 = vmatprep.mubr.msk.f32.mxu0 %vm3948_vm15, %v24142_v20 }
 0xd26   : > { %v13755_v8 = vrot.slane %v13682_v36, 1  ;;  %v13687_v36 = vmul.f32 %v24165_v14, %v25529_v38  ;;  %v13759_v60 = vsel %vm1835_vm10, %v13756_v30, %v13758_v62  ;;  %v13761_v20 = vsel %vm1835_vm10, %v13758_v62, %v13760_v56  ;;  %v25533_v38 = vld [vmem:[#allocation61_spill] sm:$0xff] }
 0xd27   : > { %v13766_v57 = vrot.slane %v13688_v21, 1  ;;  %v13691_v62 = vmul.f32 %v24202_v2, %v25533_v38  ;;  %v25539_v38 = vld [vmem:[#allocation66_spill] sm:$0xff] }
 0xd28   : > { %18452 = vmatmul.mubr.msk.f32.gmra.mrb[22].mxu0 %vm3948_vm15, %v24165_v14  ;;  %v13757_v15 = vsel %vm1835_vm10, %v13755_v8, %v13756_v30  ;;  %v13764_v61 = vrot.slane %v13687_v36, 1  ;;  %v13689_v8 = vmul.f32 %v24194_v26, %v25531_v7  ;;  %v13763_v14 = vsel %vm1835_vm10, %v13760_v56, %v13762_v53  ;;  %v25534_v36 = vld [vmem:[#allocation62_spill] sm:$0xff] }
 0xd29   : > { %18454 = vmatprep.mubr.msk.f32.mxu0 %vm3948_vm15, %v24175_v17  ;;  %v13692_v56 = vmul.f32 %v24206_v37, %v25534_v36 }
 0xd2a   : > { %v13765_v17 = vsel %vm1835_vm10, %v13762_v53, %v13764_v61  ;;  %v13768_v9 = vrot.slane %v13689_v8, 1  ;;  %v13693_v53 = vmul.f32 %v24210_v48, %v25535_v28 }
 0xd2b   : > { %v13774_v21 = vrot.slane %v13692_v56, 1 }
 0xd2c   : > { %18455 = vmatmul.mubr.msk.f32.gmra.mrb[24].mxu0 %vm3948_vm15, %v24194_v26  ;;  %v13767_v26 = vsel %vm1835_vm10, %v13764_v61, %v13766_v57  ;;  %v13776_v8 = vrot.slane %v13693_v53, 1  ;;  %v25542_v53 = vld [vmem:[#allocation70_spill] sm:$0xff] }
 0xd2d   : > { %18457 = vmatprep.mubr.msk.f32.mxu0 %vm3948_vm15, %v24198_v10 }
 0xd30   : > { %18458 = vmatmul.mubr.msk.f32.gmra.mrb[26].mxu0 %vm3948_vm15, %v24202_v2 }
 0xd31   : > { %18460 = vmatprep.mubr.msk.f32.mxu0 %vm3948_vm15, %v24206_v37 }
 0xd34   : > { %18461 = vmatmul.mubr.msk.f32.gmra.mrb[28].mxu0 %vm3948_vm15, %v24210_v48 }
 0xd35   : > { %18463 = vmatprep.mubr.msk.f32.mxu0 %vm3948_vm15, %v24214_v22 }
 0xd38   : > { %18464 = vmatmul.mubr.msk.f32.gmra.mrb[30].mxu0 %vm3948_vm15, %v24218_v12 }
 0xd39   : > { %18466 = vmatprep.mubr.msk.f32.mxu0 %vm3948_vm15, %v24222_v63 }
 0xd3c   : > { %18467 = vmatmul.mubr.msk.f32.gmra.mrb[32].mxu0 %vm3948_vm15, %v24226_v16 }
 0xd3d   : > { %18469 = vmatprep.mubr.msk.f32.mxu0 %vm3948_vm15, %v24230_v18 }
 0xd40   : > { %18470 = vmatmul.mubr.msk.f32.gmra.mrb[34].mxu0 %vm3948_vm15, %v24234_v44 }
 0xd41   : > { %18472 = vmatprep.mubr.msk.f32.mxu0 %vm3948_vm15, %v25515_v43 }
 0xd44   : > { %18473 = vmatmul.mubr.msk.f32.gmra.mrb[36].mxu0 %vm3948_vm15, %v25516_v3 }
 0xd45   : > { %18475 = vmatprep.mubr.msk.f32.mxu0 %vm3948_vm15, %v25517_v19 }
 0xd48   : > { %18476 = vmatmul.mubr.msk.f32.gmra.mrb[38].mxu0 %vm3948_vm15, %v25518_v0 }
 0xd49   : > { %18478 = vmatprep.mubr.msk.f32.mxu0 %vm3948_vm15, %v25519_v55 }
 0xd4c   : > { %18479 = vmatmul.mubr.msk.f32.gmra.mrb[40].mxu0 %vm3948_vm15, %v25520_v24 }
 0xd4d   : > { %18481 = vmatprep.mubr.msk.f32.mxu0 %vm3948_vm15, %v25521_v47 }
 0xd50   : > { %18482 = vmatmul.mubr.msk.f32.gmra.mrb[42].mxu0 %vm3948_vm15, %v25522_v32 }
 0xd51   : > { %18484 = vmatprep.mubr.msk.f32.mxu0 %vm3948_vm15, %v24383_v33 }
 0xd54   : > { %18485 = vmatmul.mubr.msk.f32.gmra.mrb[44].mxu0 %vm3948_vm15, %v25523_v6 }
 0xd55   : > { %18487 = vmatprep.mubr.msk.f32.mxu0 %vm3948_vm15, %v24651_v40 }
 0xd58   : > { %18488 = vmatmul.mubr.msk.f32.gmra.mrb[46].mxu0 %vm3948_vm15, %v24067_v34 }
 0xd59   : > { %18490 = vmatprep.mubr.msk.f32.mxu0 %vm3948_vm15, %v24130_v1 }
 0xd5c   : > { %18491 = vmatmul.mubr.msk.f32.gmra.mrb[48].mxu0 %vm3948_vm15, %v24550_v31 }
 0xd5d   : > { %18497 = vmatprep.mubr.msk.f32.mxu0 %vm3948_vm15, %v13757_v15  ;;  %v25532_v15 = vld [vmem:[#allocation60_spill] sm:$0xff] }
 0xd5e   : > { %v13690_v30 = vmul.f32 %v24198_v10, %v25532_v15  ;;  %v13769_v10 = vsel %vm1835_vm10, %v13766_v57, %v13768_v9 }
 0xd60   : > { %18498 = vmatmul.mubr.msk.f32.vlgmr.msra.gmra.mrb[18].mxu0 %vm3948_vm15, %v13759_v60  ;;  %v13770_v7 = vrot.slane %v13690_v30, 1  ;;  %v13772_v60 = vrot.slane %v13691_v62, 1  ;;  %v25538_v30 = vld [vmem:[#allocation65_spill] sm:$0xff]  ;;  %v13697_v62 = vmul.f32 %v24226_v16, %v25539_v38  ;;  %v25547_v38 = vld [vmem:[#allocation79_spill] sm:$0xff] }
 0xd61   : > { %18500 = vmatprep.mubr.msk.f32.mxu0 %vm3948_vm15, %v13761_v20  ;;  %v25536_v20 = vld [vmem:[#allocation37_spill] sm:$0xff] }
 0xd62   : > { %v13771_v2 = vsel %vm1835_vm10, %v13768_v9, %v13770_v7  ;;  %v13694_v61 = vmul.f32 %v24214_v22, %v25536_v20  ;;  %v13773_v37 = vsel %vm1835_vm10, %v13770_v7, %v13772_v60  ;;  %v13775_v48 = vsel %vm1835_vm10, %v13772_v60, %v13774_v21  ;;  %v25540_v7 = vld [vmem:[#allocation67_spill] sm:$0xff]  ;;  %v25543_v20 = vld [vmem:[#allocation73_spill] sm:$0xff] }
 0xd63   : > { %v13777_v22 = vsel %vm1835_vm10, %v13774_v21, %v13776_v8  ;;  %v13698_v36 = vmul.f32 %v24230_v18, %v25540_v7  ;;  %v13784_v56 = vrot.slane %v13697_v62, 1  ;;  %v13705_v62 = vmul.f32 %v25520_v24, %v25547_v38  ;;  %v14191_v38 = vpop.permute.xlu0 %14190 }
 0xd64   : > { %18501 = vmatmul.mubr.msk.f32.gmra.mrb[20].mxu0 %vm3948_vm15, %v13763_v14  ;;  %v25537_v14 = vld [vmem:[#allocation64_spill] sm:$0xff]  ;;  %v13778_v15 = vrot.slane %v13694_v61, 1  ;;  %v13701_v61 = vmul.f32 %v25516_v3, %v25543_v20 }
 0xd65   : > { %18503 = vmatprep.mubr.msk.f32.mxu0 %vm3948_vm15, %v13765_v17  ;;  %v13695_v57 = vmul.f32 %v24218_v12, %v25537_v14  ;;  %v13696_v17 = vmul.f32 %v24222_v63, %v25538_v30  ;;  %v13786_v28 = vrot.slane %v13698_v36, 1  ;;  %v13800_v36 = vrot.slane %v13705_v62, 1  ;;  %v14186_v62 = vpop.permute.xlu1 %14185 }
 0xd66   : > { %v13779_v12 = vsel %vm1835_vm10, %v13776_v8, %v13778_v15  ;;  %v25544_v8 = vld [vmem:[#allocation74_spill] sm:$0xff] }
 0xd67   : > { %v13780_v9 = vrot.slane %v13695_v57, 1  ;;  %v13702_v14 = vmul.f32 %v25517_v19, %v25544_v8  ;;  %v13792_v57 = vrot.slane %v13701_v61, 1 }
 0xd68   : > { %18504 = vmatmul.mubr.msk.f32.gmra.mrb[22].mxu0 %vm3948_vm15, %v13767_v26  ;;  %v13782_v26 = vrot.slane %v13696_v17, 1  ;;  %v25546_v17 = vld [vmem:[#allocation78_spill] sm:$0xff] }
 0xd69   : > { %18506 = vmatprep.mubr.msk.f32.mxu0 %vm3948_vm15, %v13769_v10  ;;  %v13781_v63 = vsel %vm1835_vm10, %v13778_v15, %v13780_v9  ;;  %v25541_v10 = vld [vmem:[#allocation69_spill] sm:$0xff]  ;;  %v13794_v30 = vrot.slane %v13702_v14, 1  ;;  %v10101_v14 = vld [vmem:[#allocation5 + $0x128] sm:$0xff] }
 0xd6a   : > { %v13699_v60 = vmul.f32 %v24234_v44, %v25541_v10  ;;  %v13783_v16 = vsel %vm1835_vm10, %v13780_v9, %v13782_v26  ;;  %v13785_v18 = vsel %vm1835_vm10, %v13782_v26, %v13784_v56  ;;  %v13787_v44 = vsel %vm1835_vm10, %v13784_v56, %v13786_v28  ;;  %v25548_v26 = vld [vmem:[#allocation80_spill] sm:$0xff] }
 0xd6b   : > { %v13706_v7 = vmul.f32 %v25521_v47, %v25548_v26 }
 0xd6c   : > { %18507 = vmatmul.mubr.msk.f32.gmra.mrb[24].mxu0 %vm3948_vm15, %v13771_v2  ;;  %v13700_v2 = vmul.f32 %v25515_v43, %v25542_v53  ;;  %v13788_v21 = vrot.slane %v13699_v60, 1  ;;  %v25550_v60 = vld [vmem:[#allocation84_spill] sm:$0xff]  ;;  %v25551_v53 = vld [vmem:[#allocation86_spill] sm:$0xff] }
 0xd6d   : > { %18509 = vmatprep.mubr.msk.f32.mxu0 %vm3948_vm15, %v13773_v37  ;;  %v13802_v10 = vrot.slane %v13706_v7, 1 }
 0xd6e   : > { %v13790_v37 = vrot.slane %v13700_v2, 1  ;;  %v13789_v43 = vsel %vm1835_vm10, %v13786_v28, %v13788_v21  ;;  %v13709_v2 = vmul.f32 %v25523_v6, %v25551_v53  ;;  %v25554_v6 = vld [vmem:[#allocation49_spill] sm:$0xff] }
 0xd6f   : > { %v13713_v8 = vmul.f32 %v25554_v6, %v24550_v31 }
 0xd70   : > { %18510 = vmatmul.mubr.msk.f32.gmra.mrb[26].mxu0 %vm3948_vm15, %v13775_v48  ;;  %v25545_v48 = vld [vmem:[#allocation77_spill] sm:$0xff]  ;;  %v13791_v3 = vsel %vm1835_vm10, %v13788_v21, %v13790_v37  ;;  %v13793_v19 = vsel %vm1835_vm10, %v13790_v37, %v13792_v57  ;;  %v25552_v21 = vld [vmem:[#allocation87_spill] sm:$0xff]  ;;  %v13808_v61 = vrot.slane %v13709_v2, 1 }
 0xd71   : > { %18512 = vmatprep.mubr.msk.f32.mxu0 %vm3948_vm15, %v13777_v22  ;;  %v13703_v15 = vmul.f32 %v25518_v0, %v25545_v48  ;;  %v13704_v22 = vmul.f32 %v25519_v55, %v25546_v17  ;;  %v13795_v0 = vsel %vm1835_vm10, %v13792_v57, %v13794_v30  ;;  %v13710_v20 = vmul.f32 %v24651_v40, %v25552_v21  ;;  %v25555_v48 = vld [vmem:[#allocation91_spill] sm:$0xff] }
 0xd72   : > { %v13712_v40 = vmul.f32 %v25555_v48, %v24130_v1  ;;  %v25558_v2 = vld [vmem:[#allocation95_spill] sm:$0xff] }
 0xd73   : > { %v13796_v9 = vrot.slane %v13703_v15, 1  ;;  %v13810_v57 = vrot.slane %v13710_v20, 1 }
 0xd74   : > { %18513 = vmatmul.mubr.msk.f32.gmra.mrb[28].mxu0 %vm3948_vm15, %v13779_v12  ;;  %v13798_v12 = vrot.slane %v13704_v22, 1  ;;  %v13814_v31 = vrot.slane %v13712_v40, 1 }
 0xd75   : > { %18515 = vmatprep.mubr.msk.f32.mxu0 %vm3948_vm15, %v13781_v63  ;;  %v13797_v55 = vsel %vm1835_vm10, %v13794_v30, %v13796_v9  ;;  %v25549_v63 = vld [vmem:[#allocation82_spill] sm:$0xff]  ;;  %v13816_v30 = vrot.slane %v13713_v8, 1  ;;  %v13811_v17 = vsel %vm1835_vm10, %v13808_v61, %v13810_v57 }
 0xd76   : > { %v13707_v56 = vmul.f32 %v25522_v32, %v25549_v63  ;;  %v13799_v24 = vsel %vm1835_vm10, %v13796_v9, %v13798_v12  ;;  %v13801_v47 = vsel %vm1835_vm10, %v13798_v12, %v13800_v36  ;;  %v13803_v32 = vsel %vm1835_vm10, %v13800_v36, %v13802_v10  ;;  %v14196_v12 = vpop.permute.xlu1 %14195 }
 0xd78   : > { %18516 = vmatmul.mubr.msk.f32.gmra.mrb[30].mxu0 %vm3948_vm15, %v13783_v16  ;;  %v13708_v16 = vmul.f32 %v24383_v33, %v25550_v60  ;;  %v13804_v28 = vrot.slane %v13707_v56, 1  ;;  %v24794_v60 = vld [vmem:[%s25556_s0] ss:$0 sm:$0xff]  ;;  %s16054_s0 = sshll.u32 %s25572_s10, 8 }
 0xd79   : > { %18518 = vmatprep.mubr.msk.f32.mxu0 %vm3948_vm15, %v13785_v18  ;;  %s24928_s1 = scalar_lea.vmem %s20151_s30, %s16054_s0 }
 0xd7a   : > { %v13806_v18 = vrot.slane %v13708_v16, 1  ;;  %v13805_v33 = vsel %vm1835_vm10, %v13802_v10, %v13804_v28  ;;  %v14206_v7 = vpop.permute.xlu1 %14205 }
 0xd7c   : > { %18519 = vmatmul.mubr.msk.f32.gmra.mrb[32].mxu0 %vm3948_vm15, %v13787_v44  ;;  %v25553_v44 = vld [vmem:[#allocation89_spill] sm:$0xff]  ;;  %v13809_v15 = vsel %vm1835_vm10, %v13806_v18, %v13808_v61 }
 0xd7d   : > { %18521 = vmatprep.mubr.msk.f32.mxu0 %vm3948_vm15, %v13789_v43  ;;  %v13711_v37 = vmul.f32 %v25553_v44, %v24067_v34  ;;  %v13807_v43 = vsel %vm1835_vm10, %v13804_v28, %v13806_v18  ;;  %v13714_v34 = vmul.f32 %v25489_v41, %v10101_v14  ;;  %v25557_v28 = vld [vmem:[#allocation96_spill] sm:$0xff] }
 0xd7e   : > { %v24788_v36 = vpop.permute.xlu1 %14215 }
 0xd7f   : > { %v13818_v1 = vrot.slane %v13714_v34, 1 }
 0xd80   : > { %18522 = vmatmul.mubr.msk.f32.gmra.mrb[34].mxu0 %vm3948_vm15, %v13791_v3  ;;  %v13812_v3 = vrot.slane %v13711_v37, 1 }
 0xd81   : > { %18524 = vmatprep.mubr.msk.f32.mxu0 %vm3948_vm15, %v13793_v19  ;;  %v13817_v19 = vsel %vm1835_vm10, %v13814_v31, %v13816_v30  ;;  %v13819_v41 = vsel %vm1835_vm10, %v13816_v30, %v13818_v1 }
 0xd82   : > { %v13813_v22 = vsel %vm1835_vm10, %v13810_v57, %v13812_v3  ;;  %v13815_v9 = vsel %vm1835_vm10, %v13812_v3, %v13814_v31 }
 0xd84   : > { %18525 = vmatmul.mubr.msk.f32.gmra.mrb[36].mxu0 %vm3948_vm15, %v13795_v0  ;;  %v14201_v0 = vpop.permute.xlu0 %14200 }
 0xd85   : > { %18527 = vmatprep.mubr.msk.f32.mxu0 %vm3948_vm15, %v13797_v55 }
 0xd88   : > { %18528 = vmatmul.mubr.msk.f32.gmra.mrb[38].mxu0 %vm3948_vm15, %v13799_v24  ;;  %v14211_v26 = vpop.permute.xlu0 %14210 }
 0xd89   : > { %18530 = vmatprep.mubr.msk.f32.mxu0 %vm3948_vm15, %v13801_v47  ;;  %v24797_v47 = vpop.permute.xlu1 %14225 }
 0xd8c   : > { %18531 = vmatmul.mubr.msk.f32.gmra.mrb[40].mxu0 %vm3948_vm15, %v13803_v32  ;;  %v24786_v55 = vpop.permute.xlu0 %14220 }
 0xd8d   : > { %18533 = vmatprep.mubr.msk.f32.mxu0 %vm3948_vm15, %v13805_v33 }
 0xd90   : > { %18534 = vmatmul.mubr.msk.f32.gmra.mrb[42].mxu0 %vm3948_vm15, %v13807_v43  ;;  %v24791_v10 = vpop.permute.xlu0 %14230  ;;  %v24807_v43 = vpop.permute.xlu1 %14235 }
 0xd91   : > { %18536 = vmatprep.mubr.msk.f32.mxu0 %vm3948_vm15, %v13809_v15 }
 0xd94   : > { %18537 = vmatmul.mubr.msk.f32.gmra.mrb[44].mxu0 %vm3948_vm15, %v13811_v17 }
 0xd95   : > { %18539 = vmatprep.mubr.msk.f32.mxu0 %vm3948_vm15, %v13813_v22 }
 0xd98   : > { %18540 = vmatmul.mubr.msk.f32.gmra.mrb[46].mxu0 %vm3948_vm15, %v13815_v9 }
 0xd99   : > { %18542 = vmatprep.mubr.msk.f32.mxu0 %vm3948_vm15, %v13817_v19 }
 0xd9c   : > { %18543 = vmatmul.mubr.msk.f32.gmra.mrb[48].mxu0 %vm3948_vm15, %v13819_v41 }
 0xe33   : > { %v18499_v63 = vpop.f32.mrb[18].mxu0 }
 0xe34   : > { %v19173_v56 = vadd.f32 %v18499_v63, %v24443_v35  ;;  %v13950_v24 = vpop.f32.mrb[19].mxu0 }
 0xe35   : > { %v19174_v16 = vadd.f32 %v13950_v24, %v24448_v11  ;;  %v24805_v11 = vpop.permute.xlu0 %14240 }
 0xe36   : > { %v14334_v53 = vadd.f32 %v19173_v56, %v25557_v28  ;;  %v24821_v56 = vpop.permute.xlu1 %14245 }
 0xe37   : > { %v14333_v32 = vadd.f32 %v19174_v16, %v25558_v2  ;;  %v18502_v18 = vpop.f32.mrb[20].mxu0 }
 0xe38   : > { %v14373_v21 = vadd.f32 %v24794_v60, %v14334_v53  ;;  %v19175_v20 = vadd.f32 %v18502_v18, %v24455_v54  ;;  %v13960_v33 = vpop.f32.mrb[21].mxu0 }
 0xe39   : > { %v14372_v35 = vadd.f32 %v24794_v60, %v14333_v32  ;;  %v19176_v61 = vadd.f32 %v13960_v33, %v24460_v58 }
 0xe3a   : > { %vm14405_vm10 = vcmp.ge.f32.partialorder %v14373_v21, 0.0  ;;  %v14437_v44 = vmul.f32 0.2, %v14373_v21  ;;  %v14336_v37 = vadd.f32 %v19175_v20, %v14191_v38 }
 0xe3b   : > { %vm14404_vm11 = vcmp.ge.f32.partialorder %v14372_v35, 0.0  ;;  %v14436_v6 = vmul.f32 0.2, %v14372_v35  ;;  %v14335_v8 = vadd.f32 %v19176_v61, %v14186_v62  ;;  %v18505_v14 = vpop.f32.mrb[22].mxu0  ;;  %v24816_v62 = vpop.permute.xlu0 %14250 }
 0xe3c   : > { %v14469_v57 = vsel %vm14405_vm10, %v14373_v21, %v14437_v44  ;;  %v14375_v48 = vadd.f32 %v24794_v60, %v14336_v37  ;;  %v19177_v54 = vadd.f32 %v18505_v14, %v24467_v51  ;;  %v13970_v40 = vpop.f32.mrb[23].mxu0  ;;  %v24833_v14 = vpop.permute.xlu1 %14255 }
 0xe3d   : > { %v14374_v15 = vadd.f32 %v24794_v60, %v14335_v8  ;;  %v19178_v58 = vadd.f32 %v13970_v40, %v24472_v49  ;;  %v14468_v3 = vsel %vm14404_vm11, %v14372_v35, %v14436_v6  ;;  %v14501_v31 = vmul.f32 1.4142135, %v14469_v57 }
 0xe3e   : > { %vm14407_vm13 = vcmp.ge.f32.partialorder %v14375_v48, 0.0  ;;  %v14439_v34 = vmul.f32 0.2, %v14375_v48  ;;  %v14338_v30 = vadd.f32 %v19177_v54, %v14201_v0  ;;  %v14500_v17 = vmul.f32 1.4142135, %v14468_v3 }
 0xe3f   : > { %vm14406_vm0 = vcmp.ge.f32.partialorder %v14374_v15, 0.0  ;;  %v14438_v22 = vmul.f32 0.2, %v14374_v15  ;;  %v14337_v1 = vadd.f32 %v19178_v58, %v14196_v12  ;;  %v18508_v19 = vpop.f32.mrb[24].mxu0  ;;  %v24830_v44 = vpop.permute.xlu0 %14260 }
 0xe40   : > { %v14377_v9 = vadd.f32 %v24794_v60, %v14338_v30  ;;  %v19179_v41 = vadd.f32 %v18508_v19, %v24479_v46  ;;  %v13980_v51 = vpop.f32.mrb[25].mxu0  ;;  %18549 = vmatprep.mubr.msk.f32.mxu1 %vm3948_vm15, %v14500_v17  ;;  %v14471_v38 = vsel %vm14407_vm13, %v14375_v48, %v14439_v34 }
 0xe41   : > { %v14376_v49 = vadd.f32 %v24794_v60, %v14337_v1  ;;  %v19180_v0 = vadd.f32 %v13980_v51, %v24484_v52  ;;  %18550 = vmatmul.mubr.msk.f32.vlgmr.msra.gmra.mrb[84].mxu1 %vm3948_vm15, %v14501_v31  ;;  %v14470_v63 = vsel %vm14406_vm0, %v14374_v15, %v14438_v22  ;;  %v14503_v2 = vmul.f32 1.4142135, %v14471_v38 }
 0xe42   : > { %vm14409_vm1 = vcmp.ge.f32.partialorder %v14377_v9, 0.0  ;;  %v14441_v12 = vmul.f32 0.2, %v14377_v9  ;;  %v14340_v24 = vadd.f32 %v19179_v41, %v14211_v26  ;;  %v14502_v16 = vmul.f32 1.4142135, %v14470_v63 }
 0xe43   : > { %vm14408_vm14 = vcmp.ge.f32.partialorder %v14376_v49, 0.0  ;;  %v14440_v46 = vmul.f32 0.2, %v14376_v49  ;;  %v14339_v28 = vadd.f32 %v19180_v0, %v14206_v7  ;;  %v18511_v53 = vpop.f32.mrb[26].mxu0  ;;  %v24846_v19 = vpop.permute.xlu0 %14270 }
 0xe44   : > { %v14379_v32 = vadd.f32 %v24794_v60, %v14340_v24  ;;  %v19181_v18 = vadd.f32 %v18511_v53, %v24494_v45  ;;  %v13990_v21 = vpop.f32.mrb[27].mxu0  ;;  %18552 = vmatprep.mubr.msk.f32.mxu1 %vm3948_vm15, %v14502_v16  ;;  %v14473_v52 = vsel %vm14409_vm1, %v14377_v9, %v14441_v12 }
 0xe45   : > { %v14378_v20 = vadd.f32 %v24794_v60, %v14339_v28  ;;  %v19182_v33 = vadd.f32 %v13990_v21, %v24496_v13  ;;  %18553 = vmatmul.mubr.msk.f32.gmra.mrb[86].mxu1 %vm3948_vm15, %v14503_v2  ;;  %v14472_v26 = vsel %vm14408_vm14, %v14376_v49, %v14440_v46  ;;  %v14505_v8 = vmul.f32 1.4142135, %v14473_v52 }
 0xe46   : > { %vm14411_vm2 = vcmp.ge.f32.partialorder %v14379_v32, 0.0  ;;  %v14443_v35 = vmul.f32 0.2, %v14379_v32  ;;  %v14342_v7 = vadd.f32 %v19181_v18, %v24786_v55  ;;  %v14504_v61 = vmul.f32 1.4142135, %v14472_v26 }
 0xe47   : > { %vm14410_vm3 = vcmp.ge.f32.partialorder %v14378_v20, 0.0  ;;  %v14442_v45 = vmul.f32 0.2, %v14378_v20  ;;  %v14341_v37 = vadd.f32 %v19182_v33, %v24788_v36  ;;  %v18514_v6 = vpop.f32.mrb[28].mxu0  ;;  %v14281_v18 = vpop.permute.xlu0 %14280 }
 0xe48   : > { %v14381_v13 = vadd.f32 %v24794_v60, %v14342_v7  ;;  %v19183_v57 = vadd.f32 %v18514_v6, %v24504_v50  ;;  %v14000_v48 = vpop.f32.mrb[29].mxu0  ;;  %18555 = vmatprep.mubr.msk.f32.mxu1 %vm3948_vm15, %v14504_v61  ;;  %v14475_v54 = vsel %vm14411_vm2, %v14379_v32, %v14443_v35 }
 0xe49   : > { %v14380_v55 = vadd.f32 %v24794_v60, %v14341_v37  ;;  %v19184_v40 = vadd.f32 %v14000_v48, %v24506_v5  ;;  %18556 = vmatmul.mubr.msk.f32.gmra.mrb[88].mxu1 %vm3948_vm15, %v14505_v8  ;;  %v14474_v15 = vsel %vm14410_vm3, %v14378_v20, %v14442_v45  ;;  %v14507_v17 = vmul.f32 1.4142135, %v14475_v54 }
 0xe4a   : > { %vm14413_vm4 = vcmp.ge.f32.partialorder %v14381_v13, 0.0  ;;  %v14445_v36 = vmul.f32 0.2, %v14381_v13  ;;  %v14344_v58 = vadd.f32 %v19183_v57, %v24791_v10  ;;  %v14506_v3 = vmul.f32 1.4142135, %v14474_v15 }
 0xe4b   : > { %vm14412_vm5 = vcmp.ge.f32.partialorder %v14380_v55, 0.0  ;;  %v14444_v34 = vmul.f32 0.2, %v14380_v55  ;;  %v14343_v50 = vadd.f32 %v19184_v40, %v24797_v47  ;;  %v18517_v30 = vpop.f32.mrb[30].mxu0  ;;  %v24851_v47 = vpop.permute.xlu1 %14265 }
 0xe4c   : > { %v14383_v31 = vadd.f32 %v24794_v60, %v14344_v58  ;;  %v19185_v22 = vadd.f32 %v18517_v30, %v24512_v42  ;;  %v14010_v1 = vpop.f32.mrb[31].mxu0  ;;  %18558 = vmatprep.mubr.msk.f32.mxu1 %vm3948_vm15, %v14506_v3  ;;  %v14477_v5 = vsel %vm14413_vm4, %v14381_v13, %v14445_v36  ;;  %v14291_v40 = vpop.permute.xlu0 %14290 }
 0xe4d   : > { %v14382_v9 = vadd.f32 %v24794_v60, %v14343_v50  ;;  %v19186_v10 = vadd.f32 %v14010_v1, %v24514_v39  ;;  %18559 = vmatmul.mubr.msk.f32.gmra.mrb[90].mxu1 %vm3948_vm15, %v14507_v17  ;;  %v14476_v41 = vsel %vm14412_vm5, %v14380_v55, %v14444_v34  ;;  %v14509_v12 = vmul.f32 1.4142135, %v14477_v5 }
 0xe4e   : > { %vm14415_vm6 = vcmp.ge.f32.partialorder %v14383_v31, 0.0  ;;  %v14447_v51 = vmul.f32 0.2, %v14383_v31  ;;  %v14346_v38 = vadd.f32 %v19185_v22, %v24805_v11  ;;  %v14508_v42 = vmul.f32 1.4142135, %v14476_v41  ;;  %v25559_v22 = vld [vmem:[#allocation39_spill] sm:$0xff] }
 0xe4f   : > { %vm14414_vm7 = vcmp.ge.f32.partialorder %v14382_v9, 0.0  ;;  %v14446_v49 = vmul.f32 0.2, %v14382_v9  ;;  %v14345_v0 = vadd.f32 %v19186_v10, %v24807_v43  ;;  %v18520_v63 = vpop.f32.mrb[32].mxu0  ;;  %v14276_v33 = vpop.permute.xlu1 %14275  ;;  %v25560_v10 = vld [vmem:[#allocation43_spill] sm:$0xff] }
 0xe50   : > { %v14385_v24 = vadd.f32 %v24794_v60, %v14346_v38  ;;  %v19187_v39 = vadd.f32 %v18520_v63, %v24522_v27  ;;  %v14020_v16 = vpop.f32.mrb[33].mxu0  ;;  %18561 = vmatprep.mubr.msk.f32.mxu1 %vm3948_vm15, %v14508_v42  ;;  %v14479_v46 = vsel %vm14415_vm6, %v14383_v31, %v14447_v51  ;;  %v14301_v42 = vpop.permute.xlu0 %14300 }
 0xe51   : > { %v14384_v28 = vadd.f32 %v24794_v60, %v14345_v0  ;;  %v19188_v53 = vadd.f32 %v14020_v16, %v24524_v59  ;;  %18562 = vmatmul.mubr.msk.f32.gmra.mrb[92].mxu1 %vm3948_vm15, %v14509_v12  ;;  %v14478_v11 = vsel %vm14414_vm7, %v14382_v9, %v14446_v49  ;;  %v14511_v20 = vmul.f32 1.4142135, %v14479_v46  ;;  %v25561_v16 = vld [vmem:[#allocation44_spill] sm:$0xff] }
 0xe52   : > { %vm14417_vm8 = vcmp.ge.f32.partialorder %v14385_v24, 0.0  ;;  %v14449_v2 = vmul.f32 0.2, %v14385_v24  ;;  %v14348_v43 = vadd.f32 %v19187_v39, %v24816_v62  ;;  %v14510_v32 = vmul.f32 1.4142135, %v14478_v11 }
 0xe53   : > { %vm14416_vm9 = vcmp.ge.f32.partialorder %v14384_v28, 0.0  ;;  %v14448_v21 = vmul.f32 0.2, %v14384_v28  ;;  %v14347_v27 = vadd.f32 %v19188_v53, %v24821_v56  ;;  %v18523_v52 = vpop.f32.mrb[34].mxu0  ;;  %v14286_v58 = vpop.permute.xlu1 %14285 }
 0xe54   : > { %v14387_v26 = vadd.f32 %v24794_v60, %v14348_v43  ;;  %v19189_v59 = vadd.f32 %v18523_v52, %v24530_v4  ;;  %v14030_v35 = vpop.f32.mrb[35].mxu0  ;;  %18564 = vmatprep.mubr.msk.f32.mxu1 %vm3948_vm15, %v14510_v32  ;;  %v14481_v7 = vsel %vm14417_vm8, %v14385_v24, %v14449_v2  ;;  %v25562_v2 = vld [vmem:[#allocation45_spill] sm:$0xff] }
 0xe55   : > { %v14386_v61 = vadd.f32 %v24794_v60, %v14347_v27  ;;  %v19190_v62 = vadd.f32 %v14030_v35, %v24532_v23  ;;  %18565 = vmatmul.mubr.msk.f32.gmra.mrb[94].mxu1 %vm3948_vm15, %v14511_v20  ;;  %v14480_v45 = vsel %vm14416_vm9, %v14384_v28, %v14448_v21  ;;  %v14513_v57 = vmul.f32 1.4142135, %v14481_v7  ;;  %v25563_v35 = vld [vmem:[#allocation46_spill] sm:$0xff] }
 0xe56   : > { %vm14419_vm12 = vcmp.ge.f32.partialorder %v14387_v26, 0.0  ;;  %v14451_v56 = vmul.f32 0.2, %v14387_v26  ;;  %v14350_v37 = vadd.f32 %v19189_v59, %v24830_v44  ;;  %v14512_v6 = vmul.f32 1.4142135, %v14480_v45  ;;  %v14311_v45 = vpop.permute.xlu0 %14310 }
 0xe57   : > { %vm14418_vm10 = vcmp.ge.f32.partialorder %v14386_v61, 0.0  ;;  %v14450_v8 = vmul.f32 0.2, %v14386_v61  ;;  %v14349_v4 = vadd.f32 %v19190_v62, %v24833_v14  ;;  %v18526_v13 = vpop.f32.mrb[36].mxu0  ;;  %v14296_v24 = vpop.permute.xlu1 %14295 }
 0xe58   : > { %v14389_v48 = vadd.f32 %v24794_v60, %v14350_v37  ;;  %v19191_v54 = vadd.f32 %v18526_v13, %v24538_v25  ;;  %v14040_v55 = vpop.f32.mrb[37].mxu0  ;;  %18567 = vmatprep.mubr.msk.f32.mxu1 %vm3948_vm15, %v14512_v6  ;;  %v14483_v23 = vsel %vm14419_vm12, %v14387_v26, %v14451_v56  ;;  %v25564_v37 = vld [vmem:[#allocation47_spill] sm:$0xff] }
 0xe59   : > { %v14388_v15 = vadd.f32 %v24794_v60, %v14349_v4  ;;  %v19192_v44 = vadd.f32 %v14040_v55, %v24540_v29  ;;  %18568 = vmatmul.mubr.msk.f32.gmra.mrb[96].mxu1 %vm3948_vm15, %v14513_v57  ;;  %v14482_v36 = vsel %vm14418_vm10, %v14386_v61, %v14450_v8  ;;  %v14515_v17 = vmul.f32 1.4142135, %v14483_v23 }
 0xe5a   : > { %vm14421_vm11 = vcmp.ge.f32.partialorder %v14389_v48, 0.0  ;;  %v14453_v14 = vmul.f32 0.2, %v14389_v48  ;;  %v14352_v3 = vadd.f32 %v19191_v54, %v24846_v19  ;;  %v14514_v34 = vmul.f32 1.4142135, %v14482_v36 }
 0xe5b   : > { %vm14420_vm13 = vcmp.ge.f32.partialorder %v14388_v15, 0.0  ;;  %v14452_v25 = vmul.f32 0.2, %v14388_v15  ;;  %v14351_v50 = vadd.f32 %v19192_v44, %v24851_v47  ;;  %v18529_v30 = vpop.f32.mrb[38].mxu0  ;;  %v14306_v4 = vpop.permute.xlu1 %14305  ;;  %v25565_v44 = vld [vmem:[#allocation48_spill] sm:$0xff] }
 0xe5c   : > { %v14391_v31 = vadd.f32 %v24794_v60, %v14352_v3  ;;  %v19193_v1 = vadd.f32 %v18529_v30, %v25559_v22  ;;  %v14050_v29 = vpop.f32.mrb[39].mxu0  ;;  %18570 = vmatprep.mubr.msk.f32.mxu1 %vm3948_vm15, %v14514_v34  ;;  %v14485_v5 = vsel %vm14421_vm11, %v14389_v48, %v14453_v14  ;;  %v25566_v34 = vld [vmem:[#allocation50_spill] sm:$0xff]  ;;  %v14321_v22 = vpop.permute.xlu0 %14320 }
 0xe5d   : > { %v14390_v9 = vadd.f32 %v24794_v60, %v14351_v50  ;;  %v19194_v41 = vadd.f32 %v14050_v29, %v25560_v10  ;;  %18571 = vmatmul.mubr.msk.f32.gmra.mrb[98].mxu1 %vm3948_vm15, %v14515_v17  ;;  %v14484_v19 = vsel %vm14420_vm13, %v14388_v15, %v14452_v25  ;;  %v14517_v12 = vmul.f32 1.4142135, %v14485_v5 }
 0xe5e   : > { %vm14423_vm0 = vcmp.ge.f32.partialorder %v14391_v31, 0.0  ;;  %v14455_v51 = vmul.f32 0.2, %v14391_v31  ;;  %v14354_v47 = vadd.f32 %v19193_v1, %v14281_v18  ;;  %v14516_v38 = vmul.f32 1.4142135, %v14484_v19  ;;  %v25567_v19 = vld [vmem:[#allocation40_spill] sm:$0xff] }
 0xe5f   : > { %vm14422_vm1 = vcmp.ge.f32.partialorder %v14390_v9, 0.0  ;;  %v14454_v49 = vmul.f32 0.2, %v14390_v9  ;;  %v14353_v0 = vadd.f32 %v19194_v41, %v14276_v33  ;;  %v18532_v63 = vpop.f32.mrb[40].mxu0  ;;  %v14316_v10 = vpop.permute.xlu1 %14315  ;;  %vm14894_vm13 = vcmask 23552  }
 0xe60   : > { %v14393_v39 = vadd.f32 %v24794_v60, %v14354_v47  ;;  %v19195_v46 = vadd.f32 %v18532_v63, %v25561_v16  ;;  %v14060_v28 = vpop.f32.mrb[41].mxu0  ;;  %18573 = vmatprep.mubr.msk.f32.mxu1 %vm3948_vm15, %v14516_v38  ;;  %v14487_v53 = vsel %vm14423_vm0, %v14391_v31, %v14455_v51 }
 0xe61   : > { %v14392_v11 = vadd.f32 %v24794_v60, %v14353_v0  ;;  %v19196_v43 = vadd.f32 %v14060_v28, %v25562_v2  ;;  %18574 = vmatmul.mubr.msk.f32.gmra.mrb[100].mxu1 %vm3948_vm15, %v14517_v12  ;;  %v14486_v32 = vsel %vm14422_vm1, %v14390_v9, %v14454_v49  ;;  %v14519_v26 = vmul.f32 1.4142135, %v14487_v53  ;;  %v25568_v49 = vld [vmem:[#allocation41_spill] sm:$0xff]  ;;  %v25569_v2 = vld [vmem:[#allocation94_spill] sm:$0xff] }
 0xe62   : > { %vm14425_vm14 = vcmp.ge.f32.partialorder %v14393_v39, 0.0  ;;  %v14457_v18 = vmul.f32 0.2, %v14393_v39  ;;  %v14356_v21 = vadd.f32 %v19195_v46, %v14291_v40  ;;  %v14518_v27 = vmul.f32 1.4142135, %v14486_v32 }
 0xe63   : > { %vm14424_vm2 = vcmp.ge.f32.partialorder %v14392_v11, 0.0  ;;  %v14456_v52 = vmul.f32 0.2, %v14392_v11  ;;  %v14355_v20 = vadd.f32 %v19196_v43, %v14286_v58  ;;  %v18535_v33 = vpop.f32.mrb[42].mxu0 }
 0xe64   : > { %v14395_v59 = vadd.f32 %v24794_v60, %v14356_v21  ;;  %v19197_v7 = vadd.f32 %v18535_v33, %v25563_v35  ;;  %v14070_v61 = vpop.f32.mrb[43].mxu0  ;;  %18576 = vmatprep.mubr.msk.f32.mxu1 %vm3948_vm15, %v14518_v27  ;;  %v14489_v62 = vsel %vm14425_vm14, %v14393_v39, %v14457_v18  ;;  %v14331_v21 = vpop.permute.xlu0 %14330 }
 0xe65   : > { %v14394_v56 = vadd.f32 %v24794_v60, %v14355_v20  ;;  %v19198_v6 = vadd.f32 %v14070_v61, %v25564_v37  ;;  %18577 = vmatmul.mubr.msk.f32.gmra.mrb[102].mxu1 %vm3948_vm15, %v14519_v26  ;;  %v14488_v8 = vsel %vm14424_vm2, %v14392_v11, %v14456_v52  ;;  %v14521_v40 = vmul.f32 1.4142135, %v14489_v62  ;;  %v25570_v52 = vld [vmem:[#allocation36_spill] sm:$0xff]  ;;  %v14326_v26 = vpop.permute.xlu1 %14325 }
 0xe66   : > { %vm14427_vm3 = vcmp.ge.f32.partialorder %v14395_v59, 0.0  ;;  %v14459_v13 = vmul.f32 0.2, %v14395_v59  ;;  %v14358_v57 = vadd.f32 %v19197_v7, %v14301_v42  ;;  %v14520_v48 = vmul.f32 1.4142135, %v14488_v8 }
 0xe67   : > { %vm14426_vm4 = vcmp.ge.f32.partialorder %v14394_v56, 0.0  ;;  %v14458_v54 = vmul.f32 0.2, %v14394_v56  ;;  %v14357_v55 = vadd.f32 %v19198_v6, %v14296_v24  ;;  %v18538_v23 = vpop.f32.mrb[44].mxu0 }
 0xe68   : > { %v14397_v15 = vadd.f32 %v24794_v60, %v14358_v57  ;;  %v19199_v36 = vadd.f32 %v18538_v23, %v25565_v44  ;;  %v14080_v58 = vpop.f32.mrb[45].mxu0  ;;  %18579 = vmatprep.mubr.msk.f32.mxu1 %vm3948_vm15, %v14520_v48  ;;  %v14491_v14 = vsel %vm14427_vm3, %v14395_v59, %v14459_v13 }
 0xe69   : > { %v14396_v3 = vadd.f32 %v24794_v60, %v14357_v55  ;;  %v19200_v25 = vadd.f32 %v14080_v58, %v25566_v34  ;;  %18580 = vmatmul.mubr.msk.f32.gmra.mrb[104].mxu1 %vm3948_vm15, %v14521_v40  ;;  %v14490_v50 = vsel %vm14426_vm4, %v14394_v56, %v14458_v54  ;;  %v14523_v9 = vmul.f32 1.4142135, %v14491_v14  ;;  %v24925_v40 = vld [vmem:[%s20141_s3] ss:$0 sm:$0xff] }
 0xe6a   : > { %vm14429_vm5 = vcmp.ge.f32.partialorder %v14397_v15, 0.0  ;;  %v14461_v30 = vmul.f32 0.2, %v14397_v15  ;;  %v14360_v17 = vadd.f32 %v19199_v36, %v14311_v45  ;;  %v14522_v31 = vmul.f32 1.4142135, %v14490_v50 }
 0xe6b   : > { %vm14428_vm6 = vcmp.ge.f32.partialorder %v14396_v3, 0.0  ;;  %v14460_v1 = vmul.f32 0.2, %v14396_v3  ;;  %v14359_v29 = vadd.f32 %v19200_v25, %v14306_v4  ;;  %v18541_v5 = vpop.f32.mrb[46].mxu0 }
 0xe6c   : > { %v14399_v41 = vadd.f32 %v24794_v60, %v14360_v17  ;;  %v19201_v51 = vadd.f32 %v18541_v5, %v25567_v19  ;;  %v14090_v47 = vpop.f32.mrb[47].mxu0  ;;  %18582 = vmatprep.mubr.msk.f32.mxu1 %vm3948_vm15, %v14522_v31  ;;  %v14493_v38 = vsel %vm14429_vm5, %v14397_v15, %v14461_v30 }
 0xe6d   : > { %v14398_v42 = vadd.f32 %v24794_v60, %v14359_v29  ;;  %v19202_v0 = vadd.f32 %v14090_v47, %v25568_v49  ;;  %18583 = vmatmul.mubr.msk.f32.gmra.mrb[106].mxu1 %vm3948_vm15, %v14523_v9  ;;  %v14492_v63 = vsel %vm14428_vm6, %v14396_v3, %v14460_v1  ;;  %v14525_v53 = vmul.f32 1.4142135, %v14493_v38 }
 0xe6e   : > { %vm14431_vm7 = vcmp.ge.f32.partialorder %v14399_v41, 0.0  ;;  %v14463_v12 = vmul.f32 0.2, %v14399_v41  ;;  %v14362_v24 = vadd.f32 %v19201_v51, %v14321_v22  ;;  %v14524_v39 = vmul.f32 1.4142135, %v14492_v63 }
 0xe6f   : > { %vm14430_vm8 = vcmp.ge.f32.partialorder %v14398_v42, 0.0  ;;  %v14462_v16 = vmul.f32 0.2, %v14398_v42  ;;  %v14361_v46 = vadd.f32 %v19202_v0, %v14316_v10  ;;  %v18544_v28 = vpop.f32.mrb[48].mxu0 }
 0xe70   : > { %v14401_v11 = vadd.f32 %v24794_v60, %v14362_v24  ;;  %v19203_v43 = vadd.f32 %v18544_v28, %v25569_v2  ;;  %v14100_v32 = vpop.f32.mrb[49].mxu0  ;;  %18585 = vmatprep.mubr.msk.f32.mxu1 %vm3948_vm15, %v14524_v39  ;;  %v14495_v18 = vsel %vm14431_vm7, %v14399_v41, %v14463_v12 }
 0xe71   : > { %v14400_v27 = vadd.f32 %v24794_v60, %v14361_v46  ;;  %v19204_v20 = vadd.f32 %v14100_v32, %v25570_v52  ;;  %18586 = vmatmul.mubr.msk.f32.gmra.mrb[108].mxu1 %vm3948_vm15, %v14525_v53  ;;  %v14494_v33 = vsel %vm14430_vm8, %v14398_v42, %v14462_v16  ;;  %v14527_v45 = vmul.f32 1.4142135, %v14495_v18 }
 0xe72   : > { %vm14433_vm9 = vcmp.ge.f32.partialorder %v14401_v11, 0.0  ;;  %v14465_v59 = vmul.f32 0.2, %v14401_v11  ;;  %v14364_v35 = vadd.f32 %v19203_v43, %v14331_v21  ;;  %v14526_v7 = vmul.f32 1.4142135, %v14494_v33 }
 0xe73   : > { %vm14432_vm12 = vcmp.ge.f32.partialorder %v14400_v27, 0.0  ;;  %v14464_v61 = vmul.f32 0.2, %v14400_v27  ;;  %v14363_v62 = vadd.f32 %v19204_v20, %v14326_v26 }
 0xe74   : > { %v14403_v56 = vadd.f32 %v24794_v60, %v14364_v35  ;;  %18588 = vmatprep.mubr.msk.f32.mxu1 %vm3948_vm15, %v14526_v7  ;;  %v14497_v37 = vsel %vm14433_vm9, %v14401_v11, %v14465_v59 }
 0xe75   : > { %v14402_v6 = vadd.f32 %v24794_v60, %v14363_v62  ;;  %18589 = vmatmul.mubr.msk.f32.gmra.mrb[110].mxu1 %vm3948_vm15, %v14527_v45  ;;  %v14496_v8 = vsel %vm14432_vm12, %v14400_v27, %v14464_v61  ;;  %v14529_v48 = vmul.f32 1.4142135, %v14497_v37 }
 0xe76   : > { %vm14435_vm10 = vcmp.ge.f32.partialorder %v14403_v56, 0.0  ;;  %v14467_v4 = vmul.f32 0.2, %v14403_v56  ;;  %v14528_v13 = vmul.f32 1.4142135, %v14496_v8 }
 0xe77   : > { %vm14434_vm11 = vcmp.ge.f32.partialorder %v14402_v6, 0.0  ;;  %v14466_v57 = vmul.f32 0.2, %v14402_v6 }
 0xe78   : > { %18591 = vmatprep.mubr.msk.f32.mxu1 %vm3948_vm15, %v14528_v13  ;;  %v14499_v54 = vsel %vm14435_vm10, %v14403_v56, %v14467_v4 }
 0xe79   : > { %18592 = vmatmul.mubr.msk.f32.gmra.mrb[112].mxu1 %vm3948_vm15, %v14529_v48  ;;  %v14498_v55 = vsel %vm14434_vm11, %v14402_v6, %v14466_v57  ;;  %v14531_v60 = vmul.f32 1.4142135, %v14499_v54 }
 0xe7a   : > { %v14530_v23 = vmul.f32 1.4142135, %v14498_v55 }
 0xe7c   : > { %18594 = vmatprep.mubr.msk.f32.mxu1 %vm3948_vm15, %v14530_v23 }
 0xe7d   : > { %18595 = vmatmul.mubr.msk.f32.gmra.mrb[114].mxu1 %vm3948_vm15, %v14531_v60 }
 0xf14   : > { %v18551_v15 = vpop.f32.mrb[84].mxu1 }
 0xf15   : > { %v14741_v44 = vadd.f32 %v18551_v15, %v24925_v40  ;;  %v14735_v36 = vpop.f32.mrb[85].mxu1 }
 0xf16   : > { %v14736_v58 = vadd.f32 %v24925_v40, %v14735_v36 }
 0xf17   : > { %14896 = vst.msk [vmem:[%s24928_s1 + $0x8] sm:$0xff] %vm14894_vm13, %v14741_v44 }
 0xf18   : > { %14895 = vst.msk [vmem:[%s24928_s1] sm:$0xff] %vm14894_vm13, %v14736_v58  ;;  %v18554_v14 = vpop.f32.mrb[86].mxu1 }
 0xf19   : > { %v14751_v3 = vadd.f32 %v18554_v14, %v24925_v40  ;;  %v14745_v34 = vpop.f32.mrb[87].mxu1 }
 0xf1a   : > { %v14746_v25 = vadd.f32 %v24925_v40, %v14745_v34 }
 0xf1b   : > { %14898 = vst.msk [vmem:[%s24928_s1 + $0x18] sm:$0xff] %vm14894_vm13, %v14751_v3 }
 0xf1c   : > { %14897 = vst.msk [vmem:[%s24928_s1 + $0x10] sm:$0xff] %vm14894_vm13, %v14746_v25  ;;  %v18557_v50 = vpop.f32.mrb[88].mxu1 }
 0xf1d   : > { %v14761_v30 = vadd.f32 %v18557_v50, %v24925_v40  ;;  %v14755_v17 = vpop.f32.mrb[89].mxu1 }
 0xf1e   : > { %v14756_v31 = vadd.f32 %v24925_v40, %v14755_v17 }
 0xf1f   : > { %14900 = vst.msk [vmem:[%s24928_s1 + $0x28] sm:$0xff] %vm14894_vm13, %v14761_v30 }
 0xf20   : > { %14899 = vst.msk [vmem:[%s24928_s1 + $0x20] sm:$0xff] %vm14894_vm13, %v14756_v31  ;;  %v18560_v22 = vpop.f32.mrb[90].mxu1 }
 0xf21   : > { %v14771_v1 = vadd.f32 %v18560_v22, %v24925_v40  ;;  %v14765_v29 = vpop.f32.mrb[91].mxu1 }
 0xf22   : > { %v14766_v5 = vadd.f32 %v24925_v40, %v14765_v29 }
 0xf23   : > { %14902 = vst.msk [vmem:[%s24928_s1 + $0x38] sm:$0xff] %vm14894_vm13, %v14771_v1 }
 0xf24   : > { %14901 = vst.msk [vmem:[%s24928_s1 + $0x30] sm:$0xff] %vm14894_vm13, %v14766_v5  ;;  %v18563_v9 = vpop.f32.mrb[92].mxu1 }
 0xf25   : > { %v14781_v10 = vadd.f32 %v18563_v9, %v24925_v40  ;;  %v14775_v41 = vpop.f32.mrb[93].mxu1 }
 0xf26   : > { %v14776_v19 = vadd.f32 %v24925_v40, %v14775_v41 }
 0xf27   : > { %14904 = vst.msk [vmem:[%s24928_s1 + $0x48] sm:$0xff] %vm14894_vm13, %v14781_v10 }
 0xf28   : > { %14903 = vst.msk [vmem:[%s24928_s1 + $0x40] sm:$0xff] %vm14894_vm13, %v14776_v19  ;;  %v18566_v51 = vpop.f32.mrb[94].mxu1 }
 0xf29   : > { %v14791_v47 = vadd.f32 %v18566_v51, %v24925_v40  ;;  %v14785_v38 = vpop.f32.mrb[95].mxu1 }
 0xf2a   : > { %v14786_v42 = vadd.f32 %v24925_v40, %v14785_v38 }
 0xf2b   : > { %14906 = vst.msk [vmem:[%s24928_s1 + $0x58] sm:$0xff] %vm14894_vm13, %v14791_v47 }
 0xf2c   : > { %14905 = vst.msk [vmem:[%s24928_s1 + $0x50] sm:$0xff] %vm14894_vm13, %v14786_v42  ;;  %v18569_v49 = vpop.f32.mrb[96].mxu1 }
 0xf2d   : > { %v14801_v0 = vadd.f32 %v18569_v49, %v24925_v40  ;;  %v14795_v63 = vpop.f32.mrb[97].mxu1 }
 0xf2e   : > { %v14796_v12 = vadd.f32 %v24925_v40, %v14795_v63 }
 0xf2f   : > { %14908 = vst.msk [vmem:[%s24928_s1 + $0x68] sm:$0xff] %vm14894_vm13, %v14801_v0 }
 0xf30   : > { %14907 = vst.msk [vmem:[%s24928_s1 + $0x60] sm:$0xff] %vm14894_vm13, %v14796_v12  ;;  %v18572_v24 = vpop.f32.mrb[98].mxu1 }
 0xf31   : > { %v14811_v39 = vadd.f32 %v18572_v24, %v24925_v40  ;;  %v14805_v16 = vpop.f32.mrb[99].mxu1 }
 0xf32   : > { %v14806_v46 = vadd.f32 %v24925_v40, %v14805_v16 }
 0xf33   : > { %14910 = vst.msk [vmem:[%s24928_s1 + $0x78] sm:$0xff] %vm14894_vm13, %v14811_v39 }
 0xf34   : > { %14909 = vst.msk [vmem:[%s24928_s1 + $0x70] sm:$0xff] %vm14894_vm13, %v14806_v46  ;;  %v18575_v28 = vpop.f32.mrb[100].mxu1 }
 0xf35   : > { %v14821_v53 = vadd.f32 %v18575_v28, %v24925_v40  ;;  %v14815_v11 = vpop.f32.mrb[101].mxu1 }
 0xf36   : > { %v14816_v2 = vadd.f32 %v24925_v40, %v14815_v11 }
 0xf37   : > { %14912 = vst.msk [vmem:[%s24928_s1 + $0x88] sm:$0xff] %vm14894_vm13, %v14821_v53 }
 0xf38   : > { %14911 = vst.msk [vmem:[%s24928_s1 + $0x80] sm:$0xff] %vm14894_vm13, %v14816_v2  ;;  %v18578_v43 = vpop.f32.mrb[102].mxu1 }
 0xf39   : > { %v14831_v32 = vadd.f32 %v18578_v43, %v24925_v40  ;;  %v14825_v18 = vpop.f32.mrb[103].mxu1 }
 0xf3a   : > { %v14826_v21 = vadd.f32 %v24925_v40, %v14825_v18 }
 0xf3b   : > { %14914 = vst.msk [vmem:[%s24928_s1 + $0x98] sm:$0xff] %vm14894_vm13, %v14831_v32 }
 0xf3c   : > { %14913 = vst.msk [vmem:[%s24928_s1 + $0x90] sm:$0xff] %vm14894_vm13, %v14826_v21  ;;  %v18581_v27 = vpop.f32.mrb[104].mxu1 }
 0xf3d   : > { %v14841_v52 = vadd.f32 %v18581_v27, %v24925_v40  ;;  %v14835_v20 = vpop.f32.mrb[105].mxu1 }
 0xf3e   : > { %v14836_v33 = vadd.f32 %v24925_v40, %v14835_v20 }
 0xf3f   : > { %14916 = vst.msk [vmem:[%s24928_s1 + $0xa8] sm:$0xff] %vm14894_vm13, %v14841_v52 }
 0xf40   : > { %14915 = vst.msk [vmem:[%s24928_s1 + $0xa0] sm:$0xff] %vm14894_vm13, %v14836_v33  ;;  %v18584_v26 = vpop.f32.mrb[106].mxu1 }
 0xf41   : > { %v14851_v59 = vadd.f32 %v18584_v26, %v24925_v40  ;;  %v14845_v35 = vpop.f32.mrb[107].mxu1 }
 0xf42   : > { %v14846_v7 = vadd.f32 %v24925_v40, %v14845_v35 }
 0xf43   : > { %14918 = vst.msk [vmem:[%s24928_s1 + $0xb8] sm:$0xff] %vm14894_vm13, %v14851_v59 }
 0xf44   : > { %14917 = vst.msk [vmem:[%s24928_s1 + $0xb0] sm:$0xff] %vm14894_vm13, %v14846_v7  ;;  %v18587_v61 = vpop.f32.mrb[108].mxu1 }
 0xf45   : > { %v14861_v62 = vadd.f32 %v18587_v61, %v24925_v40  ;;  %v14855_v45 = vpop.f32.mrb[109].mxu1 }
 0xf46   : > { %v14856_v56 = vadd.f32 %v24925_v40, %v14855_v45 }
 0xf47   : > { %14920 = vst.msk [vmem:[%s24928_s1 + $0xc8] sm:$0xff] %vm14894_vm13, %v14861_v62 }
 0xf48   : > { %14919 = vst.msk [vmem:[%s24928_s1 + $0xc0] sm:$0xff] %vm14894_vm13, %v14856_v56  ;;  %v18590_v37 = vpop.f32.mrb[110].mxu1 }
 0xf49   : > { %v14871_v6 = vadd.f32 %v18590_v37, %v24925_v40  ;;  %v14865_v8 = vpop.f32.mrb[111].mxu1 }
 0xf4a   : > { %v14866_v4 = vadd.f32 %v24925_v40, %v14865_v8 }
 0xf4b   : > { %14922 = vst.msk [vmem:[%s24928_s1 + $0xd8] sm:$0xff] %vm14894_vm13, %v14871_v6 }
 0xf4c   : > { %14921 = vst.msk [vmem:[%s24928_s1 + $0xd0] sm:$0xff] %vm14894_vm13, %v14866_v4  ;;  %v18593_v13 = vpop.f32.mrb[112].mxu1 }
 0xf4d   : > { %v14881_v57 = vadd.f32 %v18593_v13, %v24925_v40  ;;  %v14875_v48 = vpop.f32.mrb[113].mxu1 }
 0xf4e   : > { %v14876_v54 = vadd.f32 %v24925_v40, %v14875_v48 }
 0xf4f   : > { %14924 = vst.msk [vmem:[%s24928_s1 + $0xe8] sm:$0xff] %vm14894_vm13, %v14881_v57 }
 0xf50   : > { %14923 = vst.msk [vmem:[%s24928_s1 + $0xe0] sm:$0xff] %vm14894_vm13, %v14876_v54  ;;  %v18596_v55 = vpop.f32.mrb[114].mxu1 }
 0xf51   : > { %v14891_v23 = vadd.f32 %v18596_v55, %v24925_v40  ;;  %v14885_v60 = vpop.f32.mrb[115].mxu1 }
 0xf52   : > { %v14886_v15 = vadd.f32 %v24925_v40, %v14885_v60 }
 0xf53   : > { %14926 = vst.msk [vmem:[%s24928_s1 + $0xf8] sm:$0xff] %vm14894_vm13, %v14891_v23 }
 0xf54   : > { %14925 = vst.msk [vmem:[%s24928_s1 + $0xf0] sm:$0xff] %vm14894_vm13, %v14886_v15 }
 0xf55 PF: > { %s93_s7 = sadd.s32 1, %s19887_s7  }
 0xf56   : > { %p90_p4 = scmp.ge.s32.totalorder %s93_s7, 4  }
 0xf58   :  { %92 = sbr.rel (!%p90_p4) target bundleno = 71 (0x47), region = 304 }

</bundles_post_ra>
